<compile_context>
chip_gen: v6e
topology: v6e:2x2x1
jax: 0.10.0
libtpu: 0.0.40
codegen_flags: <defaults>
</compile_context>

<pallas_src>
import functools

import jax
import jax.numpy as jnp
from jax.experimental import pallas as pl
from jax.experimental.pallas import tpu as pltpu

# ----------------------------- configuration (scaled-down B5) -----------------------------
STEM_C = 16          # stem output channels (B5: 48)
BLOCKB_EXP = 96      # MBConv6 expansion channels (16 * 6)
BLOCKB_C = 32        # MBConv6 output channels
NUM_FEATURES = 64    # head 1x1 conv output = classifier[1].in_features (B5: 2048)
NUM_CLASSES = 7
SE_C = 4             # squeeze-excite reduced channels
BN_EPS = 1e-3        # EfficientNet BatchNorm2d eps
BN1D_EPS = 1e-5      # nn.BatchNorm1d default eps
_PAD = 24            # zero rows above/below the per-image flattened activation (>= W+1, mult of 8)
_ROW_CHUNK = 128     # strip-mine depthwise accumulation over this many rows


# --------------------------------- in-kernel helpers ---------------------------------------
def _sigmoid(x):
    # exp goes to the EUP; approximate reciprocal (vrcp) keeps the divide off the VALU.
    return pl.reciprocal(1.0 + jnp.exp(-x), approx=True)


def _silu(x):
    return x * _sigmoid(x)


def _dw3x3(pad_ref, out_ref, dw_w, HW, W):
    """Depthwise 3x3 conv (stride 1, pad 1) on one image's rows flattened as h*W+w.

    The activation lives in `pad_ref` interior rows [_PAD, _PAD+HW); the pad rows are zero,
    so vertical (h) borders need no masks.  Only the horizontal wrap (w==0 for left taps,
    w==W-1 for right taps) is masked.  Accumulation is strip-mined over _ROW_CHUNK-row
    chunks (keeps acc + tap live ranges inside the vreg file) and written into `out_ref`.
    dw_w: [9, C] with the BatchNorm scale already folded in.
    """
    C = dw_w.shape[1]
    for r0 in range(0, HW, _ROW_CHUNK):
        m = min(_ROW_CHUNK, HW - r0)
        w_idx = (jax.lax.broadcasted_iota(jnp.int32, (m, 1), 0) + r0) % W
        left_ok = w_idx != 0
        right_ok = w_idx != (W - 1)
        acc = jnp.zeros((m, C), jnp.float32)
        for di in range(3):
            for dj in range(3):
                off = (di - 1) * W + (dj - 1)
                tap = pad_ref[pl.ds(_PAD + r0 + off, m), :]
                if dj == 0:
                    tap = jnp.where(left_ok, tap, 0.0)
                elif dj == 2:
                    tap = jnp.where(right_ok, tap, 0.0)
                t = di * 3 + dj
                acc = acc + tap * dw_w[t:t + 1, :]
        out_ref[pl.ds(r0, m), :] = acc


def _se(h, w1, b1, w2, b2):
    """Squeeze-excite for a single image: GAP over rows, two tiny FCs, row rescale."""
    pooled = jnp.mean(h, axis=0, keepdims=True)                                # [1, C]
    s = _silu(jnp.dot(pooled, w1, preferred_element_type=jnp.float32) + b1)    # [1, SE_C]
    s = _sigmoid(jnp.dot(s, w2, preferred_element_type=jnp.float32) + b2)      # [1, C]
    return h * s


# ----------------------------------- fused kernel ------------------------------------------
def effnet_kernel(patches_ref,
                  stem_w_ref, stem_b_ref,
                  dwA_w_ref, dwA_b_ref, seA_w1_ref, seA_b1_ref, seA_w2_ref, seA_b2_ref,
                  projA_w_ref, projA_b_ref,
                  expB_w_ref, expB_b_ref, dwB_w_ref, dwB_b_ref,
                  seB_w1_ref, seB_b1_ref, seB_w2_ref, seB_b2_ref,
                  projB_w_ref, projB_b_ref,
                  head_w_ref, head_b_ref,
                  c1w_ref, c1b_ref, c2w_ref, c2b_ref, c3w_ref, c3b_ref,
                  o_ref,
                  padA_ref, accA_ref, padB_ref, accB_ref, dsel_ref,
                  *, H, W):
    HW = H * W
    Hb, Wb = H // 2, W // 2

    # ---- stem: 3x3/s2 conv (im2col matmul) + folded BN + SiLU ------------------------------
    x0 = _silu(jnp.dot(patches_ref[0], stem_w_ref[...],
                       preferred_element_type=jnp.float32) + stem_b_ref[...])     # [HW, STEM_C]

    # ---- MBConv1 (block A): dw3x3/s1 + SE + 1x1 proj + residual ----------------------------
    # zero only the pad rows; write the block input into the interior.
    padA_ref[pl.ds(0, _PAD), :] = jnp.zeros((_PAD, STEM_C), jnp.float32)
    padA_ref[pl.ds(_PAD + HW, _PAD), :] = jnp.zeros((_PAD, STEM_C), jnp.float32)
    padA_ref[pl.ds(_PAD, HW), :] = x0
    _dw3x3(padA_ref, accA_ref, dwA_w_ref[...], HW, W)
    h = _silu(accA_ref[...] + dwA_b_ref[...])
    h = _se(h, seA_w1_ref[...], seA_b1_ref[...], seA_w2_ref[...], seA_b2_ref[...])
    # residual read comes back from the scratch interior (keeps x0's live range short).
    xA = (jnp.dot(h, projA_w_ref[...], preferred_element_type=jnp.float32)
          + projA_b_ref[...] + padA_ref[pl.ds(_PAD, HW), :])                      # [HW, STEM_C]

    # ---- MBConv6/s2 (block B): 1x1 expand + dw3x3/s2 + SE + 1x1 proj -----------------------
    padB_ref[pl.ds(0, _PAD), :] = jnp.zeros((_PAD, BLOCKB_EXP), jnp.float32)
    padB_ref[pl.ds(_PAD + HW, _PAD), :] = jnp.zeros((_PAD, BLOCKB_EXP), jnp.float32)
    # SiLU'd expansion is written straight into the padded scratch interior (no extra copy).
    padB_ref[pl.ds(_PAD, HW), :] = _silu(
        jnp.dot(xA, expB_w_ref[...], preferred_element_type=jnp.float32) + expB_b_ref[...])
    _dw3x3(padB_ref, accB_ref, dwB_w_ref[...], HW, W)
    # in-kernel stride-2 selection (PyTorch k=3,s=2,p=1 centers (2*oh, 2*ow)): per output row,
    # a strided read picks the even-w columns of the even-h row from the full-res accumulator.
    for oh in range(Hb):
        dsel_ref[pl.ds(oh * Wb, Wb), :] = accB_ref[pl.ds(2 * oh * W, Wb, 2), :]
    d = _silu(dsel_ref[...] + dwB_b_ref[...])                                     # [Hb*Wb, EXP]
    d = _se(d, seB_w1_ref[...], seB_b1_ref[...], seB_w2_ref[...], seB_b2_ref[...])
    # 1x1 projection with folded BN (no activation; no residual: stride 2 + channel change)
    xB = jnp.dot(d, projB_w_ref[...], preferred_element_type=jnp.float32) + projB_b_ref[...]

    # ---- head 1x1 + BN + SiLU, global average pool, classifier (BN1d folded) ---------------
    hh = _silu(jnp.dot(xB, head_w_ref[...], preferred_element_type=jnp.float32) + head_b_ref[...])
    f = jnp.mean(hh, axis=0, keepdims=True)                                       # [1, FEAT]
    h1 = jnp.maximum(jnp.dot(f, c1w_ref[...], preferred_element_type=jnp.float32) + c1b_ref[...], 0.0)
    h2 = jnp.maximum(jnp.dot(h1, c2w_ref[...], preferred_element_type=jnp.float32) + c2b_ref[...], 0.0)
    logits = jnp.dot(h2, c3w_ref[...], preferred_element_type=jnp.float32) + c3b_ref[...]
    o_ref[...] = logits.reshape(1, 1, NUM_CLASSES)


# -------------------------------- glue / weight folding -------------------------------------
def _fold_bn(bn, eps):
    scale = bn["gamma"] / jnp.sqrt(bn["var"] + eps)
    shift = bn["beta"] - bn["mean"] * scale
    return scale.astype(jnp.float32), shift.astype(jnp.float32)


def _stem_patches(x_nhwc):
    """im2col for the 3-channel stem only (k=3, stride=2, pad=1): [N, Ho*Wo, 27]."""
    # TODO(synk): at real 456x456 resolution move this in-kernel (padded-input shifted reads).
    N, H, W, _ = x_nhwc.shape
    xp = jnp.pad(x_nhwc, ((0, 0), (1, 1), (1, 1), (0, 0)))
    Ho, Wo = H // 2, W // 2
    cols = [xp[:, i:i + 2 * Ho:2, j:j + 2 * Wo:2, :] for i in range(3) for j in range(3)]
    patches = jnp.stack(cols, axis=3)                      # [N, Ho, Wo, 9, 3]
    return patches.reshape(N, Ho * Wo, 27), (N, Ho, Wo)


def _resident(shape):
    """BlockSpec for a weight that stays resident across the batch grid."""
    return pl.BlockSpec(shape, lambda n, _r=len(shape): (0,) * _r)


def forward(params, x_nchw):
    # layout: NCHW (PyTorch) -> NHWC / per-image flattened [H*W, C] for all TPU kernel compute.
    x = jnp.transpose(x_nchw, (0, 2, 3, 1)).astype(jnp.float32)
    patches, (N, Ho, Wo) = _stem_patches(x)                 # [N, 256, 27]
    HW = Ho * Wo

    p = params
    # ---- fold every BatchNorm into the adjacent matmul / depthwise weights ----
    sc, sh = _fold_bn(p["stem"]["bn"], BN_EPS)
    stem_w = jnp.transpose(p["stem"]["w"], (2, 3, 1, 0)).reshape(-1, STEM_C) * sc[None, :]
    stem_b = sh[None, :]

    a = p["blockA"]
    sc, sh = _fold_bn(a["dw_bn"], BN_EPS)
    dwA_w = a["dw_w"].reshape(STEM_C, 9).T * sc[None, :]
    dwA_b = sh[None, :]
    seA_w1 = a["se_w1"].reshape(SE_C, STEM_C).T
    seA_b1 = a["se_b1"][None, :]
    seA_w2 = a["se_w2"].reshape(STEM_C, SE_C).T
    seA_b2 = a["se_b2"][None, :]
    sc, sh = _fold_bn(a["proj_bn"], BN_EPS)
    projA_w = a["proj_w"].reshape(STEM_C, STEM_C).T * sc[None, :]
    projA_b = sh[None, :]

    b = p["blockB"]
    sc, sh = _fold_bn(b["exp_bn"], BN_EPS)
    expB_w = b["exp_w"].reshape(BLOCKB_EXP, STEM_C).T * sc[None, :]
    expB_b = sh[None, :]
    sc, sh = _fold_bn(b["dw_bn"], BN_EPS)
    dwB_w = b["dw_w"].reshape(BLOCKB_EXP, 9).T * sc[None, :]
    dwB_b = sh[None, :]
    seB_w1 = b["se_w1"].reshape(SE_C, BLOCKB_EXP).T
    seB_b1 = b["se_b1"][None, :]
    seB_w2 = b["se_w2"].reshape(BLOCKB_EXP, SE_C).T
    seB_b2 = b["se_b2"][None, :]
    sc, sh = _fold_bn(b["proj_bn"], BN_EPS)
    projB_w = b["proj_w"].reshape(BLOCKB_C, BLOCKB_EXP).T * sc[None, :]
    projB_b = sh[None, :]

    sc, sh = _fold_bn(p["head"]["bn"], BN_EPS)
    head_w = p["head"]["w"].reshape(NUM_FEATURES, BLOCKB_C).T * sc[None, :]
    head_b = sh[None, :]

    c = p["classifier"]
    s1, t1 = _fold_bn(c["bn1"], BN1D_EPS)
    c1w = c["lin1_w"].T * s1[None, :]
    c1b = (c["lin1_b"] * s1 + t1)[None, :]
    s2, t2 = _fold_bn(c["bn2"], BN1D_EPS)
    c2w = c["lin2_w"].T * s2[None, :]
    c2b = (c["lin2_b"] * s2 + t2)[None, :]
    c3w = c["lin3_w"].T
    c3b = c["lin3_b"][None, :]

    weights = [stem_w, stem_b,
               dwA_w, dwA_b, seA_w1, seA_b1, seA_w2, seA_b2, projA_w, projA_b,
               expB_w, expB_b, dwB_w, dwB_b, seB_w1, seB_b1, seB_w2, seB_b2, projB_w, projB_b,
               head_w, head_b, c1w, c1b, c2w, c2b, c3w, c3b]

    # ------------------ ONE fused pallas kernel, batch-parallel over images -----------------
    out = pl.pallas_call(
        functools.partial(effnet_kernel, H=Ho, W=Wo),
        out_shape=jax.ShapeDtypeStruct((N, 1, NUM_CLASSES), jnp.float32),
        grid=(N,),
        in_specs=[pl.BlockSpec((1, HW, 27), lambda n: (n, 0, 0))]
                 + [_resident(w.shape) for w in weights],
        out_specs=pl.BlockSpec((1, 1, NUM_CLASSES), lambda n: (n, 0, 0)),
        scratch_shapes=[
            pltpu.VMEM((HW + 2 * _PAD, STEM_C), jnp.float32),      # padded block-A activation
            pltpu.VMEM((HW, STEM_C), jnp.float32),                 # block-A dw accumulator
            pltpu.VMEM((HW + 2 * _PAD, BLOCKB_EXP), jnp.float32),  # padded block-B expansion
            pltpu.VMEM((HW, BLOCKB_EXP), jnp.float32),             # block-B dw accumulator
            pltpu.VMEM((HW // 4, BLOCKB_EXP), jnp.float32),        # stride-2 selected rows
        ],
        compiler_params=pltpu.CompilerParams(dimension_semantics=("parallel",)),
    )(patches, *weights)
    return out.reshape(N, NUM_CLASSES)


# ---------------------------------- parameter init ------------------------------------------
def _conv_w(key, cout, cin, k):
    return 0.1 * jax.random.normal(key, (cout, cin, k, k), jnp.float32)


def _bn(key, c):
    k1, k2, k3, k4 = jax.random.split(key, 4)
    return dict(
        gamma=1.0 + 0.1 * jax.random.normal(k1, (c,), jnp.float32),
        beta=0.1 * jax.random.normal(k2, (c,), jnp.float32),
        mean=0.1 * jax.random.normal(k3, (c,), jnp.float32),
        var=1.0 + 0.1 * jnp.abs(jax.random.normal(k4, (c,), jnp.float32)),
    )


def init_params(key):
    keys = iter(jax.random.split(key, 40))
    nk = lambda: next(keys)
    params = {}
    params["stem"] = dict(w=_conv_w(nk(), STEM_C, 3, 3), bn=_bn(nk(), STEM_C))
    params["blockA"] = dict(
        dw_w=_conv_w(nk(), STEM_C, 1, 3), dw_bn=_bn(nk(), STEM_C),
        se_w1=_conv_w(nk(), SE_C, STEM_C, 1), se_b1=0.1 * jax.random.normal(nk(), (SE_C,)),
        se_w2=_conv_w(nk(), STEM_C, SE_C, 1), se_b2=0.1 * jax.random.normal(nk(), (STEM_C,)),
        proj_w=_conv_w(nk(), STEM_C, STEM_C, 1), proj_bn=_bn(nk(), STEM_C),
    )
    params["blockB"] = dict(
        exp_w=_conv_w(nk(), BLOCKB_EXP, STEM_C, 1), exp_bn=_bn(nk(), BLOCKB_EXP),
        dw_w=_conv_w(nk(), BLOCKB_EXP, 1, 3), dw_bn=_bn(nk(), BLOCKB_EXP),
        se_w1=_conv_w(nk(), SE_C, BLOCKB_EXP, 1), se_b1=0.1 * jax.random.normal(nk(), (SE_C,)),
        se_w2=_conv_w(nk(), BLOCKB_EXP, SE_C, 1), se_b2=0.1 * jax.random.normal(nk(), (BLOCKB_EXP,)),
        proj_w=_conv_w(nk(), BLOCKB_C, BLOCKB_EXP, 1), proj_bn=_bn(nk(), BLOCKB_C),
    )
    params["head"] = dict(w=_conv_w(nk(), NUM_FEATURES, BLOCKB_C, 1), bn=_bn(nk(), NUM_FEATURES))
    F = NUM_FEATURES
    params["classifier"] = dict(
        lin1_w=0.1 * jax.random.normal(nk(), (F // 2, F)), lin1_b=0.1 * jax.random.normal(nk(), (F // 2,)),
        bn1=_bn(nk(), F // 2),
        lin2_w=0.1 * jax.random.normal(nk(), (F // 4, F // 2)), lin2_b=0.1 * jax.random.normal(nk(), (F // 4,)),
        bn2=_bn(nk(), F // 4),
        lin3_w=0.1 * jax.random.normal(nk(), (NUM_CLASSES, F // 4)), lin3_b=0.1 * jax.random.normal(nk(), (NUM_CLASSES,)),
    )
    return params


# --------------------------------------- main ------------------------------------------------
if __name__ == "__main__":
    key = jax.random.PRNGKey(0)
    kp, kx = jax.random.split(key)
    params = init_params(kp)

    # PyTorch convention: NCHW input.
    x = jax.random.normal(kx, (2, 3, 32, 32), jnp.float32)

    out = jax.jit(forward)(params, x)
    jax.block_until_ready(out)
    assert out.shape == (2, NUM_CLASSES), out.shape
    assert out.dtype == jnp.float32
    assert bool(jnp.all(jnp.isfinite(out)))
    print("KERNEL_OK")
</pallas_src>

<mosaic_0001>
module attributes {stable_mosaic.version = 11 : i64} {
  func.func @effnet_kernel(%arg0: i32, %arg1: memref<1x256x27xf32, #tpu.memory_space<vmem>>, %arg2: memref<27x16xf32, #tpu.memory_space<vmem>>, %arg3: memref<1x16xf32, #tpu.memory_space<vmem>>, %arg4: memref<9x16xf32, #tpu.memory_space<vmem>>, %arg5: memref<1x16xf32, #tpu.memory_space<vmem>>, %arg6: memref<16x4xf32, #tpu.memory_space<vmem>>, %arg7: memref<1x4xf32, #tpu.memory_space<vmem>>, %arg8: memref<4x16xf32, #tpu.memory_space<vmem>>, %arg9: memref<1x16xf32, #tpu.memory_space<vmem>>, %arg10: memref<16x16xf32, #tpu.memory_space<vmem>>, %arg11: memref<1x16xf32, #tpu.memory_space<vmem>>, %arg12: memref<16x96xf32, #tpu.memory_space<vmem>>, %arg13: memref<1x96xf32, #tpu.memory_space<vmem>>, %arg14: memref<9x96xf32, #tpu.memory_space<vmem>>, %arg15: memref<1x96xf32, #tpu.memory_space<vmem>>, %arg16: memref<96x4xf32, #tpu.memory_space<vmem>>, %arg17: memref<1x4xf32, #tpu.memory_space<vmem>>, %arg18: memref<4x96xf32, #tpu.memory_space<vmem>>, %arg19: memref<1x96xf32, #tpu.memory_space<vmem>>, %arg20: memref<96x32xf32, #tpu.memory_space<vmem>>, %arg21: memref<1x32xf32, #tpu.memory_space<vmem>>, %arg22: memref<32x64xf32, #tpu.memory_space<vmem>>, %arg23: memref<1x64xf32, #tpu.memory_space<vmem>>, %arg24: memref<64x32xf32, #tpu.memory_space<vmem>>, %arg25: memref<1x32xf32, #tpu.memory_space<vmem>>, %arg26: memref<32x16xf32, #tpu.memory_space<vmem>>, %arg27: memref<1x16xf32, #tpu.memory_space<vmem>>, %arg28: memref<16x7xf32, #tpu.memory_space<vmem>>, %arg29: memref<1x7xf32, #tpu.memory_space<vmem>>, %arg30: memref<1x1x7xf32, #tpu.memory_space<vmem>>, %arg31: memref<304x16xf32, #tpu.memory_space<vmem>>, %arg32: memref<256x16xf32, #tpu.memory_space<vmem>>, %arg33: memref<304x96xf32, #tpu.memory_space<vmem>>, %arg34: memref<256x96xf32, #tpu.memory_space<vmem>>, %arg35: memref<64x96xf32, #tpu.memory_space<vmem>>) attributes {dimension_semantics = [#tpu.dimension_semantics<parallel>], iteration_bounds = array<i64: 2>, scalar_prefetch = 0 : i64, scratch_operands = 5 : i64, tpu.core_type = #tpu.core_type<tc>, window_params = [{transform_indices = @transform_0, window_bounds = array<i64: 1, 256, 27>}, {pipeline_mode = #tpu.pipeline_mode<synchronous>, transform_indices = @transform_1, window_bounds = array<i64: 27, 16>}, {pipeline_mode = #tpu.pipeline_mode<synchronous>, transform_indices = @transform_2, window_bounds = array<i64: 1, 16>}, {pipeline_mode = #tpu.pipeline_mode<synchronous>, transform_indices = @transform_3, window_bounds = array<i64: 9, 16>}, {pipeline_mode = #tpu.pipeline_mode<synchronous>, transform_indices = @transform_4, window_bounds = array<i64: 1, 16>}, {pipeline_mode = #tpu.pipeline_mode<synchronous>, transform_indices = @transform_5, window_bounds = array<i64: 16, 4>}, {pipeline_mode = #tpu.pipeline_mode<synchronous>, transform_indices = @transform_6, window_bounds = array<i64: 1, 4>}, {pipeline_mode = #tpu.pipeline_mode<synchronous>, transform_indices = @transform_7, window_bounds = array<i64: 4, 16>}, {pipeline_mode = #tpu.pipeline_mode<synchronous>, transform_indices = @transform_8, window_bounds = array<i64: 1, 16>}, {pipeline_mode = #tpu.pipeline_mode<synchronous>, transform_indices = @transform_9, window_bounds = array<i64: 16, 16>}, {pipeline_mode = #tpu.pipeline_mode<synchronous>, transform_indices = @transform_10, window_bounds = array<i64: 1, 16>}, {pipeline_mode = #tpu.pipeline_mode<synchronous>, transform_indices = @transform_11, window_bounds = array<i64: 16, 96>}, {pipeline_mode = #tpu.pipeline_mode<synchronous>, transform_indices = @transform_12, window_bounds = array<i64: 1, 96>}, {pipeline_mode = #tpu.pipeline_mode<synchronous>, transform_indices = @transform_13, window_bounds = array<i64: 9, 96>}, {pipeline_mode = #tpu.pipeline_mode<synchronous>, transform_indices = @transform_14, window_bounds = array<i64: 1, 96>}, {pipeline_mode = #tpu.pipeline_mode<synchronous>, transform_indices = @transform_15, window_bounds = array<i64: 96, 4>}, {pipeline_mode = #tpu.pipeline_mode<synchronous>, transform_indices = @transform_16, window_bounds = array<i64: 1, 4>}, {pipeline_mode = #tpu.pipeline_mode<synchronous>, transform_indices = @transform_17, window_bounds = array<i64: 4, 96>}, {pipeline_mode = #tpu.pipeline_mode<synchronous>, transform_indices = @transform_18, window_bounds = array<i64: 1, 96>}, {pipeline_mode = #tpu.pipeline_mode<synchronous>, transform_indices = @transform_19, window_bounds = array<i64: 96, 32>}, {pipeline_mode = #tpu.pipeline_mode<synchronous>, transform_indices = @transform_20, window_bounds = array<i64: 1, 32>}, {pipeline_mode = #tpu.pipeline_mode<synchronous>, transform_indices = @transform_21, window_bounds = array<i64: 32, 64>}, {pipeline_mode = #tpu.pipeline_mode<synchronous>, transform_indices = @transform_22, window_bounds = array<i64: 1, 64>}, {pipeline_mode = #tpu.pipeline_mode<synchronous>, transform_indices = @transform_23, window_bounds = array<i64: 64, 32>}, {pipeline_mode = #tpu.pipeline_mode<synchronous>, transform_indices = @transform_24, window_bounds = array<i64: 1, 32>}, {pipeline_mode = #tpu.pipeline_mode<synchronous>, transform_indices = @transform_25, window_bounds = array<i64: 32, 16>}, {pipeline_mode = #tpu.pipeline_mode<synchronous>, transform_indices = @transform_26, window_bounds = array<i64: 1, 16>}, {pipeline_mode = #tpu.pipeline_mode<synchronous>, transform_indices = @transform_27, window_bounds = array<i64: 16, 7>}, {pipeline_mode = #tpu.pipeline_mode<synchronous>, transform_indices = @transform_28, window_bounds = array<i64: 1, 7>}, {transform_indices = @transform_29, window_bounds = array<i64: 1, 1, 7>}]} {
    %c0 = arith.constant 0 : index
    %c0_0 = arith.constant 0 : index
    %c0_1 = arith.constant 0 : index
    %0 = vector.load %arg1[%c0, %c0_0, %c0_1] : memref<1x256x27xf32, #tpu.memory_space<vmem>>, vector<1x256x27xf32>
    %1 = vector.shape_cast %0 : vector<1x256x27xf32> to vector<256x27xf32>
    %c0_2 = arith.constant 0 : index
    %c0_3 = arith.constant 0 : index
    %2 = vector.load %arg2[%c0_2, %c0_3] : memref<27x16xf32, #tpu.memory_space<vmem>>, vector<27x16xf32>
    %cst = arith.constant dense<0.000000e+00> : vector<256x16xf32>
    %3 = tpu.matmul %1, %2, %cst {dimension_numbers = #tpu.dot_dimension_numbers<[1], [0], [0], [1], [0, 0, 1, 1], [], []>} : vector<256x27xf32>, vector<27x16xf32>, vector<256x16xf32> -> vector<256x16xf32>
    %c0_4 = arith.constant 0 : index
    %c0_5 = arith.constant 0 : index
    %4 = vector.load %arg3[%c0_4, %c0_5] : memref<1x16xf32, #tpu.memory_space<vmem>>, vector<1x16xf32>
    %5 = vector.broadcast %4 : vector<1x16xf32> to vector<256x16xf32>
    %6 = arith.addf %3, %5 : vector<256x16xf32>
    %cst_6 = arith.constant 0.000000e+00 : f32
    %7 = vector.broadcast %cst_6 : f32 to vector<256x16xf32>
    %8 = arith.subf %7, %6 : vector<256x16xf32>
    %9 = math.exp %8 : vector<256x16xf32>
    %cst_7 = arith.constant 1.000000e+00 : f32
    %10 = vector.broadcast %cst_7 : f32 to vector<256x16xf32>
    %11 = arith.addf %10, %9 : vector<256x16xf32>
    %12 = tpu.reciprocal %11 {approx = true} : vector<256x16xf32> -> vector<256x16xf32>
    %13 = arith.mulf %6, %12 : vector<256x16xf32>
    %cst_8 = arith.constant 0.000000e+00 : f32
    %14 = vector.broadcast %cst_8 : f32 to vector<24x16xf32>
    %c0_9 = arith.constant 0 : index
    %c0_10 = arith.constant 0 : index
    %15 = vector.load %arg31[%c0_9, %c0_10] : memref<304x16xf32, #tpu.memory_space<vmem>>, vector<24x16xf32>
    tpu.vector_store %arg31[%c0_9, %c0_10], %14 {strides = array<i32>} : memref<304x16xf32, #tpu.memory_space<vmem>>, vector<24x16xf32>,
    %cst_11 = arith.constant 0.000000e+00 : f32
    %16 = vector.broadcast %cst_11 : f32 to vector<24x16xf32>
    %c280 = arith.constant 280 : index
    %c0_12 = arith.constant 0 : index
    %17 = vector.load %arg31[%c280, %c0_12] : memref<304x16xf32, #tpu.memory_space<vmem>>, vector<24x16xf32>
    tpu.vector_store %arg31[%c280, %c0_12], %16 {strides = array<i32>} : memref<304x16xf32, #tpu.memory_space<vmem>>, vector<24x16xf32>,
    %c24 = arith.constant 24 : index
    %c0_13 = arith.constant 0 : index
    %18 = vector.load %arg31[%c24, %c0_13] : memref<304x16xf32, #tpu.memory_space<vmem>>, vector<256x16xf32>
    tpu.vector_store %arg31[%c24, %c0_13], %13 {strides = array<i32>} : memref<304x16xf32, #tpu.memory_space<vmem>>, vector<256x16xf32>,
    %c0_14 = arith.constant 0 : index
    %c0_15 = arith.constant 0 : index
    %19 = vector.load %arg4[%c0_14, %c0_15] : memref<9x16xf32, #tpu.memory_space<vmem>>, vector<9x16xf32>
    %20 = tpu.iota {dimensions = array<i32: 0>} : vector<128x1xi32>
    %c0_i32 = arith.constant 0 : i32
    %21 = vector.broadcast %c0_i32 : i32 to vector<128x1xi32>
    %22 = arith.addi %20, %21 : vector<128x1xi32>
    %c16_i32 = arith.constant 16 : i32
    %c0_i32_16 = arith.constant 0 : i32
    %23 = arith.cmpi eq, %c16_i32, %c0_i32_16 : i32
    %c1_i32 = arith.constant 1 : i32
    %24 = arith.select %23, %c1_i32, %c16_i32 : i32
    %25 = vector.broadcast %24 : i32 to vector<128x1xi32>
    %26 = arith.remsi %22, %25 : vector<128x1xi32>
    %c0_i32_17 = arith.constant 0 : i32
    %27 = vector.broadcast %c0_i32_17 : i32 to vector<128x1xi32>
    %28 = arith.cmpi ne, %26, %27 : vector<128x1xi32>
    %c0_i32_18 = arith.constant 0 : i32
    %29 = vector.broadcast %c0_i32_18 : i32 to vector<128x1xi32>
    %30 = arith.cmpi slt, %26, %29 : vector<128x1xi32>
    %c0_i32_19 = arith.constant 0 : i32
    %31 = arith.cmpi slt, %24, %c0_i32_19 : i32
    %32 = vector.broadcast %31 : i1 to vector<128x1xi1>
    %33 = vector.broadcast %32 : vector<128x1xi1> to vector<128x1xi1>
    %34 = arith.xori %30, %33 : vector<128x1xi1>
    %35 = arith.andi %34, %28 : vector<128x1xi1>
    %36 = vector.broadcast %24 : i32 to vector<128x1xi32>
    %37 = arith.addi %26, %36 : vector<128x1xi32>
    %38 = arith.select %35, %37, %26 : vector<128x1xi1>, vector<128x1xi32>
    %c0_i32_20 = arith.constant 0 : i32
    %39 = vector.broadcast %c0_i32_20 : i32 to vector<128x1xi32>
    %40 = arith.cmpi ne, %38, %39 : vector<128x1xi32>
    %c15_i32 = arith.constant 15 : i32
    %41 = vector.broadcast %c15_i32 : i32 to vector<128x1xi32>
    %42 = arith.cmpi ne, %38, %41 : vector<128x1xi32>
    %cst_21 = arith.constant 0.000000e+00 : f32
    %43 = vector.broadcast %cst_21 : f32 to vector<128x16xf32>
    %c7 = arith.constant 7 : index
    %c0_22 = arith.constant 0 : index
    %44 = vector.load %arg31[%c7, %c0_22] : memref<304x16xf32, #tpu.memory_space<vmem>>, vector<128x16xf32>
    %cst_23 = arith.constant 0.000000e+00 : f32
    %45 = vector.shape_cast %40 : vector<128x1xi1> to vector<128x1xi1>
    %46 = vector.broadcast %45 : vector<128x1xi1> to vector<128x16xi1>
    %47 = vector.broadcast %cst_23 : f32 to vector<128x16xf32>
    %48 = arith.select %46, %44, %47 : vector<128x16xi1>, vector<128x16xf32>
    %49 = vector.extract_strided_slice %19 {offsets = [0, 0], sizes = [1, 16], strides = [1, 1]} : vector<9x16xf32> to vector<1x16xf32>
    %50 = vector.broadcast %49 : vector<1x16xf32> to vector<128x16xf32>
    %51 = arith.mulf %48, %50 : vector<128x16xf32>
    %52 = arith.addf %43, %51 : vector<128x16xf32>
    %c8 = arith.constant 8 : index
    %c0_24 = arith.constant 0 : index
    %53 = vector.load %arg31[%c8, %c0_24] : memref<304x16xf32, #tpu.memory_space<vmem>>, vector<128x16xf32>
    %54 = vector.extract_strided_slice %19 {offsets = [1, 0], sizes = [1, 16], strides = [1, 1]} : vector<9x16xf32> to vector<1x16xf32>
    %55 = vector.broadcast %54 : vector<1x16xf32> to vector<128x16xf32>
    %56 = arith.mulf %53, %55 : vector<128x16xf32>
    %57 = arith.addf %52, %56 : vector<128x16xf32>
    %c9 = arith.constant 9 : index
    %c0_25 = arith.constant 0 : index
    %58 = vector.load %arg31[%c9, %c0_25] : memref<304x16xf32, #tpu.memory_space<vmem>>, vector<128x16xf32>
    %cst_26 = arith.constant 0.000000e+00 : f32
    %59 = vector.shape_cast %42 : vector<128x1xi1> to vector<128x1xi1>
    %60 = vector.broadcast %59 : vector<128x1xi1> to vector<128x16xi1>
    %61 = vector.broadcast %cst_26 : f32 to vector<128x16xf32>
    %62 = arith.select %60, %58, %61 : vector<128x16xi1>, vector<128x16xf32>
    %63 = vector.extract_strided_slice %19 {offsets = [2, 0], sizes = [1, 16], strides = [1, 1]} : vector<9x16xf32> to vector<1x16xf32>
    %64 = vector.broadcast %63 : vector<1x16xf32> to vector<128x16xf32>
    %65 = arith.mulf %62, %64 : vector<128x16xf32>
    %66 = arith.addf %57, %65 : vector<128x16xf32>
    %c23 = arith.constant 23 : index
    %c0_27 = arith.constant 0 : index
    %67 = vector.load %arg31[%c23, %c0_27] : memref<304x16xf32, #tpu.memory_space<vmem>>, vector<128x16xf32>
    %cst_28 = arith.constant 0.000000e+00 : f32
    %68 = vector.shape_cast %40 : vector<128x1xi1> to vector<128x1xi1>
    %69 = vector.broadcast %68 : vector<128x1xi1> to vector<128x16xi1>
    %70 = vector.broadcast %cst_28 : f32 to vector<128x16xf32>
    %71 = arith.select %69, %67, %70 : vector<128x16xi1>, vector<128x16xf32>
    %72 = vector.extract_strided_slice %19 {offsets = [3, 0], sizes = [1, 16], strides = [1, 1]} : vector<9x16xf32> to vector<1x16xf32>
    %73 = vector.broadcast %72 : vector<1x16xf32> to vector<128x16xf32>
    %74 = arith.mulf %71, %73 : vector<128x16xf32>
    %75 = arith.addf %66, %74 : vector<128x16xf32>
    %c24_29 = arith.constant 24 : index
    %c0_30 = arith.constant 0 : index
    %76 = vector.load %arg31[%c24_29, %c0_30] : memref<304x16xf32, #tpu.memory_space<vmem>>, vector<128x16xf32>
    %77 = vector.extract_strided_slice %19 {offsets = [4, 0], sizes = [1, 16], strides = [1, 1]} : vector<9x16xf32> to vector<1x16xf32>
    %78 = vector.broadcast %77 : vector<1x16xf32> to vector<128x16xf32>
    %79 = arith.mulf %76, %78 : vector<128x16xf32>
    %80 = arith.addf %75, %79 : vector<128x16xf32>
    %c25 = arith.constant 25 : index
    %c0_31 = arith.constant 0 : index
    %81 = vector.load %arg31[%c25, %c0_31] : memref<304x16xf32, #tpu.memory_space<vmem>>, vector<128x16xf32>
    %cst_32 = arith.constant 0.000000e+00 : f32
    %82 = vector.shape_cast %42 : vector<128x1xi1> to vector<128x1xi1>
    %83 = vector.broadcast %82 : vector<128x1xi1> to vector<128x16xi1>
    %84 = vector.broadcast %cst_32 : f32 to vector<128x16xf32>
    %85 = arith.select %83, %81, %84 : vector<128x16xi1>, vector<128x16xf32>
    %86 = vector.extract_strided_slice %19 {offsets = [5, 0], sizes = [1, 16], strides = [1, 1]} : vector<9x16xf32> to vector<1x16xf32>
    %87 = vector.broadcast %86 : vector<1x16xf32> to vector<128x16xf32>
    %88 = arith.mulf %85, %87 : vector<128x16xf32>
    %89 = arith.addf %80, %88 : vector<128x16xf32>
    %c39 = arith.constant 39 : index
    %c0_33 = arith.constant 0 : index
    %90 = vector.load %arg31[%c39, %c0_33] : memref<304x16xf32, #tpu.memory_space<vmem>>, vector<128x16xf32>
    %cst_34 = arith.constant 0.000000e+00 : f32
    %91 = vector.shape_cast %40 : vector<128x1xi1> to vector<128x1xi1>
    %92 = vector.broadcast %91 : vector<128x1xi1> to vector<128x16xi1>
    %93 = vector.broadcast %cst_34 : f32 to vector<128x16xf32>
    %94 = arith.select %92, %90, %93 : vector<128x16xi1>, vector<128x16xf32>
    %95 = vector.extract_strided_slice %19 {offsets = [6, 0], sizes = [1, 16], strides = [1, 1]} : vector<9x16xf32> to vector<1x16xf32>
    %96 = vector.broadcast %95 : vector<1x16xf32> to vector<128x16xf32>
    %97 = arith.mulf %94, %96 : vector<128x16xf32>
    %98 = arith.addf %89, %97 : vector<128x16xf32>
    %c40 = arith.constant 40 : index
    %c0_35 = arith.constant 0 : index
    %99 = vector.load %arg31[%c40, %c0_35] : memref<304x16xf32, #tpu.memory_space<vmem>>, vector<128x16xf32>
    %100 = vector.extract_strided_slice %19 {offsets = [7, 0], sizes = [1, 16], strides = [1, 1]} : vector<9x16xf32> to vector<1x16xf32>
    %101 = vector.broadcast %100 : vector<1x16xf32> to vector<128x16xf32>
    %102 = arith.mulf %99, %101 : vector<128x16xf32>
    %103 = arith.addf %98, %102 : vector<128x16xf32>
    %c41 = arith.constant 41 : index
    %c0_36 = arith.constant 0 : index
    %104 = vector.load %arg31[%c41, %c0_36] : memref<304x16xf32, #tpu.memory_space<vmem>>, vector<128x16xf32>
    %cst_37 = arith.constant 0.000000e+00 : f32
    %105 = vector.shape_cast %42 : vector<128x1xi1> to vector<128x1xi1>
    %106 = vector.broadcast %105 : vector<128x1xi1> to vector<128x16xi1>
    %107 = vector.broadcast %cst_37 : f32 to vector<128x16xf32>
    %108 = arith.select %106, %104, %107 : vector<128x16xi1>, vector<128x16xf32>
    %109 = vector.extract_strided_slice %19 {offsets = [8, 0], sizes = [1, 16], strides = [1, 1]} : vector<9x16xf32> to vector<1x16xf32>
    %110 = vector.broadcast %109 : vector<1x16xf32> to vector<128x16xf32>
    %111 = arith.mulf %108, %110 : vector<128x16xf32>
    %112 = arith.addf %103, %111 : vector<128x16xf32>
    %c0_38 = arith.constant 0 : index
    %c0_39 = arith.constant 0 : index
    %113 = vector.load %arg32[%c0_38, %c0_39] : memref<256x16xf32, #tpu.memory_space<vmem>>, vector<128x16xf32>
    tpu.vector_store %arg32[%c0_38, %c0_39], %112 {strides = array<i32>} : memref<256x16xf32, #tpu.memory_space<vmem>>, vector<128x16xf32>,
    %114 = tpu.iota {dimensions = array<i32: 0>} : vector<128x1xi32>
    %c128_i32 = arith.constant 128 : i32
    %115 = vector.broadcast %c128_i32 : i32 to vector<128x1xi32>
    %116 = arith.addi %114, %115 : vector<128x1xi32>
    %c16_i32_40 = arith.constant 16 : i32
    %c0_i32_41 = arith.constant 0 : i32
    %117 = arith.cmpi eq, %c16_i32_40, %c0_i32_41 : i32
    %c1_i32_42 = arith.constant 1 : i32
    %118 = arith.select %117, %c1_i32_42, %c16_i32_40 : i32
    %119 = vector.broadcast %118 : i32 to vector<128x1xi32>
    %120 = arith.remsi %116, %119 : vector<128x1xi32>
    %c0_i32_43 = arith.constant 0 : i32
    %121 = vector.broadcast %c0_i32_43 : i32 to vector<128x1xi32>
    %122 = arith.cmpi ne, %120, %121 : vector<128x1xi32>
    %c0_i32_44 = arith.constant 0 : i32
    %123 = vector.broadcast %c0_i32_44 : i32 to vector<128x1xi32>
    %124 = arith.cmpi slt, %120, %123 : vector<128x1xi32>
    %c0_i32_45 = arith.constant 0 : i32
    %125 = arith.cmpi slt, %118, %c0_i32_45 : i32
    %126 = vector.broadcast %125 : i1 to vector<128x1xi1>
    %127 = vector.broadcast %126 : vector<128x1xi1> to vector<128x1xi1>
    %128 = arith.xori %124, %127 : vector<128x1xi1>
    %129 = arith.andi %128, %122 : vector<128x1xi1>
    %130 = vector.broadcast %118 : i32 to vector<128x1xi32>
    %131 = arith.addi %120, %130 : vector<128x1xi32>
    %132 = arith.select %129, %131, %120 : vector<128x1xi1>, vector<128x1xi32>
    %c0_i32_46 = arith.constant 0 : i32
    %133 = vector.broadcast %c0_i32_46 : i32 to vector<128x1xi32>
    %134 = arith.cmpi ne, %132, %133 : vector<128x1xi32>
    %c15_i32_47 = arith.constant 15 : i32
    %135 = vector.broadcast %c15_i32_47 : i32 to vector<128x1xi32>
    %136 = arith.cmpi ne, %132, %135 : vector<128x1xi32>
    %cst_48 = arith.constant 0.000000e+00 : f32
    %137 = vector.broadcast %cst_48 : f32 to vector<128x16xf32>
    %c135 = arith.constant 135 : index
    %c0_49 = arith.constant 0 : index
    %138 = vector.load %arg31[%c135, %c0_49] : memref<304x16xf32, #tpu.memory_space<vmem>>, vector<128x16xf32>
    %cst_50 = arith.constant 0.000000e+00 : f32
    %139 = vector.shape_cast %134 : vector<128x1xi1> to vector<128x1xi1>
    %140 = vector.broadcast %139 : vector<128x1xi1> to vector<128x16xi1>
    %141 = vector.broadcast %cst_50 : f32 to vector<128x16xf32>
    %142 = arith.select %140, %138, %141 : vector<128x16xi1>, vector<128x16xf32>
    %143 = vector.extract_strided_slice %19 {offsets = [0, 0], sizes = [1, 16], strides = [1, 1]} : vector<9x16xf32> to vector<1x16xf32>
    %144 = vector.broadcast %143 : vector<1x16xf32> to vector<128x16xf32>
    %145 = arith.mulf %142, %144 : vector<128x16xf32>
    %146 = arith.addf %137, %145 : vector<128x16xf32>
    %c136 = arith.constant 136 : index
    %c0_51 = arith.constant 0 : index
    %147 = vector.load %arg31[%c136, %c0_51] : memref<304x16xf32, #tpu.memory_space<vmem>>, vector<128x16xf32>
    %148 = vector.extract_strided_slice %19 {offsets = [1, 0], sizes = [1, 16], strides = [1, 1]} : vector<9x16xf32> to vector<1x16xf32>
    %149 = vector.broadcast %148 : vector<1x16xf32> to vector<128x16xf32>
    %150 = arith.mulf %147, %149 : vector<128x16xf32>
    %151 = arith.addf %146, %150 : vector<128x16xf32>
    %c137 = arith.constant 137 : index
    %c0_52 = arith.constant 0 : index
    %152 = vector.load %arg31[%c137, %c0_52] : memref<304x16xf32, #tpu.memory_space<vmem>>, vector<128x16xf32>
    %cst_53 = arith.constant 0.000000e+00 : f32
    %153 = vector.shape_cast %136 : vector<128x1xi1> to vector<128x1xi1>
    %154 = vector.broadcast %153 : vector<128x1xi1> to vector<128x16xi1>
    %155 = vector.broadcast %cst_53 : f32 to vector<128x16xf32>
    %156 = arith.select %154, %152, %155 : vector<128x16xi1>, vector<128x16xf32>
    %157 = vector.extract_strided_slice %19 {offsets = [2, 0], sizes = [1, 16], strides = [1, 1]} : vector<9x16xf32> to vector<1x16xf32>
    %158 = vector.broadcast %157 : vector<1x16xf32> to vector<128x16xf32>
    %159 = arith.mulf %156, %158 : vector<128x16xf32>
    %160 = arith.addf %151, %159 : vector<128x16xf32>
    %c151 = arith.constant 151 : index
    %c0_54 = arith.constant 0 : index
    %161 = vector.load %arg31[%c151, %c0_54] : memref<304x16xf32, #tpu.memory_space<vmem>>, vector<128x16xf32>
    %cst_55 = arith.constant 0.000000e+00 : f32
    %162 = vector.shape_cast %134 : vector<128x1xi1> to vector<128x1xi1>
    %163 = vector.broadcast %162 : vector<128x1xi1> to vector<128x16xi1>
    %164 = vector.broadcast %cst_55 : f32 to vector<128x16xf32>
    %165 = arith.select %163, %161, %164 : vector<128x16xi1>, vector<128x16xf32>
    %166 = vector.extract_strided_slice %19 {offsets = [3, 0], sizes = [1, 16], strides = [1, 1]} : vector<9x16xf32> to vector<1x16xf32>
    %167 = vector.broadcast %166 : vector<1x16xf32> to vector<128x16xf32>
    %168 = arith.mulf %165, %167 : vector<128x16xf32>
    %169 = arith.addf %160, %168 : vector<128x16xf32>
    %c152 = arith.constant 152 : index
    %c0_56 = arith.constant 0 : index
    %170 = vector.load %arg31[%c152, %c0_56] : memref<304x16xf32, #tpu.memory_space<vmem>>, vector<128x16xf32>
    %171 = vector.extract_strided_slice %19 {offsets = [4, 0], sizes = [1, 16], strides = [1, 1]} : vector<9x16xf32> to vector<1x16xf32>
    %172 = vector.broadcast %171 : vector<1x16xf32> to vector<128x16xf32>
    %173 = arith.mulf %170, %172 : vector<128x16xf32>
    %174 = arith.addf %169, %173 : vector<128x16xf32>
    %c153 = arith.constant 153 : index
    %c0_57 = arith.constant 0 : index
    %175 = vector.load %arg31[%c153, %c0_57] : memref<304x16xf32, #tpu.memory_space<vmem>>, vector<128x16xf32>
    %cst_58 = arith.constant 0.000000e+00 : f32
    %176 = vector.shape_cast %136 : vector<128x1xi1> to vector<128x1xi1>
    %177 = vector.broadcast %176 : vector<128x1xi1> to vector<128x16xi1>
    %178 = vector.broadcast %cst_58 : f32 to vector<128x16xf32>
    %179 = arith.select %177, %175, %178 : vector<128x16xi1>, vector<128x16xf32>
    %180 = vector.extract_strided_slice %19 {offsets = [5, 0], sizes = [1, 16], strides = [1, 1]} : vector<9x16xf32> to vector<1x16xf32>
    %181 = vector.broadcast %180 : vector<1x16xf32> to vector<128x16xf32>
    %182 = arith.mulf %179, %181 : vector<128x16xf32>
    %183 = arith.addf %174, %182 : vector<128x16xf32>
    %c167 = arith.constant 167 : index
    %c0_59 = arith.constant 0 : index
    %184 = vector.load %arg31[%c167, %c0_59] : memref<304x16xf32, #tpu.memory_space<vmem>>, vector<128x16xf32>
    %cst_60 = arith.constant 0.000000e+00 : f32
    %185 = vector.shape_cast %134 : vector<128x1xi1> to vector<128x1xi1>
    %186 = vector.broadcast %185 : vector<128x1xi1> to vector<128x16xi1>
    %187 = vector.broadcast %cst_60 : f32 to vector<128x16xf32>
    %188 = arith.select %186, %184, %187 : vector<128x16xi1>, vector<128x16xf32>
    %189 = vector.extract_strided_slice %19 {offsets = [6, 0], sizes = [1, 16], strides = [1, 1]} : vector<9x16xf32> to vector<1x16xf32>
    %190 = vector.broadcast %189 : vector<1x16xf32> to vector<128x16xf32>
    %191 = arith.mulf %188, %190 : vector<128x16xf32>
    %192 = arith.addf %183, %191 : vector<128x16xf32>
    %c168 = arith.constant 168 : index
    %c0_61 = arith.constant 0 : index
    %193 = vector.load %arg31[%c168, %c0_61] : memref<304x16xf32, #tpu.memory_space<vmem>>, vector<128x16xf32>
    %194 = vector.extract_strided_slice %19 {offsets = [7, 0], sizes = [1, 16], strides = [1, 1]} : vector<9x16xf32> to vector<1x16xf32>
    %195 = vector.broadcast %194 : vector<1x16xf32> to vector<128x16xf32>
    %196 = arith.mulf %193, %195 : vector<128x16xf32>
    %197 = arith.addf %192, %196 : vector<128x16xf32>
    %c169 = arith.constant 169 : index
    %c0_62 = arith.constant 0 : index
    %198 = vector.load %arg31[%c169, %c0_62] : memref<304x16xf32, #tpu.memory_space<vmem>>, vector<128x16xf32>
    %cst_63 = arith.constant 0.000000e+00 : f32
    %199 = vector.shape_cast %136 : vector<128x1xi1> to vector<128x1xi1>
    %200 = vector.broadcast %199 : vector<128x1xi1> to vector<128x16xi1>
    %201 = vector.broadcast %cst_63 : f32 to vector<128x16xf32>
    %202 = arith.select %200, %198, %201 : vector<128x16xi1>, vector<128x16xf32>
    %203 = vector.extract_strided_slice %19 {offsets = [8, 0], sizes = [1, 16], strides = [1, 1]} : vector<9x16xf32> to vector<1x16xf32>
    %204 = vector.broadcast %203 : vector<1x16xf32> to vector<128x16xf32>
    %205 = arith.mulf %202, %204 : vector<128x16xf32>
    %206 = arith.addf %197, %205 : vector<128x16xf32>
    %c128 = arith.constant 128 : index
    %c0_64 = arith.constant 0 : index
    %207 = vector.load %arg32[%c128, %c0_64] : memref<256x16xf32, #tpu.memory_space<vmem>>, vector<128x16xf32>
    tpu.vector_store %arg32[%c128, %c0_64], %206 {strides = array<i32>} : memref<256x16xf32, #tpu.memory_space<vmem>>, vector<128x16xf32>,
    %c0_65 = arith.constant 0 : index
    %c0_66 = arith.constant 0 : index
    %208 = vector.load %arg32[%c0_65, %c0_66] : memref<256x16xf32, #tpu.memory_space<vmem>>, vector<256x16xf32>
    %c0_67 = arith.constant 0 : index
    %c0_68 = arith.constant 0 : index
    %209 = vector.load %arg5[%c0_67, %c0_68] : memref<1x16xf32, #tpu.memory_space<vmem>>, vector<1x16xf32>
    %210 = vector.broadcast %209 : vector<1x16xf32> to vector<256x16xf32>
    %211 = arith.addf %208, %210 : vector<256x16xf32>
    %cst_69 = arith.constant 0.000000e+00 : f32
    %212 = vector.broadcast %cst_69 : f32 to vector<256x16xf32>
    %213 = arith.subf %212, %211 : vector<256x16xf32>
    %214 = math.exp %213 : vector<256x16xf32>
    %cst_70 = arith.constant 1.000000e+00 : f32
    %215 = vector.broadcast %cst_70 : f32 to vector<256x16xf32>
    %216 = arith.addf %215, %214 : vector<256x16xf32>
    %217 = tpu.reciprocal %216 {approx = true} : vector<256x16xf32> -> vector<256x16xf32>
    %218 = arith.mulf %211, %217 : vector<256x16xf32>
    %c0_71 = arith.constant 0 : index
    %c0_72 = arith.constant 0 : index
    %219 = vector.load %arg6[%c0_71, %c0_72] : memref<16x4xf32, #tpu.memory_space<vmem>>, vector<16x4xf32>
    %c0_73 = arith.constant 0 : index
    %c0_74 = arith.constant 0 : index
    %220 = vector.load %arg7[%c0_73, %c0_74] : memref<1x4xf32, #tpu.memory_space<vmem>>, vector<1x4xf32>
    %c0_75 = arith.constant 0 : index
    %c0_76 = arith.constant 0 : index
    %221 = vector.load %arg8[%c0_75, %c0_76] : memref<4x16xf32, #tpu.memory_space<vmem>>, vector<4x16xf32>
    %c0_77 = arith.constant 0 : index
    %c0_78 = arith.constant 0 : index
    %222 = vector.load %arg9[%c0_77, %c0_78] : memref<1x16xf32, #tpu.memory_space<vmem>>, vector<1x16xf32>
    %cst_79 = arith.constant dense<0.000000e+00> : vector<16xf32>
    %223 = vector.multi_reduction <add>, %218, %cst_79 [0] : vector<256x16xf32> to vector<16xf32>
    %224 = vector.shape_cast %223 : vector<16xf32> to vector<1x16xf32>
    %cst_80 = arith.constant 2.560000e+02 : f32
    %225 = vector.broadcast %cst_80 : f32 to vector<1x16xf32>
    %226 = arith.divf %224, %225 : vector<1x16xf32>
    %cst_81 = arith.constant dense<0.000000e+00> : vector<1x4xf32>
    %227 = tpu.matmul %226, %219, %cst_81 {dimension_numbers = #tpu.dot_dimension_numbers<[1], [0], [0], [1], [0, 0, 1, 1], [], []>} : vector<1x16xf32>, vector<16x4xf32>, vector<1x4xf32> -> vector<1x4xf32>
    %228 = arith.addf %227, %220 : vector<1x4xf32>
    %cst_82 = arith.constant 0.000000e+00 : f32
    %229 = vector.broadcast %cst_82 : f32 to vector<1x4xf32>
    %230 = arith.subf %229, %228 : vector<1x4xf32>
    %231 = math.exp %230 : vector<1x4xf32>
    %cst_83 = arith.constant 1.000000e+00 : f32
    %232 = vector.broadcast %cst_83 : f32 to vector<1x4xf32>
    %233 = arith.addf %232, %231 : vector<1x4xf32>
    %234 = tpu.reciprocal %233 {approx = true} : vector<1x4xf32> -> vector<1x4xf32>
    %235 = arith.mulf %228, %234 : vector<1x4xf32>
    %cst_84 = arith.constant dense<0.000000e+00> : vector<1x16xf32>
    %236 = tpu.matmul %235, %221, %cst_84 {dimension_numbers = #tpu.dot_dimension_numbers<[1], [0], [0], [1], [0, 0, 1, 1], [], []>} : vector<1x4xf32>, vector<4x16xf32>, vector<1x16xf32> -> vector<1x16xf32>
    %237 = arith.addf %236, %222 : vector<1x16xf32>
    %cst_85 = arith.constant 0.000000e+00 : f32
    %238 = vector.broadcast %cst_85 : f32 to vector<1x16xf32>
    %239 = arith.subf %238, %237 : vector<1x16xf32>
    %240 = math.exp %239 : vector<1x16xf32>
    %cst_86 = arith.constant 1.000000e+00 : f32
    %241 = vector.broadcast %cst_86 : f32 to vector<1x16xf32>
    %242 = arith.addf %241, %240 : vector<1x16xf32>
    %243 = tpu.reciprocal %242 {approx = true} : vector<1x16xf32> -> vector<1x16xf32>
    %244 = vector.broadcast %243 : vector<1x16xf32> to vector<256x16xf32>
    %245 = arith.mulf %218, %244 : vector<256x16xf32>
    %c0_87 = arith.constant 0 : index
    %c0_88 = arith.constant 0 : index
    %246 = vector.load %arg10[%c0_87, %c0_88] : memref<16x16xf32, #tpu.memory_space<vmem>>, vector<16x16xf32>
    %cst_89 = arith.constant dense<0.000000e+00> : vector<256x16xf32>
    %247 = tpu.matmul %245, %246, %cst_89 {dimension_numbers = #tpu.dot_dimension_numbers<[1], [0], [0], [1], [0, 0, 1, 1], [], []>} : vector<256x16xf32>, vector<16x16xf32>, vector<256x16xf32> -> vector<256x16xf32>
    %c0_90 = arith.constant 0 : index
    %c0_91 = arith.constant 0 : index
    %248 = vector.load %arg11[%c0_90, %c0_91] : memref<1x16xf32, #tpu.memory_space<vmem>>, vector<1x16xf32>
    %249 = vector.broadcast %248 : vector<1x16xf32> to vector<256x16xf32>
    %250 = arith.addf %247, %249 : vector<256x16xf32>
    %c24_92 = arith.constant 24 : index
    %c0_93 = arith.constant 0 : index
    %251 = vector.load %arg31[%c24_92, %c0_93] : memref<304x16xf32, #tpu.memory_space<vmem>>, vector<256x16xf32>
    %252 = arith.addf %250, %251 : vector<256x16xf32>
    %cst_94 = arith.constant 0.000000e+00 : f32
    %253 = vector.broadcast %cst_94 : f32 to vector<24x96xf32>
    %c0_95 = arith.constant 0 : index
    %c0_96 = arith.constant 0 : index
    %254 = vector.load %arg33[%c0_95, %c0_96] : memref<304x96xf32, #tpu.memory_space<vmem>>, vector<24x96xf32>
    tpu.vector_store %arg33[%c0_95, %c0_96], %253 {strides = array<i32>} : memref<304x96xf32, #tpu.memory_space<vmem>>, vector<24x96xf32>,
    %cst_97 = arith.constant 0.000000e+00 : f32
    %255 = vector.broadcast %cst_97 : f32 to vector<24x96xf32>
    %c280_98 = arith.constant 280 : index
    %c0_99 = arith.constant 0 : index
    %256 = vector.load %arg33[%c280_98, %c0_99] : memref<304x96xf32, #tpu.memory_space<vmem>>, vector<24x96xf32>
    tpu.vector_store %arg33[%c280_98, %c0_99], %255 {strides = array<i32>} : memref<304x96xf32, #tpu.memory_space<vmem>>, vector<24x96xf32>,
    %c0_100 = arith.constant 0 : index
    %c0_101 = arith.constant 0 : index
    %257 = vector.load %arg12[%c0_100, %c0_101] : memref<16x96xf32, #tpu.memory_space<vmem>>, vector<16x96xf32>
    %cst_102 = arith.constant dense<0.000000e+00> : vector<256x96xf32>
    %258 = tpu.matmul %252, %257, %cst_102 {dimension_numbers = #tpu.dot_dimension_numbers<[1], [0], [0], [1], [0, 0, 1, 1], [], []>} : vector<256x16xf32>, vector<16x96xf32>, vector<256x96xf32> -> vector<256x96xf32>
    %c0_103 = arith.constant 0 : index
    %c0_104 = arith.constant 0 : index
    %259 = vector.load %arg13[%c0_103, %c0_104] : memref<1x96xf32, #tpu.memory_space<vmem>>, vector<1x96xf32>
    %260 = vector.broadcast %259 : vector<1x96xf32> to vector<256x96xf32>
    %261 = arith.addf %258, %260 : vector<256x96xf32>
    %cst_105 = arith.constant 0.000000e+00 : f32
    %262 = vector.broadcast %cst_105 : f32 to vector<256x96xf32>
    %263 = arith.subf %262, %261 : vector<256x96xf32>
    %264 = math.exp %263 : vector<256x96xf32>
    %cst_106 = arith.constant 1.000000e+00 : f32
    %265 = vector.broadcast %cst_106 : f32 to vector<256x96xf32>
    %266 = arith.addf %265, %264 : vector<256x96xf32>
    %267 = tpu.reciprocal %266 {approx = true} : vector<256x96xf32> -> vector<256x96xf32>
    %268 = arith.mulf %261, %267 : vector<256x96xf32>
    %c24_107 = arith.constant 24 : index
    %c0_108 = arith.constant 0 : index
    %269 = vector.load %arg33[%c24_107, %c0_108] : memref<304x96xf32, #tpu.memory_space<vmem>>, vector<256x96xf32>
    tpu.vector_store %arg33[%c24_107, %c0_108], %268 {strides = array<i32>} : memref<304x96xf32, #tpu.memory_space<vmem>>, vector<256x96xf32>,
    %c0_109 = arith.constant 0 : index
    %c0_110 = arith.constant 0 : index
    %270 = vector.load %arg14[%c0_109, %c0_110] : memref<9x96xf32, #tpu.memory_space<vmem>>, vector<9x96xf32>
    %271 = tpu.iota {dimensions = array<i32: 0>} : vector<128x1xi32>
    %c0_i32_111 = arith.constant 0 : i32
    %272 = vector.broadcast %c0_i32_111 : i32 to vector<128x1xi32>
    %273 = arith.addi %271, %272 : vector<128x1xi32>
    %c16_i32_112 = arith.constant 16 : i32
    %c0_i32_113 = arith.constant 0 : i32
    %274 = arith.cmpi eq, %c16_i32_112, %c0_i32_113 : i32
    %c1_i32_114 = arith.constant 1 : i32
    %275 = arith.select %274, %c1_i32_114, %c16_i32_112 : i32
    %276 = vector.broadcast %275 : i32 to vector<128x1xi32>
    %277 = arith.remsi %273, %276 : vector<128x1xi32>
    %c0_i32_115 = arith.constant 0 : i32
    %278 = vector.broadcast %c0_i32_115 : i32 to vector<128x1xi32>
    %279 = arith.cmpi ne, %277, %278 : vector<128x1xi32>
    %c0_i32_116 = arith.constant 0 : i32
    %280 = vector.broadcast %c0_i32_116 : i32 to vector<128x1xi32>
    %281 = arith.cmpi slt, %277, %280 : vector<128x1xi32>
    %c0_i32_117 = arith.constant 0 : i32
    %282 = arith.cmpi slt, %275, %c0_i32_117 : i32
    %283 = vector.broadcast %282 : i1 to vector<128x1xi1>
    %284 = vector.broadcast %283 : vector<128x1xi1> to vector<128x1xi1>
    %285 = arith.xori %281, %284 : vector<128x1xi1>
    %286 = arith.andi %285, %279 : vector<128x1xi1>
    %287 = vector.broadcast %275 : i32 to vector<128x1xi32>
    %288 = arith.addi %277, %287 : vector<128x1xi32>
    %289 = arith.select %286, %288, %277 : vector<128x1xi1>, vector<128x1xi32>
    %c0_i32_118 = arith.constant 0 : i32
    %290 = vector.broadcast %c0_i32_118 : i32 to vector<128x1xi32>
    %291 = arith.cmpi ne, %289, %290 : vector<128x1xi32>
    %c15_i32_119 = arith.constant 15 : i32
    %292 = vector.broadcast %c15_i32_119 : i32 to vector<128x1xi32>
    %293 = arith.cmpi ne, %289, %292 : vector<128x1xi32>
    %cst_120 = arith.constant 0.000000e+00 : f32
    %294 = vector.broadcast %cst_120 : f32 to vector<128x96xf32>
    %c7_121 = arith.constant 7 : index
    %c0_122 = arith.constant 0 : index
    %295 = vector.load %arg33[%c7_121, %c0_122] : memref<304x96xf32, #tpu.memory_space<vmem>>, vector<128x96xf32>
    %cst_123 = arith.constant 0.000000e+00 : f32
    %296 = vector.shape_cast %291 : vector<128x1xi1> to vector<128x1xi1>
    %297 = vector.broadcast %296 : vector<128x1xi1> to vector<128x96xi1>
    %298 = vector.broadcast %cst_123 : f32 to vector<128x96xf32>
    %299 = arith.select %297, %295, %298 : vector<128x96xi1>, vector<128x96xf32>
    %300 = vector.extract_strided_slice %270 {offsets = [0, 0], sizes = [1, 96], strides = [1, 1]} : vector<9x96xf32> to vector<1x96xf32>
    %301 = vector.broadcast %300 : vector<1x96xf32> to vector<128x96xf32>
    %302 = arith.mulf %299, %301 : vector<128x96xf32>
    %303 = arith.addf %294, %302 : vector<128x96xf32>
    %c8_124 = arith.constant 8 : index
    %c0_125 = arith.constant 0 : index
    %304 = vector.load %arg33[%c8_124, %c0_125] : memref<304x96xf32, #tpu.memory_space<vmem>>, vector<128x96xf32>
    %305 = vector.extract_strided_slice %270 {offsets = [1, 0], sizes = [1, 96], strides = [1, 1]} : vector<9x96xf32> to vector<1x96xf32>
    %306 = vector.broadcast %305 : vector<1x96xf32> to vector<128x96xf32>
    %307 = arith.mulf %304, %306 : vector<128x96xf32>
    %308 = arith.addf %303, %307 : vector<128x96xf32>
    %c9_126 = arith.constant 9 : index
    %c0_127 = arith.constant 0 : index
    %309 = vector.load %arg33[%c9_126, %c0_127] : memref<304x96xf32, #tpu.memory_space<vmem>>, vector<128x96xf32>
    %cst_128 = arith.constant 0.000000e+00 : f32
    %310 = vector.shape_cast %293 : vector<128x1xi1> to vector<128x1xi1>
    %311 = vector.broadcast %310 : vector<128x1xi1> to vector<128x96xi1>
    %312 = vector.broadcast %cst_128 : f32 to vector<128x96xf32>
    %313 = arith.select %311, %309, %312 : vector<128x96xi1>, vector<128x96xf32>
    %314 = vector.extract_strided_slice %270 {offsets = [2, 0], sizes = [1, 96], strides = [1, 1]} : vector<9x96xf32> to vector<1x96xf32>
    %315 = vector.broadcast %314 : vector<1x96xf32> to vector<128x96xf32>
    %316 = arith.mulf %313, %315 : vector<128x96xf32>
    %317 = arith.addf %308, %316 : vector<128x96xf32>
    %c23_129 = arith.constant 23 : index
    %c0_130 = arith.constant 0 : index
    %318 = vector.load %arg33[%c23_129, %c0_130] : memref<304x96xf32, #tpu.memory_space<vmem>>, vector<128x96xf32>
    %cst_131 = arith.constant 0.000000e+00 : f32
    %319 = vector.shape_cast %291 : vector<128x1xi1> to vector<128x1xi1>
    %320 = vector.broadcast %319 : vector<128x1xi1> to vector<128x96xi1>
    %321 = vector.broadcast %cst_131 : f32 to vector<128x96xf32>
    %322 = arith.select %320, %318, %321 : vector<128x96xi1>, vector<128x96xf32>
    %323 = vector.extract_strided_slice %270 {offsets = [3, 0], sizes = [1, 96], strides = [1, 1]} : vector<9x96xf32> to vector<1x96xf32>
    %324 = vector.broadcast %323 : vector<1x96xf32> to vector<128x96xf32>
    %325 = arith.mulf %322, %324 : vector<128x96xf32>
    %326 = arith.addf %317, %325 : vector<128x96xf32>
    %c24_132 = arith.constant 24 : index
    %c0_133 = arith.constant 0 : index
    %327 = vector.load %arg33[%c24_132, %c0_133] : memref<304x96xf32, #tpu.memory_space<vmem>>, vector<128x96xf32>
    %328 = vector.extract_strided_slice %270 {offsets = [4, 0], sizes = [1, 96], strides = [1, 1]} : vector<9x96xf32> to vector<1x96xf32>
    %329 = vector.broadcast %328 : vector<1x96xf32> to vector<128x96xf32>
    %330 = arith.mulf %327, %329 : vector<128x96xf32>
    %331 = arith.addf %326, %330 : vector<128x96xf32>
    %c25_134 = arith.constant 25 : index
    %c0_135 = arith.constant 0 : index
    %332 = vector.load %arg33[%c25_134, %c0_135] : memref<304x96xf32, #tpu.memory_space<vmem>>, vector<128x96xf32>
    %cst_136 = arith.constant 0.000000e+00 : f32
    %333 = vector.shape_cast %293 : vector<128x1xi1> to vector<128x1xi1>
    %334 = vector.broadcast %333 : vector<128x1xi1> to vector<128x96xi1>
    %335 = vector.broadcast %cst_136 : f32 to vector<128x96xf32>
    %336 = arith.select %334, %332, %335 : vector<128x96xi1>, vector<128x96xf32>
    %337 = vector.extract_strided_slice %270 {offsets = [5, 0], sizes = [1, 96], strides = [1, 1]} : vector<9x96xf32> to vector<1x96xf32>
    %338 = vector.broadcast %337 : vector<1x96xf32> to vector<128x96xf32>
    %339 = arith.mulf %336, %338 : vector<128x96xf32>
    %340 = arith.addf %331, %339 : vector<128x96xf32>
    %c39_137 = arith.constant 39 : index
    %c0_138 = arith.constant 0 : index
    %341 = vector.load %arg33[%c39_137, %c0_138] : memref<304x96xf32, #tpu.memory_space<vmem>>, vector<128x96xf32>
    %cst_139 = arith.constant 0.000000e+00 : f32
    %342 = vector.shape_cast %291 : vector<128x1xi1> to vector<128x1xi1>
    %343 = vector.broadcast %342 : vector<128x1xi1> to vector<128x96xi1>
    %344 = vector.broadcast %cst_139 : f32 to vector<128x96xf32>
    %345 = arith.select %343, %341, %344 : vector<128x96xi1>, vector<128x96xf32>
    %346 = vector.extract_strided_slice %270 {offsets = [6, 0], sizes = [1, 96], strides = [1, 1]} : vector<9x96xf32> to vector<1x96xf32>
    %347 = vector.broadcast %346 : vector<1x96xf32> to vector<128x96xf32>
    %348 = arith.mulf %345, %347 : vector<128x96xf32>
    %349 = arith.addf %340, %348 : vector<128x96xf32>
    %c40_140 = arith.constant 40 : index
    %c0_141 = arith.constant 0 : index
    %350 = vector.load %arg33[%c40_140, %c0_141] : memref<304x96xf32, #tpu.memory_space<vmem>>, vector<128x96xf32>
    %351 = vector.extract_strided_slice %270 {offsets = [7, 0], sizes = [1, 96], strides = [1, 1]} : vector<9x96xf32> to vector<1x96xf32>
    %352 = vector.broadcast %351 : vector<1x96xf32> to vector<128x96xf32>
    %353 = arith.mulf %350, %352 : vector<128x96xf32>
    %354 = arith.addf %349, %353 : vector<128x96xf32>
    %c41_142 = arith.constant 41 : index
    %c0_143 = arith.constant 0 : index
    %355 = vector.load %arg33[%c41_142, %c0_143] : memref<304x96xf32, #tpu.memory_space<vmem>>, vector<128x96xf32>
    %cst_144 = arith.constant 0.000000e+00 : f32
    %356 = vector.shape_cast %293 : vector<128x1xi1> to vector<128x1xi1>
    %357 = vector.broadcast %356 : vector<128x1xi1> to vector<128x96xi1>
    %358 = vector.broadcast %cst_144 : f32 to vector<128x96xf32>
    %359 = arith.select %357, %355, %358 : vector<128x96xi1>, vector<128x96xf32>
    %360 = vector.extract_strided_slice %270 {offsets = [8, 0], sizes = [1, 96], strides = [1, 1]} : vector<9x96xf32> to vector<1x96xf32>
    %361 = vector.broadcast %360 : vector<1x96xf32> to vector<128x96xf32>
    %362 = arith.mulf %359, %361 : vector<128x96xf32>
    %363 = arith.addf %354, %362 : vector<128x96xf32>
    %c0_145 = arith.constant 0 : index
    %c0_146 = arith.constant 0 : index
    %364 = vector.load %arg34[%c0_145, %c0_146] : memref<256x96xf32, #tpu.memory_space<vmem>>, vector<128x96xf32>
    tpu.vector_store %arg34[%c0_145, %c0_146], %363 {strides = array<i32>} : memref<256x96xf32, #tpu.memory_space<vmem>>, vector<128x96xf32>,
    %365 = tpu.iota {dimensions = array<i32: 0>} : vector<128x1xi32>
    %c128_i32_147 = arith.constant 128 : i32
    %366 = vector.broadcast %c128_i32_147 : i32 to vector<128x1xi32>
    %367 = arith.addi %365, %366 : vector<128x1xi32>
    %c16_i32_148 = arith.constant 16 : i32
    %c0_i32_149 = arith.constant 0 : i32
    %368 = arith.cmpi eq, %c16_i32_148, %c0_i32_149 : i32
    %c1_i32_150 = arith.constant 1 : i32
    %369 = arith.select %368, %c1_i32_150, %c16_i32_148 : i32
    %370 = vector.broadcast %369 : i32 to vector<128x1xi32>
    %371 = arith.remsi %367, %370 : vector<128x1xi32>
    %c0_i32_151 = arith.constant 0 : i32
    %372 = vector.broadcast %c0_i32_151 : i32 to vector<128x1xi32>
    %373 = arith.cmpi ne, %371, %372 : vector<128x1xi32>
    %c0_i32_152 = arith.constant 0 : i32
    %374 = vector.broadcast %c0_i32_152 : i32 to vector<128x1xi32>
    %375 = arith.cmpi slt, %371, %374 : vector<128x1xi32>
    %c0_i32_153 = arith.constant 0 : i32
    %376 = arith.cmpi slt, %369, %c0_i32_153 : i32
    %377 = vector.broadcast %376 : i1 to vector<128x1xi1>
    %378 = vector.broadcast %377 : vector<128x1xi1> to vector<128x1xi1>
    %379 = arith.xori %375, %378 : vector<128x1xi1>
    %380 = arith.andi %379, %373 : vector<128x1xi1>
    %381 = vector.broadcast %369 : i32 to vector<128x1xi32>
    %382 = arith.addi %371, %381 : vector<128x1xi32>
    %383 = arith.select %380, %382, %371 : vector<128x1xi1>, vector<128x1xi32>
    %c0_i32_154 = arith.constant 0 : i32
    %384 = vector.broadcast %c0_i32_154 : i32 to vector<128x1xi32>
    %385 = arith.cmpi ne, %383, %384 : vector<128x1xi32>
    %c15_i32_155 = arith.constant 15 : i32
    %386 = vector.broadcast %c15_i32_155 : i32 to vector<128x1xi32>
    %387 = arith.cmpi ne, %383, %386 : vector<128x1xi32>
    %cst_156 = arith.constant 0.000000e+00 : f32
    %388 = vector.broadcast %cst_156 : f32 to vector<128x96xf32>
    %c135_157 = arith.constant 135 : index
    %c0_158 = arith.constant 0 : index
    %389 = vector.load %arg33[%c135_157, %c0_158] : memref<304x96xf32, #tpu.memory_space<vmem>>, vector<128x96xf32>
    %cst_159 = arith.constant 0.000000e+00 : f32
    %390 = vector.shape_cast %385 : vector<128x1xi1> to vector<128x1xi1>
    %391 = vector.broadcast %390 : vector<128x1xi1> to vector<128x96xi1>
    %392 = vector.broadcast %cst_159 : f32 to vector<128x96xf32>
    %393 = arith.select %391, %389, %392 : vector<128x96xi1>, vector<128x96xf32>
    %394 = vector.extract_strided_slice %270 {offsets = [0, 0], sizes = [1, 96], strides = [1, 1]} : vector<9x96xf32> to vector<1x96xf32>
    %395 = vector.broadcast %394 : vector<1x96xf32> to vector<128x96xf32>
    %396 = arith.mulf %393, %395 : vector<128x96xf32>
    %397 = arith.addf %388, %396 : vector<128x96xf32>
    %c136_160 = arith.constant 136 : index
    %c0_161 = arith.constant 0 : index
    %398 = vector.load %arg33[%c136_160, %c0_161] : memref<304x96xf32, #tpu.memory_space<vmem>>, vector<128x96xf32>
    %399 = vector.extract_strided_slice %270 {offsets = [1, 0], sizes = [1, 96], strides = [1, 1]} : vector<9x96xf32> to vector<1x96xf32>
    %400 = vector.broadcast %399 : vector<1x96xf32> to vector<128x96xf32>
    %401 = arith.mulf %398, %400 : vector<128x96xf32>
    %402 = arith.addf %397, %401 : vector<128x96xf32>
    %c137_162 = arith.constant 137 : index
    %c0_163 = arith.constant 0 : index
    %403 = vector.load %arg33[%c137_162, %c0_163] : memref<304x96xf32, #tpu.memory_space<vmem>>, vector<128x96xf32>
    %cst_164 = arith.constant 0.000000e+00 : f32
    %404 = vector.shape_cast %387 : vector<128x1xi1> to vector<128x1xi1>
    %405 = vector.broadcast %404 : vector<128x1xi1> to vector<128x96xi1>
    %406 = vector.broadcast %cst_164 : f32 to vector<128x96xf32>
    %407 = arith.select %405, %403, %406 : vector<128x96xi1>, vector<128x96xf32>
    %408 = vector.extract_strided_slice %270 {offsets = [2, 0], sizes = [1, 96], strides = [1, 1]} : vector<9x96xf32> to vector<1x96xf32>
    %409 = vector.broadcast %408 : vector<1x96xf32> to vector<128x96xf32>
    %410 = arith.mulf %407, %409 : vector<128x96xf32>
    %411 = arith.addf %402, %410 : vector<128x96xf32>
    %c151_165 = arith.constant 151 : index
    %c0_166 = arith.constant 0 : index
    %412 = vector.load %arg33[%c151_165, %c0_166] : memref<304x96xf32, #tpu.memory_space<vmem>>, vector<128x96xf32>
    %cst_167 = arith.constant 0.000000e+00 : f32
    %413 = vector.shape_cast %385 : vector<128x1xi1> to vector<128x1xi1>
    %414 = vector.broadcast %413 : vector<128x1xi1> to vector<128x96xi1>
    %415 = vector.broadcast %cst_167 : f32 to vector<128x96xf32>
    %416 = arith.select %414, %412, %415 : vector<128x96xi1>, vector<128x96xf32>
    %417 = vector.extract_strided_slice %270 {offsets = [3, 0], sizes = [1, 96], strides = [1, 1]} : vector<9x96xf32> to vector<1x96xf32>
    %418 = vector.broadcast %417 : vector<1x96xf32> to vector<128x96xf32>
    %419 = arith.mulf %416, %418 : vector<128x96xf32>
    %420 = arith.addf %411, %419 : vector<128x96xf32>
    %c152_168 = arith.constant 152 : index
    %c0_169 = arith.constant 0 : index
    %421 = vector.load %arg33[%c152_168, %c0_169] : memref<304x96xf32, #tpu.memory_space<vmem>>, vector<128x96xf32>
    %422 = vector.extract_strided_slice %270 {offsets = [4, 0], sizes = [1, 96], strides = [1, 1]} : vector<9x96xf32> to vector<1x96xf32>
    %423 = vector.broadcast %422 : vector<1x96xf32> to vector<128x96xf32>
    %424 = arith.mulf %421, %423 : vector<128x96xf32>
    %425 = arith.addf %420, %424 : vector<128x96xf32>
    %c153_170 = arith.constant 153 : index
    %c0_171 = arith.constant 0 : index
    %426 = vector.load %arg33[%c153_170, %c0_171] : memref<304x96xf32, #tpu.memory_space<vmem>>, vector<128x96xf32>
    %cst_172 = arith.constant 0.000000e+00 : f32
    %427 = vector.shape_cast %387 : vector<128x1xi1> to vector<128x1xi1>
    %428 = vector.broadcast %427 : vector<128x1xi1> to vector<128x96xi1>
    %429 = vector.broadcast %cst_172 : f32 to vector<128x96xf32>
    %430 = arith.select %428, %426, %429 : vector<128x96xi1>, vector<128x96xf32>
    %431 = vector.extract_strided_slice %270 {offsets = [5, 0], sizes = [1, 96], strides = [1, 1]} : vector<9x96xf32> to vector<1x96xf32>
    %432 = vector.broadcast %431 : vector<1x96xf32> to vector<128x96xf32>
    %433 = arith.mulf %430, %432 : vector<128x96xf32>
    %434 = arith.addf %425, %433 : vector<128x96xf32>
    %c167_173 = arith.constant 167 : index
    %c0_174 = arith.constant 0 : index
    %435 = vector.load %arg33[%c167_173, %c0_174] : memref<304x96xf32, #tpu.memory_space<vmem>>, vector<128x96xf32>
    %cst_175 = arith.constant 0.000000e+00 : f32
    %436 = vector.shape_cast %385 : vector<128x1xi1> to vector<128x1xi1>
    %437 = vector.broadcast %436 : vector<128x1xi1> to vector<128x96xi1>
    %438 = vector.broadcast %cst_175 : f32 to vector<128x96xf32>
    %439 = arith.select %437, %435, %438 : vector<128x96xi1>, vector<128x96xf32>
    %440 = vector.extract_strided_slice %270 {offsets = [6, 0], sizes = [1, 96], strides = [1, 1]} : vector<9x96xf32> to vector<1x96xf32>
    %441 = vector.broadcast %440 : vector<1x96xf32> to vector<128x96xf32>
    %442 = arith.mulf %439, %441 : vector<128x96xf32>
    %443 = arith.addf %434, %442 : vector<128x96xf32>
    %c168_176 = arith.constant 168 : index
    %c0_177 = arith.constant 0 : index
    %444 = vector.load %arg33[%c168_176, %c0_177] : memref<304x96xf32, #tpu.memory_space<vmem>>, vector<128x96xf32>
    %445 = vector.extract_strided_slice %270 {offsets = [7, 0], sizes = [1, 96], strides = [1, 1]} : vector<9x96xf32> to vector<1x96xf32>
    %446 = vector.broadcast %445 : vector<1x96xf32> to vector<128x96xf32>
    %447 = arith.mulf %444, %446 : vector<128x96xf32>
    %448 = arith.addf %443, %447 : vector<128x96xf32>
    %c169_178 = arith.constant 169 : index
    %c0_179 = arith.constant 0 : index
    %449 = vector.load %arg33[%c169_178, %c0_179] : memref<304x96xf32, #tpu.memory_space<vmem>>, vector<128x96xf32>
    %cst_180 = arith.constant 0.000000e+00 : f32
    %450 = vector.shape_cast %387 : vector<128x1xi1> to vector<128x1xi1>
    %451 = vector.broadcast %450 : vector<128x1xi1> to vector<128x96xi1>
    %452 = vector.broadcast %cst_180 : f32 to vector<128x96xf32>
    %453 = arith.select %451, %449, %452 : vector<128x96xi1>, vector<128x96xf32>
    %454 = vector.extract_strided_slice %270 {offsets = [8, 0], sizes = [1, 96], strides = [1, 1]} : vector<9x96xf32> to vector<1x96xf32>
    %455 = vector.broadcast %454 : vector<1x96xf32> to vector<128x96xf32>
    %456 = arith.mulf %453, %455 : vector<128x96xf32>
    %457 = arith.addf %448, %456 : vector<128x96xf32>
    %c128_181 = arith.constant 128 : index
    %c0_182 = arith.constant 0 : index
    %458 = vector.load %arg34[%c128_181, %c0_182] : memref<256x96xf32, #tpu.memory_space<vmem>>, vector<128x96xf32>
    tpu.vector_store %arg34[%c128_181, %c0_182], %457 {strides = array<i32>} : memref<256x96xf32, #tpu.memory_space<vmem>>, vector<128x96xf32>,
    %c0_183 = arith.constant 0 : index
    %c0_184 = arith.constant 0 : index
    %459 = tpu.strided_load %arg34[%c0_183, %c0_184] {strides = array<i32: 2, 1>} : memref<256x96xf32, #tpu.memory_space<vmem>>, vector<8x96xf32>
    %c0_185 = arith.constant 0 : index
    %c0_186 = arith.constant 0 : index
    %460 = vector.load %arg35[%c0_185, %c0_186] : memref<64x96xf32, #tpu.memory_space<vmem>>, vector<8x96xf32>
    tpu.vector_store %arg35[%c0_185, %c0_186], %459 {strides = array<i32>} : memref<64x96xf32, #tpu.memory_space<vmem>>, vector<8x96xf32>,
    %c32 = arith.constant 32 : index
    %c0_187 = arith.constant 0 : index
    %461 = tpu.strided_load %arg34[%c32, %c0_187] {strides = array<i32: 2, 1>} : memref<256x96xf32, #tpu.memory_space<vmem>>, vector<8x96xf32>
    %c8_188 = arith.constant 8 : index
    %c0_189 = arith.constant 0 : index
    %462 = vector.load %arg35[%c8_188, %c0_189] : memref<64x96xf32, #tpu.memory_space<vmem>>, vector<8x96xf32>
    tpu.vector_store %arg35[%c8_188, %c0_189], %461 {strides = array<i32>} : memref<64x96xf32, #tpu.memory_space<vmem>>, vector<8x96xf32>,
    %c64 = arith.constant 64 : index
    %c0_190 = arith.constant 0 : index
    %463 = tpu.strided_load %arg34[%c64, %c0_190] {strides = array<i32: 2, 1>} : memref<256x96xf32, #tpu.memory_space<vmem>>, vector<8x96xf32>
    %c16 = arith.constant 16 : index
    %c0_191 = arith.constant 0 : index
    %464 = vector.load %arg35[%c16, %c0_191] : memref<64x96xf32, #tpu.memory_space<vmem>>, vector<8x96xf32>
    tpu.vector_store %arg35[%c16, %c0_191], %463 {strides = array<i32>} : memref<64x96xf32, #tpu.memory_space<vmem>>, vector<8x96xf32>,
    %c96 = arith.constant 96 : index
    %c0_192 = arith.constant 0 : index
    %465 = tpu.strided_load %arg34[%c96, %c0_192] {strides = array<i32: 2, 1>} : memref<256x96xf32, #tpu.memory_space<vmem>>, vector<8x96xf32>
    %c24_193 = arith.constant 24 : index
    %c0_194 = arith.constant 0 : index
    %466 = vector.load %arg35[%c24_193, %c0_194] : memref<64x96xf32, #tpu.memory_space<vmem>>, vector<8x96xf32>
    tpu.vector_store %arg35[%c24_193, %c0_194], %465 {strides = array<i32>} : memref<64x96xf32, #tpu.memory_space<vmem>>, vector<8x96xf32>,
    %c128_195 = arith.constant 128 : index
    %c0_196 = arith.constant 0 : index
    %467 = tpu.strided_load %arg34[%c128_195, %c0_196] {strides = array<i32: 2, 1>} : memref<256x96xf32, #tpu.memory_space<vmem>>, vector<8x96xf32>
    %c32_197 = arith.constant 32 : index
    %c0_198 = arith.constant 0 : index
    %468 = vector.load %arg35[%c32_197, %c0_198] : memref<64x96xf32, #tpu.memory_space<vmem>>, vector<8x96xf32>
    tpu.vector_store %arg35[%c32_197, %c0_198], %467 {strides = array<i32>} : memref<64x96xf32, #tpu.memory_space<vmem>>, vector<8x96xf32>,
    %c160 = arith.constant 160 : index
    %c0_199 = arith.constant 0 : index
    %469 = tpu.strided_load %arg34[%c160, %c0_199] {strides = array<i32: 2, 1>} : memref<256x96xf32, #tpu.memory_space<vmem>>, vector<8x96xf32>
    %c40_200 = arith.constant 40 : index
    %c0_201 = arith.constant 0 : index
    %470 = vector.load %arg35[%c40_200, %c0_201] : memref<64x96xf32, #tpu.memory_space<vmem>>, vector<8x96xf32>
    tpu.vector_store %arg35[%c40_200, %c0_201], %469 {strides = array<i32>} : memref<64x96xf32, #tpu.memory_space<vmem>>, vector<8x96xf32>,
    %c192 = arith.constant 192 : index
    %c0_202 = arith.constant 0 : index
    %471 = tpu.strided_load %arg34[%c192, %c0_202] {strides = array<i32: 2, 1>} : memref<256x96xf32, #tpu.memory_space<vmem>>, vector<8x96xf32>
    %c48 = arith.constant 48 : index
    %c0_203 = arith.constant 0 : index
    %472 = vector.load %arg35[%c48, %c0_203] : memref<64x96xf32, #tpu.memory_space<vmem>>, vector<8x96xf32>
    tpu.vector_store %arg35[%c48, %c0_203], %471 {strides = array<i32>} : memref<64x96xf32, #tpu.memory_space<vmem>>, vector<8x96xf32>,
    %c224 = arith.constant 224 : index
    %c0_204 = arith.constant 0 : index
    %473 = tpu.strided_load %arg34[%c224, %c0_204] {strides = array<i32: 2, 1>} : memref<256x96xf32, #tpu.memory_space<vmem>>, vector<8x96xf32>
    %c56 = arith.constant 56 : index
    %c0_205 = arith.constant 0 : index
    %474 = vector.load %arg35[%c56, %c0_205] : memref<64x96xf32, #tpu.memory_space<vmem>>, vector<8x96xf32>
    tpu.vector_store %arg35[%c56, %c0_205], %473 {strides = array<i32>} : memref<64x96xf32, #tpu.memory_space<vmem>>, vector<8x96xf32>,
    %c0_206 = arith.constant 0 : index
    %c0_207 = arith.constant 0 : index
    %475 = vector.load %arg35[%c0_206, %c0_207] : memref<64x96xf32, #tpu.memory_space<vmem>>, vector<64x96xf32>
    %c0_208 = arith.constant 0 : index
    %c0_209 = arith.constant 0 : index
    %476 = vector.load %arg15[%c0_208, %c0_209] : memref<1x96xf32, #tpu.memory_space<vmem>>, vector<1x96xf32>
    %477 = vector.broadcast %476 : vector<1x96xf32> to vector<64x96xf32>
    %478 = arith.addf %475, %477 : vector<64x96xf32>
    %cst_210 = arith.constant 0.000000e+00 : f32
    %479 = vector.broadcast %cst_210 : f32 to vector<64x96xf32>
    %480 = arith.subf %479, %478 : vector<64x96xf32>
    %481 = math.exp %480 : vector<64x96xf32>
    %cst_211 = arith.constant 1.000000e+00 : f32
    %482 = vector.broadcast %cst_211 : f32 to vector<64x96xf32>
    %483 = arith.addf %482, %481 : vector<64x96xf32>
    %484 = tpu.reciprocal %483 {approx = true} : vector<64x96xf32> -> vector<64x96xf32>
    %485 = arith.mulf %478, %484 : vector<64x96xf32>
    %c0_212 = arith.constant 0 : index
    %c0_213 = arith.constant 0 : index
    %486 = vector.load %arg16[%c0_212, %c0_213] : memref<96x4xf32, #tpu.memory_space<vmem>>, vector<96x4xf32>
    %c0_214 = arith.constant 0 : index
    %c0_215 = arith.constant 0 : index
    %487 = vector.load %arg17[%c0_214, %c0_215] : memref<1x4xf32, #tpu.memory_space<vmem>>, vector<1x4xf32>
    %c0_216 = arith.constant 0 : index
    %c0_217 = arith.constant 0 : index
    %488 = vector.load %arg18[%c0_216, %c0_217] : memref<4x96xf32, #tpu.memory_space<vmem>>, vector<4x96xf32>
    %c0_218 = arith.constant 0 : index
    %c0_219 = arith.constant 0 : index
    %489 = vector.load %arg19[%c0_218, %c0_219] : memref<1x96xf32, #tpu.memory_space<vmem>>, vector<1x96xf32>
    %cst_220 = arith.constant dense<0.000000e+00> : vector<96xf32>
    %490 = vector.multi_reduction <add>, %485, %cst_220 [0] : vector<64x96xf32> to vector<96xf32>
    %491 = vector.shape_cast %490 : vector<96xf32> to vector<1x96xf32>
    %cst_221 = arith.constant 6.400000e+01 : f32
    %492 = vector.broadcast %cst_221 : f32 to vector<1x96xf32>
    %493 = arith.divf %491, %492 : vector<1x96xf32>
    %cst_222 = arith.constant dense<0.000000e+00> : vector<1x4xf32>
    %494 = tpu.matmul %493, %486, %cst_222 {dimension_numbers = #tpu.dot_dimension_numbers<[1], [0], [0], [1], [0, 0, 1, 1], [], []>} : vector<1x96xf32>, vector<96x4xf32>, vector<1x4xf32> -> vector<1x4xf32>
    %495 = arith.addf %494, %487 : vector<1x4xf32>
    %cst_223 = arith.constant 0.000000e+00 : f32
    %496 = vector.broadcast %cst_223 : f32 to vector<1x4xf32>
    %497 = arith.subf %496, %495 : vector<1x4xf32>
    %498 = math.exp %497 : vector<1x4xf32>
    %cst_224 = arith.constant 1.000000e+00 : f32
    %499 = vector.broadcast %cst_224 : f32 to vector<1x4xf32>
    %500 = arith.addf %499, %498 : vector<1x4xf32>
    %501 = tpu.reciprocal %500 {approx = true} : vector<1x4xf32> -> vector<1x4xf32>
    %502 = arith.mulf %495, %501 : vector<1x4xf32>
    %cst_225 = arith.constant dense<0.000000e+00> : vector<1x96xf32>
    %503 = tpu.matmul %502, %488, %cst_225 {dimension_numbers = #tpu.dot_dimension_numbers<[1], [0], [0], [1], [0, 0, 1, 1], [], []>} : vector<1x4xf32>, vector<4x96xf32>, vector<1x96xf32> -> vector<1x96xf32>
    %504 = arith.addf %503, %489 : vector<1x96xf32>
    %cst_226 = arith.constant 0.000000e+00 : f32
    %505 = vector.broadcast %cst_226 : f32 to vector<1x96xf32>
    %506 = arith.subf %505, %504 : vector<1x96xf32>
    %507 = math.exp %506 : vector<1x96xf32>
    %cst_227 = arith.constant 1.000000e+00 : f32
    %508 = vector.broadcast %cst_227 : f32 to vector<1x96xf32>
    %509 = arith.addf %508, %507 : vector<1x96xf32>
    %510 = tpu.reciprocal %509 {approx = true} : vector<1x96xf32> -> vector<1x96xf32>
    %511 = vector.broadcast %510 : vector<1x96xf32> to vector<64x96xf32>
    %512 = arith.mulf %485, %511 : vector<64x96xf32>
    %c0_228 = arith.constant 0 : index
    %c0_229 = arith.constant 0 : index
    %513 = vector.load %arg20[%c0_228, %c0_229] : memref<96x32xf32, #tpu.memory_space<vmem>>, vector<96x32xf32>
    %cst_230 = arith.constant dense<0.000000e+00> : vector<64x32xf32>
    %514 = tpu.matmul %512, %513, %cst_230 {dimension_numbers = #tpu.dot_dimension_numbers<[1], [0], [0], [1], [0, 0, 1, 1], [], []>} : vector<64x96xf32>, vector<96x32xf32>, vector<64x32xf32> -> vector<64x32xf32>
    %c0_231 = arith.constant 0 : index
    %c0_232 = arith.constant 0 : index
    %515 = vector.load %arg21[%c0_231, %c0_232] : memref<1x32xf32, #tpu.memory_space<vmem>>, vector<1x32xf32>
    %516 = vector.broadcast %515 : vector<1x32xf32> to vector<64x32xf32>
    %517 = arith.addf %514, %516 : vector<64x32xf32>
    %c0_233 = arith.constant 0 : index
    %c0_234 = arith.constant 0 : index
    %518 = vector.load %arg22[%c0_233, %c0_234] : memref<32x64xf32, #tpu.memory_space<vmem>>, vector<32x64xf32>
    %cst_235 = arith.constant dense<0.000000e+00> : vector<64x64xf32>
    %519 = tpu.matmul %517, %518, %cst_235 {dimension_numbers = #tpu.dot_dimension_numbers<[1], [0], [0], [1], [0, 0, 1, 1], [], []>} : vector<64x32xf32>, vector<32x64xf32>, vector<64x64xf32> -> vector<64x64xf32>
    %c0_236 = arith.constant 0 : index
    %c0_237 = arith.constant 0 : index
    %520 = vector.load %arg23[%c0_236, %c0_237] : memref<1x64xf32, #tpu.memory_space<vmem>>, vector<1x64xf32>
    %521 = vector.broadcast %520 : vector<1x64xf32> to vector<64x64xf32>
    %522 = arith.addf %519, %521 : vector<64x64xf32>
    %cst_238 = arith.constant 0.000000e+00 : f32
    %523 = vector.broadcast %cst_238 : f32 to vector<64x64xf32>
    %524 = arith.subf %523, %522 : vector<64x64xf32>
    %525 = math.exp %524 : vector<64x64xf32>
    %cst_239 = arith.constant 1.000000e+00 : f32
    %526 = vector.broadcast %cst_239 : f32 to vector<64x64xf32>
    %527 = arith.addf %526, %525 : vector<64x64xf32>
    %528 = tpu.reciprocal %527 {approx = true} : vector<64x64xf32> -> vector<64x64xf32>
    %529 = arith.mulf %522, %528 : vector<64x64xf32>
    %cst_240 = arith.constant dense<0.000000e+00> : vector<64xf32>
    %530 = vector.multi_reduction <add>, %529, %cst_240 [0] : vector<64x64xf32> to vector<64xf32>
    %531 = vector.shape_cast %530 : vector<64xf32> to vector<1x64xf32>
    %cst_241 = arith.constant 6.400000e+01 : f32
    %532 = vector.broadcast %cst_241 : f32 to vector<1x64xf32>
    %533 = arith.divf %531, %532 : vector<1x64xf32>
    %c0_242 = arith.constant 0 : index
    %c0_243 = arith.constant 0 : index
    %534 = vector.load %arg24[%c0_242, %c0_243] : memref<64x32xf32, #tpu.memory_space<vmem>>, vector<64x32xf32>
    %cst_244 = arith.constant dense<0.000000e+00> : vector<1x32xf32>
    %535 = tpu.matmul %533, %534, %cst_244 {dimension_numbers = #tpu.dot_dimension_numbers<[1], [0], [0], [1], [0, 0, 1, 1], [], []>} : vector<1x64xf32>, vector<64x32xf32>, vector<1x32xf32> -> vector<1x32xf32>
    %c0_245 = arith.constant 0 : index
    %c0_246 = arith.constant 0 : index
    %536 = vector.load %arg25[%c0_245, %c0_246] : memref<1x32xf32, #tpu.memory_space<vmem>>, vector<1x32xf32>
    %537 = arith.addf %535, %536 : vector<1x32xf32>
    %cst_247 = arith.constant 0.000000e+00 : f32
    %538 = vector.broadcast %cst_247 : f32 to vector<1x32xf32>
    %539 = arith.maximumf %537, %538 : vector<1x32xf32>
    %c0_248 = arith.constant 0 : index
    %c0_249 = arith.constant 0 : index
    %540 = vector.load %arg26[%c0_248, %c0_249] : memref<32x16xf32, #tpu.memory_space<vmem>>, vector<32x16xf32>
    %cst_250 = arith.constant dense<0.000000e+00> : vector<1x16xf32>
    %541 = tpu.matmul %539, %540, %cst_250 {dimension_numbers = #tpu.dot_dimension_numbers<[1], [0], [0], [1], [0, 0, 1, 1], [], []>} : vector<1x32xf32>, vector<32x16xf32>, vector<1x16xf32> -> vector<1x16xf32>
    %c0_251 = arith.constant 0 : index
    %c0_252 = arith.constant 0 : index
    %542 = vector.load %arg27[%c0_251, %c0_252] : memref<1x16xf32, #tpu.memory_space<vmem>>, vector<1x16xf32>
    %543 = arith.addf %541, %542 : vector<1x16xf32>
    %cst_253 = arith.constant 0.000000e+00 : f32
    %544 = vector.broadcast %cst_253 : f32 to vector<1x16xf32>
    %545 = arith.maximumf %543, %544 : vector<1x16xf32>
    %c0_254 = arith.constant 0 : index
    %c0_255 = arith.constant 0 : index
    %546 = vector.load %arg28[%c0_254, %c0_255] : memref<16x7xf32, #tpu.memory_space<vmem>>, vector<16x7xf32>
    %cst_256 = arith.constant dense<0.000000e+00> : vector<1x7xf32>
    %547 = tpu.matmul %545, %546, %cst_256 {dimension_numbers = #tpu.dot_dimension_numbers<[1], [0], [0], [1], [0, 0, 1, 1], [], []>} : vector<1x16xf32>, vector<16x7xf32>, vector<1x7xf32> -> vector<1x7xf32>
    %c0_257 = arith.constant 0 : index
    %c0_258 = arith.constant 0 : index
    %548 = vector.load %arg29[%c0_257, %c0_258] : memref<1x7xf32, #tpu.memory_space<vmem>>, vector<1x7xf32>
    %549 = arith.addf %547, %548 : vector<1x7xf32>
    %550 = vector.shape_cast %549 : vector<1x7xf32> to vector<1x1x7xf32>
    %c0_259 = arith.constant 0 : index
    %c0_260 = arith.constant 0 : index
    %c0_261 = arith.constant 0 : index
    %551 = vector.load %arg30[%c0_259, %c0_260, %c0_261] : memref<1x1x7xf32, #tpu.memory_space<vmem>>, vector<1x1x7xf32>
    tpu.vector_store %arg30[%c0_259, %c0_260, %c0_261], %550 {strides = array<i32>} : memref<1x1x7xf32, #tpu.memory_space<vmem>>, vector<1x1x7xf32>,
    return
  }
  func.func @transform_0(%arg0: i32) -> (i32, i32, i32) {
    %c0_i32 = arith.constant 0 : i32
    %c0_i32_0 = arith.constant 0 : i32
    %c0_i32_1 = arith.constant 0 : i32
    return %arg0, %c0_i32, %c0_i32_0 : i32, i32, i32
  }
  func.func @transform_1(%arg0: i32) -> (i32, i32) {
    %c0_i32 = arith.constant 0 : i32
    %c0_i32_0 = arith.constant 0 : i32
    %c0_i32_1 = arith.constant 0 : i32
    return %c0_i32, %c0_i32_0 : i32, i32
  }
  func.func @transform_2(%arg0: i32) -> (i32, i32) {
    %c0_i32 = arith.constant 0 : i32
    %c0_i32_0 = arith.constant 0 : i32
    %c0_i32_1 = arith.constant 0 : i32
    return %c0_i32, %c0_i32_0 : i32, i32
  }
  func.func @transform_3(%arg0: i32) -> (i32, i32) {
    %c0_i32 = arith.constant 0 : i32
    %c0_i32_0 = arith.constant 0 : i32
    %c0_i32_1 = arith.constant 0 : i32
    return %c0_i32, %c0_i32_0 : i32, i32
  }
  func.func @transform_4(%arg0: i32) -> (i32, i32) {
    %c0_i32 = arith.constant 0 : i32
    %c0_i32_0 = arith.constant 0 : i32
    %c0_i32_1 = arith.constant 0 : i32
    return %c0_i32, %c0_i32_0 : i32, i32
  }
  func.func @transform_5(%arg0: i32) -> (i32, i32) {
    %c0_i32 = arith.constant 0 : i32
    %c0_i32_0 = arith.constant 0 : i32
    %c0_i32_1 = arith.constant 0 : i32
    return %c0_i32, %c0_i32_0 : i32, i32
  }
  func.func @transform_6(%arg0: i32) -> (i32, i32) {
    %c0_i32 = arith.constant 0 : i32
    %c0_i32_0 = arith.constant 0 : i32
    %c0_i32_1 = arith.constant 0 : i32
    return %c0_i32, %c0_i32_0 : i32, i32
  }
  func.func @transform_7(%arg0: i32) -> (i32, i32) {
    %c0_i32 = arith.constant 0 : i32
    %c0_i32_0 = arith.constant 0 : i32
    %c0_i32_1 = arith.constant 0 : i32
    return %c0_i32, %c0_i32_0 : i32, i32
  }
  func.func @transform_8(%arg0: i32) -> (i32, i32) {
    %c0_i32 = arith.constant 0 : i32
    %c0_i32_0 = arith.constant 0 : i32
    %c0_i32_1 = arith.constant 0 : i32
    return %c0_i32, %c0_i32_0 : i32, i32
  }
  func.func @transform_9(%arg0: i32) -> (i32, i32) {
    %c0_i32 = arith.constant 0 : i32
    %c0_i32_0 = arith.constant 0 : i32
    %c0_i32_1 = arith.constant 0 : i32
    return %c0_i32, %c0_i32_0 : i32, i32
  }
  func.func @transform_10(%arg0: i32) -> (i32, i32) {
    %c0_i32 = arith.constant 0 : i32
    %c0_i32_0 = arith.constant 0 : i32
    %c0_i32_1 = arith.constant 0 : i32
    return %c0_i32, %c0_i32_0 : i32, i32
  }
  func.func @transform_11(%arg0: i32) -> (i32, i32) {
    %c0_i32 = arith.constant 0 : i32
    %c0_i32_0 = arith.constant 0 : i32
    %c0_i32_1 = arith.constant 0 : i32
    return %c0_i32, %c0_i32_0 : i32, i32
  }
  func.func @transform_12(%arg0: i32) -> (i32, i32) {
    %c0_i32 = arith.constant 0 : i32
    %c0_i32_0 = arith.constant 0 : i32
    %c0_i32_1 = arith.constant 0 : i32
    return %c0_i32, %c0_i32_0 : i32, i32
  }
  func.func @transform_13(%arg0: i32) -> (i32, i32) {
    %c0_i32 = arith.constant 0 : i32
    %c0_i32_0 = arith.constant 0 : i32
    %c0_i32_1 = arith.constant 0 : i32
    return %c0_i32, %c0_i32_0 : i32, i32
  }
  func.func @transform_14(%arg0: i32) -> (i32, i32) {
    %c0_i32 = arith.constant 0 : i32
    %c0_i32_0 = arith.constant 0 : i32
    %c0_i32_1 = arith.constant 0 : i32
    return %c0_i32, %c0_i32_0 : i32, i32
  }
  func.func @transform_15(%arg0: i32) -> (i32, i32) {
    %c0_i32 = arith.constant 0 : i32
    %c0_i32_0 = arith.constant 0 : i32
    %c0_i32_1 = arith.constant 0 : i32
    return %c0_i32, %c0_i32_0 : i32, i32
  }
  func.func @transform_16(%arg0: i32) -> (i32, i32) {
    %c0_i32 = arith.constant 0 : i32
    %c0_i32_0 = arith.constant 0 : i32
    %c0_i32_1 = arith.constant 0 : i32
    return %c0_i32, %c0_i32_0 : i32, i32
  }
  func.func @transform_17(%arg0: i32) -> (i32, i32) {
    %c0_i32 = arith.constant 0 : i32
    %c0_i32_0 = arith.constant 0 : i32
    %c0_i32_1 = arith.constant 0 : i32
    return %c0_i32, %c0_i32_0 : i32, i32
  }
  func.func @transform_18(%arg0: i32) -> (i32, i32) {
    %c0_i32 = arith.constant 0 : i32
    %c0_i32_0 = arith.constant 0 : i32
    %c0_i32_1 = arith.constant 0 : i32
    return %c0_i32, %c0_i32_0 : i32, i32
  }
  func.func @transform_19(%arg0: i32) -> (i32, i32) {
    %c0_i32 = arith.constant 0 : i32
    %c0_i32_0 = arith.constant 0 : i32
    %c0_i32_1 = arith.constant 0 : i32
    return %c0_i32, %c0_i32_0 : i32, i32
  }
  func.func @transform_20(%arg0: i32) -> (i32, i32) {
    %c0_i32 = arith.constant 0 : i32
    %c0_i32_0 = arith.constant 0 : i32
    %c0_i32_1 = arith.constant 0 : i32
    return %c0_i32, %c0_i32_0 : i32, i32
  }
  func.func @transform_21(%arg0: i32) -> (i32, i32) {
    %c0_i32 = arith.constant 0 : i32
    %c0_i32_0 = arith.constant 0 : i32
    %c0_i32_1 = arith.constant 0 : i32
    return %c0_i32, %c0_i32_0 : i32, i32
  }
  func.func @transform_22(%arg0: i32) -> (i32, i32) {
    %c0_i32 = arith.constant 0 : i32
    %c0_i32_0 = arith.constant 0 : i32
    %c0_i32_1 = arith.constant 0 : i32
    return %c0_i32, %c0_i32_0 : i32, i32
  }
  func.func @transform_23(%arg0: i32) -> (i32, i32) {
    %c0_i32 = arith.constant 0 : i32
    %c0_i32_0 = arith.constant 0 : i32
    %c0_i32_1 = arith.constant 0 : i32
    return %c0_i32, %c0_i32_0 : i32, i32
  }
  func.func @transform_24(%arg0: i32) -> (i32, i32) {
    %c0_i32 = arith.constant 0 : i32
    %c0_i32_0 = arith.constant 0 : i32
    %c0_i32_1 = arith.constant 0 : i32
    return %c0_i32, %c0_i32_0 : i32, i32
  }
  func.func @transform_25(%arg0: i32) -> (i32, i32) {
    %c0_i32 = arith.constant 0 : i32
    %c0_i32_0 = arith.constant 0 : i32
    %c0_i32_1 = arith.constant 0 : i32
    return %c0_i32, %c0_i32_0 : i32, i32
  }
  func.func @transform_26(%arg0: i32) -> (i32, i32) {
    %c0_i32 = arith.constant 0 : i32
    %c0_i32_0 = arith.constant 0 : i32
    %c0_i32_1 = arith.constant 0 : i32
    return %c0_i32, %c0_i32_0 : i32, i32
  }
  func.func @transform_27(%arg0: i32) -> (i32, i32) {
    %c0_i32 = arith.constant 0 : i32
    %c0_i32_0 = arith.constant 0 : i32
    %c0_i32_1 = arith.constant 0 : i32
    return %c0_i32, %c0_i32_0 : i32, i32
  }
  func.func @transform_28(%arg0: i32) -> (i32, i32) {
    %c0_i32 = arith.constant 0 : i32
    %c0_i32_0 = arith.constant 0 : i32
    %c0_i32_1 = arith.constant 0 : i32
    return %c0_i32, %c0_i32_0 : i32, i32
  }
  func.func @transform_29(%arg0: i32) -> (i32, i32, i32) {
    %c0_i32 = arith.constant 0 : i32
    %c0_i32_0 = arith.constant 0 : i32
    %c0_i32_1 = arith.constant 0 : i32
    return %arg0, %c0_i32, %c0_i32_0 : i32, i32, i32
  }
}

</mosaic_0001>

<bundles_post_ra>
// kernel: forward.1
= control target key start
LH: loop header
LB: loop body
LE: loop exit
PB: predicated region body
PF: predicated region fallthrough
CT: control target
= control target key end

     0   :  { %s7730_s6 = smov 1   ;;  %s7731_s10 = smov 2   ;;  %s10592_s0 = inlined_call_operand.smem [shape: u32[30], index: -1, kind: input, shape index: {}] }
   0x1   :  { %s7770_s5 = sld [smem:[%s10592_s0]]   ;;  %s7732_s14 = smov 3  }
   0x2   :  { %s7775_s9 = sld [smem:[%s10592_s0 + %s7730_s6]]   ;;  %s7733_s18 = smov 4  }
   0x3   :  { %s7780_s13 = sld [smem:[%s10592_s0 + %s7731_s10]]   ;;  %s7734_s22 = smov 5  }
   0x4   :  { %s7785_s17 = sld [smem:[%s10592_s0 + %s7732_s14]]   ;;  %s7735_s26 = smov 6  }
   0x5   :  { %s7790_s21 = sld [smem:[%s10592_s0 + %s7733_s18]]   ;;  %s7736_s30 = smov 7  }
   0x6   :  { %s7795_s25 = sld [smem:[%s10592_s0 + %s7734_s22]]   ;;  %s7737_s4 = smov 8  }
   0x7   :  { %10681 = sst [smem:[#allocation10_spill]] %s7770_s5  ;;  %s7738_s10 = smov 9  }
   0x8   :  { %10682 = sst [smem:[#allocation11_spill]] %s7775_s9  ;;  %s7739_s15 = smov 10  }
   0x9   :  { %10683 = sst [smem:[#allocation12_spill]] %s7780_s13  ;;  %s7740_s20 = smov 11  }
   0xa   :  { %s7800_s29 = sld [smem:[%s10592_s0 + %s7735_s26]]   ;;  %s7741_s26 = smov 12  }
   0xb   :  { %s7805_s3 = sld [smem:[%s10592_s0 + %s7736_s30]]   ;;  %s7742_s1 = smov 13  }
   0xc   :  { %s7810_s8 = sld [smem:[%s10592_s0 + %s7737_s4]]   ;;  %s7743_s7 = smov 14  }
   0xd   :  { %s7815_s14 = sld [smem:[%s10592_s0 + %s7738_s10]]   ;;  %s7745_s22 = smov 16  }
   0xe   :  { %s7820_s19 = sld [smem:[%s10592_s0 + %s7739_s15]]   ;;  %s7744_s15 = smov 15  }
   0xf   :  { %s7825_s24 = sld [smem:[%s10592_s0 + %s7740_s20]]   ;;  %s7746_s28 = smov 17  }
  0x10   :  { %s7830_s30 = sld [smem:[%s10592_s0 + %s7741_s26]]  }
  0x11   :  { %10684 = sst [smem:[#allocation13_spill]] %s7805_s3 }
  0x12   :  { %10685 = sst [smem:[#allocation14_spill]] %s7810_s8 }
  0x13   :  { %10686 = sst [smem:[#allocation15_spill]] %s7815_s14 }
  0x14   :  { %s7835_s6 = sld [smem:[%s10592_s0 + %s7742_s1]]  }
  0x15   :  { %s7840_s12 = sld [smem:[%s10592_s0 + %s7743_s7]]   ;;  %s7747_s7 = smov 18  }
  0x16   :  { %s7845_s20 = sld [smem:[%s10592_s0 + %s7744_s15]]   ;;  %s7748_s15 = smov 19  }
  0x17   :  { %s7850_s27 = sld [smem:[%s10592_s0 + %s7745_s22]]   ;;  %s7749_s22 = smov 20  }
  0x18   :  { %s7855_s4 = sld [smem:[%s10592_s0 + %s7746_s28]]   ;;  %s7750_s28 = smov 21  }
  0x1a   :  { %10687 = sst [smem:[#allocation16_spill]] %s7835_s6 }
  0x1b   :  { %10688 = sst [smem:[#allocation17_spill]] %s7840_s12 }
  0x1c   :  { %10689 = sst [smem:[#allocation18_spill]] %s7845_s20 }
  0x1d   :  { %10690 = sst [smem:[#allocation19_spill]] %s7850_s27 }
  0x1e   :  { %10691 = sst [smem:[#allocation20_spill]] %s7855_s4 }
  0x1f   :  { %s7860_s12 = sld [smem:[%s10592_s0 + %s7747_s7]]   ;;  %s7751_s7 = smov 22  }
  0x20   :  { %s7865_s20 = sld [smem:[%s10592_s0 + %s7748_s15]]   ;;  %s7752_s15 = smov 23  }
  0x21   :  { %s7870_s27 = sld [smem:[%s10592_s0 + %s7749_s22]]   ;;  %s7753_s22 = smov 24  }
  0x22   :  { %s7875_s4 = sld [smem:[%s10592_s0 + %s7750_s28]]   ;;  %s7754_s28 = smov 25  }
  0x25   :  { %10692 = sst [smem:[#allocation21_spill]] %s7860_s12 }
  0x26   :  { %10693 = sst [smem:[#allocation22_spill]] %s7865_s20 }
  0x27   :  { %10694 = sst [smem:[#allocation23_spill]] %s7870_s27 }
  0x28   :  { %10695 = sst [smem:[#allocation24_spill]] %s7875_s4 }
  0x29   :  { %s7880_s12 = sld [smem:[%s10592_s0 + %s7751_s7]]   ;;  %s7755_s7 = smov 26  }
  0x2a   :  { %s7885_s20 = sld [smem:[%s10592_s0 + %s7752_s15]]   ;;  %s7756_s15 = smov 27  }
  0x2b   :  { %s7890_s27 = sld [smem:[%s10592_s0 + %s7753_s22]]   ;;  %s7757_s22 = smov 28  }
  0x2c   :  { %s7895_s4 = sld [smem:[%s10592_s0 + %s7754_s28]]   ;;  %s7758_s28 = smov 29  }
  0x2f   :  { %10696 = sst [smem:[#allocation25_spill]] %s7880_s12 }
  0x30   :  { %10697 = sst [smem:[#allocation26_spill]] %s7885_s20 }
  0x31   :  { %10698 = sst [smem:[#allocation27_spill]] %s7890_s27 }
  0x32   :  { %10699 = sst [smem:[#allocation28_spill]] %s7895_s4 }
  0x33   :  { %s7900_s12 = sld [smem:[%s10592_s0 + %s7755_s7]]  }
  0x34   :  { %s7905_s20 = sld [smem:[%s10592_s0 + %s7756_s15]]  }
  0x35   :  { %s7910_s27 = sld [smem:[%s10592_s0 + %s7757_s22]]  }
  0x36   :  { %s7915_s4 = sld [smem:[%s10592_s0 + %s7758_s28]]  }
  0x39   :  { %10700 = sst [smem:[#allocation29_spill]] %s7900_s12 }
  0x3a   :  { %64 = vsyncpa [#allocation8], 0 }
  0x3b   :  { %66 = vsyncpa [#allocation8 + $0x1], 0  ;;  %s7917_s7 = smov 0   ;;  %s7919_s10 = smov 0  }
  0x3c   :  { %s7921_s11 = smov 0   ;;  %s7923_s15 = smov 0  }
  0x3d LB: > { %s10701_s14 = sld [smem:[#allocation15_spill]]  ;;  %s7938_s0 = sadd.s32 4294967295, %s7728_s15   ;;  %s7728_s15 = sphi %s7923_s15, %s10992_s15   ;;  %s7724_s11 = sphi %s7921_s11, %s10991_s11   ;;  %s7720_s10 = sphi %s7919_s10, %s10990_s10   ;;  %s7716_s7 = sphi %s7917_s7, %s10989_s7  }
  0x3e   : > { %s10702_s13 = sld [smem:[#allocation12_spill]]  ;;  %s6518_s16 = sadd.s32 4294967294, %s7728_s15  }
  0x3f   : > { %s10703_s9 = sld [smem:[#allocation11_spill]]  ;;  %s7942_s18 = sadd.s32 1, %s7728_s15  }
  0x40   : > { %s10704_s6 = sld [smem:[#allocation16_spill]]  ;;  %s693_s22 = sadd.s32 1, %s7724_s11 }
  0x41   : > { %s690_s23 = ssub.s32 %s7728_s15, %s7942_s18  ;;  %p703_p0 = scmp.ne.s32.totalorder %s7724_s11, %s7720_s10 }
  0x42   : > { %p691_p1 = scmp.eq.s32.totalorder %s690_s23, 0  ;;  %p704_p2 = scmp.eq.s32.totalorder %s7938_s0, 1 }
  0x43   : > { %p709_p3 = scmp.ne.s32.totalorder %s7720_s10, %s7716_s7  ;;  %p710_p4 = scmp.eq.s32.totalorder %s6518_s16, 1 }
  0x44   : > { %s7953_s26 = scalar_select %p691_p1, %s7724_s11, %s693_s22  }
  0x45   : > { %p7955_p5 = por %p704_p2, %p703_p0  ;;  %p7959_p6 = por %p710_p4, %p709_p3 }
  0x46   : > { %p6521_p7 = scmp.ge.s32.totalorder %s7728_s15, 1  ;;  %p820_p8 = scmp.lt.s32.totalorder %s7728_s15, 3 }
  0x48   : > { %p821_p9 = pnand %p6521_p7, %p820_p8 }
  0x4a   : > { %824 = sbr.rel (%p821_p9) target bundleno = 3317 (0xcf5), region = 136 }
  0x4f   : > { %s10707_s5 = sld [smem:[#allocation10_spill]]  ;;  %v935_v0 = vld [vmem:[%s10703_s9 + $0x18] sm:$0x7]  ;;  %vm1040_vm0 = vcmask 1042432   ;;  %v934_v1 = vld [vmem:[%s10703_s9 + $0x10] sm:$0xff]  ;;  %p895_p10 = scmp.lt.s32.totalorder %s7938_s0, 1  ;;  %v1502_v63 = vlaneseq }
  0x50   : > { %6832 = vmatprep.subr.msk.mxu0 %vm1040_vm0, %v935_v0  ;;  %v933_v2 = vld [vmem:[%s10703_s9 + $0x8] sm:$0xff]  ;;  %v932_v3 = vld [vmem:[%s10703_s9] sm:$0xff]  ;;  %vm943_vm1 = vcmask 220160   ;;  %vm10652_vm2 = vcmask 130048   ;;  %v10605_v36 = vmov 0.0   ;;  %s10890_s3 = sld [smem:[#allocation13_spill]] }
  0x51   : > { %6833 = vmatpush3.msk.msra.mxu0 %vm1040_vm0, %v935_v0  ;;  %s896_s2 = scalar_select %p895_p10, %s7938_s0, 1  ;;  %1462 = vst.msk [vmem:[#allocation2] sm:$0xff] %vm10652_vm2, %v10605_v36  ;;  %1463 = vst.msk [vmem:[#allocation2 + $0x8] sm:$0xff] %vm10652_vm2, %v10605_v36  ;;  %6888 = vmatprep.subr.mxu1 %v10605_v36  ;;  %v8052_v37 = vld [vmem:[%s10702_s13] ss:$0 sm:$0xff] }
  0x52   : > { %6834 = vmatprep.subr.mxu0 %v934_v1  ;;  %1464 = vst.msk [vmem:[#allocation2 + $0x10] sm:$0xff] %vm10652_vm2, %v10605_v36  ;;  %1465 = vst.msk [vmem:[#allocation2 + $0x118] sm:$0xff] %vm10652_vm2, %v10605_v36  ;;  %s10894_s8 = sld [smem:[#allocation14_spill]] }
  0x53   : > { %6835 = vmatpush3.msra.mxu0 %v934_v1  ;;  %s6658_s16 = sshll.u32 %s896_s2, 8  ;;  %1466 = vst.msk [vmem:[#allocation2 + $0x120] sm:$0xff] %vm10652_vm2, %v10605_v36  ;;  %1467 = vst.msk [vmem:[#allocation2 + $0x128] sm:$0xff] %vm10652_vm2, %v10605_v36  ;;  %s10965_s23 = sld [smem:[#allocation18_spill]] }
  0x54   : > { %6836 = vmatprep.subr.mxu0 %v933_v2  ;;  %s10975_s2 = sld [smem:[#allocation17_spill]] }
  0x55   : > { %s7972_s22 = scalar_lea.vmem %s10707_s5, %s6658_s16  ;;  %6837 = vmatpush3.msra.mxu0 %v933_v2  ;;  %s10977_s16 = sld [smem:[#allocation20_spill]] }
  0x56   : > { %v900_v4 = vld [vmem:[%s7972_s22] sm:$0xff]  ;;  %v901_v5 = vld [vmem:[%s7972_s22 + $0x8] sm:$0xff]  ;;  %6838 = vmatprep.subr.mxu0 %v932_v3  ;;  %v902_v6 = vld [vmem:[%s7972_s22 + $0x10] sm:$0xff]  ;;  %s10987_s12 = sld [smem:[#allocation29_spill]] }
  0x57   : > { %6840 = vmatprep.mubr.msk.f32.mxu0 %vm943_vm1, %v900_v4  ;;  %6839 = vmatpush3.msra.mxu0 %v932_v3  ;;  %v903_v7 = vld [vmem:[%s7972_s22 + $0x18] sm:$0xff]  ;;  %v904_v8 = vld [vmem:[%s7972_s22 + $0x20] sm:$0xff]  ;;  %v905_v9 = vld [vmem:[%s7972_s22 + $0x28] sm:$0xff] }
  0x58   : > { %6841 = vmatmul.mubr.msk.f32.vlgmr.msra.gmra.mxu0 %vm943_vm1, %v901_v5  ;;  %v906_v10 = vld [vmem:[%s7972_s22 + $0x30] sm:$0xff]  ;;  %v907_v11 = vld [vmem:[%s7972_s22 + $0x38] sm:$0xff]  ;;  %v908_v12 = vld [vmem:[%s7972_s22 + $0x40] sm:$0xff]  ;;  %v8084_v5 = vshrl.u32 %v1502_v63, 7 }
  0x59   : > { %6843 = vmatprep.mubr.msk.f32.mxu0 %vm943_vm1, %v902_v6  ;;  %v909_v13 = vld [vmem:[%s7972_s22 + $0x48] sm:$0xff]  ;;  %v910_v14 = vld [vmem:[%s7972_s22 + $0x50] sm:$0xff]  ;;  %v911_v15 = vld [vmem:[%s7972_s22 + $0x58] sm:$0xff] }
  0x5a   : > { %v912_v16 = vld [vmem:[%s7972_s22 + $0x60] sm:$0xff]  ;;  %v913_v17 = vld [vmem:[%s7972_s22 + $0x68] sm:$0xff]  ;;  %v914_v18 = vld [vmem:[%s7972_s22 + $0x70] sm:$0xff]  ;;  %10708 = vst [vmem:[#allocation30_spill] sm:$0xff] %v8084_v5 }
  0x5b   : > { %v915_v19 = vld [vmem:[%s7972_s22 + $0x78] sm:$0xff]  ;;  %v916_v20 = vld [vmem:[%s7972_s22 + $0x80] sm:$0xff]  ;;  %v917_v21 = vld [vmem:[%s7972_s22 + $0x88] sm:$0xff] }
  0x5c   : > { %6844 = vmatmul.mubr.msk.f32.gmra.mxu0 %vm943_vm1, %v903_v7  ;;  %v918_v22 = vld [vmem:[%s7972_s22 + $0x90] sm:$0xff]  ;;  %v919_v23 = vld [vmem:[%s7972_s22 + $0x98] sm:$0xff]  ;;  %v920_v24 = vld [vmem:[%s7972_s22 + $0xa0] sm:$0xff] }
  0x5d   : > { %6846 = vmatprep.mubr.msk.f32.mxu0 %vm943_vm1, %v904_v8  ;;  %v921_v25 = vld [vmem:[%s7972_s22 + $0xa8] sm:$0xff]  ;;  %v922_v26 = vld [vmem:[%s7972_s22 + $0xb0] sm:$0xff]  ;;  %v923_v27 = vld [vmem:[%s7972_s22 + $0xb8] sm:$0xff] }
  0x5e   : > { %v924_v28 = vld [vmem:[%s7972_s22 + $0xc0] sm:$0xff]  ;;  %v925_v29 = vld [vmem:[%s7972_s22 + $0xc8] sm:$0xff]  ;;  %v926_v30 = vld [vmem:[%s7972_s22 + $0xd0] sm:$0xff] }
  0x5f   : > { %v927_v31 = vld [vmem:[%s7972_s22 + $0xd8] sm:$0xff]  ;;  %v928_v32 = vld [vmem:[%s7972_s22 + $0xe0] sm:$0xff]  ;;  %v929_v33 = vld [vmem:[%s7972_s22 + $0xe8] sm:$0xff] }
  0x60   : > { %6847 = vmatmul.mubr.msk.f32.gmra.mxu0 %vm943_vm1, %v905_v9  ;;  %v930_v34 = vld [vmem:[%s7972_s22 + $0xf0] sm:$0xff]  ;;  %v931_v35 = vld [vmem:[%s7972_s22 + $0xf8] sm:$0xff]  ;;  %s10978_s22 = sld [smem:[#allocation19_spill]] }
  0x61   : > { %6849 = vmatprep.mubr.msk.f32.mxu0 %vm943_vm1, %v906_v10 }
  0x64   : > { %6850 = vmatmul.mubr.msk.f32.gmra.mxu0 %vm943_vm1, %v907_v11 }
  0x65   : > { %6852 = vmatprep.mubr.msk.f32.mxu0 %vm943_vm1, %v908_v12 }
  0x68   : > { %6853 = vmatmul.mubr.msk.f32.gmra.mxu0 %vm943_vm1, %v909_v13 }
  0x69   : > { %6855 = vmatprep.mubr.msk.f32.mxu0 %vm943_vm1, %v910_v14  ;;  %v10604_v14 = vsub.s32 1, %v8084_v5 }
  0x6c   : > { %6856 = vmatmul.mubr.msk.f32.gmra.mxu0 %vm943_vm1, %v911_v15 }
  0x6d   : > { %6858 = vmatprep.mubr.msk.f32.mxu0 %vm943_vm1, %v912_v16 }
  0x70   : > { %6859 = vmatmul.mubr.msk.f32.gmra.mxu0 %vm943_vm1, %v913_v17 }
  0x71   : > { %6861 = vmatprep.mubr.msk.f32.mxu0 %vm943_vm1, %v914_v18  ;;  %v8096_v18 = vld [vmem:[%s7785_s17] sm:$0xff] }
  0x74   : > { %6862 = vmatmul.mubr.msk.f32.gmra.mxu0 %vm943_vm1, %v915_v19 }
  0x75   : > { %6864 = vmatprep.mubr.msk.f32.mxu0 %vm943_vm1, %v916_v20 }
  0x78   : > { %6865 = vmatmul.mubr.msk.f32.gmra.mxu0 %vm943_vm1, %v917_v21 }
  0x79   : > { %6867 = vmatprep.mubr.msk.f32.mxu0 %vm943_vm1, %v918_v22  ;;  %v1523_v22 = vand.u32 15, %v8084_v5 }
  0x7b   : > { %vm8125_vm3 = vcmp.ne.s32.totalorder %v1523_v22, 0 }
  0x7c   : > { %6868 = vmatmul.mubr.msk.f32.gmra.mxu0 %vm943_vm1, %v919_v23 }
  0x7d   : > { %6870 = vmatprep.mubr.msk.f32.mxu0 %vm943_vm1, %v920_v24 }
  0x80   : > { %6871 = vmatmul.mubr.msk.f32.gmra.mxu0 %vm943_vm1, %v921_v25 }
  0x81   : > { %6873 = vmatprep.mubr.msk.f32.mxu0 %vm943_vm1, %v922_v26  ;;  %v8106_v26 = vsub.s32 0, %v8084_v5 }
  0x83   : > { %10709 = vst [vmem:[#allocation31_spill] sm:$0xff] %v8106_v26 }
  0x84   : > { %6874 = vmatmul.mubr.msk.f32.gmra.mxu0 %vm943_vm1, %v923_v27 }
  0x85   : > { %6876 = vmatprep.mubr.msk.f32.mxu0 %vm943_vm1, %v924_v28 }
  0x88   : > { %6877 = vmatmul.mubr.msk.f32.gmra.mxu0 %vm943_vm1, %v925_v29 }
  0x89   : > { %6879 = vmatprep.mubr.msk.f32.mxu0 %vm943_vm1, %v926_v30  ;;  %v8115_v30 = vrot.slane %v8096_v18, %v10604_v14 }
  0x8c   : > { %6880 = vmatmul.mubr.msk.f32.gmra.mxu0 %vm943_vm1, %v927_v31 }
  0x8d   : > { %6882 = vmatprep.mubr.msk.f32.mxu0 %vm943_vm1, %v928_v32 }
  0x90   : > { %6883 = vmatmul.mubr.msk.f32.gmra.mxu0 %vm943_vm1, %v929_v33 }
  0x91   : > { %6885 = vmatprep.mubr.msk.f32.mxu0 %vm943_vm1, %v930_v34  ;;  %v8119_v34 = vadd.s32 8, %v8084_v5 }
  0x93   : > { %10710 = vst [vmem:[#allocation32_spill] sm:$0xff] %v8119_v34 }
  0x94   : > { %6886 = vmatmul.mubr.msk.f32.gmra.mxu0 %vm943_vm1, %v931_v35  ;;  %v8122_v35 = vadd.s32 16, %v8084_v5 }
  0x96   : > { %10711 = vst [vmem:[#allocation33_spill] sm:$0xff] %v8122_v35  ;;  %v1537_v63 = vand.u32 15, %v8122_v35 }
  0x98   : > { %vm8159_vm4 = vcmp.ne.s32.totalorder %v1537_v63, 0 }
 0x118   : > { %v6842_v38 = vpop.f32.mrf.mxu0 }
 0x119   : > { %v8055_v39 = vadd.f32 %v6842_v38, %v8052_v37 }
 0x11a   : > { %v1110_v40 = vpop.f32.mrf.mxu0 }
 0x11b   : > { %v1270_v41 = vsub.f32 0.0, %v8055_v39  ;;  %v8059_v42 = vadd.f32 %v8052_v37, %v1110_v40  ;;  %v10712_v40 = vmov 0 }
 0x11c   : > { %v6845_v43 = vpop.f32.mrf.mxu0  ;;  %v10713_v40 = vsel %vm8125_vm3, 4294967295, %v10712_v40 }
 0x11d   : > { %v1303_v44 = vmul.f32 1.442695, %v1270_v41  ;;  %v1269_v45 = vsub.f32 0.0, %v8059_v42  ;;  %v8063_v46 = vadd.f32 %v6845_v43, %v8052_v37  ;;  %10714 = vst [vmem:[#allocation34_spill] sm:$0xff] %v10713_v40  ;;  %v1743_v41 = vld [vmem:[#allocation2 + $0x7] sm:$0xff] }
 0x11e   : > { %v1120_v47 = vpop.f32.mrf.mxu0 }
 0x11f   : > { %7199 = vpow2.f32 %v1303_v44  ;;  %v1301_v48 = vmul.f32 1.442695, %v1269_v45  ;;  %v1272_v49 = vsub.f32 0.0, %v8063_v46  ;;  %v8067_v50 = vadd.f32 %v8052_v37, %v1120_v47 }
 0x120   : > { %v6848_v51 = vpop.f32.mrf.mxu0  ;;  %v8132_v47 = vrot.slane %v8096_v18, %v8106_v26 }
 0x121   : > { %7201 = vpow2.f32 %v1301_v48  ;;  %v1307_v52 = vmul.f32 1.442695, %v1272_v49  ;;  %v1271_v53 = vsub.f32 0.0, %v8067_v50  ;;  %v8071_v54 = vadd.f32 %v6848_v51, %v8052_v37 }
 0x122   : > { %v1130_v55 = vpop.f32.mrf.mxu0  ;;  %v10603_v51 = vsub.s32 2, %v8084_v5 }
 0x123   : > { %7203 = vpow2.f32 %v1307_v52  ;;  %v1305_v56 = vmul.f32 1.442695, %v1271_v53  ;;  %v1274_v57 = vsub.f32 0.0, %v8071_v54  ;;  %v8075_v58 = vadd.f32 %v8052_v37, %v1130_v55 }
 0x124   : > { %v6851_v59 = vpop.f32.mrf.mxu0  ;;  %v10602_v55 = vsub.s32 4, %v8084_v5 }
 0x125   : > { %7205 = vpow2.f32 %v1305_v56  ;;  %v1311_v60 = vmul.f32 1.442695, %v1274_v57  ;;  %v1273_v61 = vsub.f32 0.0, %v8075_v58  ;;  %v8079_v1 = vadd.f32 %v6851_v59, %v8052_v37  ;;  %v1843_v57 = vld [vmem:[#allocation2 + $0x8] sm:$0xff] }
 0x126   : > { %v1140_v62 = vpop.f32.mrf.mxu0  ;;  %v1791_v56 = vsel %vm8125_vm3, %v1743_v41, 0.0  ;;  %v8174_v41 = vadd.s32 24, %v8084_v5 }
 0x127   : > { %7207 = vpow2.f32 %v1311_v60  ;;  %v1309_v0 = vmul.f32 1.442695, %v1273_v61  ;;  %v8082_v3 = vadd.f32 %v8052_v37, %v1140_v62  ;;  %v1276_v7 = vsub.f32 0.0, %v8079_v1 }
 0x128   : > { %v6854_v2 = vpop.f32.mrf.mxu0  ;;  %v1530_v62 = vand.u32 15, %v8119_v34  ;;  %10721 = vst [vmem:[#allocation37_spill] sm:$0xff] %v8174_v41 }
 0x129   : > { %7209 = vpow2.f32 %v1309_v0  ;;  %v1275_v11 = vsub.f32 0.0, %v8082_v3  ;;  %v8089_v12 = vadd.f32 %v6854_v2, %v8052_v37  ;;  %v1315_v19 = vmul.f32 1.442695, %v1276_v7  ;;  %v1744_v2 = vld [vmem:[#allocation2 + $0xf] sm:$0xff] }
 0x12a   : > { %v1150_v4 = vpop.f32.mrf.mxu0  ;;  %v1863_v7 = vmul.f32 %v8115_v30, %v1843_v57  ;;  %vm8167_vm5 = vcmp.ne.s32.totalorder %v1530_v62, 15 }
 0x12b   : > { %v8093_v16 = vadd.f32 %v8052_v37, %v1150_v4  ;;  %v1313_v27 = vmul.f32 1.442695, %v1275_v11  ;;  %v1278_v28 = vsub.f32 0.0, %v8089_v12  ;;  %v1811_v4 = vmul.f32 %v8132_v47, %v1791_v56  ;;  %v1895_v11 = vld [vmem:[#allocation2 + $0x9] sm:$0xff] }
 0x12c   : > { %v7200_v6 = vpop.eup %7199  ;;  %v6857_v8 = vpop.f32.mrf.mxu0 }
 0x12d   : > { %v1366_v9 = vadd.f32 1.0, %v7200_v6  ;;  %v8099_v20 = vadd.f32 %v6857_v8, %v8052_v37  ;;  %v1277_v32 = vsub.f32 0.0, %v8093_v16  ;;  %v1319_v48 = vmul.f32 1.442695, %v1278_v28  ;;  %v1844_v6 = vld [vmem:[#allocation2 + $0x10] sm:$0xff] }
 0x12e   : > { %v7202_v10 = vpop.eup %7201  ;;  %v1160_v13 = vpop.f32.mrf.mxu0  ;;  %v8146_v8 = vrot.slane %v8096_v18, %v10603_v51  ;;  %v10718_v28 = vmov 0 }
 0x12f   : > { %7211 = vrcp.f32 %v1366_v9  ;;  %v1365_v15 = vadd.f32 1.0, %v7202_v10  ;;  %v8103_v24 = vadd.f32 %v8052_v37, %v1160_v13  ;;  %v1280_v38 = vsub.f32 0.0, %v8099_v20 }
 0x130   : > { %v7204_v17 = vpop.eup %7203  ;;  %v6860_v21 = vpop.f32.mrf.mxu0  ;;  %v1317_v53 = vmul.f32 1.442695, %v1277_v32  ;;  %v8151_v10 = vrot.slane %v8096_v18, %v10602_v55  ;;  %v10719_v28 = vsel %vm8167_vm5, 4294967295, %v10718_v28  ;;  %v1963_v32 = vmul.f32 %v8146_v8, %v1895_v11 }
 0x131   : > { %7213 = vrcp.f32 %v1365_v15  ;;  %v1368_v23 = vadd.f32 1.0, %v7204_v17  ;;  %v8110_v29 = vadd.f32 %v6860_v21, %v8052_v37  ;;  %v1279_v44 = vsub.f32 0.0, %v8103_v24  ;;  %10720 = vst [vmem:[#allocation36_spill] sm:$0xff] %v10719_v28 }
 0x132   : > { %v7206_v25 = vpop.eup %7205  ;;  %v1323_v59 = vmul.f32 1.442695, %v1280_v38  ;;  %v1170_v61 = vpop.f32.mrf.mxu0  ;;  %v10601_v17 = vsub.s32 3, %v8084_v5 }
 0x133   : > { %7215 = vrcp.f32 %v1368_v23  ;;  %v1367_v31 = vadd.f32 1.0, %v7206_v25  ;;  %v1282_v49 = vsub.f32 0.0, %v8110_v29  ;;  %v1321_v60 = vmul.f32 1.442695, %v1279_v44 }
 0x134   : > { %v7208_v33 = vpop.eup %7207  ;;  %7217 = vpow2.f32 %v1315_v19  ;;  %v8154_v13 = vadd.f32 %v8052_v37, %v1170_v61  ;;  %v10600_v19 = vsub.s32 5, %v8084_v5  ;;  %v6863_v21 = vpop.f32.mrf.mxu0  ;;  %v1812_v25 = vmul.f32 %v8132_v47, %v1744_v2 }
 0x135   : > { %7219 = vrcp.f32 %v1367_v31  ;;  %v1370_v43 = vadd.f32 1.0, %v7208_v33  ;;  %v1327_v0 = vmul.f32 1.442695, %v1282_v49  ;;  %v1879_v31 = vadd.f32 %v1863_v7, %v1811_v4 }
 0x136   : > { %v7210_v45 = vpop.eup %7209  ;;  %7221 = vpow2.f32 %v1313_v27  ;;  %10715 = vst [vmem:[#allocation35_spill] sm:$0xff] %v8154_v13  ;;  %v1864_v27 = vmul.f32 %v8115_v30, %v1844_v6  ;;  %v10599_v33 = vsub.s32 7, %v8084_v5  ;;  %v1281_v44 = vsub.f32 0.0, %v8154_v13  ;;  %v1180_v4 = vpop.f32.mrf.mxu0 }
 0x137   : > { %7223 = vrcp.f32 %v1370_v43  ;;  %v1369_v52 = vadd.f32 1.0, %v7210_v45  ;;  %v8177_v43 = vadd.s32 32, %v8084_v5  ;;  %v8197_v57 = vrot.slane %v8096_v18, %v10600_v19 }
 0x138   : > { %v8206_v61 = vadd.s32 64, %v8084_v5  ;;  %v8208_v62 = vadd.f32 %v1864_v27, %v1812_v25  ;;  %v1979_v63 = vadd.f32 %v1963_v32, %v1879_v31  ;;  %v1544_v7 = vand.u32 15, %v8174_v41 }
 0x139   : > { %7225 = vrcp.f32 %v1369_v52  ;;  %10722 = vst [vmem:[#allocation38_spill] sm:$0xff] %v8177_v43  ;;  %v10598_v52 = vsub.s32 6, %v8084_v5  ;;  %v1325_v11 = vmul.f32 1.442695, %v1281_v44  ;;  %v8247_v19 = vadd.s32 96, %v8084_v5 }
 0x13a   : > { %7227 = vpow2.f32 %v1319_v48  ;;  %v8187_v48 = vrot.slane %v8096_v18, %v10601_v17  ;;  %vm8242_vm6 = vcmp.ne.s32.totalorder %v1544_v7, 15  ;;  %v10732_v41 = vmov 0 }
 0x13b   : > { %7229 = vpow2.f32 %v1317_v53  ;;  %v8192_v53 = vadd.s32 40, %v8084_v5  ;;  %10729 = vst [vmem:[#allocation43_spill] sm:$0xff] %v8247_v19 }
 0x13c   : > { %v7212_v9 = vpop.eup %7211  ;;  %7231 = vpow2.f32 %v1323_v59  ;;  %v8200_v59 = vadd.s32 48, %v8084_v5 }
 0x13d   : > { %v1430_v15 = vmul.f32 %v7212_v9, %v8055_v39  ;;  %7233 = vpow2.f32 %v1321_v60  ;;  %10724 = vst [vmem:[#allocation40_spill] sm:$0xff] %v8192_v53  ;;  %v8203_v60 = vadd.s32 56, %v8084_v5  ;;  %v1551_v9 = vand.u32 15, %v8177_v43 }
 0x13e   : > { %v7214_v22 = vpop.eup %7213  ;;  %7235 = vpow2.f32 %v1327_v0  ;;  %10725 = vst [vmem:[#allocation41_spill] sm:$0xff] %v8200_v59  ;;  %v8214_v0 = vrot.slane %v8096_v18, %v10599_v33 }
 0x13f   : > { %1469 = vst.msk [vmem:[#allocation2 + $0x20] sm:$0xff] %vm10652_vm2, %v1430_v15  ;;  %v1429_v39 = vmul.f32 %v7214_v22, %v8059_v42  ;;  %v8181_v42 = vadd.f32 %v6863_v21, %v8052_v37  ;;  %v8224_v21 = vrot.slane %v8096_v18, %v10598_v52  ;;  %7237 = vpow2.f32 %v1325_v11 }
 0x140   : > { %v7216_v38 = vpop.eup %7215  ;;  %vm8269_vm7 = vcmp.ne.s32.totalorder %v1551_v9, 0 }
 0x141   : > { %10723 = vst [vmem:[#allocation39_spill] sm:$0xff] %v8181_v42  ;;  %v7218_v45 = vpop.eup %7217  ;;  %1468 = vst.msk [vmem:[#allocation2 + $0x18] sm:$0xff] %vm10652_vm2, %v1429_v39  ;;  %v1432_v49 = vmul.f32 %v7216_v38, %v8063_v46  ;;  %v1284_v15 = vsub.f32 0.0, %v8181_v42  ;;  %v8232_v38 = vadd.s32 72, %v8084_v5  ;;  %v10733_v41 = vsel %vm8269_vm7, 4294967295, %v10732_v41 }
 0x142   : > { %v7220_v56 = vpop.eup %7219  ;;  %v1372_v25 = vadd.f32 1.0, %v7218_v45  ;;  %v8240_v45 = vadd.s32 88, %v8084_v5  ;;  %10734 = vst [vmem:[#allocation46_spill] sm:$0xff] %v10733_v41 }
 0x143   : > { %v7222_v46 = vpop.eup %7221  ;;  %1471 = vst.msk [vmem:[#allocation2 + $0x30] sm:$0xff] %vm10652_vm2, %v1432_v49  ;;  %v1431_v2 = vmul.f32 %v7220_v56, %v8067_v50  ;;  %v6866_v56 = vpop.f32.mrf.mxu0 }
 0x144   : > { %v7224_v6 = vpop.eup %7223  ;;  %v1371_v49 = vadd.f32 1.0, %v7222_v46  ;;  %10726 = vst [vmem:[#allocation42_spill] sm:$0xff] %v8240_v45  ;;  %v8252_v46 = vadd.f32 %v8052_v37, %v1180_v4  ;;  %7239 = vrcp.f32 %v1372_v25 }
 0x145   : > { %1470 = vst.msk [vmem:[#allocation2 + $0x28] sm:$0xff] %vm10652_vm2, %v1431_v2  ;;  %v1434_v22 = vmul.f32 %v7224_v6, %v8071_v54  ;;  %v8237_v54 = vadd.s32 80, %v8084_v5  ;;  %v1190_v25 = vpop.f32.mrf.mxu0 }
 0x146   : > { %v7226_v27 = vpop.eup %7225  ;;  %10730 = vst [vmem:[#allocation44_spill] sm:$0xff] %v8252_v46  ;;  %7241 = vrcp.f32 %v1371_v49 }
 0x147   : > { %v7228_v44 = vpop.eup %7227  ;;  %1473 = vst.msk [vmem:[#allocation2 + $0x40] sm:$0xff] %vm10652_vm2, %v1434_v22  ;;  %v1433_v18 = vmul.f32 %v7226_v27, %v8075_v58  ;;  %v8249_v58 = vmul.f32 1.442695, %v1284_v15 }
 0x148   : > { %v7230_v2 = vpop.eup %7229  ;;  %v1745_v6 = vld [vmem:[#allocation2 + $0x17] sm:$0xff]  ;;  %v1746_v11 = vld [vmem:[#allocation2 + $0x1f] sm:$0xff]  ;;  %v1374_v32 = vadd.f32 1.0, %v7228_v44 }
 0x149   : > { %v1845_v52 = vld [vmem:[#allocation2 + $0x18] sm:$0xff]  ;;  %v7232_v22 = vpop.eup %7231  ;;  %v1793_v27 = vsel %vm8159_vm4, %v1745_v6, 0.0  ;;  %v1997_v7 = vsel %vm8125_vm3, %v1745_v6, 0.0  ;;  %1472 = vst.msk [vmem:[#allocation2 + $0x38] sm:$0xff] %vm10652_vm2, %v1433_v18  ;;  %v1373_v50 = vadd.f32 1.0, %v7230_v2  ;;  %v8266_v6 = vadd.f32 %v6866_v56, %v8052_v37  ;;  %v1846_v18 = vld [vmem:[#allocation2 + $0x20] sm:$0xff] }
 0x14a   : > { %v1865_v17 = vmul.f32 %v8115_v30, %v1845_v52  ;;  %v1896_v55 = vld [vmem:[#allocation2 + $0x11] sm:$0xff]  ;;  %v7234_v51 = vpop.eup %7233  ;;  %v1813_v15 = vmul.f32 %v8132_v47, %v1793_v27  ;;  %v1897_v14 = vld [vmem:[#allocation2 + $0x19] sm:$0xff]  ;;  %v2017_v36 = vmul.f32 %v8187_v48, %v1997_v7  ;;  %v2055_v27 = vmul.f32 %v8151_v10, %v1845_v52 }
 0x14b   : > { %v1944_v4 = vsel %vm8167_vm5, %v1896_v55, 0.0  ;;  %v7236_v31 = vpop.eup %7235  ;;  %10731 = vst [vmem:[#allocation45_spill] sm:$0xff] %v8266_v6  ;;  %v1376_v55 = vadd.f32 1.0, %v7232_v22  ;;  %v1965_v44 = vmul.f32 %v8146_v8, %v1897_v14  ;;  %v2018_v49 = vmul.f32 %v8187_v48, %v1746_v11 }
 0x14c   : > { %v1964_v39 = vmul.f32 %v8146_v8, %v1944_v4  ;;  %v1881_v26 = vadd.f32 %v1865_v17, %v1813_v15  ;;  %v2033_v43 = vadd.f32 %v2017_v36, %v1979_v63  ;;  %v8276_v2 = vld [vmem:[#allocation2 + $0x27] sm:$0xff]  ;;  %v1375_v56 = vadd.f32 1.0, %v7234_v51 }
 0x14d   : > { %7243 = vrcp.f32 %v1374_v32  ;;  %v1378_v17 = vadd.f32 1.0, %v7236_v31  ;;  %v8279_v36 = vadd.f32 %v8052_v37, %v1190_v25  ;;  %v2056_v52 = vmul.f32 %v8151_v10, %v1846_v18  ;;  %v1898_v22 = vld [vmem:[#allocation2 + $0x21] sm:$0xff]  ;;  %v6869_v32 = vpop.f32.mrf.mxu0 }
 0x14e   : > { %v1980_v7 = vadd.f32 %v1964_v39, %v8208_v62  ;;  %v2071_v4 = vadd.f32 %v2055_v27, %v2033_v43  ;;  %v1981_v63 = vadd.f32 %v1965_v44, %v1881_v26  ;;  %7245 = vrcp.f32 %v1373_v50  ;;  %v1847_v25 = vld [vmem:[#allocation2 + $0x28] sm:$0xff] }
 0x14f   : > { %10735 = vst [vmem:[#allocation47_spill] sm:$0xff] %v8279_v36  ;;  %v2109_v15 = vmul.f32 %v8197_v57, %v1897_v14  ;;  %v1999_v62 = vsel %vm8159_vm4, %v8276_v2, 0.0  ;;  %7247 = vrcp.f32 %v1376_v55  ;;  %v1283_v51 = vsub.f32 0.0, %v8252_v46 }
 0x150   : > { %v2034_v9 = vadd.f32 %v2018_v49, %v1980_v7  ;;  %v2019_v39 = vmul.f32 %v8187_v48, %v1999_v62  ;;  %7249 = vrcp.f32 %v1375_v56  ;;  %v1286_v31 = vsub.f32 0.0, %v8266_v6  ;;  %v1748_v56 = vld [vmem:[#allocation2 + $0x2f] sm:$0xff]  ;;  %v8356_v34 = vld [vmem:[#allocation2 + $0x39] sm:$0xff] }
 0x151   : > { %v2125_v26 = vadd.f32 %v2109_v15, %v2071_v4  ;;  %v2090_v14 = vsel %vm8167_vm5, %v1898_v22, 0.0  ;;  %7251 = vrcp.f32 %v1378_v17  ;;  %v1285_v50 = vsub.f32 0.0, %v8279_v36  ;;  %v8312_v15 = vld [vmem:[%s7785_s17 + $0x8] ss:$0 sm:$0xff]  ;;  %v1899_v62 = vld [vmem:[#allocation2 + $0x29] sm:$0xff] }
 0x152   : > { %v2072_v43 = vadd.f32 %v2056_v52, %v2034_v9  ;;  %v1946_v27 = vsel %vm8242_vm6, %v1898_v22, 0.0  ;;  %v2035_v55 = vadd.f32 %v2019_v39, %v1981_v63  ;;  %v2110_v44 = vmul.f32 %v8197_v57, %v2090_v14  ;;  %v8309_v22 = vpop.eup %7237 }
 0x153   : > { %v2143_v7 = vsel %vm8125_vm3, %v8276_v2, 0.0  ;;  %v1814_v49 = vmul.f32 %v8132_v47, %v1746_v11  ;;  %v10736_v52 = vand.u32 15, %v8192_v53  ;;  %v10737_v17 = vmov 0 }
 0x154   : > { %v2163_v4 = vmul.f32 %v8224_v21, %v2143_v7  ;;  %v1329_v9 = vmul.f32 1.442695, %v1283_v51  ;;  %v8307_v63 = vadd.f32 %v6869_v32, %v8052_v37  ;;  %v2057_v11 = vmul.f32 %v8151_v10, %v1847_v25  ;;  %v7240_v7 = vpop.eup %7239 }
 0x155   : > { %vm8302_vm8 = vcmp.ne.s32.totalorder %v10736_v52, 15  ;;  %v2126_v39 = vadd.f32 %v2110_v44, %v2072_v43  ;;  %7253 = vpow2.f32 %v8249_v58  ;;  %v1335_v14 = vmul.f32 1.442695, %v1286_v31 }
 0x156   : > { %v10738_v17 = vsel %vm8302_vm8, 4294967295, %v10737_v17  ;;  %10740 = vst [vmem:[#allocation49_spill] sm:$0xff] %v8307_v63  ;;  %v1866_v52 = vmul.f32 %v8115_v30, %v1846_v18  ;;  %v1966_v40 = vmul.f32 %v8146_v8, %v1946_v27  ;;  %v2179_v51 = vadd.f32 %v2163_v4, %v2125_v26  ;;  %v7242_v18 = vpop.eup %7241  ;;  %v1848_v27 = vld [vmem:[#allocation2 + $0x30] sm:$0xff] }
 0x157   : > { %10739 = vst [vmem:[#allocation48_spill] sm:$0xff] %v10738_v17  ;;  %v2201_v32 = vmul.f32 %v8214_v0, %v1847_v25  ;;  %v1795_v53 = vsel %vm8269_vm7, %v8276_v2, 0.0  ;;  %v2073_v35 = vadd.f32 %v2057_v11, %v2035_v55  ;;  %v2164_v36 = vmul.f32 %v8224_v21, %v1748_v56  ;;  %v8332_v11 = vld [vmem:[#allocation2 + $0x37] sm:$0xff] }
 0x158   : > { %v10741_v43 = vand.u32 15, %v8200_v59  ;;  %v1333_v31 = vmul.f32 1.442695, %v1285_v50  ;;  %v1882_v44 = vadd.f32 %v1866_v52, %v1814_v49  ;;  %v2255_v4 = vmul.f32 %v8312_v15, %v1899_v62 }
 0x159   : > { %v2217_v26 = vadd.f32 %v2201_v32, %v2179_v51  ;;  %v1288_v6 = vsub.f32 0.0, %v8307_v63  ;;  %v2111_v2 = vmul.f32 %v8197_v57, %v1899_v62  ;;  %v2180_v55 = vadd.f32 %v2164_v36, %v2126_v39  ;;  %v8340_v63 = vld [vmem:[#allocation2 + $0x31] sm:$0xff] }
 0x15a   : > { %vm8325_vm9 = vcmp.ne.s32.totalorder %v10741_v43, 0  ;;  %v8335_v59 = vadd.s32 104, %v8084_v5  ;;  %7255 = vpow2.f32 %v1329_v9  ;;  %v1815_v43 = vmul.f32 %v8132_v47, %v1795_v53  ;;  %v7244_v51 = vpop.eup %7243  ;;  %v8347_v53 = vld [vmem:[#allocation2 + $0x38] sm:$0xff] }
 0x15b   : > { %v1867_v50 = vmul.f32 %v8115_v30, %v1847_v25  ;;  %v1982_v49 = vadd.f32 %v1966_v40, %v1882_v44  ;;  %v2271_v52 = vadd.f32 %v2255_v4, %v2217_v26  ;;  %v2202_v32 = vmul.f32 %v8214_v0, %v1848_v27  ;;  %v7246_v39 = vpop.eup %7245 }
 0x15c   : > { %10744 = vst [vmem:[#allocation50_spill] sm:$0xff] %v8335_v59  ;;  %v2127_v46 = vadd.f32 %v2111_v2, %v2073_v35  ;;  %v8343_v36 = vadd.s32 112, %v8084_v5  ;;  %7257 = vpow2.f32 %v1335_v14  ;;  %v2020_v42 = vmul.f32 %v8187_v48, %v1748_v56  ;;  %v7248_v35 = vpop.eup %7247 }
 0x15d   : > { %2287 = vst.msk [vmem:[#allocation3] sm:$0xff] %vm10652_vm2, %v2271_v52  ;;  %v2145_v40 = vsel %vm8159_vm4, %v8332_v11, 0.0  ;;  %7259 = vpow2.f32 %v1333_v31  ;;  %v1339_v25 = vmul.f32 1.442695, %v1288_v6  ;;  %v2058_v9 = vmul.f32 %v8151_v10, %v1848_v27  ;;  %v7250_v4 = vpop.eup %7249 }
 0x15e   : > { %10745 = vst [vmem:[#allocation51_spill] sm:$0xff] %v8343_v36  ;;  %v1816_v44 = vmul.f32 %v8132_v47, %v1748_v56  ;;  %v2218_v26 = vadd.f32 %v2202_v32, %v2180_v55  ;;  %v2165_v14 = vmul.f32 %v8224_v21, %v2145_v40  ;;  %v1883_v2 = vadd.f32 %v1867_v50, %v1815_v43  ;;  %v7252_v6 = vpop.eup %7251 }
 0x15f   : > { %v1967_v52 = vmul.f32 %v8146_v8, %v1899_v62  ;;  %v2036_v13 = vadd.f32 %v2020_v42, %v1982_v49  ;;  %v2236_v23 = vsel %vm8167_vm5, %v8340_v63, 0.0  ;;  %v1948_v31 = vsel %vm8302_vm8, %v8340_v63, 0.0 }
 0x160   : > { %v2181_v56 = vadd.f32 %v2165_v14, %v2127_v46  ;;  %v2203_v55 = vmul.f32 %v8214_v0, %v8347_v53  ;;  %v2256_v43 = vmul.f32 %v8312_v15, %v2236_v23  ;;  %v2001_v42 = vsel %vm8269_vm7, %v8332_v11, 0.0 }
 0x161   : > { %v1436_v62 = vmul.f32 %v7240_v7, %v8079_v1  ;;  %v1435_v50 = vmul.f32 %v7242_v18, %v8082_v3  ;;  %v1438_v49 = vmul.f32 %v7244_v51, %v8089_v12  ;;  %v2257_v40 = vmul.f32 %v8312_v15, %v8356_v34  ;;  %v1200_v18 = vpop.f32.mrf.mxu0 }
 0x162   : > { %v2219_v32 = vadd.f32 %v2203_v55, %v2181_v56  ;;  %v2272_v46 = vadd.f32 %v2256_v43, %v2218_v26  ;;  %v10746_v14 = vand.u32 15, %v8203_v60  ;;  %v1437_v23 = vmul.f32 %v7246_v39, %v8093_v16  ;;  %v8382_v41 = vpop.eup %7253 }
 0x163   : > { %v1797_v1 = vsel %vm8325_vm9, %v8332_v11, 0.0  ;;  %1475 = vst.msk [vmem:[#allocation2 + $0x50] sm:$0xff] %vm10652_vm2, %v1436_v62  ;;  %1474 = vst.msk [vmem:[#allocation2 + $0x48] sm:$0xff] %vm10652_vm2, %v1435_v50  ;;  %v1440_v3 = vmul.f32 %v7248_v35, %v8099_v20  ;;  %v1439_v12 = vmul.f32 %v7250_v4, %v8103_v24  ;;  %v1442_v7 = vmul.f32 %v7252_v6, %v8110_v29  ;;  %v6872_v62 = vpop.f32.mrf.mxu0 }
 0x164   : > { %vm8377_vm10 = vcmp.ne.s32.totalorder %v10746_v14, 15  ;;  %1477 = vst.msk [vmem:[#allocation2 + $0x60] sm:$0xff] %vm10652_vm2, %v1438_v49  ;;  %v1868_v16 = vmul.f32 %v8115_v30, %v1848_v27  ;;  %v1968_v51 = vmul.f32 %v8146_v8, %v1948_v31  ;;  %v2092_v11 = vsel %vm8242_vm6, %v8340_v63, 0.0  ;;  %2288 = vst.msk [vmem:[#allocation3 + $0x8] sm:$0xff] %vm10652_vm2, %v2272_v46 }
 0x165   : > { %v2273_v39 = vadd.f32 %v2257_v40, %v2219_v32  ;;  %v10749_v26 = vand.u32 15, %v8206_v61  ;;  %v10750_v20 = vmov 0  ;;  %1476 = vst.msk [vmem:[#allocation2 + $0x58] sm:$0xff] %vm10652_vm2, %v1437_v23  ;;  %v1983_v24 = vadd.f32 %v1967_v52, %v1883_v2  ;;  %1479 = vst.msk [vmem:[#allocation2 + $0x70] sm:$0xff] %vm10652_vm2, %v1440_v3  ;;  %v1750_v2 = vld [vmem:[#allocation2 + $0x3f] sm:$0xff] }
 0x166   : > { %v2074_v29 = vadd.f32 %v2058_v9, %v2036_v13  ;;  %v2021_v27 = vmul.f32 %v8187_v48, %v2001_v42  ;;  %1478 = vst.msk [vmem:[#allocation2 + $0x68] sm:$0xff] %vm10652_vm2, %v1439_v12  ;;  %1481 = vst.msk [vmem:[#allocation2 + $0x80] sm:$0xff] %vm10652_vm2, %v1442_v7  ;;  %v8411_v63 = vadd.s32 120, %v8084_v5  ;;  %v1884_v35 = vadd.f32 %v1868_v16, %v1816_v44 }
 0x167   : > { %vm8401_vm11 = vcmp.ne.s32.totalorder %v10749_v26, 0  ;;  %v1817_v4 = vmul.f32 %v8132_v47, %v1797_v1  ;;  %v1869_v6 = vmul.f32 %v8115_v30, %v8347_v53  ;;  %2289 = vst.msk [vmem:[#allocation3 + $0x10] sm:$0xff] %vm10652_vm2, %v2273_v39  ;;  %v8418_v13 = vadd.f32 %v8052_v37, %v1200_v18  ;;  %v7256_v9 = vpop.eup %7255  ;;  %v1850_v18 = vld [vmem:[#allocation2 + $0x40] sm:$0xff] }
 0x168   : > { %v10751_v20 = vsel %vm8401_vm11, 4294967295, %v10750_v20  ;;  %10753 = vst [vmem:[#allocation53_spill] sm:$0xff] %v8411_v63  ;;  %v2112_v52 = vmul.f32 %v8197_v57, %v2092_v11  ;;  %v1586_v31 = vand.u32 15, %v8232_v38  ;;  %v1593_v56 = vand.u32 15, %v8237_v54 }
 0x169   : > { %10752 = vst [vmem:[#allocation52_spill] sm:$0xff] %v10751_v20  ;;  %v8424_v44 = vadd.s32 128, %v8084_v5  ;;  %v1984_v55 = vadd.f32 %v1968_v51, %v1884_v35  ;;  %v1600_v43 = vand.u32 15, %v8240_v45  ;;  %7261 = vpow2.f32 %v1339_v25  ;;  %v7258_v50 = vpop.eup %7257 }
 0x16a   : > { %v2037_v49 = vadd.f32 %v2021_v27, %v1983_v24  ;;  %v2128_v32 = vadd.f32 %v2112_v52, %v2074_v29  ;;  %v7260_v14 = vpop.eup %7259  ;;  %v1885_v23 = vadd.f32 %v1869_v6, %v1817_v4  ;;  %v2022_v1 = vmul.f32 %v8187_v48, %v1750_v2  ;;  %v1751_v3 = vld [vmem:[#allocation2 + $0x47] sm:$0xff] }
 0x16b   : > { %v1287_v7 = vsub.f32 0.0, %v8418_v13  ;;  %v2059_v25 = vmul.f32 %v8151_v10, %v8347_v53  ;;  %v2166_v16 = vmul.f32 %v8224_v21, %v1750_v2  ;;  %v1902_v51 = vld [vmem:[#allocation2 + $0x41] sm:$0xff]  ;;  %v8438_v39 = vadd.f32 %v6872_v62, %v8052_v37 }
 0x16c   : > { %v1818_v26 = vmul.f32 %v8132_v47, %v1750_v2  ;;  %v1969_v24 = vmul.f32 %v8146_v8, %v8356_v34  ;;  %v2038_v29 = vadd.f32 %v2022_v1, %v1984_v55  ;;  %v1377_v27 = vadd.f32 1.0, %v8309_v22 }
 0x16d   : > { %v2075_v35 = vadd.f32 %v2059_v25, %v2037_v49  ;;  %v2182_v4 = vadd.f32 %v2166_v16, %v2128_v32  ;;  %v1950_v53 = vsel %vm8377_vm10, %v1902_v51, 0.0  ;;  %v2003_v6 = vsel %vm8325_vm9, %v1751_v3, 0.0  ;;  %v1851_v49 = vld [vmem:[#allocation2 + $0x48] sm:$0xff] }
 0x16e   : > { %v1870_v52 = vmul.f32 %v8115_v30, %v1850_v18  ;;  %v2060_v62 = vmul.f32 %v8151_v10, %v1850_v18  ;;  %v1985_v11 = vadd.f32 %v1969_v24, %v1885_v23  ;;  %v8450_v2 = vmul.f32 1.442695, %v1287_v7 }
 0x16f   : > { %v2204_v12 = vmul.f32 %v8214_v0, %v1850_v18  ;;  %v2113_v22 = vmul.f32 %v8197_v57, %v8356_v34  ;;  %v1799_v55 = vsel %vm8401_vm11, %v1751_v3, 0.0  ;;  %v2023_v32 = vmul.f32 %v8187_v48, %v2003_v6 }
 0x170   : > { %v1886_v1 = vadd.f32 %v1870_v52, %v1818_v26  ;;  %v2076_v25 = vadd.f32 %v2060_v62, %v2038_v29  ;;  %v1970_v16 = vmul.f32 %v8146_v8, %v1950_v53  ;;  %v2094_v23 = vsel %vm8302_vm8, %v1902_v51, 0.0  ;;  %v1752_v52 = vld [vmem:[#allocation2 + $0x4f] sm:$0xff] }
 0x171   : > { %v2129_v7 = vadd.f32 %v2113_v22, %v2075_v35  ;;  %v2220_v24 = vadd.f32 %v2204_v12, %v2182_v4  ;;  %vm8461_vm12 = vcmp.ne.s32.totalorder %v1586_v31, 15  ;;  %v10754_v18 = vmov 0 }
 0x172   : > { %v10755_v18 = vsel %vm8461_vm12, 4294967295, %v10754_v18  ;;  %7263 = vrcp.f32 %v1377_v27  ;;  %v1380_v34 = vadd.f32 1.0, %v8382_v41  ;;  %v1819_v40 = vmul.f32 %v8132_v47, %v1799_v55  ;;  %v1903_v41 = vld [vmem:[#allocation2 + $0x49] sm:$0xff] }
 0x173   : > { %10756 = vst [vmem:[#allocation54_spill] sm:$0xff] %v10755_v18  ;;  %v1871_v6 = vmul.f32 %v8115_v30, %v1851_v49  ;;  %v2039_v26 = vadd.f32 %v2023_v32, %v1985_v11  ;;  %v2147_v53 = vsel %vm8269_vm7, %v1751_v3, 0.0  ;;  %v2114_v62 = vmul.f32 %v8197_v57, %v2094_v23 }
 0x174   : > { %v2167_v12 = vmul.f32 %v8224_v21, %v2147_v53  ;;  %vm8472_vm13 = vcmp.ne.s32.totalorder %v1593_v56, 0  ;;  %v1379_v27 = vadd.f32 1.0, %v7256_v9  ;;  %v1382_v35 = vadd.f32 1.0, %v7258_v50  ;;  %v1852_v50 = vld [vmem:[#allocation2 + $0x50] sm:$0xff] }
 0x175   : > { %v1986_v4 = vadd.f32 %v1970_v16, %v1886_v1  ;;  %v2061_v22 = vmul.f32 %v8151_v10, %v1851_v49  ;;  %v2238_v11 = vsel %vm8242_vm6, %v1902_v51, 0.0  ;;  %v1381_v55 = vadd.f32 1.0, %v7260_v14  ;;  %v1753_v14 = vld [vmem:[#allocation2 + $0x57] sm:$0xff] }
 0x176   : > { %v7262_v3 = vpop.eup %7261  ;;  %v2130_v32 = vadd.f32 %v2114_v62, %v2076_v25  ;;  %v2183_v46 = vadd.f32 %v2167_v12, %v2129_v7  ;;  %v2205_v23 = vmul.f32 %v8214_v0, %v1851_v49  ;;  %v2258_v56 = vmul.f32 %v8312_v15, %v2238_v11  ;;  %v1210_v12 = vpop.f32.mrf.mxu0  ;;  %v1853_v11 = vld [vmem:[#allocation2 + $0x58] sm:$0xff] }
 0x177   : > { %v1887_v53 = vadd.f32 %v1871_v6, %v1819_v40  ;;  %v2024_v42 = vmul.f32 %v8187_v48, %v1752_v52  ;;  %v2077_v9 = vadd.f32 %v2061_v22, %v2039_v26  ;;  %7265 = vrcp.f32 %v1380_v34  ;;  %v1904_v34 = vld [vmem:[#allocation2 + $0x51] sm:$0xff] }
 0x178   : > { %v2168_v1 = vmul.f32 %v8224_v21, %v1752_v52  ;;  %v2221_v16 = vadd.f32 %v2205_v23, %v2183_v46  ;;  %v2259_v33 = vmul.f32 %v8312_v15, %v1903_v41  ;;  %v2274_v51 = vadd.f32 %v2258_v56, %v2220_v24 }
 0x179   : > { %v1971_v25 = vmul.f32 %v8146_v8, %v1903_v41  ;;  %v2040_v7 = vadd.f32 %v2024_v42, %v1986_v4  ;;  %7267 = vrcp.f32 %v1379_v27  ;;  %v1384_v49 = vadd.f32 1.0, %v7262_v3  ;;  %v8717_v42 = vld [vmem:[%s7790_s21] ss:$0 sm:$0xff] }
 0x17a   : > { %v2115_v62 = vmul.f32 %v8197_v57, %v1903_v41  ;;  %v2184_v40 = vadd.f32 %v2168_v1, %v2130_v32  ;;  %v2275_v6 = vadd.f32 %v2259_v33, %v2221_v16  ;;  %2290 = vst.msk [vmem:[#allocation3 + $0x18] sm:$0xff] %vm10652_vm2, %v2274_v51  ;;  %7269 = vrcp.f32 %v1382_v35  ;;  %v1905_v16 = vld [vmem:[#allocation2 + $0x59] sm:$0xff]  ;;  %v6875_v51 = vpop.f32.mrf.mxu0 }
 0x17b   : > { %v2062_v26 = vmul.f32 %v8151_v10, %v1852_v50  ;;  %v1987_v46 = vadd.f32 %v1971_v25, %v1887_v53  ;;  %v2005_v24 = vsel %vm8401_vm11, %v1753_v14, 0.0  ;;  %vm8492_vm14 = vcmp.ne.s32.totalorder %v1600_v43, 15  ;;  %v1754_v25 = vld [vmem:[#allocation2 + $0x5f] sm:$0xff] }
 0x17c   : > { %7271 = vrcp.f32 %v1381_v55  ;;  %v2206_v27 = vmul.f32 %v8214_v0, %v1852_v50  ;;  %v1820_v41 = vmul.f32 %v8132_v47, %v1752_v52  ;;  %v2131_v4 = vadd.f32 %v2115_v62, %v2077_v9  ;;  %2291 = vst.msk [vmem:[#allocation3 + $0x20] sm:$0xff] %vm10652_vm2, %v2275_v6 }
 0x17d   : > { %v2025_v35 = vmul.f32 %v8187_v48, %v2005_v24  ;;  %v2078_v22 = vadd.f32 %v2062_v26, %v2040_v7  ;;  %v1952_v3 = vsel %vm8461_vm12, %v1904_v34, 0.0  ;;  %v2096_v43 = vsel %vm8377_vm10, %v1904_v34, 0.0 }
 0x17e   : > { %v2149_v55 = vsel %vm8325_vm9, %v1753_v14, 0.0  ;;  %v1872_v32 = vmul.f32 %v8115_v30, %v1852_v50  ;;  %v2222_v23 = vadd.f32 %v2206_v27, %v2184_v40  ;;  %v10762_v56 = vand.u32 15, %v8247_v19 }
 0x17f   : > { %v2169_v52 = vmul.f32 %v8224_v21, %v2149_v55  ;;  %v10763_v53 = vmov 0  ;;  %7273 = vrcp.f32 %v1384_v49  ;;  %v8514_v9 = vpop.eup %7263  ;;  %v1801_v1 = vsel %vm8472_vm13, %v1753_v14, 0.0  ;;  %v8532_v55 = vld [vmem:[#allocation2 + $0x61] sm:$0xff] }
 0x180   : > { %vm8510_vm15 = vcmp.ne.s32.totalorder %v10762_v56, 0  ;;  %v2041_v58 = vadd.f32 %v2025_v35, %v1987_v46  ;;  %v2116_v33 = vmul.f32 %v8197_v57, %v2096_v43  ;;  %v2240_v50 = vsel %vm8302_vm8, %v1904_v34, 0.0  ;;  %v1755_v56 = vld [vmem:[#allocation2 + $0x67] sm:$0xff] }
 0x181   : > { %v10764_v53 = vsel %vm8510_vm15, 4294967295, %v10763_v53  ;;  %v1972_v7 = vmul.f32 %v8146_v8, %v1952_v3  ;;  %v2185_v62 = vadd.f32 %v2169_v52, %v2131_v4  ;;  %v2207_v40 = vmul.f32 %v8214_v0, %v1853_v11 }
 0x182   : > { %10765 = vst [vmem:[#allocation55_spill] sm:$0xff] %v10764_v53  ;;  %v8524_v49 = vadd.f32 %v8052_v37, %v1210_v12  ;;  %v1888_v6 = vadd.f32 %v1872_v32, %v1820_v41  ;;  %v2063_v14 = vmul.f32 %v8151_v10, %v1853_v11  ;;  %v2132_v26 = vadd.f32 %v2116_v33, %v2078_v22  ;;  %v1220_v12 = vpop.f32.mrf.mxu0  ;;  %v1854_v22 = vld [vmem:[#allocation2 + $0x60] sm:$0xff] }
 0x183   : > { %v2260_v46 = vmul.f32 %v8312_v15, %v2240_v50  ;;  %v1821_v24 = vmul.f32 %v8132_v47, %v1801_v1  ;;  %v1873_v34 = vmul.f32 %v8115_v30, %v1853_v11  ;;  %v2223_v27 = vadd.f32 %v2207_v40, %v2185_v62  ;;  %v10766_v1 = vld [vmem:[#allocation32_spill] sm:$0xff]  ;;  %v1907_v11 = vld [vmem:[#allocation2 + $0x69] sm:$0xff] }
 0x184   : > { %v2261_v35 = vmul.f32 %v8312_v15, %v1905_v16  ;;  %v2079_v3 = vadd.f32 %v2063_v14, %v2041_v58  ;;  %v2170_v4 = vmul.f32 %v8224_v21, %v1754_v25  ;;  %7275 = vpow2.f32 %v8450_v2  ;;  %v7266_v41 = vpop.eup %7265 }
 0x185   : > { %v2276_v43 = vadd.f32 %v2260_v46, %v2222_v23  ;;  %v1988_v32 = vadd.f32 %v1972_v7, %v1888_v6  ;;  %v8536_v33 = vadd.s32 128, %v10766_v1  ;;  %v2117_v58 = vmul.f32 %v8197_v57, %v1905_v16 }
 0x186   : > { %v2277_v52 = vadd.f32 %v2261_v35, %v2223_v27  ;;  %v2186_v50 = vadd.f32 %v2170_v4, %v2132_v26  ;;  %v8543_v2 = vadd.f32 %v6875_v51, %v8052_v37  ;;  %v7268_v62 = vpop.eup %7267  ;;  %v1889_v40 = vadd.f32 %v1873_v34, %v1821_v24 }
 0x187   : > { %2292 = vst.msk [vmem:[#allocation3 + $0x28] sm:$0xff] %vm10652_vm2, %v2276_v43  ;;  %v2026_v7 = vmul.f32 %v8187_v48, %v1754_v25  ;;  %v1954_v6 = vsel %vm8492_vm14, %v8532_v55, 0.0  ;;  %v8551_v14 = vadd.f32 %v8052_v37, %v1220_v12  ;;  %v7270_v26 = vpop.eup %7269  ;;  %v2208_v46 = vmul.f32 %v8214_v0, %v1854_v22 }
 0x188   : > { %2293 = vst.msk [vmem:[#allocation3 + $0x30] sm:$0xff] %vm10652_vm2, %v2277_v52  ;;  %v1822_v27 = vmul.f32 %v8132_v47, %v1754_v25  ;;  %v2133_v51 = vadd.f32 %v2117_v58, %v2079_v3  ;;  %v2007_v24 = vsel %vm8472_vm13, %v1755_v56, 0.0  ;;  %v1874_v35 = vmul.f32 %v8115_v30, %v1854_v22  ;;  %v1855_v52 = vld [vmem:[#allocation2 + $0x68] sm:$0xff] }
 0x189   : > { %v7272_v34 = vpop.eup %7271  ;;  %v1973_v4 = vmul.f32 %v8146_v8, %v1905_v16  ;;  %v2042_v43 = vadd.f32 %v2026_v7, %v1988_v32  ;;  %v2151_v37 = vsel %vm8401_vm11, %v1755_v56, 0.0  ;;  %v2224_v12 = vadd.f32 %v2208_v46, %v2186_v50 }
 0x18a   : > { %v1803_v1 = vsel %vm8510_vm15, %v1755_v56, 0.0  ;;  %v1974_v25 = vmul.f32 %v8146_v8, %v1954_v6  ;;  %v2171_v3 = vmul.f32 %v8224_v21, %v2151_v37  ;;  %v2064_v58 = vmul.f32 %v8151_v10, %v1854_v22 }
 0x18b   : > { %v1989_v23 = vadd.f32 %v1973_v4, %v1889_v40  ;;  %v2027_v17 = vmul.f32 %v8187_v48, %v2007_v24  ;;  %v2242_v16 = vsel %vm8377_vm10, %v8532_v55, 0.0  ;;  %v1890_v7 = vadd.f32 %v1874_v35, %v1822_v27  ;;  %v1756_v24 = vld [vmem:[#allocation2 + $0x6f] sm:$0xff] }
 0x18c   : > { %v7274_v32 = vpop.eup %7273  ;;  %v2187_v50 = vadd.f32 %v2171_v3, %v2133_v51  ;;  %v2209_v46 = vmul.f32 %v8214_v0, %v1855_v52  ;;  %v2262_v56 = vmul.f32 %v8312_v15, %v2242_v16  ;;  %v2080_v6 = vadd.f32 %v2064_v58, %v2042_v43 }
 0x18d   : > { %v1823_v37 = vmul.f32 %v8132_v47, %v1803_v1  ;;  %v1875_v22 = vmul.f32 %v8115_v30, %v1855_v52  ;;  %v2098_v40 = vsel %vm8461_vm12, %v8532_v55, 0.0  ;;  %v1990_v4 = vadd.f32 %v1974_v25, %v1890_v7  ;;  %v10770_v1 = vld [vmem:[#allocation35_spill] sm:$0xff]  ;;  %v10776_v7 = vld [vmem:[#allocation44_spill] sm:$0xff] }
 0x18e   : > { %v2225_v28 = vadd.f32 %v2209_v46, %v2187_v50  ;;  %v2263_v20 = vmul.f32 %v8312_v15, %v1907_v11  ;;  %v2278_v27 = vadd.f32 %v2262_v56, %v2224_v12  ;;  %v10767_v51 = vand.u32 15, %v8343_v36  ;;  %v10775_v25 = vld [vmem:[#allocation39_spill] sm:$0xff]  ;;  %v10777_v46 = vld [vmem:[#allocation45_spill] sm:$0xff] }
 0x18f   : > { %v2043_v43 = vadd.f32 %v2027_v17, %v1989_v23  ;;  %v1441_v3 = vmul.f32 %v8514_v9, %v10770_v1  ;;  %v10771_v58 = vand.u32 15, %v8335_v59  ;;  %v10772_v55 = vmov 0  ;;  %v10779_v23 = vld [vmem:[#allocation49_spill] sm:$0xff]  ;;  %v1856_v1 = vld [vmem:[#allocation2 + $0x70] sm:$0xff] }
 0x190   : > { %vm8580_vm0 = vcmp.ne.s32.totalorder %v10767_v51, 0  ;;  %v1444_v16 = vmul.f32 %v7266_v41, %v10775_v25  ;;  %v1443_v12 = vmul.f32 %v7268_v62, %v10776_v7  ;;  %v2279_v50 = vadd.f32 %v2263_v20, %v2225_v28  ;;  %2294 = vst.msk [vmem:[#allocation3 + $0x38] sm:$0xff] %vm10652_vm2, %v2278_v27  ;;  %v10778_v51 = vld [vmem:[#allocation47_spill] sm:$0xff] }
 0x191   : > { %vm8588_vm1 = vcmp.ne.s32.totalorder %v10771_v58, 15  ;;  %v1446_v56 = vmul.f32 %v7270_v26, %v10777_v46  ;;  %v1445_v17 = vmul.f32 %v7272_v34, %v10778_v51  ;;  %v1448_v29 = vmul.f32 %v7274_v32, %v10779_v23  ;;  %v7276_v9 = vpop.eup %7275  ;;  %1480 = vst.msk [vmem:[#allocation2 + $0x78] sm:$0xff] %vm10652_vm2, %v1441_v3  ;;  %v10780_v32 = vld [vmem:[#allocation33_spill] sm:$0xff] }
 0x192   : > { %v10773_v55 = vsel %vm8588_vm1, 4294967295, %v10772_v55  ;;  %v2028_v58 = vmul.f32 %v8187_v48, %v1756_v24  ;;  %v2118_v5 = vmul.f32 %v8197_v57, %v2098_v40  ;;  %1483 = vst.msk [vmem:[#allocation2 + $0x90] sm:$0xff] %vm10652_vm2, %v1444_v16  ;;  %1482 = vst.msk [vmem:[#allocation2 + $0x88] sm:$0xff] %vm10652_vm2, %v1443_v12  ;;  %v1292_v20 = vsub.f32 0.0, %v8543_v2 }
 0x193   : > { %10774 = vst [vmem:[#allocation32_spill] sm:$0xff] %v10773_v55  ;;  %v1291_v41 = vsub.f32 0.0, %v8551_v14  ;;  %v1824_v62 = vmul.f32 %v8132_v47, %v1756_v24  ;;  %v1891_v26 = vadd.f32 %v1875_v22, %v1823_v37  ;;  %v2065_v34 = vmul.f32 %v8151_v10, %v1855_v52  ;;  %2295 = vst.msk [vmem:[#allocation3 + $0x40] sm:$0xff] %vm10652_vm2, %v2279_v50  ;;  %v6878_v52 = vpop.f32.mrf.mxu0  ;;  %v1858_v50 = vld [vmem:[#allocation2 + $0x80] sm:$0xff] }
 0x194   : > { %1485 = vst.msk [vmem:[#allocation2 + $0xa0] sm:$0xff] %vm10652_vm2, %v1446_v56  ;;  %1484 = vst.msk [vmem:[#allocation2 + $0x98] sm:$0xff] %vm10652_vm2, %v1445_v17  ;;  %v8611_v40 = vadd.s32 128, %v10780_v32  ;;  %v2044_v28 = vadd.f32 %v2028_v58, %v1990_v4  ;;  %v2134_v27 = vadd.f32 %v2118_v5, %v2080_v6  ;;  %v10781_v3 = vsub.f32 0.0, %v8438_v39 }
 0x195   : > { %1487 = vst.msk [vmem:[#allocation2 + $0xb0] sm:$0xff] %vm10652_vm2, %v1448_v29  ;;  %v10782_v37 = vsub.f32 0.0, %v8524_v49  ;;  %v1876_v16 = vmul.f32 %v8115_v30, %v1856_v1  ;;  %v1975_v7 = vmul.f32 %v8146_v8, %v1907_v11  ;;  %v2081_v12 = vadd.f32 %v2065_v34, %v2043_v43  ;;  %v8630_v43 = vld [vmem:[%s10702_s13] ss:$0 sm:$0xff]  ;;  %s7761_s13 = smov [#allocation7]  }
 0x196   : > { %v1343_v25 = vmul.f32 1.442695, %v10781_v3  ;;  %v1383_v46 = vadd.f32 1.0, %v7276_v9  ;;  %v2066_v56 = vmul.f32 %v8151_v10, %v1856_v1  ;;  %v2172_v29 = vmul.f32 %v8224_v21, %v1756_v24  ;;  %v1230_v24 = vpop.f32.mrf.mxu0 }
 0x197   : > { %v1341_v22 = vmul.f32 1.442695, %v10782_v37  ;;  %v1347_v5 = vmul.f32 1.442695, %v1292_v20  ;;  %v8622_v6 = vmul.f32 1.442695, %v1291_v41  ;;  %v2210_v4 = vmul.f32 %v8214_v0, %v1856_v1 }
 0x198   : > { %v1892_v51 = vadd.f32 %v1876_v16, %v1824_v62  ;;  %v1991_v17 = vadd.f32 %v1975_v7, %v1891_v26  ;;  %v2119_v23 = vmul.f32 %v8197_v57, %v1907_v11  ;;  %v2082_v58 = vadd.f32 %v2066_v56, %v2044_v28  ;;  %v1757_v62 = vld [vmem:[#allocation2 + $0x77] sm:$0xff]  ;;  %v1758_v11 = vld [vmem:[#allocation2 + $0x7f] sm:$0xff]  ;;  %v6881_v53 = vpop.f32.mrf.mxu0 }
 0x199   : > { %v2188_v32 = vadd.f32 %v2172_v29, %v2134_v27  ;;  %v8627_v3 = vmul.f32 %v8115_v30, %v1858_v50  ;;  %v8633_v9 = vadd.f32 %v8630_v43, %v6878_v52  ;;  %v2068_v41 = vmul.f32 %v8151_v10, %v1858_v50  ;;  %v1857_v26 = vld [vmem:[#allocation2 + $0x78] sm:$0xff]  ;;  %v1910_v45 = vld [vmem:[#allocation2 + $0x81] sm:$0xff] }
 0x19a   : > { %v2135_v20 = vadd.f32 %v2119_v23, %v2081_v12  ;;  %v2212_v1 = vmul.f32 %v8214_v0, %v1858_v50  ;;  %7277 = vrcp.f32 %v1383_v46  ;;  %v1805_v34 = vsel %vm8580_vm0, %v1757_v62, 0.0  ;;  %v1908_v27 = vld [vmem:[#allocation2 + $0x71] sm:$0xff]  ;;  %v1909_v29 = vld [vmem:[#allocation2 + $0x79] sm:$0xff] }
 0x19b   : > { %v1877_v28 = vmul.f32 %v8115_v30, %v1857_v26  ;;  %v2009_v37 = vsel %vm8510_vm15, %v1757_v62, 0.0  ;;  %v10783_v52 = vand.u32 15, %v8411_v63  ;;  %7279 = vpow2.f32 %v1343_v25 }
 0x19c   : > { %v1825_v7 = vmul.f32 %v8132_v47, %v1805_v34  ;;  %v1956_v12 = vsel %vm8588_vm1, %v1908_v27, 0.0  ;;  %v2029_v50 = vmul.f32 %v8187_v48, %v2009_v37  ;;  %v8653_v46 = vadd.f32 %v8630_v43, %v1230_v24 }
 0x19d   : > { %vm8644_vm4 = vcmp.ne.s32.totalorder %v10783_v52, 15  ;;  %v2226_v56 = vadd.f32 %v2210_v4, %v2188_v32  ;;  %v1976_v23 = vmul.f32 %v8146_v8, %v1956_v12  ;;  %7281 = vpow2.f32 %v1341_v22 }
 0x19e   : > { %v1294_v52 = vsub.f32 0.0, %v8633_v9  ;;  %v2030_v36 = vmul.f32 %v8187_v48, %v1758_v11  ;;  %v2045_v25 = vadd.f32 %v2029_v50, %v1991_v17  ;;  %v2100_v34 = vsel %vm8492_vm14, %v1908_v27, 0.0 }
 0x19f   : > { %7283 = vpow2.f32 %v1347_v5  ;;  %v1893_v59 = vadd.f32 %v1877_v28, %v1825_v7  ;;  %v1992_v63 = vadd.f32 %v1976_v23, %v1892_v51  ;;  %v2120_v37 = vmul.f32 %v8197_v57, %v2100_v34  ;;  %v8670_v51 = vld [vmem:[#allocation2 + $0x87] sm:$0xff] }
 0x1a0   : > { %v2153_v4 = vsel %vm8472_vm13, %v1757_v62, 0.0  ;;  %v1977_v32 = vmul.f32 %v8146_v8, %v1909_v29  ;;  %v2067_v22 = vmul.f32 %v8151_v10, %v1857_v26  ;;  %v1293_v12 = vsub.f32 0.0, %v8653_v46 }
 0x1a1   : > { %v2173_v24 = vmul.f32 %v8224_v21, %v2153_v4  ;;  %v2046_v17 = vadd.f32 %v2030_v36, %v1992_v63  ;;  %v2136_v50 = vadd.f32 %v2120_v37, %v2082_v58  ;;  %v2174_v19 = vmul.f32 %v8224_v21, %v1758_v11 }
 0x1a2   : > { %v2244_v5 = vsel %vm8461_vm12, %v1908_v27, 0.0  ;;  %v2083_v28 = vadd.f32 %v2067_v22, %v2045_v25  ;;  %v2211_v62 = vmul.f32 %v8214_v0, %v1857_v26  ;;  %v1993_v23 = vadd.f32 %v1977_v32, %v1893_v59  ;;  %v8681_v25 = vld [vmem:[#allocation2 + $0x88] sm:$0xff] }
 0x1a3   : > { %v2189_v31 = vadd.f32 %v2173_v24, %v2135_v20  ;;  %v2264_v7 = vmul.f32 %v8312_v15, %v2244_v5  ;;  %v2121_v34 = vmul.f32 %v8197_v57, %v1909_v29  ;;  %v2190_v4 = vadd.f32 %v2174_v19, %v2136_v50  ;;  %v3331_v50 = vld [vmem:[%s7795_s25 + $0x8] sm:$0xff]  ;;  %v3330_v5 = vld [vmem:[%s7795_s25] sm:$0xff] }
 0x1a4   : > { %v1351_v36 = vmul.f32 1.442695, %v1294_v52  ;;  %v2265_v58 = vmul.f32 %v8312_v15, %v1909_v29  ;;  %v2011_v27 = vsel %vm8580_vm0, %v8670_v51, 0.0  ;;  %v1826_v20 = vmul.f32 %v8132_v47, %v1758_v11  ;;  %v8686_v29 = vld [vmem:[#allocation2 + $0x8f] sm:$0xff]  ;;  %6889 = vmatpush3.msra.mxu1 %v3331_v50 }
 0x1a5   : > { %v2227_v63 = vadd.f32 %v2211_v62, %v2189_v31  ;;  %v2280_v37 = vadd.f32 %v2264_v7, %v2226_v56  ;;  %v2084_v26 = vadd.f32 %v2068_v41, %v2046_v17  ;;  %v2031_v59 = vmul.f32 %v8187_v48, %v2011_v27  ;;  %v3067_v27 = vld [vmem:[#allocation3] sm:$0xff] }
 0x1a6   : > { %v1349_v19 = vmul.f32 1.442695, %v1293_v12  ;;  %v2137_v32 = vadd.f32 %v2121_v34, %v2083_v28  ;;  %v1958_v56 = vsel %vm8644_vm4, %v1910_v45, 0.0  ;;  %v2102_v11 = vsel %vm8588_vm1, %v1910_v45, 0.0 }
 0x1a7   : > { %v2281_v52 = vadd.f32 %v2265_v58, %v2227_v63  ;;  %2296 = vst.msk [vmem:[#allocation3 + $0x48] sm:$0xff] %vm10652_vm2, %v2280_v37  ;;  %v8690_v22 = vpop.eup %7277  ;;  %v2228_v41 = vadd.f32 %v2212_v1, %v2190_v4  ;;  %v2047_v24 = vadd.f32 %v2031_v59, %v1993_v23  ;;  %v2122_v17 = vmul.f32 %v8197_v57, %v2102_v11  ;;  %v8708_v23 = vld [vmem:[#allocation2 + $0x89] sm:$0xff] }
 0x1a8   : > { %v2155_v12 = vsel %vm8510_vm15, %v8670_v51, 0.0  ;;  %v8698_v28 = vpop.eup %7279  ;;  %v2069_v31 = vmul.f32 %v8151_v10, %v8681_v25  ;;  %v2246_v1 = vsel %vm8492_vm14, %v1910_v45, 0.0  ;;  %7285 = vpow2.f32 %v8622_v6  ;;  %v8719_v45 = vld [vmem:[#allocation2 + $0x90] sm:$0xff] }
 0x1a9   : > { %2297 = vst.msk [vmem:[#allocation3 + $0x50] sm:$0xff] %vm10652_vm2, %v2281_v52  ;;  %v2175_v62 = vmul.f32 %v8224_v21, %v2155_v12  ;;  %v1978_v7 = vmul.f32 %v8146_v8, %v1958_v56  ;;  %v2138_v34 = vadd.f32 %v2122_v17, %v2084_v26  ;;  %v2176_v4 = vmul.f32 %v8224_v21, %v8686_v29 }
 0x1aa   : > { %v2266_v63 = vmul.f32 %v8312_v15, %v2246_v1  ;;  %v10786_v58 = vmov 0.0   ;;  %v8714_v37 = vpop.eup %7281  ;;  %v2085_v6 = vadd.f32 %v2069_v31, %v2047_v24  ;;  %v2213_v52 = vmul.f32 %v8214_v0, %v8681_v25 }
 0x1ab   : > { %6890 = vmatprep.subr.mxu1 %v10786_v58  ;;  %v2191_v59 = vadd.f32 %v2175_v62, %v2137_v32  ;;  %7287 = vpow2.f32 %v1351_v36  ;;  %v1894_v56 = vadd.f32 %v8627_v3, %v1826_v20  ;;  %v2192_v11 = vadd.f32 %v2176_v4, %v2138_v34  ;;  %v10792_v34 = vld [vmem:[#allocation37_spill] sm:$0xff] }
 0x1ac   : > { %6891 = vmatpush3.msra.mxu1 %v3330_v5  ;;  %v8723_v26 = vpop.eup %7283  ;;  %v2282_v17 = vadd.f32 %v2266_v63, %v2228_v41  ;;  %7289 = vpow2.f32 %v1349_v19  ;;  %v2123_v12 = vmul.f32 %v8197_v57, %v8708_v23  ;;  %v2267_v32 = vmul.f32 %v8312_v15, %v8708_v23  ;;  %v8737_v5 = vld [vmem:[#allocation2 + $0x97] sm:$0xff] }
 0x1ad   : > { %6895 = vmatprep.subr.mxu1 %v10786_v58  ;;  %v2229_v50 = vadd.f32 %v2213_v52, %v2191_v59  ;;  %v10787_v24 = vand.u32 15, %v8424_v44  ;;  %v10788_v36 = vmov 0  ;;  %v8740_v3 = vadd.f32 %v8717_v42, %v3067_v27  ;;  %v8745_v41 = vld [vmem:[#allocation2 + $0x91] sm:$0xff] }
 0x1ae   : > { %v2214_v20 = vmul.f32 %v8214_v0, %v8719_v45  ;;  %v1994_v19 = vadd.f32 %v1978_v7, %v1894_v56  ;;  %2298 = vst.msk [vmem:[#allocation3 + $0x58] sm:$0xff] %vm10652_vm2, %v2282_v17  ;;  %v2330_v31 = vand.u32 15, %v8536_v33  ;;  %v2139_v44 = vadd.f32 %v2123_v12, %v2085_v6  ;;  %v8760_v33 = vld [vmem:[#allocation2 + $0x98] sm:$0xff]  ;;  %v10793_v56 = vld [vmem:[#allocation38_spill] sm:$0xff] }
 0x1af   : > { %vm8733_vm6 = vcmp.ne.s32.totalorder %v10787_v24, 0  ;;  %10791 = vst [vmem:[#allocation39_spill] sm:$0xff] %v8740_v3  ;;  %v2283_v62 = vadd.f32 %v2267_v32, %v2229_v50  ;;  %v2337_v1 = vand.u32 15, %v8611_v40  ;;  %v8750_v4 = vadd.s32 128, %v10792_v34  ;;  %v3068_v6 = vld [vmem:[#allocation3 + $0x8] sm:$0xff] }
 0x1b0   : > { %v10789_v36 = vsel %vm8733_vm6, 4294967295, %v10788_v36  ;;  %v2032_v63 = vmul.f32 %v8187_v48, %v8686_v29  ;;  %v2230_v27 = vadd.f32 %v2214_v20, %v2192_v11  ;;  %v2591_v7 = vsel %vm8733_vm6, %v8670_v51, 0.0  ;;  %v10794_v17 = vld [vmem:[#allocation40_spill] sm:$0xff]  ;;  %v10795_v24 = vld [vmem:[#allocation41_spill] sm:$0xff] }
 0x1b1   : > { %10790 = vst [vmem:[#allocation35_spill] sm:$0xff] %v10789_v36  ;;  %v2157_v59 = vsel %vm8580_vm0, %v8737_v5, 0.0  ;;  %2299 = vst.msk [vmem:[#allocation3 + $0x60] sm:$0xff] %vm10652_vm2, %v2283_v62  ;;  %v2248_v52 = vsel %vm8588_vm1, %v8745_v41, 0.0  ;;  %v8768_v11 = vadd.s32 128, %v10793_v56  ;;  %v8771_v51 = vadd.s32 128, %v10794_v17 }
 0x1b2   : > { %v2177_v40 = vmul.f32 %v8224_v21, %v2157_v59  ;;  %v3138_v35 = vsub.f32 0.0, %v8740_v3  ;;  %v2048_v12 = vadd.f32 %v2032_v63, %v1994_v19  ;;  %v8774_v50 = vld [vmem:[#allocation2 + $0x99] sm:$0xff]  ;;  %v2268_v32 = vmul.f32 %v8312_v15, %v2248_v52 }
 0x1b3   : > { %v8778_v20 = vadd.s32 128, %v10795_v24  ;;  %v2607_v62 = vmul.f32 %v2591_v7, %v8132_v47  ;;  %v2655_v34 = vmul.f32 %v8681_v25, %v8115_v30  ;;  %v2215_v56 = vmul.f32 %v8214_v0, %v8760_v33  ;;  %v3069_v25 = vld [vmem:[#allocation3 + $0x10] sm:$0xff] }
 0x1b4   : > { %v2193_v59 = vadd.f32 %v2177_v40, %v2139_v44  ;;  %vm8785_vm9 = vcmp.ne.s32.totalorder %v2337_v1, 0  ;;  %v8790_v19 = vadd.f32 %v8717_v42, %v3068_v6  ;;  %v2070_v63 = vmul.f32 %v8151_v10, %v8719_v45 }
 0x1b5   : > { %v2284_v52 = vadd.f32 %v2268_v32, %v2230_v27  ;;  %vm8794_vm10 = vcmp.ne.s32.totalorder %v2330_v31, 15  ;;  %v10799_v7 = vmov 0  ;;  %v2104_v44 = vsel %vm8644_vm4, %v8745_v41, 0.0  ;;  %v7286_v24 = vpop.eup %7285  ;;  %v1240_v32 = vpop.f32.mrf.mxu0 }
 0x1b6   : > { %10798 = vst [vmem:[#allocation44_spill] sm:$0xff] %v8790_v19  ;;  %v10800_v7 = vsel %vm8794_vm10, 4294967295, %v10799_v7  ;;  %v2231_v1 = vadd.f32 %v2215_v56, %v2193_v59  ;;  %v2269_v40 = vmul.f32 %v8312_v15, %v8774_v50  ;;  %v2344_v6 = vand.u32 15, %v8750_v4 }
 0x1b7   : > { %v2086_v55 = vadd.f32 %v2070_v63, %v2048_v12  ;;  %2300 = vst.msk [vmem:[#allocation3 + $0x68] sm:$0xff] %vm10652_vm2, %v2284_v52  ;;  %v2351_v31 = vand.u32 15, %v8768_v11  ;;  %v8808_v18 = vmul.f32 1.442695, %v3138_v35  ;;  %v2671_v3 = vadd.f32 %v2655_v34, %v2607_v62  ;;  %v8823_v62 = vld [vmem:[#allocation2 + $0x9f] sm:$0xff] }
 0x1b8   : > { %v2285_v59 = vadd.f32 %v2269_v40, %v2231_v1  ;;  %v8811_v56 = vadd.s32 128, %v8203_v60  ;;  %v7288_v15 = vpop.eup %7287  ;;  %v8814_v4 = vadd.f32 %v8717_v42, %v3069_v25  ;;  %v3139_v12 = vsub.f32 0.0, %v8790_v19 }
 0x1b9   : > { %v2124_v11 = vmul.f32 %v8197_v57, %v2104_v44  ;;  %v2785_v63 = vsel %vm8733_vm6, %v8737_v5, 0.0  ;;  %v7290_v52 = vpop.eup %7289  ;;  %v2751_v35 = vmul.f32 %v8708_v23, %v8146_v8  ;;  %v1447_v60 = vmul.f32 %v8690_v22, %v8418_v13 }
 0x1ba   : > { %2301 = vst.msk [vmem:[#allocation3 + $0x70] sm:$0xff] %vm10652_vm2, %v2285_v59  ;;  %v1386_v34 = vadd.f32 1.0, %v8698_v28  ;;  %v1385_v25 = vadd.f32 1.0, %v8714_v37  ;;  %v1388_v1 = vadd.f32 1.0, %v8723_v26  ;;  %v1387_v40 = vadd.f32 1.0, %v7286_v24  ;;  %v2196_v37 = vld [vmem:[#allocation2 + $0xa0] sm:$0xff] }
 0x1bb   : > { %v2140_v44 = vadd.f32 %v2124_v11, %v2086_v55  ;;  %v8832_v27 = vadd.s32 128, %v8206_v61  ;;  %v2767_v23 = vadd.f32 %v2751_v35, %v2671_v3  ;;  %v2801_v19 = vmul.f32 %v2785_v63, %v8187_v48  ;;  %1486 = vst.msk [vmem:[#allocation2 + $0xa8] sm:$0xff] %vm10652_vm2, %v1447_v60  ;;  %v6884_v11 = vpop.f32.mrf.mxu0 }
 0x1bc   : > { %7291 = vrcp.f32 %v1386_v34  ;;  %v1390_v59 = vadd.f32 1.0, %v7288_v15  ;;  %v2178_v22 = vmul.f32 %v8224_v21, %v8823_v62  ;;  %vm8839_vm13 = vcmp.ne.s32.totalorder %v2344_v6, 15 }
 0x1bd   : > { %7293 = vrcp.f32 %v1385_v25  ;;  %v1389_v61 = vadd.f32 1.0, %v7290_v52  ;;  %v8843_v28 = vmul.f32 1.442695, %v3139_v12  ;;  %v2736_v26 = vsel %vm8794_vm10, %v8745_v41, 0.0 }
 0x1be   : > { %7295 = vrcp.f32 %v1388_v1  ;;  %v8849_v3 = vadd.f32 %v8630_v43, %v6881_v53  ;;  %v2608_v24 = vmul.f32 %v8686_v29, %v8132_v47  ;;  %v2194_v6 = vadd.f32 %v2178_v22, %v2140_v44  ;;  %v1250_v1 = vpop.f32.mrf.mxu0 }
 0x1bf   : > { %v2593_v15 = vsel %vm8785_vm9, %v8737_v5, 0.0  ;;  %vm8856_vm14 = vcmp.ne.s32.totalorder %v2351_v31, 0  ;;  %v10803_v12 = vmov 0  ;;  %7297 = vrcp.f32 %v1387_v40 }
 0x1c0   : > { %v10804_v12 = vsel %vm8856_vm14, 4294967295, %v10803_v12  ;;  %v2817_v63 = vadd.f32 %v2801_v19, %v2767_v23  ;;  %7299 = vrcp.f32 %v1390_v59  ;;  %v8862_v53 = vadd.f32 %v8630_v43, %v1240_v32 }
 0x1c1   : > { %10805 = vst [vmem:[#allocation45_spill] sm:$0xff] %v10804_v12  ;;  %v2656_v29 = vmul.f32 %v8719_v45, %v8115_v30  ;;  %v2216_v52 = vmul.f32 %v8214_v0, %v2196_v37  ;;  %v2752_v5 = vmul.f32 %v2736_v26, %v8146_v8  ;;  %7301 = vrcp.f32 %v1389_v61  ;;  %v8890_v26 = vld [vmem:[%s7785_s17 + $0x8] ss:$0 sm:$0xff] }
 0x1c2   : > { %v2609_v31 = vmul.f32 %v2593_v15, %v8132_v47  ;;  %v2657_v19 = vmul.f32 %v8760_v33, %v8115_v30  ;;  %v2835_v35 = vmul.f32 %v8760_v33, %v8151_v10  ;;  %v1296_v32 = vsub.f32 0.0, %v8849_v3  ;;  %v8874_v25 = vld [vmem:[#allocation2 + $0xa1] sm:$0xff]  ;;  %v8918_v45 = vld [vmem:[#allocation2 + $0xa9] sm:$0xff] }
 0x1c3   : > { %v2672_v60 = vadd.f32 %v2656_v29, %v2608_v24  ;;  %v2232_v34 = vadd.f32 %v2216_v52, %v2194_v6  ;;  %v8878_v44 = vadd.s32 128, %v8232_v38  ;;  %v2250_v23 = vsel %vm8644_vm4, %v8874_v25, 0.0  ;;  %v2547_v24 = vld [vmem:[#allocation2 + $0xa7] sm:$0xff] }
 0x1c4   : > { %v2851_v40 = vadd.f32 %v2835_v35, %v2817_v63  ;;  %v8884_v59 = vadd.s32 128, %v8237_v54  ;;  %v1295_v33 = vsub.f32 0.0, %v8862_v53  ;;  %v2610_v22 = vmul.f32 %v8823_v62, %v8132_v47 }
 0x1c5   : > { %v2768_v61 = vadd.f32 %v2752_v5, %v2672_v60  ;;  %v2270_v38 = vmul.f32 %v8890_v26, %v2250_v23  ;;  %v8894_v6 = vadd.f32 %v8630_v43, %v6884_v11  ;;  %v2673_v15 = vadd.f32 %v2657_v19, %v2609_v31 }
 0x1c6   : > { %v2885_v16 = vmul.f32 %v8774_v50, %v8197_v57  ;;  %v1355_v54 = vmul.f32 1.442695, %v1296_v32  ;;  %v8899_v63 = vadd.f32 %v8630_v43, %v1250_v1  ;;  %v2658_v29 = vmul.f32 %v2196_v37, %v8115_v30 }
 0x1c7   : > { %v2753_v52 = vmul.f32 %v8774_v50, %v8146_v8  ;;  %v2802_v5 = vmul.f32 %v8823_v62, %v8187_v48  ;;  %v2286_v35 = vadd.f32 %v2270_v38, %v2232_v34  ;;  %v2738_v11 = vsel %vm8839_vm13, %v8874_v25, 0.0  ;;  %v2643_v62 = vld [vmem:[#allocation2 + $0xa8] sm:$0xff] }
 0x1c8   : > { %v2901_v60 = vadd.f32 %v2885_v16, %v2851_v40  ;;  %v2787_v31 = vsel %vm8785_vm9, %v2547_v24, 0.0  ;;  %v2919_v19 = vsel %vm8733_vm6, %v2547_v24, 0.0  ;;  %v2836_v1 = vmul.f32 %v2196_v37, %v8151_v10 }
 0x1c9   : > { %v7292_v32 = vpop.eup %7291  ;;  %v2674_v23 = vadd.f32 %v2658_v29, %v2610_v22  ;;  %v2818_v50 = vadd.f32 %v2802_v5, %v2768_v61  ;;  %2302 = vst.msk [vmem:[#allocation3 + $0x78] sm:$0xff] %vm10652_vm2, %v2286_v35  ;;  %v1353_v34 = vmul.f32 1.442695, %v1295_v33  ;;  %v2769_v38 = vadd.f32 %v2753_v52, %v2673_v15 }
 0x1ca   : > { %v7294_v40 = vpop.eup %7293  ;;  %v2595_v16 = vsel %vm8856_vm14, %v2547_v24, 0.0  ;;  %v2935_v13 = vmul.f32 %v2919_v19, %v8224_v21  ;;  %7303 = vpow2.f32 %v1355_v54  ;;  %v2754_v36 = vmul.f32 %v2738_v11, %v8146_v8  ;;  %v2548_v19 = vld [vmem:[#allocation2 + $0xaf] sm:$0xff] }
 0x1cb   : > { %v7296_v41 = vpop.eup %7295  ;;  %v2803_v37 = vmul.f32 %v2787_v31, %v8187_v48  ;;  %v2870_v22 = vsel %vm8794_vm10, %v8874_v25, 0.0  ;;  %v1450_v33 = vmul.f32 %v7292_v32, %v8438_v39  ;;  %v10806_v61 = vand.u32 15, %v8778_v20  ;;  %v6887_v25 = vpop.f32.mrf.mxu0 }
 0x1cc   : > { %v7298_v15 = vpop.eup %7297  ;;  %v2951_v54 = vadd.f32 %v2935_v13, %v2901_v60  ;;  %v2969_v29 = vmul.f32 %v2643_v62, %v8214_v0  ;;  %v1449_v52 = vmul.f32 %v7294_v40, %v8524_v49  ;;  %v10809_v5 = vand.u32 15, %v8771_v51  ;;  %v2644_v49 = vld [vmem:[#allocation2 + $0xb0] sm:$0xff] }
 0x1cd   : > { %vm8928_vm0 = vcmp.ne.s32.totalorder %v10806_v61, 0  ;;  %v10810_v35 = vmov 0  ;;  %v1452_v39 = vmul.f32 %v7296_v41, %v8543_v2  ;;  %v7300_v20 = vpop.eup %7299  ;;  %v2852_v11 = vadd.f32 %v2836_v1, %v2818_v50  ;;  %1489 = vst.msk [vmem:[#allocation2 + $0xc0] sm:$0xff] %vm10652_vm2, %v1450_v33 }
 0x1ce   : > { %vm8936_vm4 = vcmp.ne.s32.totalorder %v10809_v5, 15  ;;  %v2611_v31 = vmul.f32 %v2595_v16, %v8132_v47  ;;  %v1451_v13 = vmul.f32 %v7298_v15, %v8551_v14  ;;  %7305 = vpow2.f32 %v1353_v34  ;;  %v7302_v60 = vpop.eup %7301  ;;  %1488 = vst.msk [vmem:[#allocation2 + $0xb8] sm:$0xff] %vm10652_vm2, %v1449_v52 }
 0x1cf   : > { %v10811_v35 = vsel %vm8936_vm4, 4294967295, %v10810_v35  ;;  %v2659_v51 = vmul.f32 %v2643_v62, %v8115_v30  ;;  %v2985_v32 = vadd.f32 %v2969_v29, %v2951_v54  ;;  %v3019_v40 = vmul.f32 %v8890_v26, %v8918_v45  ;;  %1491 = vst.msk [vmem:[#allocation2 + $0xd0] sm:$0xff] %vm10652_vm2, %v1452_v39 }
 0x1d0   : > { %10812 = vst [vmem:[#allocation47_spill] sm:$0xff] %v10811_v35  ;;  %v1454_v2 = vmul.f32 %v7300_v20, %v8633_v9  ;;  %v2886_v41 = vmul.f32 %v2870_v22, %v8197_v57  ;;  %1490 = vst.msk [vmem:[#allocation2 + $0xc8] sm:$0xff] %vm10652_vm2, %v1451_v13  ;;  %v1453_v14 = vmul.f32 %v7302_v60, %v8653_v46  ;;  %v1298_v1 = vsub.f32 0.0, %v8894_v6 }
 0x1d1   : > { %v8955_v50 = vadd.f32 %v8630_v43, %v6887_v25  ;;  %v2770_v34 = vadd.f32 %v2754_v36, %v2674_v23  ;;  %v2819_v16 = vadd.f32 %v2803_v37, %v2769_v38  ;;  %v3035_v33 = vadd.f32 %v3019_v40, %v2985_v32  ;;  %v1260_v23 = vpop.f32.mrf.mxu0 }
 0x1d2   : > { %1493 = vst.msk [vmem:[#allocation2 + $0xe0] sm:$0xff] %vm10652_vm2, %v1454_v2  ;;  %v1297_v61 = vsub.f32 0.0, %v8899_v63  ;;  %v2660_v9 = vmul.f32 %v2644_v49, %v8115_v30  ;;  %v2612_v22 = vmul.f32 %v2548_v19, %v8132_v47  ;;  %v2902_v15 = vadd.f32 %v2886_v41, %v2852_v11  ;;  %1492 = vst.msk [vmem:[#allocation2 + $0xd8] sm:$0xff] %vm10652_vm2, %v1453_v14 }
 0x1d3   : > { %v2386_v46 = vand.u32 15, %v8878_v44  ;;  %v2675_v54 = vadd.f32 %v2659_v51, %v2611_v31  ;;  %v2804_v29 = vmul.f32 %v2548_v19, %v8187_v48  ;;  %v2837_v36 = vmul.f32 %v2643_v62, %v8151_v10  ;;  %3051 = vst.msk [vmem:[#allocation3 + $0x80] sm:$0xff] %vm10652_vm2, %v3035_v33 }
 0x1d4   : > { %v2838_v38 = vmul.f32 %v2644_v49, %v8151_v10  ;;  %v2936_v37 = vmul.f32 %v2548_v19, %v8224_v21  ;;  %v1359_v52 = vmul.f32 1.442695, %v1298_v1  ;;  %v1300_v5 = vsub.f32 0.0, %v8955_v50 }
 0x1d5   : > { %vm10650_vm6 = vmmov 0   ;;  %v2755_v39 = vmul.f32 %v8918_v45, %v8146_v8  ;;  %v2820_v25 = vadd.f32 %v2804_v29, %v2770_v34  ;;  %v2853_v20 = vadd.f32 %v2837_v36, %v2819_v16  ;;  %v2549_v60 = vld [vmem:[#allocation2 + $0xb7] sm:$0xff] }
 0x1d6   : > { %6892 = vmatprep.mubr.msk.f32.mxu1 %vm10650_vm6, %v10786_v58  ;;  %v1357_v62 = vmul.f32 1.442695, %v1297_v61  ;;  %v2970_v11 = vmul.f32 %v2644_v49, %v8214_v0  ;;  %v2676_v31 = vadd.f32 %v2660_v9, %v2612_v22  ;;  %v2952_v13 = vadd.f32 %v2936_v37, %v2902_v15  ;;  %v2645_v2 = vld [vmem:[#allocation2 + $0xb8] sm:$0xff] }
 0x1d7   : > { %v8975_v19 = vadd.f32 %v8630_v43, %v1260_v23  ;;  %v2771_v51 = vadd.f32 %v2755_v39, %v2675_v54  ;;  %v2887_v32 = vmul.f32 %v8918_v45, %v8197_v57  ;;  %v2597_v40 = vsel %vm8928_vm0, %v2549_v60, 0.0  ;;  %v2692_v41 = vld [vmem:[#allocation2 + $0xb1] sm:$0xff]  ;;  %v7304_v1 = vpop.eup %7303  ;;  %v8987_v9 = vld [vmem:[#allocation2 + $0xbf] sm:$0xff] }
 0x1d8   : > { %v2789_v14 = vsel %vm8856_vm14, %v2549_v60, 0.0  ;;  %v2740_v49 = vsel %vm8936_vm4, %v2692_v41, 0.0  ;;  %7307 = vpow2.f32 %v1359_v52  ;;  %v1363_v43 = vmul.f32 1.442695, %v1300_v5 }
 0x1d9   : > { %v2805_v34 = vmul.f32 %v2789_v14, %v8187_v48  ;;  %v2854_v16 = vadd.f32 %v2838_v38, %v2820_v25  ;;  %v2903_v33 = vadd.f32 %v2887_v32, %v2853_v20  ;;  %v2756_v45 = vmul.f32 %v2740_v49, %v8146_v8  ;;  %v2696_v44 = vld [vmem:[#allocation2 + $0xd1] sm:$0xff] }
 0x1da   : > { %7309 = vpow2.f32 %v1357_v62  ;;  %v2986_v61 = vadd.f32 %v2970_v11, %v2952_v13  ;;  %v2613_v22 = vmul.f32 %v2597_v40, %v8132_v47  ;;  %v2661_v15 = vmul.f32 %v2645_v2, %v8115_v30 }
 0x1db   : > { %v2872_v54 = vsel %vm8839_vm13, %v2692_v41, 0.0  ;;  %v10813_v29 = vand.u32 15, %v8832_v27  ;;  %v10814_v36 = vmov 0  ;;  %v7306_v23 = vpop.eup %7305  ;;  %v2821_v38 = vadd.f32 %v2805_v34, %v2771_v51  ;;  %v2693_v27 = vld [vmem:[#allocation2 + $0xb9] sm:$0xff] }
 0x1dc   : > { %v2888_v37 = vmul.f32 %v2872_v54, %v8197_v57  ;;  %v2921_v52 = vsel %vm8785_vm9, %v2549_v60, 0.0  ;;  %v10817_v5 = vand.u32 15, %v8811_v56  ;;  %v1299_v25 = vsub.f32 0.0, %v8975_v19 }
 0x1dd   : > { %vm8995_vm6 = vcmp.ne.s32.totalorder %v10813_v29, 0  ;;  %v2772_v20 = vadd.f32 %v2756_v45, %v2676_v31  ;;  %v2937_v62 = vmul.f32 %v2921_v52, %v8224_v21  ;;  %v1392_v11 = vadd.f32 1.0, %v7304_v1  ;;  %v2646_v31 = vld [vmem:[#allocation2 + $0xc0] sm:$0xff] }
 0x1de   : > { %v10815_v36 = vsel %vm8995_vm6, 4294967295, %v10814_v36  ;;  %vm9004_vm2 = vcmp.ne.s32.totalorder %v10817_v5, 15  ;;  %7311 = vpow2.f32 %v1363_v43  ;;  %v2806_v13 = vmul.f32 %v8987_v9, %v8187_v48 }
 0x1df   : > { %10816 = vst [vmem:[#allocation49_spill] sm:$0xff] %v10815_v36  ;;  %v2839_v17 = vmul.f32 %v2645_v2, %v8151_v10  ;;  %v2904_v60 = vadd.f32 %v2888_v37, %v2854_v16  ;;  %v3004_v56 = vsel %vm8794_vm10, %v2692_v41, 0.0  ;;  %v2677_v51 = vadd.f32 %v2661_v15, %v2613_v22  ;;  %v2551_v41 = vld [vmem:[#allocation2 + $0xc7] sm:$0xff] }
 0x1e0   : > { %v2953_v32 = vadd.f32 %v2937_v62, %v2903_v33  ;;  %v2971_v40 = vmul.f32 %v2645_v2, %v8214_v0  ;;  %v3020_v14 = vmul.f32 %v8890_v26, %v3004_v56  ;;  %v2757_v49 = vmul.f32 %v2693_v27, %v8146_v8  ;;  %v2694_v33 = vld [vmem:[#allocation2 + $0xc1] sm:$0xff] }
 0x1e1   : > { %v2855_v1 = vadd.f32 %v2839_v17, %v2821_v38  ;;  %v2938_v34 = vmul.f32 %v8987_v9, %v8224_v21  ;;  %v1391_v43 = vadd.f32 1.0, %v7306_v23  ;;  %v2822_v45 = vadd.f32 %v2806_v13, %v2772_v20  ;;  %v10821_v20 = vld [vmem:[#allocation42_spill] sm:$0xff] }
 0x1e2   : > { %v2987_v54 = vadd.f32 %v2971_v40, %v2953_v32  ;;  %v3021_v16 = vmul.f32 %v8890_v26, %v2693_v27  ;;  %v3036_v29 = vadd.f32 %v3020_v14, %v2986_v61  ;;  %v2393_v2 = vand.u32 15, %v8884_v59  ;;  %v2552_v40 = vld [vmem:[#allocation2 + $0xcf] sm:$0xff] }
 0x1e3   : > { %v2954_v22 = vadd.f32 %v2938_v34, %v2904_v60  ;;  %7313 = vrcp.f32 %v1392_v11  ;;  %v1361_v15 = vmul.f32 1.442695, %v1299_v25  ;;  %v2840_v37 = vmul.f32 %v2646_v31, %v8151_v10  ;;  %v2647_v25 = vld [vmem:[#allocation2 + $0xc8] sm:$0xff] }
 0x1e4   : > { %v2773_v52 = vadd.f32 %v2757_v49, %v2677_v51  ;;  %v2889_v38 = vmul.f32 %v2693_v27, %v8197_v57  ;;  %v3037_v5 = vadd.f32 %v3021_v16, %v2987_v54  ;;  %vm10820_vm9 = vcmask 130048   ;;  %v2695_v54 = vld [vmem:[#allocation2 + $0xc9] sm:$0xff] }
 0x1e5   : > { %3052 = vst.msk [vmem:[#allocation3 + $0x88] sm:$0xff] %vm10820_vm9, %v3036_v29  ;;  %v2972_v23 = vmul.f32 %v2646_v31, %v8214_v0  ;;  %v2791_v61 = vsel %vm8928_vm0, %v2551_v41, 0.0  ;;  %7315 = vrcp.f32 %v1391_v43  ;;  %v9029_v62 = vadd.s32 128, %v10821_v20  ;;  %vm10822_vm10 = vmmov %vm10820_vm9  ;;  %v9035_v17 = vpop.eup %7307 }
 0x1e6   : > { %v2856_v59 = vadd.f32 %v2840_v37, %v2822_v45  ;;  %v2905_v11 = vadd.f32 %v2889_v38, %v2855_v1  ;;  %3053 = vst.msk [vmem:[#allocation3 + $0x90] sm:$0xff] %vm10822_vm10, %v3037_v5  ;;  %v2807_v13 = vmul.f32 %v2791_v61, %v8187_v48  ;;  %v2874_v27 = vsel %vm8936_vm4, %v2694_v33, 0.0 }
 0x1e7   : > { %v2988_v60 = vadd.f32 %v2972_v23, %v2954_v22  ;;  %v2599_v56 = vsel %vm8995_vm6, %v2551_v41, 0.0  ;;  %v2923_v51 = vsel %vm8856_vm14, %v2551_v41, 0.0  ;;  %7317 = vpow2.f32 %v1361_v15  ;;  %v9041_v32 = vpop.eup %7309 }
 0x1e8   : > { %v2742_v14 = vsel %vm9004_vm2, %v2694_v33, 0.0  ;;  %v2823_v49 = vadd.f32 %v2807_v13, %v2773_v52  ;;  %v2890_v1 = vmul.f32 %v2874_v27, %v8197_v57  ;;  %v2939_v34 = vmul.f32 %v2923_v51, %v8224_v21  ;;  %v2648_v13 = vld [vmem:[#allocation2 + $0xd0] sm:$0xff] }
 0x1e9   : > { %v2662_v43 = vmul.f32 %v2646_v31, %v8115_v30  ;;  %v2614_v45 = vmul.f32 %v8987_v9, %v8132_v47  ;;  %v2841_v16 = vmul.f32 %v2647_v25, %v8151_v10  ;;  %v3006_v29 = vsel %vm8839_vm13, %v2694_v33, 0.0  ;;  %vm10826_vm13 = vmmov %vm10820_vm9 }
 0x1ea   : > { %v2906_v41 = vadd.f32 %v2890_v1, %v2856_v59  ;;  %v2955_v22 = vadd.f32 %v2939_v34, %v2905_v11  ;;  %v2973_v15 = vmul.f32 %v2647_v25, %v8214_v0  ;;  %v3022_v37 = vmul.f32 %v8890_v26, %v3006_v29 }
 0x1eb   : > { %v7312_v52 = vpop.eup %7311  ;;  %v2615_v38 = vmul.f32 %v2599_v56, %v8132_v47  ;;  %v2663_v31 = vmul.f32 %v2647_v25, %v8115_v30  ;;  %v2758_v5 = vmul.f32 %v2742_v14, %v8146_v8  ;;  %v2940_v9 = vmul.f32 %v2552_v40, %v8224_v21 }
 0x1ec   : > { %v2857_v23 = vadd.f32 %v2841_v16, %v2823_v49  ;;  %v2989_v61 = vadd.f32 %v2973_v15, %v2955_v22  ;;  %v3023_v55 = vmul.f32 %v8890_v26, %v2695_v54  ;;  %v3038_v33 = vadd.f32 %v3022_v37, %v2988_v60  ;;  %v9077_v60 = vld [vmem:[#allocation2 + $0xd7] sm:$0xff] }
 0x1ed   : > { %7319 = vpow2.f32 %v8843_v28  ;;  %v10823_v20 = vsub.f32 0.0, %v8814_v4  ;;  %v2678_v11 = vadd.f32 %v2662_v43, %v2614_v45  ;;  %vm9065_vm10 = vcmp.ne.s32.totalorder %v2393_v2, 0  ;;  %v10829_v2 = vld [vmem:[#allocation43_spill] sm:$0xff] }
 0x1ee   : > { %v2891_v25 = vmul.f32 %v2695_v54, %v8197_v57  ;;  %v2956_v56 = vadd.f32 %v2940_v9, %v2906_v41  ;;  %v3039_v51 = vadd.f32 %v3023_v55, %v2989_v61  ;;  %3054 = vst.msk [vmem:[#allocation3 + $0x98] sm:$0xff] %vm10826_vm13, %v3038_v33  ;;  %vm9073_vm9 = vcmp.ne.s32.totalorder %v2386_v46, 15  ;;  %v10830_v46 = vld [vmem:[#allocation53_spill] sm:$0xff] }
 0x1ef   : > { %v9063_v59 = vmul.f32 1.442695, %v10823_v20  ;;  %v2679_v14 = vadd.f32 %v2663_v31, %v2615_v38  ;;  %v2774_v49 = vadd.f32 %v2758_v5, %v2678_v11  ;;  %v9080_v1 = vadd.s32 128, %v10829_v2  ;;  %v2649_v38 = vld [vmem:[#allocation2 + $0xd8] sm:$0xff] }
 0x1f0   : > { %v2400_v34 = vand.u32 15, %v9029_v62  ;;  %v7314_v43 = vpop.eup %7313  ;;  %v2664_v45 = vmul.f32 %v2648_v13, %v8115_v30  ;;  %v2974_v16 = vmul.f32 %v2648_v13, %v8214_v0  ;;  %v2907_v29 = vadd.f32 %v2891_v25, %v2857_v23  ;;  %3055 = vst.msk [vmem:[#allocation3 + $0xa0] sm:$0xff] %vm10826_vm13, %v3039_v51  ;;  %v9096_v61 = vld [vmem:[#allocation2 + $0xd9] sm:$0xff] }
 0x1f1   : > { %v9087_v41 = vadd.s32 128, %v10830_v46  ;;  %v2842_v22 = vmul.f32 %v2648_v13, %v8151_v10  ;;  %v2759_v15 = vmul.f32 %v2695_v54, %v8146_v8  ;;  %v2808_v37 = vmul.f32 %v2552_v40, %v8187_v48 }
 0x1f2   : > { %v2925_v31 = vsel %vm8928_vm0, %v9077_v60, 0.0  ;;  %v7316_v5 = vpop.eup %7315  ;;  %v2616_v9 = vmul.f32 %v2552_v40, %v8132_v47  ;;  %v2990_v23 = vadd.f32 %v2974_v16, %v2956_v56  ;;  %v2793_v55 = vsel %vm8995_vm6, %v9077_v60, 0.0  ;;  %vm10831_vm0 = vmmov %vm10826_vm13 }
 0x1f3   : > { %v2941_v33 = vmul.f32 %v2925_v31, %v8224_v21  ;;  %v2775_v54 = vadd.f32 %v2759_v15, %v2679_v14  ;;  %v2824_v20 = vadd.f32 %v2808_v37, %v2774_v49  ;;  %v2744_v11 = vsel %vm9073_vm9, %v2696_v44, 0.0  ;;  %vm10832_vm13 = vmmov %vm10831_vm0 }
 0x1f4   : > { %v3008_v24 = vsel %vm8936_vm4, %v2696_v44, 0.0  ;;  %v7318_v13 = vpop.eup %7317  ;;  %v2975_v40 = vmul.f32 %v2649_v38, %v8214_v0  ;;  %v1456_v51 = vmul.f32 %v7314_v43, %v8849_v3  ;;  %v2809_v2 = vmul.f32 %v2793_v55, %v8187_v48  ;;  %vm10833_vm4 = vmmov %vm10831_vm0 }
 0x1f5   : > { %v2957_v25 = vadd.f32 %v2941_v33, %v2907_v29  ;;  %v3024_v56 = vmul.f32 %v8890_v26, %v3008_v24  ;;  %v3025_v14 = vmul.f32 %v8890_v26, %v9096_v61  ;;  %v1455_v49 = vmul.f32 %v7316_v5, %v8862_v53 }
 0x1f6   : > { %v1394_v16 = vadd.f32 1.0, %v9035_v17  ;;  %1495 = vst.msk [vmem:[#allocation2 + $0xf0] sm:$0xff] %vm10831_vm0, %v1456_v51  ;;  %v1393_v29 = vadd.f32 1.0, %v9041_v32  ;;  %v1396_v37 = vadd.f32 1.0, %v7312_v52  ;;  %v2858_v31 = vadd.f32 %v2842_v22, %v2824_v20  ;;  %v10834_v52 = vld [vmem:[#allocation50_spill] sm:$0xff] }
 0x1f7   : > { %v2991_v46 = vadd.f32 %v2975_v40, %v2957_v25  ;;  %v3040_v15 = vadd.f32 %v3024_v56, %v2990_v23  ;;  %v2876_v3 = vsel %vm9004_vm2, %v2696_v44, 0.0  ;;  %1494 = vst.msk [vmem:[#allocation2 + $0xe8] sm:$0xff] %vm10832_vm13, %v1455_v49  ;;  %v1395_v43 = vadd.f32 1.0, %v7318_v13  ;;  %v10835_v44 = vld [vmem:[#allocation51_spill] sm:$0xff] }
 0x1f8   : > { %7321 = vrcp.f32 %v1394_v16  ;;  %v2601_v53 = vsel %vm9065_vm10, %v9077_v60, 0.0  ;;  %v2760_v17 = vmul.f32 %v2744_v11, %v8146_v8  ;;  %v2407_v32 = vand.u32 15, %v9080_v1  ;;  %v2554_v11 = vld [vmem:[#allocation2 + $0xdf] sm:$0xff] }
 0x1f9   : > { %v3041_v5 = vadd.f32 %v3025_v14, %v2991_v46  ;;  %3056 = vst.msk [vmem:[#allocation3 + $0xa8] sm:$0xff] %vm10833_vm4, %v3040_v15  ;;  %7323 = vrcp.f32 %v1393_v29  ;;  %v9126_v22 = vadd.s32 128, %v10834_v52  ;;  %v9129_v23 = vadd.s32 128, %v10835_v44  ;;  %v9155_v16 = vld [vmem:[#allocation2 + $0x121] sm:$0xff] }
 0x1fa   : > { %7325 = vrcp.f32 %v1396_v37  ;;  %v7320_v55 = vpop.eup %7319  ;;  %v2680_v33 = vadd.f32 %v2664_v45, %v2616_v9  ;;  %v2825_v20 = vadd.f32 %v2809_v2, %v2775_v54  ;;  %v2892_v60 = vmul.f32 %v2876_v3, %v8197_v57  ;;  %v2918_v54 = vld [vmem:[#allocation2 + $0x11f] sm:$0xff] }
 0x1fb   : > { %3057 = vst.msk [vmem:[#allocation3 + $0xb0] sm:$0xff] %vm10831_vm0, %v3041_v5  ;;  %7327 = vrcp.f32 %v1395_v43  ;;  %v2617_v1 = vmul.f32 %v2601_v53, %v8132_v47  ;;  %v2665_v24 = vmul.f32 %v2649_v38, %v8115_v30  ;;  %v2428_v13 = vand.u32 15, %v9087_v41 }
 0x1fc   : > { %7329 = vpow2.f32 %v8808_v18  ;;  %v2776_v25 = vadd.f32 %v2760_v17, %v2680_v33  ;;  %v2843_v45 = vmul.f32 %v2649_v38, %v8151_v10  ;;  %v2908_v9 = vadd.f32 %v2892_v60, %v2858_v31 }
 0x1fd   : > { %7331 = vpow2.f32 %v9063_v59  ;;  %v9139_v40 = vadd.f32 1.0, %v7320_v55  ;;  %vm9141_vm4 = vcmp.ne.s32.totalorder %v2407_v32, 0  ;;  %vm9147_vm13 = vcmp.ne.s32.totalorder %v2400_v34, 15  ;;  %v2650_v59 = vld [vmem:[#allocation2 + $0xe0] sm:$0xff] }
 0x1fe   : > { %v2414_v41 = vand.u32 15, %v9126_v22  ;;  %v2810_v51 = vmul.f32 %v2554_v11, %v8187_v48  ;;  %v2859_v38 = vadd.f32 %v2843_v45, %v2825_v20  ;;  %v2942_v2 = vmul.f32 %v2554_v11, %v8224_v21  ;;  %v2555_v14 = vld [vmem:[#allocation2 + $0xe7] sm:$0xff] }
 0x1ff   : > { %v2421_v49 = vand.u32 15, %v9129_v23  ;;  %v2618_v46 = vmul.f32 %v2554_v11, %v8132_v47  ;;  %v2681_v62 = vadd.f32 %v2665_v24, %v2617_v1  ;;  %v2698_v34 = vld [vmem:[#allocation2 + $0xe1] sm:$0xff]  ;;  %vm9158_vm0 = vcmp.ne.s32.totalorder %v2428_v13, 15 }
 0x200   : > { %v9163_v29 = vmul.f32 %v2918_v54, %v8224_v21  ;;  %v2826_v37 = vadd.f32 %v2810_v51, %v2776_v25  ;;  %v2893_v31 = vmul.f32 %v9096_v61, %v8197_v57  ;;  %v2958_v3 = vadd.f32 %v2942_v2, %v2908_v9  ;;  %v2651_v23 = vld [vmem:[#allocation2 + $0xe8] sm:$0xff] }
 0x201   : > { %v2795_v43 = vsel %vm9065_vm10, %v2555_v14, 0.0  ;;  %v2666_v53 = vmul.f32 %v2650_v59, %v8115_v30  ;;  %v2844_v17 = vmul.f32 %v2650_v59, %v8151_v10  ;;  %v2761_v5 = vmul.f32 %v9096_v61, %v8146_v8 }
 0x202   : > { %v3018_v32 = vsel %vm9158_vm0, %v9155_v16, 0.0  ;;  %v2976_v52 = vmul.f32 %v2650_v59, %v8214_v0  ;;  %v2909_v22 = vadd.f32 %v2893_v31, %v2859_v38  ;;  %v2603_v44 = vsel %vm9141_vm4, %v2555_v14, 0.0  ;;  %v2699_v59 = vld [vmem:[#allocation2 + $0xe9] sm:$0xff]  ;;  %v2967_v31 = vld [vmem:[#allocation2 + $0x118] sm:$0xff] }
 0x203   : > { %v2746_v55 = vsel %vm9147_vm13, %v2698_v34, 0.0  ;;  %v2682_v33 = vadd.f32 %v2666_v53, %v2618_v46  ;;  %v2777_v20 = vadd.f32 %v2761_v5, %v2681_v62  ;;  %v2811_v60 = vmul.f32 %v2795_v43, %v8187_v48  ;;  %v3001_v43 = vld [vmem:[#allocation2 + $0x119] sm:$0xff] }
 0x204   : > { %v2927_v61 = vsel %vm8995_vm6, %v2555_v14, 0.0  ;;  %v2860_v1 = vadd.f32 %v2844_v17, %v2826_v37  ;;  %v2992_v24 = vadd.f32 %v2976_v52, %v2958_v3  ;;  %v2878_v13 = vsel %vm9073_vm9, %v2698_v34, 0.0  ;;  %v2968_v3 = vld [vmem:[#allocation2 + $0x120] sm:$0xff]  ;;  %v3070_v17 = vld [vmem:[#allocation3 + $0x18] sm:$0xff] }
 0x205   : > { %v7322_v11 = vpop.eup %7321  ;;  %v2943_v25 = vmul.f32 %v2927_v61, %v8224_v21  ;;  %v2619_v9 = vmul.f32 %v2603_v44, %v8132_v47  ;;  %v2667_v54 = vmul.f32 %v2651_v23, %v8115_v30  ;;  %v2762_v51 = vmul.f32 %v2746_v55, %v8146_v8 }
 0x206   : > { %v7324_v45 = vpop.eup %7323  ;;  %v3010_v38 = vsel %vm9004_vm2, %v2698_v34, 0.0  ;;  %v2977_v16 = vmul.f32 %v2651_v23, %v8214_v0  ;;  %v1458_v62 = vmul.f32 %v7322_v11, %v8894_v6  ;;  %vm9195_vm6 = vcmp.ne.s32.totalorder %v2421_v49, 0  ;;  %v3072_v11 = vld [vmem:[#allocation3 + $0x28] sm:$0xff] }
 0x207   : > { %v7326_v2 = vpop.eup %7325  ;;  %v2959_v14 = vadd.f32 %v2943_v25, %v2909_v22  ;;  %v3026_v46 = vmul.f32 %v8890_v26, %v3010_v38  ;;  %v2827_v5 = vadd.f32 %v2811_v60, %v2777_v20  ;;  %v2894_v39 = vmul.f32 %v2878_v13, %v8197_v57  ;;  %v2556_v22 = vld [vmem:[#allocation2 + $0xef] sm:$0xff] }
 0x208   : > { %v7328_v53 = vpop.eup %7327  ;;  %v1457_v34 = vmul.f32 %v7324_v45, %v8899_v63  ;;  %vm9201_vm2 = vcmp.ne.s32.totalorder %v2414_v41, 15  ;;  %v10844_v52 = vmov 0  ;;  %v1460_v6 = vmul.f32 %v7326_v2, %v8955_v50  ;;  %v3071_v60 = vld [vmem:[#allocation3 + $0x20] sm:$0xff]  ;;  %v3074_v38 = vld [vmem:[#allocation3 + $0x38] sm:$0xff] }
 0x209   : > { %v10845_v52 = vsel %vm9201_vm2, 4294967295, %v10844_v52  ;;  %v9206_v49 = vpop.eup %7329  ;;  %v2993_v44 = vadd.f32 %v2977_v16, %v2959_v14  ;;  %v3027_v55 = vmul.f32 %v8890_v26, %v2699_v59  ;;  %v3042_v61 = vadd.f32 %v3026_v46, %v2992_v24  ;;  %v3075_v2 = vld [vmem:[#allocation3 + $0x40] sm:$0xff] }
 0x20a   : > { %10846 = vst [vmem:[#allocation33_spill] sm:$0xff] %v10845_v52  ;;  %vm10847_vm14 = vcmask 130048   ;;  %v1459_v20 = vmul.f32 %v7328_v53, %v8975_v19  ;;  %v9211_v63 = vpop.eup %7331  ;;  %v2778_v41 = vadd.f32 %v2762_v51, %v2682_v33  ;;  %v9216_v50 = vmul.f32 %v2967_v31, %v8214_v0  ;;  %v3073_v51 = vld [vmem:[#allocation3 + $0x30] sm:$0xff]  ;;  %v2652_v14 = vld [vmem:[#allocation2 + $0xf0] sm:$0xff] }
 0x20b   : > { %1497 = vst.msk [vmem:[#allocation2 + $0x100] sm:$0xff] %vm10847_vm14, %v1458_v62  ;;  %vm10848_vm1 = vmmov %vm10847_vm14  ;;  %v9219_v13 = vmul.f32 %v2968_v3, %v8214_v0  ;;  %v9222_v24 = vmul.f32 %v8890_v26, %v3001_v43  ;;  %v2845_v19 = vmul.f32 %v2651_v23, %v8151_v10  ;;  %v2910_v25 = vadd.f32 %v2894_v39, %v2860_v1  ;;  %v3076_v43 = vld [vmem:[#allocation3 + $0x48] sm:$0xff] }
 0x20c   : > { %1496 = vst.msk [vmem:[#allocation2 + $0xf8] sm:$0xff] %vm10848_vm1, %v1457_v34  ;;  %vm10849_vm15 = vmmov %vm10848_vm1  ;;  %v3043_v45 = vadd.f32 %v3027_v55, %v2993_v44  ;;  %v9228_v33 = vmul.f32 %v8890_v26, %v3018_v32  ;;  %v2812_v16 = vmul.f32 %v2556_v22, %v8187_v48  ;;  %v9232_v46 = vadd.f32 %v8717_v42, %v3070_v17 }
 0x20d   : > { %1499 = vst.msk [vmem:[#allocation2 + $0x110] sm:$0xff] %vm10849_vm15, %v1460_v6  ;;  %vm10850_vm14 = vmmov %vm10848_vm1  ;;  %v9235_v23 = vadd.f32 %v8717_v42, %v3071_v60  ;;  %v9238_v1 = vadd.f32 %v8717_v42, %v3072_v11  ;;  %v2620_v62 = vmul.f32 %v2556_v22, %v8132_v47  ;;  %v2683_v31 = vadd.f32 %v2667_v54, %v2619_v9 }
 0x20e   : > { %3058 = vst.msk [vmem:[#allocation3 + $0xb8] sm:$0xff] %vm10850_vm14, %v3042_v61  ;;  %vm10851_vm12 = vmmov %vm10848_vm1  ;;  %v2861_v32 = vadd.f32 %v2845_v19, %v2827_v5  ;;  %v2944_v3 = vmul.f32 %v2556_v22, %v8224_v21  ;;  %v2828_v53 = vadd.f32 %v2812_v16, %v2778_v41  ;;  %v9244_v39 = vadd.f32 %v8717_v42, %v3073_v51 }
 0x20f   : > { %1498 = vst.msk [vmem:[#allocation2 + $0x108] sm:$0xff] %vm10851_vm12, %v1459_v20  ;;  %vm10852_vm12 = vmmov %vm10848_vm1  ;;  %v9247_v17 = vadd.f32 %v8717_v42, %v3074_v38  ;;  %v9250_v34 = vadd.f32 %v8717_v42, %v3075_v2  ;;  %v2668_v6 = vmul.f32 %v2652_v14, %v8115_v30  ;;  %v2763_v9 = vmul.f32 %v2699_v59, %v8146_v8 }
 0x210   : > { %3059 = vst.msk [vmem:[#allocation3 + $0xc0] sm:$0xff] %vm10852_vm12, %v3043_v45  ;;  %v2895_v54 = vmul.f32 %v2699_v59, %v8197_v57  ;;  %v2960_v5 = vadd.f32 %v2944_v3, %v2910_v25  ;;  %v2846_v22 = vmul.f32 %v2652_v14, %v8151_v10  ;;  %v9257_v55 = vadd.f32 %v8717_v42, %v3076_v43  ;;  %vm10853_vm15 = vmmov %vm10848_vm1 }
 0x211   : > { %v2978_v60 = vmul.f32 %v2652_v14, %v8214_v0  ;;  %v2684_v11 = vadd.f32 %v2668_v6, %v2620_v62  ;;  %v2779_v41 = vadd.f32 %v2763_v9, %v2683_v31  ;;  %7333 = vrcp.f32 %v9139_v40 }
 0x212   : > { %v2654_v44 = vld [vmem:[#allocation2 + $0x100] sm:$0xff]  ;;  %v2911_v19 = vadd.f32 %v2895_v54, %v2861_v32  ;;  %v2862_v59 = vadd.f32 %v2846_v22, %v2828_v53 }
 0x213   : > { %v2557_v45 = vld [vmem:[#allocation2 + $0xf7] sm:$0xff]  ;;  %v2558_v51 = vld [vmem:[#allocation2 + $0xff] sm:$0xff]  ;;  %v2994_v3 = vadd.f32 %v2978_v60, %v2960_v5  ;;  %v2670_v31 = vmul.f32 %v2654_v44, %v8115_v30  ;;  %v2848_v32 = vmul.f32 %v2654_v44, %v8151_v10 }
 0x214   : > { %v2653_v38 = vld [vmem:[#allocation2 + $0xf8] sm:$0xff]  ;;  %v2605_v25 = vsel %vm9195_vm6, %v2557_v45, 0.0  ;;  %v2797_v16 = vsel %vm9141_vm4, %v2557_v45, 0.0  ;;  %v2622_v53 = vmul.f32 %v2558_v51, %v8132_v47  ;;  %v2814_v54 = vmul.f32 %v2558_v51, %v8187_v48 }
 0x215   : > { %v2669_v2 = vmul.f32 %v2653_v38, %v8115_v30  ;;  %v2700_v42 = vld [vmem:[#allocation2 + $0xf1] sm:$0xff]  ;;  %v2621_v43 = vmul.f32 %v2605_v25, %v8132_v47  ;;  %v2813_v62 = vmul.f32 %v2797_v16, %v8187_v48  ;;  %v2701_v6 = vld [vmem:[#allocation2 + $0xf9] sm:$0xff]  ;;  %v2847_v5 = vmul.f32 %v2653_v38, %v8151_v10 }
 0x216   : > { %v2748_v14 = vsel %vm9201_vm2, %v2700_v42, 0.0  ;;  %v2880_v60 = vsel %vm9147_vm13, %v2700_v42, 0.0  ;;  %v2929_v30 = vsel %vm9065_vm10, %v2557_v45, 0.0  ;;  %v2980_v47 = vmul.f32 %v2654_v44, %v8214_v0  ;;  %vm10856_vm10 = vmmov %vm10848_vm1 }
 0x217   : > { %v2764_v9 = vmul.f32 %v2748_v14, %v8146_v8  ;;  %v2829_v22 = vadd.f32 %v2813_v62, %v2779_v41  ;;  %v2685_v25 = vadd.f32 %v2669_v2, %v2621_v43  ;;  %v2896_v16 = vmul.f32 %v2880_v60, %v8197_v57  ;;  %v9285_v41 = vld [vmem:[#allocation2 + $0x111] sm:$0xff] }
 0x218   : > { %v2765_v61 = vmul.f32 %v2701_v6, %v8146_v8  ;;  %v2945_v36 = vmul.f32 %v2929_v30, %v8224_v21  ;;  %v2946_v12 = vmul.f32 %v2558_v51, %v8224_v21  ;;  %v2897_v2 = vmul.f32 %v2701_v6, %v8197_v57  ;;  %v2834_v43 = vld [vmem:[#allocation2 + $0x110] sm:$0xff]  ;;  %v2783_v51 = vld [vmem:[#allocation2 + $0x107] sm:$0xff] }
 0x219   : > { %v2780_v20 = vadd.f32 %v2764_v9, %v2684_v11  ;;  %v2863_v14 = vadd.f32 %v2847_v5, %v2829_v22  ;;  %v2912_v35 = vadd.f32 %v2896_v16, %v2862_v59  ;;  %v3012_v11 = vsel %vm9073_vm9, %v2700_v42, 0.0  ;;  %v2917_v9 = vld [vmem:[#allocation2 + $0x117] sm:$0xff]  ;;  %v2702_v22 = vld [vmem:[#allocation2 + $0x101] sm:$0xff] }
 0x21a   : > { %v2961_v27 = vadd.f32 %v2945_v36, %v2911_v19  ;;  %v2979_v45 = vmul.f32 %v2653_v38, %v8214_v0  ;;  %v3028_v44 = vmul.f32 %v8890_v26, %v3012_v11  ;;  %v2686_v5 = vadd.f32 %v2670_v31, %v2622_v53 }
 0x21b   : > { %v2830_v62 = vadd.f32 %v2814_v54, %v2780_v20  ;;  %v2781_v60 = vadd.f32 %v2765_v61, %v2685_v25  ;;  %v2962_v30 = vadd.f32 %v2946_v12, %v2912_v35  ;;  %v2884_v20 = vsel %vm9158_vm0, %v9285_v41, 0.0  ;;  %v2784_v12 = vld [vmem:[#allocation2 + $0x10f] sm:$0xff] }
 0x21c   : > { %v2913_v59 = vadd.f32 %v2897_v2, %v2863_v14  ;;  %v2995_v42 = vadd.f32 %v2979_v45, %v2961_v27  ;;  %v3029_v54 = vmul.f32 %v8890_v26, %v2701_v6  ;;  %v3044_v36 = vadd.f32 %v3028_v44, %v2994_v3  ;;  %v2867_v6 = vld [vmem:[#allocation2 + $0x109] sm:$0xff] }
 0x21d   : > { %v2864_v19 = vadd.f32 %v2848_v32, %v2830_v62  ;;  %v2850_v38 = vmul.f32 %v2834_v43, %v8151_v10  ;;  %v2933_v16 = vsel %vm9195_vm6, %v2917_v9, 0.0  ;;  %v2750_v61 = vsel %vm9158_vm0, %v2702_v22, 0.0  ;;  %v2833_v32 = vld [vmem:[#allocation2 + $0x108] sm:$0xff]  ;;  %vm10859_vm0 = vmmov %vm10848_vm1 }
 0x21e   : > { %v3045_v35 = vadd.f32 %v3029_v54, %v2995_v42  ;;  %3060 = vst.msk [vmem:[#allocation3 + $0xc8] sm:$0xff] %vm10853_vm15, %v3044_v36  ;;  %v2900_v31 = vmul.f32 %v2884_v20, %v8197_v57  ;;  %v2766_v53 = vmul.f32 %v2750_v61, %v8146_v8  ;;  %v2799_v3 = vsel %vm9195_vm6, %v2783_v51, 0.0  ;;  %v3077_v36 = vld [vmem:[#allocation3 + $0x50] sm:$0xff]  ;;  %vm10854_vm6 = vmmov %vm10848_vm1 }
 0x21f   : > { %v2996_v25 = vadd.f32 %v2980_v47, %v2962_v30  ;;  %v3016_v14 = vsel %vm9201_vm2, %v9285_v41, 0.0  ;;  %v2815_v15 = vmul.f32 %v2799_v3, %v8187_v48  ;;  %v2882_v62 = vsel %vm9201_vm2, %v2702_v22, 0.0  ;;  %vm10860_vm14 = vmmov %vm10859_vm0 }
 0x220   : > { %3061 = vst.msk [vmem:[#allocation3 + $0xd0] sm:$0xff] %vm10848_vm1, %v3045_v35  ;;  %v2782_v11 = vadd.f32 %v2766_v53, %v2686_v5  ;;  %v2816_v8 = vmul.f32 %v2784_v12, %v8187_v48  ;;  %v2898_v37 = vmul.f32 %v2882_v62, %v8197_v57  ;;  %v2931_v2 = vsel %vm9141_vm4, %v2783_v51, 0.0  ;;  %vm10863_vm12 = vmmov %vm10859_vm0 }
 0x221   : > { %v2831_v47 = vadd.f32 %v2815_v15, %v2781_v60  ;;  %v2849_v27 = vmul.f32 %v2833_v32, %v8151_v10  ;;  %v2899_v41 = vmul.f32 %v2867_v6, %v8197_v57  ;;  %v2947_v45 = vmul.f32 %v2931_v2, %v8224_v21  ;;  %vm10864_vm15 = vmmov %vm10859_vm0 }
 0x222   : > { %v2832_v44 = vadd.f32 %v2816_v8, %v2782_v11  ;;  %v2914_v9 = vadd.f32 %v2898_v37, %v2864_v19  ;;  %v2948_v30 = vmul.f32 %v2784_v12, %v8224_v21  ;;  %v3014_v5 = vsel %vm9147_vm13, %v2702_v22, 0.0  ;;  %vm10858_vm13 = vmmov %vm10848_vm1 }
 0x223   : > { %v2865_v48 = vadd.f32 %v2849_v27, %v2831_v47  ;;  %v2963_v20 = vadd.f32 %v2947_v45, %v2913_v59  ;;  %v2981_v42 = vmul.f32 %v2833_v32, %v8214_v0  ;;  %v3030_v51 = vmul.f32 %v8890_v26, %v3014_v5  ;;  %vm10865_vm1 = vmmov %vm10859_vm0 }
 0x224   : > { %v2949_v60 = vmul.f32 %v2933_v16, %v8224_v21  ;;  %v2982_v10 = vmul.f32 %v2834_v43, %v8214_v0  ;;  %v2866_v57 = vadd.f32 %v2850_v38, %v2832_v44  ;;  %v2964_v54 = vadd.f32 %v2948_v30, %v2914_v9  ;;  %v3078_v0 = vld [vmem:[#allocation3 + $0x58] sm:$0xff]  ;;  %v9333_v21 = vld [vmem:[%s7790_s21] ss:$0 sm:$0xff] }
 0x225   : > { %v2915_v19 = vadd.f32 %v2899_v41, %v2865_v48  ;;  %v2997_v61 = vadd.f32 %v2981_v42, %v2963_v20  ;;  %v3031_v12 = vmul.f32 %v8890_v26, %v2867_v6  ;;  %v3046_v18 = vadd.f32 %v3030_v51, %v2996_v25  ;;  %v3081_v41 = vld [vmem:[#allocation3 + $0x70] sm:$0xff]  ;;  %v3082_v9 = vld [vmem:[#allocation3 + $0x78] sm:$0xff]  ;;  %v3083_v48 = vld [vmem:[#allocation3 + $0x80] sm:$0xff] }
 0x226   : > { %v3032_v22 = vmul.f32 %v8890_v26, %v3016_v14  ;;  %v2916_v59 = vadd.f32 %v2900_v31, %v2866_v57  ;;  %v2998_v35 = vadd.f32 %v2982_v10, %v2964_v54  ;;  %v3143_v53 = vsub.f32 0.0, %v9238_v1  ;;  %v3079_v26 = vld [vmem:[#allocation3 + $0x60] sm:$0xff]  ;;  %v3085_v10 = vld [vmem:[#allocation3 + $0x90] sm:$0xff]  ;;  %v3086_v54 = vld [vmem:[#allocation3 + $0x98] sm:$0xff] }
 0x227   : > { %v2965_v3 = vadd.f32 %v2949_v60, %v2915_v19  ;;  %v3047_v32 = vadd.f32 %v3031_v12, %v2997_v61  ;;  %3062 = vst.msk [vmem:[#allocation3 + $0xd8] sm:$0xff] %vm10854_vm6, %v3046_v18  ;;  %v9336_v43 = vadd.f32 %v9333_v21, %v3077_v36  ;;  %v3144_v38 = vsub.f32 0.0, %v9244_v39  ;;  %vm10866_vm6 = vmmov %vm10859_vm0 }
 0x228   : > { %v2966_v16 = vadd.f32 %v9163_v29, %v2916_v59  ;;  %v3048_v6 = vadd.f32 %v3032_v22, %v2998_v35  ;;  %v3145_v31 = vsub.f32 0.0, %v9247_v17  ;;  %v10855_v25 = vsub.f32 0.0, %v9232_v46  ;;  %v3080_v29 = vld [vmem:[#allocation3 + $0x68] sm:$0xff] }
 0x229   : > { %v2999_v15 = vadd.f32 %v9216_v50, %v2965_v3  ;;  %3063 = vst.msk [vmem:[#allocation3 + $0xe0] sm:$0xff] %vm10856_vm10, %v3047_v32  ;;  %v3146_v62 = vsub.f32 0.0, %v9250_v34  ;;  %v10857_v11 = vsub.f32 0.0, %v9235_v23  ;;  %v9351_v2 = vadd.f32 %v9333_v21, %v3078_v0  ;;  %vm10867_vm10 = vmmov %vm10859_vm0 }
 0x22a   : > { %v3176_v14 = vmul.f32 1.442695, %v10855_v25  ;;  %v3000_v37 = vadd.f32 %v9219_v13, %v2966_v16  ;;  %3064 = vst.msk [vmem:[#allocation3 + $0xe8] sm:$0xff] %vm10858_vm13, %v3048_v6  ;;  %v3147_v47 = vsub.f32 0.0, %v9257_v55  ;;  %v3180_v27 = vmul.f32 1.442695, %v3143_v53  ;;  %v7334_v25 = vpop.eup %7333  ;;  %vm10868_vm13 = vmmov %vm10859_vm0 }
 0x22b   : > { %v3178_v8 = vmul.f32 1.442695, %v10857_v11  ;;  %v3049_v50 = vadd.f32 %v9222_v24, %v2999_v15  ;;  %v9357_v45 = vadd.f32 %v9333_v21, %v3079_v26  ;;  %v3182_v44 = vmul.f32 1.442695, %v3144_v38  ;;  %v3084_v24 = vld [vmem:[#allocation3 + $0x88] sm:$0xff] }
 0x22c   : > { %v3050_v13 = vadd.f32 %v9228_v33, %v3000_v37  ;;  %v3148_v30 = vsub.f32 0.0, %v9336_v43  ;;  %7335 = vpow2.f32 %v3176_v14  ;;  %v3184_v5 = vmul.f32 1.442695, %v3145_v31  ;;  %v3087_v14 = vld [vmem:[#allocation3 + $0xa0] sm:$0xff]  ;;  %v3088_v37 = vld [vmem:[#allocation3 + $0xa8] sm:$0xff] }
 0x22d   : > { %3065 = vst.msk [vmem:[#allocation3 + $0xf0] sm:$0xff] %vm10859_vm0, %v3049_v50  ;;  %v9363_v20 = vadd.f32 %v9333_v21, %v3080_v29  ;;  %7337 = vpow2.f32 %v3178_v8  ;;  %v3186_v40 = vmul.f32 1.442695, %v3146_v62  ;;  %v9367_v42 = vadd.f32 %v9333_v21, %v3081_v41 }
 0x22e   : > { %3066 = vst.msk [vmem:[#allocation3 + $0xf8] sm:$0xff] %vm10860_vm14, %v3050_v13  ;;  %v3149_v33 = vsub.f32 0.0, %v9351_v2  ;;  %7339 = vpow2.f32 %v3180_v27  ;;  %v3188_v51 = vmul.f32 1.442695, %v3147_v47  ;;  %v3234_v60 = vadd.f32 1.0, %v9206_v49  ;;  %v3089_v27 = vld [vmem:[#allocation3 + $0xb0] sm:$0xff]  ;;  %vm10869_vm14 = vmmov %vm10859_vm0 }
 0x22f   : > { %v9372_v57 = vadd.f32 %v9333_v21, %v3082_v9  ;;  %7341 = vpow2.f32 %v3182_v44  ;;  %v9375_v36 = vadd.f32 %v9333_v21, %v3083_v48  ;;  %v3150_v19 = vsub.f32 0.0, %v9357_v45 }
 0x230   : > { %7343 = vpow2.f32 %v3184_v5  ;;  %v3190_v61 = vmul.f32 1.442695, %v3148_v30  ;;  %v3236_v12 = vadd.f32 1.0, %v9211_v63  ;;  %v9380_v18 = vadd.f32 %v9333_v21, %v3084_v24  ;;  %v3090_v30 = vld [vmem:[#allocation3 + $0xb8] sm:$0xff]  ;;  %v3091_v24 = vld [vmem:[#allocation3 + $0xc0] sm:$0xff] }
 0x231   : > { %v3151_v49 = vsub.f32 0.0, %v9363_v20  ;;  %7345 = vpow2.f32 %v3186_v40  ;;  %v9384_v22 = vadd.f32 %v9333_v21, %v3085_v10  ;;  %v3152_v59 = vsub.f32 0.0, %v9367_v42 }
 0x232   : > { %7347 = vpow2.f32 %v3188_v51  ;;  %v3192_v35 = vmul.f32 1.442695, %v3149_v33  ;;  %v9388_v53 = vadd.f32 %v9333_v21, %v3086_v54  ;;  %v3153_v3 = vsub.f32 0.0, %v9372_v57 }
 0x233   : > { %7349 = vrcp.f32 %v3234_v60  ;;  %v3154_v63 = vsub.f32 0.0, %v9375_v36  ;;  %v3194_v32 = vmul.f32 1.442695, %v3150_v19  ;;  %v3155_v0 = vsub.f32 0.0, %v9380_v18 }
 0x234   : > { %7351 = vpow2.f32 %v3190_v61  ;;  %v3196_v38 = vmul.f32 1.442695, %v3151_v49  ;;  %v3156_v16 = vsub.f32 0.0, %v9384_v22  ;;  %v3198_v6 = vmul.f32 1.442695, %v3152_v59  ;;  %v3092_v61 = vld [vmem:[#allocation3 + $0xc8] sm:$0xff] }
 0x235   : > { %7353 = vrcp.f32 %v3236_v12  ;;  %v3157_v26 = vsub.f32 0.0, %v9388_v53  ;;  %v3200_v31 = vmul.f32 1.442695, %v3153_v3  ;;  %v3202_v15 = vmul.f32 1.442695, %v3154_v63  ;;  %v3093_v12 = vld [vmem:[#allocation3 + $0xd0] sm:$0xff] }
 0x236   : > { %7355 = vpow2.f32 %v3192_v35  ;;  %v3204_v11 = vmul.f32 1.442695, %v3155_v0  ;;  %v3206_v29 = vmul.f32 1.442695, %v3156_v16  ;;  %v9396_v50 = vadd.f32 %v9333_v21, %v3087_v14 }
 0x237   : > { %7357 = vpow2.f32 %v3194_v32  ;;  %v3208_v41 = vmul.f32 1.442695, %v3157_v26  ;;  %v9399_v5 = vadd.f32 %v9333_v21, %v3088_v37  ;;  %v9402_v33 = vadd.f32 %v9333_v21, %v3089_v27  ;;  %v10861_v26 = vld [vmem:[#allocation44_spill] sm:$0xff] }
 0x238   : > { %7359 = vpow2.f32 %v3196_v38  ;;  %v3158_v10 = vsub.f32 0.0, %v9396_v50  ;;  %v9406_v49 = vadd.f32 %v9333_v21, %v3090_v30  ;;  %v9409_v3 = vadd.f32 %v9333_v21, %v3091_v24  ;;  %v3094_v38 = vld [vmem:[#allocation3 + $0xd8] sm:$0xff] }
 0x239   : > { %v7336_v62 = vpop.eup %7335  ;;  %7361 = vpow2.f32 %v3198_v6  ;;  %v3159_v63 = vsub.f32 0.0, %v9399_v5  ;;  %v3160_v16 = vsub.f32 0.0, %v9402_v33 }
 0x23a   : > { %v7338_v8 = vpop.eup %7337  ;;  %7363 = vpow2.f32 %v3200_v31  ;;  %v3237_v13 = vadd.f32 1.0, %v7336_v62  ;;  %v9414_v31 = vmul.f32 %v7334_v25, %v10861_v26  ;;  %v9420_v62 = vadd.f32 %v9333_v21, %v3093_v12 }
 0x23b   : > { %v7340_v47 = vpop.eup %7339  ;;  %7365 = vpow2.f32 %v3202_v15  ;;  %v3238_v48 = vadd.f32 1.0, %v7338_v8  ;;  %v9417_v15 = vadd.f32 %v9333_v21, %v3092_v61  ;;  %v3161_v8 = vsub.f32 0.0, %v9406_v49 }
 0x23c   : > { %v7342_v44 = vpop.eup %7341  ;;  %7367 = vpow2.f32 %v3204_v11  ;;  %v3239_v51 = vadd.f32 1.0, %v7340_v47  ;;  %v3210_v11 = vmul.f32 1.442695, %v3158_v10  ;;  %v9427_v25 = vadd.f32 %v9333_v21, %v3094_v38 }
 0x23d   : > { %v7344_v9 = vpop.eup %7343  ;;  %7369 = vpow2.f32 %v3206_v29  ;;  %v3240_v54 = vadd.f32 1.0, %v7342_v44  ;;  %v10862_v29 = vld [vmem:[#allocation39_spill] sm:$0xff]  ;;  %v3212_v44 = vmul.f32 1.442695, %v3159_v63  ;;  %v3164_v10 = vsub.f32 0.0, %v9420_v62 }
 0x23e   : > { %v7346_v40 = vpop.eup %7345  ;;  %7371 = vpow2.f32 %v3208_v41  ;;  %v3241_v59 = vadd.f32 1.0, %v7344_v9  ;;  %v3162_v41 = vsub.f32 0.0, %v9409_v3  ;;  %v3095_v9 = vld [vmem:[#allocation3 + $0xe0] sm:$0xff]  ;;  %v3216_v61 = vmul.f32 1.442695, %v3161_v8 }
 0x23f   : > { %v7348_v60 = vpop.eup %7347  ;;  %7373 = vrcp.f32 %v3237_v13  ;;  %v3242_v32 = vadd.f32 1.0, %v7346_v40  ;;  %v3336_v40 = vsel %vm10863_vm12, %v9414_v31, 0.0  ;;  %v3165_v63 = vsub.f32 0.0, %v9427_v25  ;;  %vm10870_vm12 = vmmov %vm10859_vm0 }
 0x240   : > { %v7350_v19 = vpop.eup %7349  ;;  %7375 = vrcp.f32 %v3238_v48  ;;  %v3243_v6 = vadd.f32 1.0, %v7348_v60  ;;  %v3163_v60 = vsub.f32 0.0, %v9417_v15 }
 0x241   : > { %v7352_v35 = vpop.eup %7351  ;;  %7377 = vrcp.f32 %v3239_v51  ;;  %v9424_v47 = vmul.f32 %v7350_v19, %v10862_v29  ;;  %v3096_v51 = vld [vmem:[#allocation3 + $0xe8] sm:$0xff]  ;;  %v3098_v29 = vld [vmem:[#allocation3 + $0xf8] sm:$0xff] }
 0x242   : > { %v7354_v0 = vpop.eup %7353  ;;  %7379 = vrcp.f32 %v3240_v54  ;;  %v3244_v37 = vadd.f32 1.0, %v7352_v35  ;;  %v3214_v54 = vmul.f32 1.442695, %v3160_v16  ;;  %v9440_v35 = vadd.f32 %v9333_v21, %v3095_v9 }
 0x243   : > { %v7356_v14 = vpop.eup %7355  ;;  %7381 = vrcp.f32 %v3241_v59  ;;  %v9431_v48 = vmul.f32 %v7354_v0, %v8814_v4  ;;  %v3335_v59 = vsel %vm10864_vm15, %v9424_v47, 0.0  ;;  %v9444_v38 = vadd.f32 %v9333_v21, %v3096_v51  ;;  %vm10871_vm15 = vmmov %vm10859_vm0 }
 0x244   : > { %v7358_v27 = vpop.eup %7357  ;;  %7383 = vrcp.f32 %v3242_v32  ;;  %v3245_v30 = vadd.f32 1.0, %v7356_v14  ;;  %v3337_v32 = vadd.f32 %v3336_v40, %v3335_v59  ;;  %v3218_v14 = vmul.f32 1.442695, %v3162_v41 }
 0x245   : > { %v7360_v13 = vpop.eup %7359  ;;  %7385 = vrcp.f32 %v3243_v6  ;;  %v3246_v12 = vadd.f32 1.0, %v7358_v27  ;;  %v3338_v6 = vsel %vm10865_vm1, %v9431_v48, 0.0  ;;  %v3222_v27 = vmul.f32 1.442695, %v3164_v10  ;;  %vm10872_vm1 = vmmov %vm10859_vm0 }
 0x246   : > { %v7362_v24 = vpop.eup %7361  ;;  %7387 = vpow2.f32 %v3210_v11  ;;  %v3247_v16 = vadd.f32 1.0, %v7360_v13  ;;  %v3220_v11 = vmul.f32 1.442695, %v3163_v60  ;;  %v3166_v40 = vsub.f32 0.0, %v9440_v35 }
 0x247   : > { %v7364_v19 = vpop.eup %7363  ;;  %7389 = vrcp.f32 %v3244_v37  ;;  %v3097_v37 = vld [vmem:[#allocation3 + $0xf0] sm:$0xff]  ;;  %v3248_v9 = vadd.f32 1.0, %v7362_v24  ;;  %v3224_v51 = vmul.f32 1.442695, %v3165_v63  ;;  %v3339_v13 = vadd.f32 %v3338_v6, %v3337_v32 }
 0x248   : > { %v7366_v4 = vpop.eup %7365  ;;  %7391 = vpow2.f32 %v3212_v44  ;;  %v3167_v59 = vsub.f32 0.0, %v9444_v38  ;;  %v3249_v52 = vadd.f32 1.0, %v7364_v19  ;;  %v9457_v24 = vadd.f32 %v9333_v21, %v3098_v29 }
 0x249   : > { %v7368_v0 = vpop.eup %7367  ;;  %7393 = vrcp.f32 %v3245_v30 }
 0x24a   : > { %v7370_v26 = vpop.eup %7369  ;;  %7395 = vpow2.f32 %v3214_v54  ;;  %v9454_v54 = vadd.f32 %v9333_v21, %v3097_v37  ;;  %v3251_v6 = vadd.f32 1.0, %v7368_v0  ;;  %v3169_v0 = vsub.f32 0.0, %v9457_v24 }
 0x24b   : > { %v7372_v8 = vpop.eup %7371  ;;  %7397 = vrcp.f32 %v3246_v12  ;;  %v3250_v12 = vadd.f32 1.0, %v7366_v4 }
 0x24c   : > { %v7374_v44 = vpop.eup %7373  ;;  %7399 = vpow2.f32 %v3216_v61  ;;  %v3168_v37 = vsub.f32 0.0, %v9454_v54 }
 0x24d   : > { %v7376_v30 = vpop.eup %7375  ;;  %7401 = vrcp.f32 %v3247_v16  ;;  %v9451_v41 = vmul.f32 %v7374_v44, %v9232_v46 }
 0x24e   : > { %v7378_v60 = vpop.eup %7377  ;;  %7403 = vpow2.f32 %v3218_v14  ;;  %v9460_v10 = vmul.f32 %v7376_v30, %v9235_v23 }
 0x24f   : > { %v7380_v61 = vpop.eup %7379  ;;  %7405 = vrcp.f32 %v3248_v9  ;;  %v9463_v19 = vmul.f32 %v7378_v60, %v9238_v1  ;;  %v3340_v46 = vsel %vm10866_vm6, %v9451_v41, 0.0  ;;  %v3252_v9 = vadd.f32 1.0, %v7370_v26  ;;  %vm10873_vm6 = vmmov %vm10859_vm0 }
 0x250   : > { %v7382_v63 = vpop.eup %7381  ;;  %7407 = vpow2.f32 %v3220_v11  ;;  %v9468_v32 = vmul.f32 %v7380_v61, %v9244_v39  ;;  %v3341_v21 = vadd.f32 %v3340_v46, %v3339_v13  ;;  %v3342_v16 = vsel %vm10867_vm10, %v9460_v10, 0.0  ;;  %vm10874_vm10 = vmmov %vm10859_vm0 }
 0x251   : > { %v7384_v23 = vpop.eup %7383  ;;  %7409 = vrcp.f32 %v3249_v52  ;;  %v9473_v4 = vmul.f32 %v7382_v63, %v9247_v17  ;;  %v3344_v1 = vsel %vm10868_vm13, %v9463_v19, 0.0  ;;  %v3226_v11 = vmul.f32 1.442695, %v3166_v40  ;;  %vm10875_vm13 = vmmov %vm10859_vm0 }
 0x252   : > { %v7386_v14 = vpop.eup %7385  ;;  %7411 = vpow2.f32 %v3222_v27  ;;  %v3343_v39 = vadd.f32 %v3342_v16, %v3341_v21  ;;  %v9479_v44 = vmul.f32 %v7384_v23, %v9250_v34  ;;  %v3346_v52 = vsel %vm10859_vm0, %v9468_v32, 0.0 }
 0x253   : > { %v7388_v29 = vpop.eup %7387  ;;  %7413 = vrcp.f32 %v3250_v12  ;;  %v3228_v13 = vmul.f32 1.442695, %v3167_v59  ;;  %v3253_v61 = vadd.f32 1.0, %v7372_v8  ;;  %v9485_v27 = vmul.f32 %v7386_v14, %v9257_v55 }
 0x254   : > { %v7390_v17 = vpop.eup %7389  ;;  %7415 = vpow2.f32 %v3224_v51  ;;  %v3345_v30 = vadd.f32 %v3344_v1, %v3343_v39  ;;  %v3348_v26 = vsel %vm10869_vm14, %v9473_v4, 0.0  ;;  %v3230_v40 = vmul.f32 1.442695, %v3168_v37  ;;  %vm10876_vm14 = vmmov %vm10859_vm0 }
 0x255   : > { %v7392_v60 = vpop.eup %7391  ;;  %7417 = vrcp.f32 %v3251_v6  ;;  %v3254_v63 = vadd.f32 1.0, %v7388_v29  ;;  %v9490_v51 = vmul.f32 %v7390_v17, %v9336_v43  ;;  %v3350_v8 = vsel %vm10870_vm12, %v9479_v44, 0.0  ;;  %vm10877_vm12 = vmmov %vm10859_vm0 }
 0x256   : > { %v7394_v34 = vpop.eup %7393  ;;  %7419 = vpow2.f32 %v3226_v11  ;;  %v3347_v12 = vadd.f32 %v3346_v52, %v3345_v30  ;;  %v3232_v55 = vmul.f32 1.442695, %v3169_v0  ;;  %v3255_v23 = vadd.f32 1.0, %v7392_v60 }
 0x257   : > { %v7396_v46 = vpop.eup %7395  ;;  %7421 = vrcp.f32 %v3252_v9  ;;  %v9495_v6 = vmul.f32 %v7394_v34, %v9351_v2  ;;  %v3352_v1 = vsel %vm10871_vm15, %v9485_v27, 0.0  ;;  %v3354_v29 = vsel %vm10872_vm1, %v9490_v51, 0.0  ;;  %vm10878_vm15 = vmmov %vm10859_vm0 }
 0x258   : > { %v7398_v59 = vpop.eup %7397  ;;  %7423 = vpow2.f32 %v3228_v13  ;;  %v3349_v21 = vadd.f32 %v3348_v26, %v3347_v12  ;;  %v3256_v11 = vadd.f32 1.0, %v7396_v46  ;;  %vm10879_vm1 = vmmov %vm10859_vm0 }
 0x259   : > { %v7400_v16 = vpop.eup %7399  ;;  %7425 = vrcp.f32 %v3253_v61  ;;  %v9500_v39 = vmul.f32 %v7398_v59, %v9357_v45  ;;  %v3356_v13 = vsel %vm10873_vm6, %v9495_v6, 0.0  ;;  %vm10880_vm6 = vmmov %vm10859_vm0 }
 0x25a   : > { %v7402_v14 = vpop.eup %7401  ;;  %7427 = vpow2.f32 %v3230_v40  ;;  %v3351_v43 = vadd.f32 %v3350_v8, %v3349_v21  ;;  %v3257_v17 = vadd.f32 1.0, %v7400_v16 }
 0x25b   : > { %v7404_v37 = vpop.eup %7403  ;;  %7429 = vrcp.f32 %v3254_v63  ;;  %v9505_v0 = vmul.f32 %v7402_v14, %v9363_v20  ;;  %v3358_v34 = vsel %vm10874_vm10, %v9500_v39, 0.0  ;;  %vm10881_vm10 = vmmov %vm10859_vm0 }
 0x25c   : > { %v7406_v9 = vpop.eup %7405  ;;  %7431 = vpow2.f32 %v3232_v55  ;;  %v3353_v52 = vadd.f32 %v3352_v1, %v3351_v43  ;;  %v3258_v45 = vadd.f32 1.0, %v7404_v37 }
 0x25d   : > { %v7408_v2 = vpop.eup %7407  ;;  %7433 = vrcp.f32 %v3255_v23  ;;  %v9510_v26 = vmul.f32 %v7406_v9, %v9367_v42  ;;  %v3360_v8 = vsel %vm10875_vm13, %v9505_v0, 0.0  ;;  %vm10882_vm13 = vmmov %vm10859_vm0 }
 0x25e   : > { %v7410_v30 = vpop.eup %7409  ;;  %v3355_v60 = vadd.f32 %v3354_v29, %v3353_v52  ;;  %7435 = vrcp.f32 %v3256_v11  ;;  %v3259_v63 = vadd.f32 1.0, %v7408_v2 }
 0x25f   : > { %v7412_v61 = vpop.eup %7411  ;;  %7437 = vrcp.f32 %v3257_v17  ;;  %v9515_v20 = vmul.f32 %v7410_v30, %v9372_v57  ;;  %v3362_v23 = vsel %vm10859_vm0, %v9510_v26, 0.0 }
 0x260   : > { %v7414_v40 = vpop.eup %7413  ;;  %v3357_v12 = vadd.f32 %v3356_v13, %v3355_v60  ;;  %v3260_v16 = vadd.f32 1.0, %v7412_v61  ;;  %7439 = vrcp.f32 %v3258_v45 }
 0x261   : > { %v7416_v46 = vpop.eup %7415  ;;  %v9520_v42 = vmul.f32 %v7414_v40, %v9375_v36  ;;  %7441 = vrcp.f32 %v3259_v63  ;;  %v3364_v11 = vsel %vm10876_vm14, %v9515_v20, 0.0  ;;  %vm10883_vm14 = vmmov %vm10859_vm0 }
 0x262   : > { %v7418_v59 = vpop.eup %7417  ;;  %v3359_v55 = vadd.f32 %v3358_v34, %v3357_v12  ;;  %v3261_v37 = vadd.f32 1.0, %v7416_v46  ;;  %7443 = vrcp.f32 %v3260_v16 }
 0x263   : > { %v7420_v21 = vpop.eup %7419  ;;  %v9525_v57 = vmul.f32 %v7418_v59, %v9380_v18  ;;  %v3366_v17 = vsel %vm10877_vm12, %v9520_v42, 0.0  ;;  %vm10884_vm12 = vmmov %vm10859_vm0 }
 0x264   : > { %v7422_v1 = vpop.eup %7421  ;;  %v3361_v14 = vadd.f32 %v3360_v8, %v3359_v55  ;;  %v3262_v2 = vadd.f32 1.0, %v7420_v21  ;;  %7445 = vrcp.f32 %v3261_v37 }
 0x265   : > { %v7424_v43 = vpop.eup %7423  ;;  %v9530_v36 = vmul.f32 %v7422_v1, %v9384_v22  ;;  %v3368_v45 = vsel %vm10878_vm15, %v9525_v57, 0.0  ;;  %vm10885_vm15 = vmmov %vm10859_vm0 }
 0x266   : > { %v7426_v29 = vpop.eup %7425  ;;  %v3363_v9 = vadd.f32 %v3362_v23, %v3361_v14  ;;  %v3263_v61 = vadd.f32 1.0, %v7424_v43  ;;  %7447 = vrcp.f32 %v3262_v2 }
 0x267   : > { %v7428_v52 = vpop.eup %7427  ;;  %v9535_v18 = vmul.f32 %v7426_v29, %v9388_v53  ;;  %v3370_v46 = vsel %vm10879_vm1, %v9530_v36, 0.0  ;;  %vm10886_vm1 = vmmov %vm10859_vm0 }
 0x268   : > { %v7430_v13 = vpop.eup %7429  ;;  %v3365_v30 = vadd.f32 %v3364_v11, %v3363_v9  ;;  %v3264_v12 = vadd.f32 1.0, %v7428_v52  ;;  %7449 = vrcp.f32 %v3263_v61 }
 0x269   : > { %v7432_v60 = vpop.eup %7431  ;;  %v9540_v22 = vmul.f32 %v7430_v13, %v9396_v50  ;;  %v3372_v55 = vsel %vm10880_vm6, %v9535_v18, 0.0  ;;  %vm10887_vm6 = vmmov %vm10859_vm0 }
 0x26a   : > { %v7434_v34 = vpop.eup %7433  ;;  %v3367_v40 = vadd.f32 %v3366_v17, %v3365_v30  ;;  %v3265_v59 = vadd.f32 1.0, %v7432_v60  ;;  %7451 = vrcp.f32 %v3264_v12 }
 0x26b   : > { %v7436_v63 = vpop.eup %7435  ;;  %v9545_v53 = vmul.f32 %v7434_v34, %v9399_v5  ;;  %v3374_v50 = vsel %vm10881_vm10, %v9540_v22, 0.0  ;;  %vm10888_vm10 = vmmov %vm10859_vm0 }
 0x26c   : > { %v3369_v8 = vadd.f32 %v3368_v45, %v3367_v40  ;;  %v7438_v21 = vpop.eup %7437  ;;  %v9550_v23 = vmul.f32 %v7436_v63, %v9402_v33  ;;  %7453 = vrcp.f32 %v3265_v59 }
 0x26d   : > { %v7440_v1 = vpop.eup %7439  ;;  %v9555_v43 = vmul.f32 %v7438_v21, %v9406_v49  ;;  %v3376_v5 = vsel %vm10882_vm13, %v9545_v53, 0.0  ;;  %vm10889_vm13 = vmmov %vm10859_vm0 }
 0x26e   : > { %v3371_v16 = vadd.f32 %v3370_v46, %v3369_v8  ;;  %v7442_v37 = vpop.eup %7441  ;;  %v9560_v29 = vmul.f32 %v7440_v1, %v9409_v3  ;;  %v3378_v33 = vsel %vm10859_vm0, %v9550_v23, 0.0 }
 0x26f   : > { %v7444_v9 = vpop.eup %7443  ;;  %v9565_v2 = vmul.f32 %v7442_v37, %v9417_v15  ;;  %v3380_v49 = vsel %vm10883_vm14, %v9555_v43, 0.0  ;;  %vm10891_vm14 = vmmov %vm10859_vm0 }
 0x270   : > { %v3373_v14 = vadd.f32 %v3372_v55, %v3371_v16  ;;  %v9570_v30 = vmul.f32 %v7444_v9, %v9420_v62  ;;  %v3382_v3 = vsel %vm10884_vm12, %v9560_v29, 0.0  ;;  %vm10892_vm12 = vmmov %vm10859_vm0 }
 0x271   : > { %v7446_v17 = vpop.eup %7445  ;;  %v3384_v15 = vsel %vm10885_vm15, %v9565_v2, 0.0  ;;  %vm10893_vm15 = vmmov 0  }
 0x272   : > { %v3375_v11 = vadd.f32 %v3374_v50, %v3373_v14  ;;  %v9575_v45 = vmul.f32 %v7446_v17, %v9427_v25  ;;  %v3386_v62 = vsel %vm10886_vm1, %v9570_v30, 0.0  ;;  %vm3489_vm1 = vcmask 1043456  }
 0x273   : > { %v7448_v60 = vpop.eup %7447 }
 0x274   : > { %v3377_v52 = vadd.f32 %v3376_v5, %v3375_v11  ;;  %v9580_v12 = vmul.f32 %v7448_v60, %v9440_v35  ;;  %v3388_v25 = vsel %vm10887_vm6, %v9575_v45, 0.0  ;;  %v3332_v60 = vld [vmem:[%s7800_s29] sm:$0x1]  ;;  %vm3485_vm6 = vcmask 31744  }
 0x275   : > { %v7450_v34 = vpop.eup %7449 }
 0x276   : > { %v3379_v13 = vadd.f32 %v3378_v33, %v3377_v52  ;;  %v9585_v8 = vmul.f32 %v7450_v34, %v9444_v38  ;;  %v3390_v35 = vsel %vm10888_vm10, %v9580_v12, 0.0  ;;  %vm10896_vm10 = vmmov %vm10859_vm0 }
 0x277   : > { %v7452_v46 = vpop.eup %7451 }
 0x278   : > { %v3381_v61 = vadd.f32 %v3380_v49, %v3379_v13  ;;  %v9590_v21 = vmul.f32 %v7452_v46, %v9454_v54  ;;  %v3392_v1 = vsel %vm10889_vm13, %v9585_v8, 0.0  ;;  %vm10897_vm13 = vmmov %vm10859_vm0 }
 0x279   : > { %v7454_v59 = vpop.eup %7453 }
 0x27a   : > { %v3383_v40 = vadd.f32 %v3382_v3, %v3381_v61  ;;  %v9595_v50 = vmul.f32 %v7454_v59, %v9457_v24  ;;  %v3394_v14 = vsel %vm10859_vm0, %v9590_v21, 0.0  ;;  %v3333_v3 = vld [vmem:[%s10890_s3] sm:$0xf]  ;;  %s10985_s3 = sld [smem:[#allocation25_spill]] }
 0x27c   : > { %v3385_v63 = vadd.f32 %v3384_v15, %v3383_v40  ;;  %v3396_v54 = vsel %vm10891_vm14, %v9595_v50, 0.0  ;;  %vm10898_vm14 = vmmov %vm10859_vm0 }
 0x27e   : > { %v3387_v55 = vadd.f32 %v3386_v62, %v3385_v63 }
 0x280   : > { %v3389_v16 = vadd.f32 %v3388_v25, %v3387_v55  ;;  %v3605_v55 = vld [vmem:[%s10701_s14 + $0x8] sm:$0xff] }
 0x282   : > { %v3391_v38 = vadd.f32 %v3390_v35, %v3389_v16  ;;  %v3604_v35 = vld [vmem:[%s10701_s14] sm:$0xff]  ;;  %v4006_v16 = vld [vmem:[%s7825_s24 + $0x8] sm:$0xff]  ;;  %s7672_s14 = sshll.u32 %s7761_s13, 4  ;;  %s7673_s14 = int_to_ptr.vmem [resolvable:$false] %s7672_s14 }
 0x283   : > { %6952 = vmatprep.subr.mxu0 %v4006_v16 }
 0x284   : > { %v3393_v5 = vadd.f32 %v3392_v1, %v3391_v38  ;;  %v4005_v1 = vld [vmem:[%s7825_s24] sm:$0xff]  ;;  %6953 = vmatpush3.msra.mxu0 %v4006_v16  ;;  %v3937_v16 = vld [vmem:[#allocation2 + $0x30] sm:$0xff] }
 0x285   : > { %6954 = vmatprep.subr.mxu0 %v4005_v1  ;;  %v3334_v38 = vld [vmem:[%s10894_s8] sm:$0x1] }
 0x286   : > { %v3395_v37 = vadd.f32 %v3394_v14, %v3393_v5  ;;  %6955 = vmatpush3.msra.mxu0 %v4005_v1 }
 0x287   : > { %7092 = vmatprep.subr.mxu0 %v10786_v58 }
 0x288   : > { %v3397_v11 = vadd.f32 %v3396_v54, %v3395_v37 }
 0x28a   : > { %v3398_v33 = vrot.slane %v3397_v11, 4 }
 0x28c   : > { %v3399_v9 = vadd.f32 %v3398_v33, %v3397_v11 }
 0x28e   : > { %v3400_v52 = vrot.slane %v3399_v9, 2 }
 0x290   : > { %v3401_v24 = vadd.f32 %v3400_v52, %v3399_v9 }
 0x292   : > { %v3402_v49 = vrot.slane %v3401_v24, 1 }
 0x294   : > { %v3403_v17 = vadd.f32 %v3402_v49, %v3401_v24  ;;  %v10895_v24 = vld [vmem:[#allocation31_spill] sm:$0xff] }
 0x296   : > { %v3405_v13 = vmul.f32 0.00390625, %v3403_v17 }
 0x298   : > { %6893 = vmatmul.mubr.msk.f32.vlgmr.msra.gmra.mxu1 %vm10892_vm12, %v3405_v13  ;;  %vm10899_vm12 = vmmov %vm10859_vm0 }
 0x299   : > { %6897 = vmatprep.mubr.msk.f32.mxu1 %vm10893_vm15, %v10786_v58  ;;  %6896 = vmatpush3.msk.msra.mxu1 %vm3489_vm1, %v3333_v3 }
 0x29a   : > { %6900 = vmatprep.subr.mxu1 %v3605_v55 }
 0x358   : > { %v3475_v61 = vpop.f32.mrf.mxu1 }
 0x359   : > { %v3476_v15 = vadd.f32 %v3475_v61, %v3332_v60 }
 0x35a   : > { %v6894_v34 = vpop.f32.mrf.mxu1 }
 0x35b   : > { %v3479_v40 = vsub.f32 0.0, %v3476_v15 }
 0x35d   : > { %v3480_v62 = vmul.f32 1.442695, %v3479_v40  ;;  %v3935_v40 = vld [vmem:[#allocation2 + $0x20] sm:$0xff] }
 0x35f   : > { %7455 = vpow2.f32 %v3480_v62 }
 0x36c   : > { %v7456_v46 = vpop.eup %7455 }
 0x36d   : > { %v3482_v63 = vadd.f32 1.0, %v7456_v46 }
 0x36f   : > { %7457 = vrcp.f32 %v3482_v63 }
 0x37c   : > { %v7458_v25 = vpop.eup %7457 }
 0x37d   : > { %v3484_v59 = vmul.f32 %v7458_v25, %v3476_v15  ;;  %v3934_v15 = vld [vmem:[#allocation2 + $0x18] sm:$0xff] }
 0x37f   : > { %6898 = vmatmul.mubr.msk.f32.vlgmr.msra.gmra.mxu1 %vm3485_vm6, %v3484_v59 }
 0x380   : > { %6901 = vmatpush3.msra.mxu1 %v3605_v55  ;;  %v3936_v55 = vld [vmem:[#allocation2 + $0x28] sm:$0xff] }
 0x381   : > { %6902 = vmatprep.subr.mxu1 %v3604_v35 }
 0x382   : > { %6903 = vmatpush3.msra.mxu1 %v3604_v35 }
 0x383   : > { %7004 = vmatprep.subr.mxu1 %v10786_v58 }
 0x43f   : > { %v3559_v14 = vpop.f32.mrf.mxu1 }
 0x440   : > { %v3560_v5 = vadd.f32 %v3559_v14, %v3334_v38 }
 0x441   : > { %v6899_v54 = vpop.f32.mrf.mxu1 }
 0x442   : > { %v3563_v37 = vsub.f32 0.0, %v3560_v5 }
 0x444   : > { %v3564_v11 = vmul.f32 1.442695, %v3563_v37  ;;  %v3938_v37 = vld [vmem:[#allocation2 + $0x38] sm:$0xff] }
 0x446   : > { %7459 = vpow2.f32 %v3564_v11 }
 0x453   : > { %v7460_v33 = vpop.eup %7459 }
 0x454   : > { %v3566_v9 = vadd.f32 1.0, %v7460_v33  ;;  %v3939_v33 = vld [vmem:[#allocation2 + $0x40] sm:$0xff] }
 0x456   : > { %7461 = vrcp.f32 %v3566_v9 }
 0x463   : > { %v7462_v52 = vpop.eup %7461 }
 0x464   : > { %v9618_v49 = vrot.slane %v7462_v52, %v10895_v24 }
 0x466   : > { %v3572_v17 = vmul.f32 %v9618_v49, %v9424_v47  ;;  %v3573_v13 = vmul.f32 %v9618_v49, %v9414_v31  ;;  %v3574_v3 = vmul.f32 %v9618_v49, %v9431_v48  ;;  %v3575_v60 = vmul.f32 %v9618_v49, %v9451_v41 }
 0x467   : > { %v3576_v61 = vmul.f32 %v9618_v49, %v9460_v10  ;;  %v3577_v31 = vmul.f32 %v9618_v49, %v9463_v19  ;;  %v3578_v47 = vmul.f32 %v9618_v49, %v9468_v32  ;;  %v3579_v48 = vmul.f32 %v9618_v49, %v9473_v4 }
 0x468   : > { %6904 = vmatprep.mubr.msk.f32.mxu1 %vm10896_vm10, %v3572_v17  ;;  %vm10900_vm10 = vmmov %vm10859_vm0  ;;  %v3580_v41 = vmul.f32 %v9618_v49, %v9479_v44  ;;  %v3581_v10 = vmul.f32 %v9618_v49, %v9485_v27  ;;  %v3582_v19 = vmul.f32 %v9618_v49, %v9490_v51  ;;  %v3583_v32 = vmul.f32 %v9618_v49, %v9495_v6 }
 0x469   : > { %6905 = vmatmul.mubr.msk.f32.vlgmr.msra.gmra.mxu1 %vm10897_vm13, %v3573_v13  ;;  %vm10901_vm13 = vmmov %vm10859_vm0  ;;  %v3584_v4 = vmul.f32 %v9618_v49, %v9500_v39  ;;  %v3585_v44 = vmul.f32 %v9618_v49, %v9505_v0  ;;  %v3586_v27 = vmul.f32 %v9618_v49, %v9510_v26  ;;  %v3587_v51 = vmul.f32 %v9618_v49, %v9515_v20 }
 0x46a   : > { %6907 = vmatprep.mubr.msk.f32.mxu1 %vm10859_vm0, %v3574_v3  ;;  %v3588_v6 = vmul.f32 %v9618_v49, %v9520_v42  ;;  %v3589_v39 = vmul.f32 %v9618_v49, %v9525_v57  ;;  %v3590_v0 = vmul.f32 %v9618_v49, %v9530_v36  ;;  %v3591_v26 = vmul.f32 %v9618_v49, %v9535_v18  ;;  %v3940_v3 = vld [vmem:[#allocation2 + $0x48] sm:$0xff] }
 0x46b   : > { %v3592_v20 = vmul.f32 %v9618_v49, %v9540_v22  ;;  %v3593_v42 = vmul.f32 %v9618_v49, %v9545_v53  ;;  %v3594_v57 = vmul.f32 %v9618_v49, %v9550_v23  ;;  %v3595_v36 = vmul.f32 %v9618_v49, %v9555_v43 }
 0x46c   : > { %v3596_v18 = vmul.f32 %v9618_v49, %v9560_v29  ;;  %v3597_v22 = vmul.f32 %v9618_v49, %v9565_v2  ;;  %v3598_v53 = vmul.f32 %v9618_v49, %v9570_v30  ;;  %v3599_v23 = vmul.f32 %v9618_v49, %v9575_v45  ;;  %v9731_v45 = vld [vmem:[%s7820_s19] ss:$0 sm:$0xff] }
 0x46d   : > { %6908 = vmatmul.mubr.msk.f32.gmra.mxu1 %vm10898_vm14, %v3575_v60  ;;  %vm10902_vm14 = vmmov %vm10859_vm0  ;;  %v3600_v43 = vmul.f32 %v9618_v49, %v9580_v12  ;;  %v3601_v29 = vmul.f32 %v9618_v49, %v9585_v8  ;;  %v3602_v2 = vmul.f32 %v9618_v49, %v9590_v21  ;;  %v3603_v30 = vmul.f32 %v9618_v49, %v9595_v50 }
 0x46e   : > { %6910 = vmatprep.mubr.msk.f32.mxu1 %vm10899_vm12, %v3576_v61  ;;  %vm10903_vm12 = vmmov %vm10859_vm0  ;;  %v3941_v61 = vld [vmem:[#allocation2 + $0x50] sm:$0xff] }
 0x471   : > { %6911 = vmatmul.mubr.msk.f32.gmra.mxu1 %vm10900_vm10, %v3577_v31  ;;  %vm10904_vm10 = vmmov %vm10859_vm0 }
 0x472   : > { %6913 = vmatprep.mubr.msk.f32.mxu1 %vm10901_vm13, %v3578_v47  ;;  %vm10905_vm13 = vmmov %vm10859_vm0 }
 0x475   : > { %6914 = vmatmul.mubr.msk.f32.gmra.mxu1 %vm10859_vm0, %v3579_v48 }
 0x476   : > { %6916 = vmatprep.mubr.msk.f32.mxu1 %vm10902_vm14, %v3580_v41  ;;  %vm10906_vm14 = vmmov %vm10859_vm0 }
 0x479   : > { %6917 = vmatmul.mubr.msk.f32.gmra.mxu1 %vm10903_vm12, %v3581_v10  ;;  %vm10907_vm12 = vmmov %vm10859_vm0 }
 0x47a   : > { %6919 = vmatprep.mubr.msk.f32.mxu1 %vm10904_vm10, %v3582_v19  ;;  %vm10908_vm10 = vmmov %vm10859_vm0  ;;  %v3942_v19 = vld [vmem:[#allocation2 + $0x58] sm:$0xff] }
 0x47d   : > { %6920 = vmatmul.mubr.msk.f32.gmra.mxu1 %vm10905_vm13, %v3583_v32  ;;  %vm10909_vm13 = vmmov %vm10859_vm0 }
 0x47e   : > { %6922 = vmatprep.mubr.msk.f32.mxu1 %vm10859_vm0, %v3584_v4  ;;  %v3943_v4 = vld [vmem:[#allocation2 + $0x60] sm:$0xff] }
 0x481   : > { %6923 = vmatmul.mubr.msk.f32.gmra.mxu1 %vm10906_vm14, %v3585_v44  ;;  %vm10910_vm14 = vmmov %vm10859_vm0 }
 0x482   : > { %6925 = vmatprep.mubr.msk.f32.mxu1 %vm10907_vm12, %v3586_v27  ;;  %vm10911_vm12 = vmmov %vm10859_vm0 }
 0x485   : > { %6926 = vmatmul.mubr.msk.f32.gmra.mxu1 %vm10908_vm10, %v3587_v51  ;;  %vm10912_vm10 = vmmov %vm10859_vm0 }
 0x486   : > { %6928 = vmatprep.mubr.msk.f32.mxu1 %vm10909_vm13, %v3588_v6  ;;  %vm10913_vm13 = vmmov %vm10859_vm0 }
 0x489   : > { %6929 = vmatmul.mubr.msk.f32.gmra.mxu1 %vm10859_vm0, %v3589_v39 }
 0x48a   : > { %6931 = vmatprep.mubr.msk.f32.mxu1 %vm10910_vm14, %v3590_v0  ;;  %vm10914_vm14 = vmmov %vm10859_vm0  ;;  %v3944_v0 = vld [vmem:[#allocation2 + $0x68] sm:$0xff] }
 0x48d   : > { %6932 = vmatmul.mubr.msk.f32.gmra.mxu1 %vm10911_vm12, %v3591_v26  ;;  %vm10915_vm12 = vmmov %vm10859_vm0 }
 0x48e   : > { %6934 = vmatprep.mubr.msk.f32.mxu1 %vm10912_vm10, %v3592_v20  ;;  %vm10916_vm10 = vmmov %vm10859_vm0  ;;  %v3945_v20 = vld [vmem:[#allocation2 + $0x70] sm:$0xff] }
 0x491   : > { %6935 = vmatmul.mubr.msk.f32.gmra.mxu1 %vm10913_vm13, %v3593_v42  ;;  %vm10917_vm13 = vmmov %vm10859_vm0 }
 0x492   : > { %6937 = vmatprep.mubr.msk.f32.mxu1 %vm10859_vm0, %v3594_v57 }
 0x495   : > { %6938 = vmatmul.mubr.msk.f32.gmra.mxu1 %vm10914_vm14, %v3595_v36  ;;  %vm10918_vm14 = vmmov %vm10859_vm0 }
 0x496   : > { %6940 = vmatprep.mubr.msk.f32.mxu1 %vm10915_vm12, %v3596_v18  ;;  %vm10919_vm12 = vmmov %vm10859_vm0 }
 0x499   : > { %6941 = vmatmul.mubr.msk.f32.gmra.mxu1 %vm10916_vm10, %v3597_v22  ;;  %vm10920_vm10 = vmmov %vm10859_vm0 }
 0x49a   : > { %6943 = vmatprep.mubr.msk.f32.mxu1 %vm10917_vm13, %v3598_v53  ;;  %vm10921_vm13 = vmmov %vm10859_vm0  ;;  %v3946_v53 = vld [vmem:[#allocation2 + $0x78] sm:$0xff] }
 0x49d   : > { %6944 = vmatmul.mubr.msk.f32.gmra.mxu1 %vm10859_vm0, %v3599_v23  ;;  %vm3998_vm0 = vcmask 785408  }
 0x49e   : > { %6946 = vmatprep.mubr.msk.f32.mxu1 %vm10918_vm14, %v3600_v43  ;;  %3999 = vst.msk [vmem:[#allocation4] sm:$0xff] %vm3998_vm0, %v10786_v58  ;;  %4000 = vst.msk [vmem:[#allocation4 + $0x8] sm:$0xff] %vm3998_vm0, %v10786_v58  ;;  %v3947_v43 = vld [vmem:[#allocation2 + $0x80] sm:$0xff] }
 0x49f   : > { %4001 = vst.msk [vmem:[#allocation4 + $0x10] sm:$0xff] %vm3998_vm0, %v10786_v58  ;;  %4002 = vst.msk [vmem:[#allocation4 + $0x118] sm:$0xff] %vm3998_vm0, %v10786_v58 }
 0x4a0   : > { %4003 = vst.msk [vmem:[#allocation4 + $0x120] sm:$0xff] %vm3998_vm0, %v10786_v58  ;;  %4004 = vst.msk [vmem:[#allocation4 + $0x128] sm:$0xff] %vm3998_vm0, %v10786_v58 }
 0x4a1   : > { %6947 = vmatmul.mubr.msk.f32.gmra.mxu1 %vm10919_vm12, %v3601_v29  ;;  %vm10922_vm14 = vmmov %vm10920_vm10 }
 0x4a2   : > { %6949 = vmatprep.mubr.msk.f32.mxu1 %vm10920_vm10, %v3602_v2  ;;  %vm10923_vm12 = vmmov %vm10920_vm10 }
 0x4a5   : > { %6950 = vmatmul.mubr.msk.f32.gmra.mxu1 %vm10921_vm13, %v3603_v30  ;;  %vm10924_vm13 = vmmov %vm10920_vm10 }
 0x4a6   : > { %7028 = vmatprep.mubr.msk.f32.mxu1 %vm10893_vm15, %v10786_v58 }
 0x529   : > { %v6906_v12 = vpop.f32.mrf.mxu1 }
 0x52a   : > { %v3781_v8 = vadd.f32 %v6906_v12, %v9731_v45 }
 0x52b   : > { %v3775_v21 = vpop.f32.mrf.mxu1 }
 0x52c   : > { %v3776_v50 = vadd.f32 %v9731_v45, %v3775_v21  ;;  %v3967_v46 = vadd.f32 %v3935_v40, %v3781_v8  ;;  %v3948_v21 = vld [vmem:[#allocation2 + $0x88] sm:$0xff] }
 0x52d   : > { %v6909_v34 = vpop.f32.mrf.mxu1 }
 0x52e   : > { %v3966_v62 = vadd.f32 %v3934_v15, %v3776_v50  ;;  %v3791_v63 = vadd.f32 %v6909_v34, %v9731_v45  ;;  %v3949_v15 = vld [vmem:[#allocation2 + $0x90] sm:$0xff] }
 0x52f   : > { %v3785_v25 = vpop.f32.mrf.mxu1 }
 0x530   : > { %v3786_v59 = vadd.f32 %v9731_v45, %v3785_v25  ;;  %6956 = vmatprep.mubr.msk.f32.mxu0 %vm10922_vm14, %v3966_v62  ;;  %v3969_v38 = vadd.f32 %v3937_v16, %v3791_v63  ;;  %vm10925_vm14 = vmmov %vm10920_vm10  ;;  %v3950_v25 = vld [vmem:[#allocation2 + $0x98] sm:$0xff] }
 0x531   : > { %v6912_v35 = vpop.f32.mrf.mxu1  ;;  %6957 = vmatmul.mubr.msk.f32.vlgmr.msra.gmra.mxu0 %vm10923_vm12, %v3967_v46  ;;  %vm10926_vm12 = vmmov %vm10920_vm10 }
 0x532   : > { %v3968_v1 = vadd.f32 %v3936_v55, %v3786_v59  ;;  %v3801_v14 = vadd.f32 %v6912_v35, %v9731_v45  ;;  %v3951_v55 = vld [vmem:[#allocation2 + $0xa0] sm:$0xff] }
 0x533   : > { %v3795_v5 = vpop.f32.mrf.mxu1 }
 0x534   : > { %v3796_v54 = vadd.f32 %v9731_v45, %v3795_v5  ;;  %6959 = vmatprep.mubr.msk.f32.mxu0 %vm10920_vm10, %v3968_v1  ;;  %v3971_v52 = vadd.f32 %v3939_v33, %v3801_v14  ;;  %v3952_v5 = vld [vmem:[#allocation2 + $0xa8] sm:$0xff] }
 0x535   : > { %v6915_v11 = vpop.f32.mrf.mxu1  ;;  %6960 = vmatmul.mubr.msk.f32.gmra.mxu0 %vm10924_vm13, %v3969_v38  ;;  %vm10927_vm13 = vmmov %vm10920_vm10 }
 0x536   : > { %v3970_v9 = vadd.f32 %v3938_v37, %v3796_v54  ;;  %v3811_v49 = vadd.f32 %v6915_v11, %v9731_v45  ;;  %v3953_v37 = vld [vmem:[#allocation2 + $0xb0] sm:$0xff] }
 0x537   : > { %v3805_v17 = vpop.f32.mrf.mxu1 }
 0x538   : > { %v3806_v13 = vadd.f32 %v9731_v45, %v3805_v17  ;;  %6962 = vmatprep.mubr.msk.f32.mxu0 %vm10925_vm14, %v3970_v9  ;;  %v3973_v47 = vadd.f32 %v3941_v61, %v3811_v49  ;;  %vm10928_vm14 = vmmov %vm10920_vm10  ;;  %v3954_v17 = vld [vmem:[#allocation2 + $0xb8] sm:$0xff] }
 0x539   : > { %v6918_v60 = vpop.f32.mrf.mxu1  ;;  %6963 = vmatmul.mubr.msk.f32.gmra.mxu0 %vm10926_vm12, %v3971_v52  ;;  %vm10929_vm12 = vmmov %vm10920_vm10 }
 0x53a   : > { %v3972_v31 = vadd.f32 %v3940_v3, %v3806_v13  ;;  %v3821_v48 = vadd.f32 %v6918_v60, %v9731_v45  ;;  %v3955_v3 = vld [vmem:[#allocation2 + $0xc0] sm:$0xff] }
 0x53b   : > { %v3815_v41 = vpop.f32.mrf.mxu1 }
 0x53c   : > { %v3816_v10 = vadd.f32 %v9731_v45, %v3815_v41  ;;  %6965 = vmatprep.mubr.msk.f32.mxu0 %vm10920_vm10, %v3972_v31  ;;  %v3975_v27 = vadd.f32 %v3943_v4, %v3821_v48  ;;  %v3956_v41 = vld [vmem:[#allocation2 + $0xc8] sm:$0xff] }
 0x53d   : > { %v6921_v32 = vpop.f32.mrf.mxu1  ;;  %6966 = vmatmul.mubr.msk.f32.gmra.mxu0 %vm10927_vm13, %v3973_v47  ;;  %vm10930_vm13 = vmmov %vm10920_vm10 }
 0x53e   : > { %v3974_v44 = vadd.f32 %v3942_v19, %v3816_v10  ;;  %v3831_v51 = vadd.f32 %v6921_v32, %v9731_v45  ;;  %v3957_v19 = vld [vmem:[#allocation2 + $0xd0] sm:$0xff] }
 0x53f   : > { %v3825_v6 = vpop.f32.mrf.mxu1 }
 0x540   : > { %v3826_v39 = vadd.f32 %v9731_v45, %v3825_v6  ;;  %6968 = vmatprep.mubr.msk.f32.mxu0 %vm10928_vm14, %v3974_v44  ;;  %v3977_v57 = vadd.f32 %v3945_v20, %v3831_v51  ;;  %vm10931_vm14 = vmmov %vm10920_vm10  ;;  %v3958_v6 = vld [vmem:[#allocation2 + $0xd8] sm:$0xff] }
 0x541   : > { %v6924_v26 = vpop.f32.mrf.mxu1  ;;  %6969 = vmatmul.mubr.msk.f32.gmra.mxu0 %vm10929_vm12, %v3975_v27  ;;  %vm10932_vm12 = vmmov %vm10920_vm10 }
 0x542   : > { %v3976_v42 = vadd.f32 %v3944_v0, %v3826_v39  ;;  %v3841_v36 = vadd.f32 %v6924_v26, %v9731_v45  ;;  %v3959_v0 = vld [vmem:[#allocation2 + $0xe0] sm:$0xff] }
 0x543   : > { %v3835_v18 = vpop.f32.mrf.mxu1 }
 0x544   : > { %v3836_v22 = vadd.f32 %v9731_v45, %v3835_v18  ;;  %6971 = vmatprep.mubr.msk.f32.mxu0 %vm10920_vm10, %v3976_v42  ;;  %v3979_v2 = vadd.f32 %v3947_v43, %v3841_v36  ;;  %v3960_v18 = vld [vmem:[#allocation2 + $0xe8] sm:$0xff] }
 0x545   : > { %v6927_v23 = vpop.f32.mrf.mxu1  ;;  %6972 = vmatmul.mubr.msk.f32.gmra.mxu0 %vm10930_vm13, %v3977_v57  ;;  %vm10933_vm13 = vmmov %vm10920_vm10 }
 0x546   : > { %v3978_v29 = vadd.f32 %v3946_v53, %v3836_v22  ;;  %v3851_v30 = vadd.f32 %v6927_v23, %v9731_v45  ;;  %v3961_v53 = vld [vmem:[#allocation2 + $0xf0] sm:$0xff] }
 0x547   : > { %v3845_v12 = vpop.f32.mrf.mxu1 }
 0x548   : > { %v3846_v8 = vadd.f32 %v9731_v45, %v3845_v12  ;;  %6974 = vmatprep.mubr.msk.f32.mxu0 %vm10931_vm14, %v3978_v29  ;;  %v3981_v40 = vadd.f32 %v3949_v15, %v3851_v30  ;;  %vm10934_vm14 = vmmov %vm10920_vm10  ;;  %v3962_v12 = vld [vmem:[#allocation2 + $0xf8] sm:$0xff] }
 0x549   : > { %v6930_v50 = vpop.f32.mrf.mxu1  ;;  %6975 = vmatmul.mubr.msk.f32.gmra.mxu0 %vm10932_vm12, %v3979_v2  ;;  %vm10935_vm12 = vmmov %vm10920_vm10 }
 0x54a   : > { %v3980_v34 = vadd.f32 %v3948_v21, %v3846_v8  ;;  %v3861_v62 = vadd.f32 %v6930_v50, %v9731_v45  ;;  %v3963_v21 = vld [vmem:[#allocation2 + $0x100] sm:$0xff] }
 0x54b   : > { %v3855_v46 = vpop.f32.mrf.mxu1 }
 0x54c   : > { %v3856_v63 = vadd.f32 %v9731_v45, %v3855_v46  ;;  %6977 = vmatprep.mubr.msk.f32.mxu0 %vm10920_vm10, %v3980_v34  ;;  %v3983_v16 = vadd.f32 %v3951_v55, %v3861_v62  ;;  %v3964_v46 = vld [vmem:[#allocation2 + $0x108] sm:$0xff]  ;;  %v9800_v55 = vld [vmem:[%s7830_s30] ss:$0 sm:$0xff] }
 0x54d   : > { %v6933_v59 = vpop.f32.mrf.mxu1  ;;  %6978 = vmatmul.mubr.msk.f32.gmra.mxu0 %vm10933_vm13, %v3981_v40  ;;  %vm10936_vm13 = vmmov %vm10920_vm10 }
 0x54e   : > { %v3982_v35 = vadd.f32 %v3950_v25, %v3856_v63  ;;  %v3871_v1 = vadd.f32 %v6933_v59, %v9731_v45  ;;  %v3965_v63 = vld [vmem:[#allocation2 + $0x110] sm:$0xff] }
 0x54f   : > { %v3865_v38 = vpop.f32.mrf.mxu1 }
 0x550   : > { %v3866_v14 = vadd.f32 %v9731_v45, %v3865_v38  ;;  %6980 = vmatprep.mubr.msk.f32.mxu0 %vm10934_vm14, %v3982_v35  ;;  %v3985_v33 = vadd.f32 %v3953_v37, %v3871_v1  ;;  %vm10937_vm14 = vmmov %vm10920_vm10 }
 0x551   : > { %v6936_v54 = vpop.f32.mrf.mxu1  ;;  %6981 = vmatmul.mubr.msk.f32.gmra.mxu0 %vm10935_vm12, %v3983_v16  ;;  %vm10938_vm12 = vmmov %vm10920_vm10 }
 0x552   : > { %v3984_v11 = vadd.f32 %v3952_v5, %v3866_v14  ;;  %v3881_v9 = vadd.f32 %v6936_v54, %v9731_v45 }
 0x553   : > { %v3875_v52 = vpop.f32.mrf.mxu1 }
 0x554   : > { %v3876_v49 = vadd.f32 %v9731_v45, %v3875_v52  ;;  %6983 = vmatprep.mubr.msk.f32.mxu0 %vm10920_vm10, %v3984_v11  ;;  %v3987_v61 = vadd.f32 %v3955_v3, %v3881_v9 }
 0x555   : > { %v6939_v13 = vpop.f32.mrf.mxu1  ;;  %6984 = vmatmul.mubr.msk.f32.gmra.mxu0 %vm10936_vm13, %v3985_v33  ;;  %vm10939_vm13 = vmmov %vm10920_vm10 }
 0x556   : > { %v3986_v60 = vadd.f32 %v3954_v17, %v3876_v49  ;;  %v3891_v31 = vadd.f32 %v6939_v13, %v9731_v45 }
 0x557   : > { %v3885_v47 = vpop.f32.mrf.mxu1 }
 0x558   : > { %v3886_v48 = vadd.f32 %v9731_v45, %v3885_v47  ;;  %6986 = vmatprep.mubr.msk.f32.mxu0 %vm10937_vm14, %v3986_v60  ;;  %v3989_v4 = vadd.f32 %v3957_v19, %v3891_v31  ;;  %vm10940_vm14 = vmmov %vm10920_vm10 }
 0x559   : > { %v6942_v10 = vpop.f32.mrf.mxu1  ;;  %6987 = vmatmul.mubr.msk.f32.gmra.mxu0 %vm10938_vm12, %v3987_v61  ;;  %vm10941_vm12 = vmmov %vm10920_vm10 }
 0x55a   : > { %v3988_v32 = vadd.f32 %v3956_v41, %v3886_v48  ;;  %v3901_v44 = vadd.f32 %v6942_v10, %v9731_v45 }
 0x55b   : > { %v3895_v27 = vpop.f32.mrf.mxu1 }
 0x55c   : > { %v3896_v51 = vadd.f32 %v9731_v45, %v3895_v27  ;;  %6989 = vmatprep.mubr.msk.f32.mxu0 %vm10920_vm10, %v3988_v32  ;;  %v3991_v20 = vadd.f32 %v3959_v0, %v3901_v44 }
 0x55d   : > { %v6945_v39 = vpop.f32.mrf.mxu1  ;;  %6990 = vmatmul.mubr.msk.f32.gmra.mxu0 %vm10939_vm13, %v3989_v4  ;;  %vm10942_vm13 = vmmov %vm10920_vm10 }
 0x55e   : > { %v3990_v26 = vadd.f32 %v3958_v6, %v3896_v51  ;;  %v3911_v42 = vadd.f32 %v6945_v39, %v9731_v45 }
 0x55f   : > { %v3905_v57 = vpop.f32.mrf.mxu1 }
 0x560   : > { %v3906_v36 = vadd.f32 %v9731_v45, %v3905_v57  ;;  %6992 = vmatprep.mubr.msk.f32.mxu0 %vm10940_vm14, %v3990_v26  ;;  %v3993_v43 = vadd.f32 %v3961_v53, %v3911_v42  ;;  %vm10943_vm14 = vmmov %vm10920_vm10 }
 0x561   : > { %v6948_v22 = vpop.f32.mrf.mxu1  ;;  %6993 = vmatmul.mubr.msk.f32.gmra.mxu0 %vm10941_vm12, %v3991_v20  ;;  %vm10944_vm12 = vmmov %vm10920_vm10 }
 0x562   : > { %v3992_v23 = vadd.f32 %v3960_v18, %v3906_v36  ;;  %v3921_v29 = vadd.f32 %v6948_v22, %v9731_v45 }
 0x563   : > { %v3915_v2 = vpop.f32.mrf.mxu1 }
 0x564   : > { %v3916_v30 = vadd.f32 %v9731_v45, %v3915_v2  ;;  %6995 = vmatprep.mubr.msk.f32.mxu0 %vm10920_vm10, %v3992_v23  ;;  %v3995_v15 = vadd.f32 %v3963_v21, %v3921_v29 }
 0x565   : > { %v6951_v8 = vpop.f32.mrf.mxu1  ;;  %6996 = vmatmul.mubr.msk.f32.gmra.mxu0 %vm10942_vm13, %v3993_v43  ;;  %vm10945_vm13 = vmmov %vm10920_vm10 }
 0x566   : > { %v3994_v50 = vadd.f32 %v3962_v12, %v3916_v30  ;;  %v3931_v34 = vadd.f32 %v6951_v8, %v9731_v45 }
 0x567   : > { %v3925_v40 = vpop.f32.mrf.mxu1 }
 0x568   : > { %v3926_v62 = vadd.f32 %v9731_v45, %v3925_v40  ;;  %6998 = vmatprep.mubr.msk.f32.mxu0 %vm10943_vm14, %v3994_v50  ;;  %v3997_v59 = vadd.f32 %v3965_v63, %v3931_v34 }
 0x569   : > { %6999 = vmatmul.mubr.msk.f32.gmra.mxu0 %vm10944_vm12, %v3995_v15 }
 0x56a   : > { %v3996_v25 = vadd.f32 %v3964_v46, %v3926_v62 }
 0x56c   : > { %7001 = vmatprep.mubr.msk.f32.mxu0 %vm10920_vm10, %v3996_v25 }
 0x56d   : > { %7002 = vmatmul.mubr.msk.f32.gmra.mxu0 %vm10945_vm13, %v3997_v59 }
 0x56e   : > { %7108 = vmatprep.mubr.msk.f32.mxu0 %vm10893_vm15, %v10786_v58 }
 0x5f1   : > { %v6958_v35 = vpop.f32.mrf.mxu0 }
 0x5f2   : > { %v9803_v45 = vadd.f32 %v6958_v35, %v9800_v55 }
 0x5f3   : > { %v4176_v16 = vpop.f32.mrf.mxu0 }
 0x5f4   : > { %v4336_v1 = vsub.f32 0.0, %v9803_v45  ;;  %v9807_v38 = vadd.f32 %v9800_v55, %v4176_v16 }
 0x5f5   : > { %v6961_v14 = vpop.f32.mrf.mxu0 }
 0x5f6   : > { %v4369_v5 = vmul.f32 1.442695, %v4336_v1  ;;  %v4335_v54 = vsub.f32 0.0, %v9807_v38  ;;  %v9811_v37 = vadd.f32 %v6961_v14, %v9800_v55  ;;  %v9854_v14 = vld [vmem:[%s10704_s6] sm:$0xff] }
 0x5f7   : > { %v4186_v11 = vpop.f32.mrf.mxu0 }
 0x5f8   : > { %7463 = vpow2.f32 %v4369_v5  ;;  %v4367_v33 = vmul.f32 1.442695, %v4335_v54  ;;  %v4338_v9 = vsub.f32 0.0, %v9811_v37  ;;  %v9815_v52 = vadd.f32 %v9800_v55, %v4186_v11  ;;  %v4561_v11 = vld [vmem:[#allocation4 + $0x7] sm:$0xff] }
 0x5f9   : > { %v6964_v49 = vpop.f32.mrf.mxu0 }
 0x5fa   : > { %7465 = vpow2.f32 %v4367_v33  ;;  %v4373_v17 = vmul.f32 1.442695, %v4338_v9  ;;  %v4337_v13 = vsub.f32 0.0, %v9815_v52  ;;  %v9819_v3 = vadd.f32 %v6964_v49, %v9800_v55 }
 0x5fb   : > { %v4196_v60 = vpop.f32.mrf.mxu0 }
 0x5fc   : > { %7467 = vpow2.f32 %v4373_v17  ;;  %v4371_v61 = vmul.f32 1.442695, %v4337_v13  ;;  %v4340_v31 = vsub.f32 0.0, %v9819_v3  ;;  %v9823_v47 = vadd.f32 %v9800_v55, %v4196_v60  ;;  %v10946_v13 = vld [vmem:[#allocation30_spill] sm:$0xff] }
 0x5fd   : > { %v6967_v48 = vpop.f32.mrf.mxu0  ;;  %v10947_v60 = vsub.s32 1, %v10946_v13 }
 0x5fe   : > { %7469 = vpow2.f32 %v4371_v61  ;;  %v4377_v41 = vmul.f32 1.442695, %v4340_v31  ;;  %v4339_v10 = vsub.f32 0.0, %v9823_v47  ;;  %v9827_v19 = vadd.f32 %v6967_v48, %v9800_v55 }
 0x5ff   : > { %v4206_v32 = vpop.f32.mrf.mxu0  ;;  %v9863_v61 = vrot.slane %v9854_v14, %v10947_v60  ;;  %v9867_v31 = vrot.slane %v9854_v14, %v10895_v24 }
 0x600   : > { %7471 = vpow2.f32 %v4377_v41  ;;  %v4375_v4 = vmul.f32 1.442695, %v4339_v10  ;;  %v9830_v44 = vadd.f32 %v9800_v55, %v4206_v32  ;;  %v4342_v27 = vsub.f32 0.0, %v9827_v19 }
 0x601   : > { %v6970_v51 = vpop.f32.mrf.mxu0  ;;  %v4577_v41 = vsel %vm8125_vm3, %v4561_v11, 0.0 }
 0x602   : > { %7473 = vpow2.f32 %v4375_v4  ;;  %v4341_v6 = vsub.f32 0.0, %v9830_v44  ;;  %v9835_v39 = vadd.f32 %v6970_v51, %v9800_v55  ;;  %v4381_v20 = vmul.f32 1.442695, %v4342_v27  ;;  %v4629_v4 = vld [vmem:[#allocation4 + $0x8] sm:$0xff] }
 0x603   : > { %v4216_v0 = vpop.f32.mrf.mxu0 }
 0x604   : > { %v9838_v42 = vadd.f32 %v9800_v55, %v4216_v0  ;;  %v4379_v22 = vmul.f32 1.442695, %v4341_v6  ;;  %v4344_v53 = vsub.f32 0.0, %v9835_v39 }
 0x605   : > { %v7464_v26 = vpop.eup %7463  ;;  %v6973_v57 = vpop.f32.mrf.mxu0 }
 0x606   : > { %v4432_v36 = vadd.f32 1.0, %v7464_v26  ;;  %v9842_v23 = vadd.f32 %v6973_v57, %v9800_v55  ;;  %v4343_v30 = vsub.f32 0.0, %v9838_v42  ;;  %v4385_v15 = vmul.f32 1.442695, %v4344_v53 }
 0x607   : > { %v7466_v18 = vpop.eup %7465  ;;  %v4226_v43 = vpop.f32.mrf.mxu0  ;;  %v4597_v57 = vmul.f32 %v9867_v31, %v4577_v41  ;;  %v4649_v53 = vmul.f32 %v9863_v61, %v4629_v4  ;;  %v10951_v4 = vsub.s32 3, %v10946_v13 }
 0x608   : > { %7475 = vrcp.f32 %v4432_v36  ;;  %v4431_v29 = vadd.f32 1.0, %v7466_v18  ;;  %v9846_v12 = vadd.f32 %v9800_v55, %v4226_v43  ;;  %v4346_v34 = vsub.f32 0.0, %v9842_v23  ;;  %v4562_v18 = vld [vmem:[#allocation4 + $0xf] sm:$0xff] }
 0x609   : > { %v7468_v2 = vpop.eup %7467  ;;  %7477 = vpow2.f32 %v4381_v20  ;;  %v6976_v8 = vpop.f32.mrf.mxu0  ;;  %v4383_v25 = vmul.f32 1.442695, %v4343_v30  ;;  %v10949_v43 = vsub.s32 2, %v10946_v13 }
 0x60a   : > { %7479 = vrcp.f32 %v4431_v29  ;;  %v4434_v21 = vadd.f32 1.0, %v7468_v2  ;;  %v9850_v40 = vadd.f32 %v6976_v8, %v9800_v55  ;;  %v4345_v59 = vsub.f32 0.0, %v9846_v12  ;;  %v4681_v8 = vld [vmem:[#allocation4 + $0x9] sm:$0xff] }
 0x60b   : > { %v7470_v50 = vpop.eup %7469  ;;  %7481 = vpow2.f32 %v4379_v22  ;;  %v4236_v62 = vpop.f32.mrf.mxu0  ;;  %v4389_v5 = vmul.f32 1.442695, %v4346_v34  ;;  %v4630_v22 = vld [vmem:[#allocation4 + $0x10] sm:$0xff]  ;;  %v9884_v29 = vrot.slane %v9854_v14, %v10949_v43 }
 0x60c   : > { %7483 = vrcp.f32 %v4434_v21  ;;  %v4433_v46 = vadd.f32 1.0, %v7470_v50  ;;  %v4348_v54 = vsub.f32 0.0, %v9850_v40  ;;  %v4387_v9 = vmul.f32 1.442695, %v4345_v59 }
 0x60d   : > { %v7472_v63 = vpop.eup %7471  ;;  %v6979_v35 = vpop.f32.mrf.mxu0  ;;  %v9858_v49 = vadd.f32 %v9800_v55, %v4236_v62  ;;  %v4598_v62 = vmul.f32 %v9867_v31, %v4562_v18 }
 0x60e   : > { %7485 = vrcp.f32 %v4433_v46  ;;  %v4436_v16 = vadd.f32 1.0, %v7472_v63  ;;  %v4393_v10 = vmul.f32 1.442695, %v4348_v54  ;;  %v9872_v32 = vadd.f32 %v6979_v35, %v9800_v55 }
 0x60f   : > { %v7474_v1 = vpop.eup %7473  ;;  %7487 = vpow2.f32 %v4385_v15  ;;  %v4246_v17 = vpop.f32.mrf.mxu0  ;;  %v4347_v51 = vsub.f32 0.0, %v9858_v49  ;;  %v4650_v46 = vmul.f32 %v9863_v61, %v4630_v22  ;;  %v4665_v35 = vadd.f32 %v4649_v53, %v4597_v57 }
 0x610   : > { %7489 = vrcp.f32 %v4436_v16  ;;  %v4435_v33 = vadd.f32 1.0, %v7474_v1  ;;  %v9876_v6 = vadd.f32 %v9800_v55, %v4246_v17  ;;  %v4350_v2 = vsub.f32 0.0, %v9872_v32 }
 0x611   : > { %7491 = vpow2.f32 %v4383_v25  ;;  %v6982_v0 = vpop.f32.mrf.mxu0  ;;  %v4391_v50 = vmul.f32 1.442695, %v4347_v51  ;;  %v4717_v16 = vmul.f32 %v9884_v29, %v4681_v8  ;;  %v10954_v8 = vsub.s32 6, %v10946_v13 }
 0x612   : > { %7493 = vrcp.f32 %v4435_v33  ;;  %v4349_v15 = vsub.f32 0.0, %v9876_v6  ;;  %v9896_v1 = vadd.f32 %v6982_v0, %v9800_v55 }
 0x613   : > { %7495 = vpow2.f32 %v4389_v5  ;;  %v4256_v34 = vpop.f32.mrf.mxu0 }
 0x614   : > { %7497 = vpow2.f32 %v4387_v9  ;;  %v9901_v33 = vadd.f32 %v9800_v55, %v4256_v34  ;;  %v4395_v60 = vmul.f32 1.442695, %v4349_v15 }
 0x615   : > { %v7476_v27 = vpop.eup %7475  ;;  %7499 = vpow2.f32 %v4393_v10  ;;  %v4666_v10 = vadd.f32 %v4650_v46, %v4598_v62  ;;  %v6985_v51 = vpop.f32.mrf.mxu0 }
 0x616   : > { %v7478_v26 = vpop.eup %7477  ;;  %v4496_v20 = vmul.f32 %v7476_v27, %v9803_v45  ;;  %7501 = vpow2.f32 %v4391_v50  ;;  %v9911_v27 = vrot.slane %v9854_v14, %v10951_v4  ;;  %v9935_v50 = vadd.f32 %v6985_v51, %v9800_v55 }
 0x617   : > { %v7480_v36 = vpop.eup %7479  ;;  %v4438_v25 = vadd.f32 1.0, %v7478_v26  ;;  %v4733_v26 = vadd.f32 %v4717_v16, %v4665_v35 }
 0x618   : > { %v7482_v30 = vpop.eup %7481  ;;  %4528 = vst.msk [vmem:[#allocation4 + $0x20] sm:$0xff] %vm3998_vm0, %v4496_v20  ;;  %v4495_v45 = vmul.f32 %v7480_v36, %v9807_v38  ;;  %v4397_v38 = vmul.f32 1.442695, %v4350_v2  ;;  %v10952_v20 = vsub.s32 5, %v10946_v13  ;;  %v4352_v36 = vsub.f32 0.0, %v9896_v1 }
 0x619   : > { %v7484_v21 = vpop.eup %7483  ;;  %v4437_v11 = vadd.f32 1.0, %v7482_v30  ;;  %7503 = vrcp.f32 %v4438_v25  ;;  %v10953_v30 = vsub.s32 7, %v10946_v13 }
 0x61a   : > { %4527 = vst.msk [vmem:[#allocation4 + $0x18] sm:$0xff] %vm3998_vm0, %v4495_v45  ;;  %v4498_v63 = vmul.f32 %v7484_v21, %v9811_v37  ;;  %v10950_v37 = vsub.s32 4, %v10946_v13  ;;  %v9918_v57 = vrot.slane %v9854_v14, %v10952_v20  ;;  %7505 = vpow2.f32 %v4397_v38 }
 0x61b   : > { %v7486_v59 = vpop.eup %7485  ;;  %7507 = vrcp.f32 %v4437_v11  ;;  %v9927_v45 = vrot.slane %v9854_v14, %v10953_v30  ;;  %v9932_v21 = vrot.slane %v9854_v14, %v10954_v8 }
 0x61c   : > { %v7488_v5 = vpop.eup %7487  ;;  %4530 = vst.msk [vmem:[#allocation4 + $0x30] sm:$0xff] %vm3998_vm0, %v4498_v63  ;;  %v4497_v54 = vmul.f32 %v7486_v59, %v9815_v52  ;;  %v9906_v17 = vrot.slane %v9854_v14, %v10950_v37  ;;  %7509 = vpow2.f32 %v4395_v60 }
 0x61d   : > { %v7490_v9 = vpop.eup %7489  ;;  %v4440_v53 = vadd.f32 1.0, %v7488_v5  ;;  %v4401_v5 = vmul.f32 1.442695, %v4352_v36 }
 0x61e   : > { %v7492_v41 = vpop.eup %7491  ;;  %4529 = vst.msk [vmem:[#allocation4 + $0x28] sm:$0xff] %vm3998_vm0, %v4497_v54  ;;  %v4500_v52 = vmul.f32 %v7490_v9, %v9819_v3  ;;  %v4351_v3 = vsub.f32 0.0, %v9901_v33 }
 0x61f   : > { %v7494_v0 = vpop.eup %7493  ;;  %v4439_v62 = vadd.f32 1.0, %v7492_v41  ;;  %v4632_v16 = vld [vmem:[#allocation4 + $0x20] sm:$0xff]  ;;  %7511 = vrcp.f32 %v4440_v53 }
 0x620   : > { %v7496_v18 = vpop.eup %7495  ;;  %4532 = vst.msk [vmem:[#allocation4 + $0x40] sm:$0xff] %vm3998_vm0, %v4500_v52  ;;  %v4499_v22 = vmul.f32 %v7494_v0, %v9823_v47  ;;  %v4399_v54 = vmul.f32 1.442695, %v4351_v3  ;;  %v4810_v51 = vmul.f32 %v9906_v17, %v4632_v16 }
 0x621   : > { %v4563_v43 = vld [vmem:[#allocation4 + $0x17] sm:$0xff]  ;;  %v7498_v47 = vpop.eup %7497  ;;  %v4564_v46 = vld [vmem:[#allocation4 + $0x1f] sm:$0xff]  ;;  %v4442_v59 = vadd.f32 1.0, %v7496_v18  ;;  %7513 = vrcp.f32 %v4439_v62 }
 0x622   : > { %v4631_v2 = vld [vmem:[#allocation4 + $0x18] sm:$0xff]  ;;  %v4751_v34 = vsel %vm8125_vm3, %v4563_v43, 0.0  ;;  %4531 = vst.msk [vmem:[#allocation4 + $0x38] sm:$0xff] %vm3998_vm0, %v4499_v22  ;;  %v7500_v35 = vpop.eup %7499  ;;  %v4441_v37 = vadd.f32 1.0, %v7498_v47  ;;  %v4772_v41 = vmul.f32 %v9911_v27, %v4564_v46  ;;  %v4266_v43 = vpop.f32.mrf.mxu0  ;;  %v4354_v47 = vsub.f32 0.0, %v9935_v50 }
 0x623   : > { %v4682_v15 = vld [vmem:[#allocation4 + $0x11] sm:$0xff]  ;;  %v4683_v63 = vld [vmem:[#allocation4 + $0x19] sm:$0xff]  ;;  %v4771_v14 = vmul.f32 %v9911_v27, %v4751_v34  ;;  %v4809_v9 = vmul.f32 %v9906_v17, %v4631_v2  ;;  %7515 = vrcp.f32 %v4442_v59  ;;  %v4444_v20 = vadd.f32 1.0, %v7500_v35  ;;  %v9948_v36 = vpop.eup %7501 }
 0x624   : > { %v4698_v13 = vsel %vm8167_vm5, %v4682_v15, 0.0  ;;  %v4863_v22 = vmul.f32 %v9918_v57, %v4683_v63  ;;  %7517 = vrcp.f32 %v4441_v37  ;;  %v9964_v35 = vadd.f32 %v9800_v55, %v4266_v43  ;;  %v4634_v48 = vld [vmem:[#allocation4 + $0x30] sm:$0xff] }
 0x625   : > { %v4718_v38 = vmul.f32 %v9884_v29, %v4698_v13  ;;  %v4787_v11 = vadd.f32 %v4771_v14, %v4733_v26  ;;  %v4565_v4 = vld [vmem:[#allocation4 + $0x27] sm:$0xff]  ;;  %7519 = vrcp.f32 %v4444_v20  ;;  %v4566_v63 = vld [vmem:[#allocation4 + $0x2f] sm:$0xff] }
 0x626   : > { %v4684_v52 = vld [vmem:[#allocation4 + $0x21] sm:$0xff]  ;;  %v7504_v2 = vpop.eup %7503  ;;  %v4897_v62 = vsel %vm8125_vm3, %v4565_v4, 0.0  ;;  %7521 = vpow2.f32 %v4401_v5  ;;  %v4654_v5 = vmul.f32 %v9863_v61, %v4634_v48 }
 0x627   : > { %v4734_v60 = vadd.f32 %v4718_v38, %v4666_v10  ;;  %v4825_v0 = vadd.f32 %v4809_v9, %v4787_v11  ;;  %v4581_v10 = vsel %vm8269_vm7, %v4565_v4, 0.0  ;;  %v4633_v3 = vld [vmem:[#allocation4 + $0x28] sm:$0xff]  ;;  %v4844_v8 = vsel %vm8167_vm5, %v4684_v52, 0.0  ;;  %v9955_v15 = vpop.eup %7505  ;;  %v9969_v38 = vld [vmem:[%s10704_s6 + $0x8] ss:$0 sm:$0xff] }
 0x628   : > { %v4864_v34 = vmul.f32 %v9918_v57, %v4844_v8  ;;  %v7508_v46 = vpop.eup %7507  ;;  %v4601_v13 = vmul.f32 %v9867_v31, %v4581_v10  ;;  %v4653_v14 = vmul.f32 %v9863_v61, %v4633_v3  ;;  %v4917_v59 = vmul.f32 %v9932_v21, %v4897_v62  ;;  %v4685_v11 = vld [vmem:[#allocation4 + $0x29] sm:$0xff] }
 0x629   : > { %v4788_v18 = vadd.f32 %v4772_v41, %v4734_v60  ;;  %v4879_v30 = vadd.f32 %v4863_v22, %v4825_v0  ;;  %v9966_v16 = vpop.eup %7509  ;;  %v4686_v37 = vld [vmem:[#allocation4 + $0x31] sm:$0xff]  ;;  %v4955_v41 = vmul.f32 %v9927_v45, %v4633_v3  ;;  %7523 = vpow2.f32 %v4399_v54 }
 0x62a   : > { %v4405_v4 = vmul.f32 1.442695, %v4354_v47  ;;  %v4602_v52 = vmul.f32 %v9867_v31, %v4566_v63  ;;  %v4669_v20 = vadd.f32 %v4653_v14, %v4601_v13  ;;  %v5009_v22 = vmul.f32 %v9969_v38, %v4685_v11  ;;  %v4567_v10 = vld [vmem:[#allocation4 + $0x37] sm:$0xff] }
 0x62b   : > { %v4826_v26 = vadd.f32 %v4810_v51, %v4788_v18  ;;  %v4933_v60 = vadd.f32 %v4917_v59, %v4879_v30  ;;  %v4918_v51 = vmul.f32 %v9932_v21, %v4566_v63  ;;  %v4956_v54 = vmul.f32 %v9927_v45, %v4634_v48  ;;  %v4635_v62 = vld [vmem:[#allocation4 + $0x38] sm:$0xff] }
 0x62c   : > { %v7512_v0 = vpop.eup %7511  ;;  %v4721_v3 = vmul.f32 %v9884_v29, %v4685_v11  ;;  %v4755_v13 = vsel %vm8269_vm7, %v4567_v10, 0.0  ;;  %v4670_v14 = vadd.f32 %v4654_v5, %v4602_v52  ;;  %7525 = vpow2.f32 %v4405_v4  ;;  %v4568_v10 = vld [vmem:[#allocation4 + $0x3f] sm:$0xff] }
 0x62d   : > { %v4880_v9 = vadd.f32 %v4864_v34, %v4826_v26  ;;  %v4971_v18 = vadd.f32 %v4955_v41, %v4933_v60  ;;  %v4702_v26 = vsel %vm8302_vm8, %v4686_v37, 0.0  ;;  %v4687_v41 = vld [vmem:[#allocation4 + $0x39] sm:$0xff]  ;;  %v4775_v48 = vmul.f32 %v9911_v27, %v4755_v13 }
 0x62e   : > { %v7514_v8 = vpop.eup %7513  ;;  %v4722_v63 = vmul.f32 %v9884_v29, %v4702_v26  ;;  %v4737_v59 = vadd.f32 %v4721_v3, %v4669_v20  ;;  %v4990_v11 = vsel %vm8167_vm5, %v4686_v37, 0.0  ;;  %v4502_v26 = vmul.f32 %v7504_v2, %v9827_v19 }
 0x62f   : > { %v4934_v30 = vadd.f32 %v4918_v51, %v4880_v9  ;;  %v5025_v47 = vadd.f32 %v5009_v22, %v4971_v18  ;;  %v5010_v22 = vmul.f32 %v9969_v38, %v4990_v11  ;;  %v4501_v52 = vmul.f32 %v7508_v46, %v9830_v44 }
 0x630   : > { %v7516_v34 = vpop.eup %7515  ;;  %v4738_v18 = vadd.f32 %v4722_v63, %v4670_v14  ;;  %v4504_v20 = vmul.f32 %v7512_v0, %v9835_v39  ;;  %v4503_v5 = vmul.f32 %v7514_v8, %v9838_v42  ;;  %4534 = vst.msk [vmem:[#allocation4 + $0x50] sm:$0xff] %vm3998_vm0, %v4502_v26  ;;  %v4636_v39 = vld [vmem:[#allocation4 + $0x40] sm:$0xff]  ;;  %v4776_v42 = vmul.f32 %v9911_v27, %v4568_v10 }
 0x631   : > { %5041 = vst.msk [vmem:[#allocation5] sm:$0xff] %vm3998_vm0, %v5025_v47  ;;  %v7518_v60 = vpop.eup %7517  ;;  %v4972_v9 = vadd.f32 %v4956_v54, %v4934_v30  ;;  %v4791_v54 = vadd.f32 %v4775_v48, %v4737_v59  ;;  %4533 = vst.msk [vmem:[#allocation4 + $0x48] sm:$0xff] %vm3998_vm0, %v4501_v52  ;;  %v4506_v25 = vmul.f32 %v7516_v34, %v9842_v23  ;;  %v4353_v23 = vsub.f32 0.0, %v9964_v35 }
 0x632   : > { %v7520_v51 = vpop.eup %7519  ;;  %4536 = vst.msk [vmem:[#allocation4 + $0x60] sm:$0xff] %vm3998_vm0, %v4504_v20  ;;  %v4505_v19 = vmul.f32 %v7518_v60, %v9846_v12  ;;  %4535 = vst.msk [vmem:[#allocation4 + $0x58] sm:$0xff] %vm3998_vm0, %v4503_v5  ;;  %v4813_v46 = vmul.f32 %v9906_v17, %v4635_v62  ;;  %v6988_v12 = vpop.f32.mrf.mxu0  ;;  %v4443_v0 = vadd.f32 1.0, %v9948_v36  ;;  %v4814_v8 = vmul.f32 %v9906_v17, %v4636_v39 }
 0x633   : > { %v5026_v4 = vadd.f32 %v5010_v22, %v4972_v9  ;;  %v7522_v30 = vpop.eup %7521  ;;  %v4508_v44 = vmul.f32 %v7520_v51, %v9850_v40  ;;  %4538 = vst.msk [vmem:[#allocation4 + $0x70] sm:$0xff] %vm3998_vm0, %v4506_v25  ;;  %v4792_v40 = vadd.f32 %v4776_v42, %v4738_v18  ;;  %v4867_v3 = vmul.f32 %v9918_v57, %v4687_v41 }
 0x634   : > { %4537 = vst.msk [vmem:[#allocation4 + $0x68] sm:$0xff] %vm3998_vm0, %v4505_v19  ;;  %v4829_v37 = vadd.f32 %v4813_v46, %v4791_v54  ;;  %v10010_v47 = vadd.f32 %v6988_v12, %v9800_v55  ;;  %v10012_v63 = vmul.f32 1.442695, %v4353_v23  ;;  %v4446_v36 = vadd.f32 1.0, %v9955_v15  ;;  %v4276_v5 = vpop.f32.mrf.mxu0 }
 0x635   : > { %5042 = vst.msk [vmem:[#allocation5 + $0x8] sm:$0xff] %vm3998_vm0, %v5026_v4  ;;  %4540 = vst.msk [vmem:[#allocation4 + $0x80] sm:$0xff] %vm3998_vm0, %v4508_v44  ;;  %v4830_v13 = vadd.f32 %v4814_v8, %v4792_v40  ;;  %7527 = vrcp.f32 %v4443_v0  ;;  %v4445_v11 = vadd.f32 1.0, %v9966_v16  ;;  %v4448_v22 = vadd.f32 1.0, %v7522_v30 }
 0x636   : > { %v7524_v2 = vpop.eup %7523  ;;  %v4883_v14 = vadd.f32 %v4867_v3, %v4829_v37  ;;  %7529 = vrcp.f32 %v4446_v36  ;;  %v6991_v12 = vpop.f32.mrf.mxu0  ;;  %v4356_v37 = vsub.f32 0.0, %v10010_v47  ;;  %v10033_v0 = vadd.f32 %v9800_v55, %v4276_v5 }
 0x637   : > { %v4447_v26 = vadd.f32 1.0, %v7524_v2  ;;  %7531 = vrcp.f32 %v4445_v11  ;;  %v4638_v30 = vld [vmem:[#allocation4 + $0x50] sm:$0xff] }
 0x638   : > { %v4569_v62 = vld [vmem:[#allocation4 + $0x47] sm:$0xff]  ;;  %v4570_v18 = vld [vmem:[#allocation4 + $0x4f] sm:$0xff]  ;;  %7533 = vrcp.f32 %v4448_v22 }
 0x639   : > { %v7526_v34 = vpop.eup %7525  ;;  %v4585_v60 = vsel %vm8401_vm11, %v4569_v62, 0.0  ;;  %v4637_v9 = vld [vmem:[#allocation4 + $0x48] sm:$0xff]  ;;  %v4901_v10 = vsel %vm8269_vm7, %v4569_v62, 0.0  ;;  %v4922_v39 = vmul.f32 %v9932_v21, %v4570_v18  ;;  %v4571_v23 = vld [vmem:[#allocation4 + $0x57] sm:$0xff]  ;;  %7535 = vrcp.f32 %v4447_v26  ;;  %v4572_v26 = vld [vmem:[#allocation4 + $0x5f] sm:$0xff] }
 0x63a   : > { %v4688_v48 = vld [vmem:[#allocation4 + $0x41] sm:$0xff]  ;;  %v4605_v41 = vmul.f32 %v9867_v31, %v4585_v60  ;;  %v4657_v51 = vmul.f32 %v9863_v61, %v4637_v9  ;;  %v4450_v52 = vadd.f32 1.0, %v7526_v34  ;;  %v4689_v4 = vld [vmem:[#allocation4 + $0x49] sm:$0xff]  ;;  %v4921_v16 = vmul.f32 %v9932_v21, %v4901_v10  ;;  %v4690_v40 = vld [vmem:[#allocation4 + $0x51] sm:$0xff] }
 0x63b   : > { %v4848_v20 = vsel %vm8302_vm8, %v4688_v48, 0.0  ;;  %v4959_v2 = vmul.f32 %v9927_v45, %v4637_v9  ;;  %v4725_v53 = vmul.f32 %v9884_v29, %v4689_v4  ;;  %v5013_v46 = vmul.f32 %v9969_v38, %v4689_v4  ;;  %v4639_v60 = vld [vmem:[#allocation4 + $0x58] sm:$0xff] }
 0x63c   : > { %v4868_v15 = vmul.f32 %v9918_v57, %v4848_v20  ;;  %v5517_v54 = vld [vmem:[#allocation5] ss:$2 sm:$0xff]  ;;  %v4673_v25 = vadd.f32 %v4657_v51, %v4605_v41  ;;  %v4937_v44 = vadd.f32 %v4921_v16, %v4883_v14  ;;  %v4960_v62 = vmul.f32 %v9927_v45, %v4638_v30 }
 0x63d   : > { %5518 = vst.msk [vmem:[#allocation6] sm:$0xff] %vm3998_vm0, %v5517_v54  ;;  %7537 = vrcp.f32 %v4450_v52  ;;  %v10039_v14 = vadd.f32 %v6991_v12, %v9800_v55  ;;  %v10959_v9 = vld [vmem:[#allocation54_spill] sm:$0xff]  ;;  %v4658_v41 = vmul.f32 %v9863_v61, %v4638_v30  ;;  %v4606_v51 = vmul.f32 %v9867_v31, %v4570_v18  ;;  %v4286_v52 = vpop.f32.mrf.mxu0  ;;  %v4692_v12 = vld [vmem:[#allocation4 + $0x61] sm:$0xff] }
 0x63e   : > { %v4884_v19 = vadd.f32 %v4868_v15, %v4830_v13  ;;  %v4975_v42 = vadd.f32 %v4959_v2, %v4937_v44  ;;  %v4741_v8 = vadd.f32 %v4725_v53, %v4673_v25  ;;  %v4759_v13 = vsel %vm8401_vm11, %v4571_v23, 0.0  ;;  %v4691_v10 = vld [vmem:[#allocation4 + $0x59] sm:$0xff]  ;;  %v4573_v23 = vld [vmem:[#allocation4 + $0x67] sm:$0xff] }
 0x63f   : > { %vm10960_vm3 = vnez %v10959_v9  ;;  %v4779_v36 = vmul.f32 %v9911_v27, %v4759_v13  ;;  %v4817_v15 = vmul.f32 %v9906_v17, %v4639_v60  ;;  %v4994_v16 = vsel %vm8302_vm8, %v4690_v40, 0.0  ;;  %v4640_v2 = vld [vmem:[#allocation4 + $0x60] sm:$0xff] }
 0x640   : > { %v4938_v3 = vadd.f32 %v4922_v39, %v4884_v19  ;;  %v5029_v34 = vadd.f32 %v5013_v46, %v4975_v42  ;;  %v4706_v48 = vsel %vm10960_vm3, %v4690_v40, 0.0  ;;  %v5014_v54 = vmul.f32 %v9969_v38, %v4994_v16  ;;  %v6994_v42 = vpop.f32.mrf.mxu0 }
 0x641   : > { %v4795_v20 = vadd.f32 %v4779_v36, %v4741_v8  ;;  %v4726_v4 = vmul.f32 %v9884_v29, %v4706_v48  ;;  %v4674_v19 = vadd.f32 %v4658_v41, %v4606_v51  ;;  %7539 = vpow2.f32 %v10012_v63  ;;  %v4641_v48 = vld [vmem:[#allocation4 + $0x68] sm:$0xff] }
 0x642   : > { %5045 = vst.msk [vmem:[#allocation5 + $0x20] sm:$0xff] %vm3998_vm0, %v5029_v34  ;;  %v7528_v11 = vpop.eup %7527  ;;  %v4976_v22 = vadd.f32 %v4960_v62, %v4938_v3  ;;  %v10054_v18 = vadd.f32 %v9800_v55, %v4286_v52  ;;  %v4355_v39 = vsub.f32 0.0, %v10033_v0  ;;  %v4871_v43 = vmul.f32 %v9918_v57, %v4691_v10  ;;  %v4296_v52 = vpop.f32.mrf.mxu0 }
 0x643   : > { %v7530_v5 = vpop.eup %7529  ;;  %v4833_v30 = vadd.f32 %v4817_v15, %v4795_v20  ;;  %v4742_v53 = vadd.f32 %v4726_v4, %v4674_v19  ;;  %v10059_v40 = vmul.f32 1.442695, %v4356_v37  ;;  %v4780_v63 = vmul.f32 %v9911_v27, %v4572_v26  ;;  %v4693_v20 = vld [vmem:[#allocation4 + $0x69] sm:$0xff] }
 0x644   : > { %v7532_v25 = vpop.eup %7531  ;;  %v5030_v44 = vadd.f32 %v5014_v54, %v4976_v22  ;;  %v4358_v8 = vsub.f32 0.0, %v10039_v14  ;;  %v4357_v3 = vsub.f32 0.0, %v10054_v18  ;;  %v10065_v13 = vadd.f32 %v6994_v42, %v9800_v55  ;;  %v10961_v22 = vld [vmem:[#allocation55_spill] sm:$0xff] }
 0x645   : > { %v7534_v46 = vpop.eup %7533  ;;  %v4887_v62 = vadd.f32 %v4871_v43, %v4833_v30  ;;  %v4796_v60 = vadd.f32 %v4780_v63, %v4742_v53  ;;  %v4905_v36 = vsel %vm8401_vm11, %v4573_v23, 0.0  ;;  %v4818_v37 = vmul.f32 %v9906_v17, %v4640_v2 }
 0x646   : > { %5046 = vst.msk [vmem:[#allocation5 + $0x28] sm:$0xff] %vm3998_vm0, %v5030_v44  ;;  %v7536_v34 = vpop.eup %7535  ;;  %v4925_v51 = vmul.f32 %v9932_v21, %v4905_v36  ;;  %vm10962_vm5 = vnez %v10961_v22  ;;  %v4963_v4 = vmul.f32 %v9927_v45, %v4641_v48  ;;  %v4661_v16 = vmul.f32 %v9863_v61, %v4641_v48  ;;  %v4574_v44 = vld [vmem:[#allocation4 + $0x6f] sm:$0xff] }
 0x647   : > { %v4589_v26 = vsel %vm10962_vm5, %v4573_v23, 0.0  ;;  %v4834_v15 = vadd.f32 %v4818_v37, %v4796_v60  ;;  %v4852_v59 = vsel %vm10960_vm3, %v4692_v12, 0.0  ;;  %v5017_v30 = vmul.f32 %v9969_v38, %v4693_v20  ;;  %v6997_v23 = vpop.f32.mrf.mxu0 }
 0x648   : > { %v4941_v10 = vadd.f32 %v4925_v51, %v4887_v62  ;;  %v4609_v2 = vmul.f32 %v9867_v31, %v4589_v26  ;;  %v4507_v53 = vmul.f32 %v7528_v11, %v9858_v49  ;;  %v4510_v42 = vmul.f32 %v7530_v5, %v9872_v32  ;;  %v4644_v51 = vld [vmem:[#allocation4 + $0x80] sm:$0xff] }
 0x649   : > { %v4509_v43 = vmul.f32 %v7532_v25, %v9876_v6  ;;  %v4512_v60 = vmul.f32 %v7534_v46, %v9896_v1  ;;  %v4511_v12 = vmul.f32 %v7536_v34, %v9901_v33  ;;  %v4872_v48 = vmul.f32 %v9918_v57, %v4852_v59  ;;  %v4642_v6 = vld [vmem:[#allocation4 + $0x70] sm:$0xff] }
 0x64a   : > { %v7538_v41 = vpop.eup %7537  ;;  %v4979_v19 = vadd.f32 %v4963_v4, %v4941_v10  ;;  %4539 = vst.msk [vmem:[#allocation4 + $0x78] sm:$0xff] %vm3998_vm0, %v4507_v53  ;;  %4542 = vst.msk [vmem:[#allocation4 + $0x90] sm:$0xff] %vm3998_vm0, %v4510_v42  ;;  %v10091_v32 = vadd.f32 %v9800_v55, %v4296_v52  ;;  %v4407_v1 = vmul.f32 1.442695, %v4355_v39  ;;  %v4360_v33 = vsub.f32 0.0, %v10065_v13 }
 0x64b   : > { %4541 = vst.msk [vmem:[#allocation4 + $0x88] sm:$0xff] %vm3998_vm0, %v4509_v43  ;;  %v4514_v49 = vmul.f32 %v7538_v41, %v9935_v50  ;;  %4544 = vst.msk [vmem:[#allocation4 + $0xa0] sm:$0xff] %vm3998_vm0, %v4512_v60  ;;  %v10098_v11 = vadd.f32 %v6997_v23, %v9800_v55  ;;  %v4610_v5 = vmul.f32 %v9867_v31, %v4574_v44  ;;  %v4413_v34 = vmul.f32 1.442695, %v4358_v8 }
 0x64c   : > { %v5033_v62 = vadd.f32 %v5017_v30, %v4979_v19  ;;  %4543 = vst.msk [vmem:[#allocation4 + $0x98] sm:$0xff] %vm3998_vm0, %v4511_v12  ;;  %v4888_v25 = vadd.f32 %v4872_v48, %v4834_v15  ;;  %v4677_v46 = vadd.f32 %v4661_v16, %v4609_v2  ;;  %v4411_v36 = vmul.f32 1.442695, %v4357_v3 }
 0x64d   : > { %v5520_v54 = vld [vmem:[#allocation5 + $0x20] ss:$2 sm:$0xff]  ;;  %4546 = vst.msk [vmem:[#allocation4 + $0xb0] sm:$0xff] %vm3998_vm0, %v4514_v49  ;;  %v4662_v41 = vmul.f32 %v9863_v61, %v4642_v6  ;;  %v4926_v37 = vmul.f32 %v9932_v21, %v4574_v44  ;;  %v4359_v39 = vsub.f32 0.0, %v10091_v32  ;;  %v4729_v26 = vmul.f32 %v9884_v29, %v4693_v20  ;;  %v10963_v44 = vld [vmem:[#allocation32_spill] sm:$0xff] }
 0x64e   : > { %5521 = vst.msk [vmem:[#allocation6 + $0x8] sm:$0xff] %vm3998_vm0, %v5520_v54  ;;  %v7540_v63 = vpop.eup %7539  ;;  %5049 = vst.msk [vmem:[#allocation5 + $0x40] sm:$0xff] %vm3998_vm0, %v5033_v62  ;;  %v4417_v55 = vmul.f32 1.442695, %v4360_v33  ;;  %v4362_v52 = vsub.f32 0.0, %v10098_v11  ;;  %v4964_v10 = vmul.f32 %v9927_v45, %v4642_v6  ;;  %v4822_v8 = vmul.f32 %v9906_v17, %v4644_v51 }
 0x64f   : > { %v4449_v50 = vadd.f32 1.0, %v7540_v63  ;;  %v4678_v4 = vadd.f32 %v4662_v41, %v4610_v5  ;;  %v4942_v15 = vadd.f32 %v4926_v37, %v4888_v25  ;;  %v4745_v54 = vadd.f32 %v4729_v26, %v4677_v46 }
 0x650   : > { %vm10964_vm7 = vnez %v10963_v44  ;;  %v4415_v23 = vmul.f32 1.442695, %v4359_v39  ;;  %v4421_v60 = vmul.f32 1.442695, %v4362_v52  ;;  %v5615_v44 = vld [vmem:[%s10965_s23 + $0x20] sm:$0xff]  ;;  %vm10968_vm11 = vnez %v10800_v7 }
 0x651   : > { %v4575_v3 = vld [vmem:[#allocation4 + $0x77] sm:$0xff]  ;;  %v4576_v59 = vld [vmem:[#allocation4 + $0x7f] sm:$0xff]  ;;  %v4980_v53 = vadd.f32 %v4964_v10, %v4942_v15  ;;  %7541 = vrcp.f32 %v4449_v50  ;;  %v5622_v10 = vld [vmem:[%s10965_s23 + $0x58] sm:$0xff] }
 0x652   : > { %v4643_v16 = vld [vmem:[#allocation4 + $0x78] sm:$0xff]  ;;  %v4763_v30 = vsel %vm10962_vm5, %v4575_v3, 0.0  ;;  %v4784_v63 = vmul.f32 %v9911_v27, %v4576_v59  ;;  %7543 = vpow2.f32 %v10059_v40  ;;  %v10120_v33 = vld [vmem:[#allocation4 + $0x87] sm:$0xff]  ;;  %v10125_v9 = vld [vmem:[#allocation4 + $0x8f] sm:$0xff]  ;;  %7005 = vmatpush3.msra.mxu1 %v5622_v10 }
 0x653   : > { %v4694_v19 = vld [vmem:[#allocation4 + $0x71] sm:$0xff]  ;;  %v4783_v2 = vmul.f32 %v9911_v27, %v4763_v30  ;;  %v4695_v42 = vld [vmem:[#allocation4 + $0x79] sm:$0xff]  ;;  %v4821_v48 = vmul.f32 %v9906_v17, %v4643_v16  ;;  %v4696_v46 = vld [vmem:[#allocation4 + $0x81] sm:$0xff]  ;;  %7545 = vpow2.f32 %v4407_v1  ;;  %v4909_v52 = vsel %vm10962_vm5, %v10120_v33, 0.0  ;;  %7006 = vmatprep.subr.mxu1 %v10786_v58 }
 0x654   : > { %v4710_v20 = vsel %vm10964_vm7, %v4694_v19, 0.0  ;;  %v4998_v6 = vsel %vm10960_vm3, %v4694_v19, 0.0  ;;  %v4875_v50 = vmul.f32 %v9918_v57, %v4695_v42  ;;  %v4803_v51 = vld [vmem:[#allocation4 + $0x88] sm:$0xff]  ;;  %7547 = vpow2.f32 %v4413_v34  ;;  %v5621_v34 = vld [vmem:[%s10965_s23 + $0x50] sm:$0xff]  ;;  %v10138_v3 = vld [vmem:[#allocation4 + $0x90] sm:$0xff] }
 0x655   : > { %v4730_v43 = vmul.f32 %v9884_v29, %v4710_v20  ;;  %v4799_v62 = vadd.f32 %v4783_v2, %v4745_v54  ;;  %v5018_v25 = vmul.f32 %v9969_v38, %v4998_v6  ;;  %v4856_v39 = vsel %vm10964_vm7, %v4696_v46, 0.0  ;;  %v5620_v59 = vld [vmem:[%s10965_s23 + $0x48] sm:$0xff]  ;;  %7007 = vmatpush3.msra.mxu1 %v5621_v34  ;;  %v5619_v2 = vld [vmem:[%s10965_s23 + $0x40] sm:$0xff] }
 0x656   : > { %v4876_v26 = vmul.f32 %v9918_v57, %v4856_v39  ;;  %v4929_v1 = vmul.f32 %v9932_v21, %v4909_v52  ;;  %7549 = vpow2.f32 %v4411_v36  ;;  %v4930_v54 = vmul.f32 %v9932_v21, %v10125_v9  ;;  %v4895_v20 = vld [vmem:[#allocation4 + $0x97] sm:$0xff]  ;;  %7008 = vmatprep.subr.mxu1 %v10786_v58  ;;  %v5614_v52 = vld [vmem:[%s10965_s23 + $0x18] sm:$0xff] }
 0x657   : > { %v4746_v12 = vadd.f32 %v4730_v43, %v4678_v4  ;;  %v4837_v5 = vadd.f32 %v4821_v48, %v4799_v62  ;;  %v5034_v41 = vadd.f32 %v5018_v25, %v4980_v53  ;;  %v4841_v4 = vld [vmem:[#allocation4 + $0x89] sm:$0xff]  ;;  %v4967_v22 = vmul.f32 %v9927_v45, %v4803_v51  ;;  %7009 = vmatpush3.msra.mxu1 %v5620_v59  ;;  %v10156_v48 = vld [vmem:[#allocation4 + $0x98] sm:$0xff]  ;;  %v5613_v59 = vld [vmem:[%s10965_s23 + $0x10] sm:$0xff] }
 0x658   : > { %7551 = vpow2.f32 %v4417_v55  ;;  %v5021_v30 = vmul.f32 %v9969_v38, %v4841_v4  ;;  %v4968_v42 = vmul.f32 %v9927_v45, %v10138_v3  ;;  %v10148_v55 = vld [vmem:[#allocation4 + $0x91] sm:$0xff]  ;;  %7010 = vmatprep.subr.mxu1 %v10786_v58  ;;  %v10164_v25 = vld [vmem:[#allocation4 + $0x99] sm:$0xff]  ;;  %v5201_v34 = vmul.f32 %v4841_v4, %v9884_v29 }
 0x659   : > { %v4800_v49 = vadd.f32 %v4784_v63, %v4746_v12  ;;  %v4891_v40 = vadd.f32 %v4875_v50, %v4837_v5  ;;  %5050 = vst.msk [vmem:[#allocation5 + $0x48] sm:$0xff] %vm3998_vm0, %v5034_v41  ;;  %7553 = vpow2.f32 %v4415_v23  ;;  %v5618_v23 = vld [vmem:[%s10965_s23 + $0x38] sm:$0xff]  ;;  %7011 = vmatpush3.msra.mxu1 %v5619_v2  ;;  %v5002_v6 = vsel %vm10964_vm7, %v10148_v55, 0.0  ;;  %v5617_v5 = vld [vmem:[%s10965_s23 + $0x30] sm:$0xff]  ;;  %v10185_v2 = vld [vmem:[%s7830_s30] ss:$0 sm:$0xff] }
 0x65a   : > { %7555 = vpow2.f32 %v4421_v60  ;;  %v10966_v60 = vld [vmem:[#allocation35_spill] sm:$0xff]  ;;  %7012 = vmatprep.subr.mxu1 %v10786_v58  ;;  %v5022_v50 = vmul.f32 %v9969_v38, %v5002_v6  ;;  %v5137_v41 = vmul.f32 %v4803_v51, %v9863_v61 }
 0x65b   : > { %v4838_v37 = vadd.f32 %v4822_v8, %v4800_v49  ;;  %v4945_v16 = vadd.f32 %v4929_v1, %v4891_v40  ;;  %vm10967_vm8 = vnez %v10966_v60  ;;  %7013 = vmatpush3.msra.mxu1 %v5618_v23 }
 0x65c   : > { %v5073_v12 = vsel %vm10967_vm8, %v10120_v33, 0.0  ;;  %7014 = vmatprep.subr.mxu1 %v10786_v58  ;;  %v5235_v1 = vsel %vm10967_vm8, %v4895_v20, 0.0 }
 0x65d   : > { %v4892_v15 = vadd.f32 %v4876_v26, %v4838_v37  ;;  %v4983_v19 = vadd.f32 %v4967_v22, %v4945_v16  ;;  %v5089_v46 = vmul.f32 %v5073_v12, %v9867_v31  ;;  %v5616_v37 = vld [vmem:[%s10965_s23 + $0x28] sm:$0xff]  ;;  %7015 = vmatpush3.msra.mxu1 %v5617_v5  ;;  %v4306_v26 = vpop.f32.mrf.mxu0 }
 0x65e   : > { %v7542_v8 = vpop.eup %7541  ;;  %7016 = vmatprep.subr.mxu1 %v10786_v58  ;;  %v10188_v20 = vadd.f32 %v10185_v2, %v4306_v26 }
 0x65f   : > { %v4946_v36 = vadd.f32 %v4930_v54, %v4892_v15  ;;  %v7544_v53 = vpop.eup %7543  ;;  %v5037_v63 = vadd.f32 %v5021_v30, %v4983_v19  ;;  %7017 = vmatpush3.msra.mxu1 %v5616_v37  ;;  %v5153_v38 = vadd.f32 %v5137_v41, %v5089_v46  ;;  %v10179_v15 = vld [vmem:[#allocation4 + $0x9f] sm:$0xff]  ;;  %v4513_v54 = vmul.f32 %v7542_v8, %v9964_v35  ;;  %v7000_v8 = vpop.f32.mrf.mxu0 }
 0x660   : > { %v5523_v43 = vld [vmem:[#allocation5 + $0x40] ss:$2 sm:$0xff]  ;;  %v7546_v49 = vpop.eup %7545  ;;  %7018 = vmatprep.subr.mxu1 %v10786_v58  ;;  %v4452_v16 = vadd.f32 1.0, %v7544_v53  ;;  %v4361_v5 = vsub.f32 0.0, %v10188_v20  ;;  %v10205_v46 = vadd.f32 %v10185_v2, %v7000_v8  ;;  %v5285_v41 = vmul.f32 %v10156_v48, %v9906_v17 }
 0x661   : > { %5524 = vst.msk [vmem:[#allocation6 + $0x10] sm:$0xff] %vm3998_vm0, %v5523_v43  ;;  %v4984_v62 = vadd.f32 %v4968_v42, %v4946_v36  ;;  %5053 = vst.msk [vmem:[#allocation5 + $0x60] sm:$0xff] %vm3998_vm0, %v5037_v63  ;;  %v7548_v33 = vpop.eup %7547  ;;  %7019 = vmatpush3.msra.mxu1 %v5615_v44  ;;  %v4451_v22 = vadd.f32 1.0, %v7546_v49  ;;  %v5217_v4 = vadd.f32 %v5201_v34, %v5153_v38  ;;  %v5612_v53 = vld [vmem:[%s10965_s23 + $0x8] sm:$0xff]  ;;  %v4950_v63 = vld [vmem:[#allocation4 + $0xa0] sm:$0xff]  ;;  %v5186_v49 = vsel %vm10968_vm11, %v10148_v55, 0.0 }
 0x662   : > { %7020 = vmatprep.subr.mxu1 %v10786_v58  ;;  %v4454_v19 = vadd.f32 1.0, %v7548_v33  ;;  %v5251_v42 = vmul.f32 %v5235_v1, %v9911_v27  ;;  %4545 = vst.msk [vmem:[#allocation4 + $0xa8] sm:$0xff] %vm3998_vm0, %v4513_v54  ;;  %7557 = vrcp.f32 %v4452_v16  ;;  %v5090_v33 = vmul.f32 %v10125_v9, %v9867_v31  ;;  %v10217_v38 = vld [vmem:[%s10704_s6 + $0x8] ss:$0 sm:$0xff]  ;;  %v10969_v34 = vld [vmem:[#allocation45_spill] sm:$0xff] }
 0x663   : > { %v5038_v40 = vadd.f32 %v5022_v50, %v4984_v62  ;;  %v7550_v39 = vpop.eup %7549  ;;  %7021 = vmatpush3.msra.mxu1 %v5614_v52  ;;  %7559 = vrcp.f32 %v4451_v22  ;;  %v5611_v62 = vld [vmem:[%s10965_s23] sm:$0xff]  ;;  %v4316_v50 = vpop.f32.mrf.mxu0  ;;  %v5138_v55 = vmul.f32 %v10138_v3, %v9863_v61  ;;  %v5202_v37 = vmul.f32 %v5186_v49, %v9884_v29 }
 0x664   : > { %v4453_v30 = vadd.f32 1.0, %v7550_v39  ;;  %7022 = vmatprep.subr.mxu1 %v10786_v58  ;;  %7561 = vrcp.f32 %v4454_v19  ;;  %v5267_v6 = vadd.f32 %v5251_v42, %v5217_v4  ;;  %v10214_v44 = vadd.f32 %v10185_v2, %v4316_v50 }
 0x665   : > { %5054 = vst.msk [vmem:[#allocation5 + $0x68] sm:$0xff] %vm3998_vm0, %v5038_v40  ;;  %v7552_v51 = vpop.eup %7551  ;;  %7023 = vmatpush3.msra.mxu1 %v5613_v59  ;;  %v5154_v39 = vadd.f32 %v5138_v55, %v5090_v33  ;;  %v5335_v48 = vmul.f32 %v10164_v25, %v9918_v57  ;;  %v4419_v52 = vmul.f32 1.442695, %v4361_v5  ;;  %v4364_v1 = vsub.f32 0.0, %v10205_v46  ;;  %v7003_v19 = vpop.f32.mrf.mxu0 }
 0x666   : > { %v7554_v10 = vpop.eup %7553  ;;  %v4456_v35 = vadd.f32 1.0, %v7552_v51  ;;  %7024 = vmatprep.subr.mxu1 %v10786_v58  ;;  %7563 = vrcp.f32 %v4453_v30  ;;  %v5301_v9 = vadd.f32 %v5285_v41, %v5267_v6  ;;  %v4363_v3 = vsub.f32 0.0, %v10214_v44 }
 0x667   : > { %v7556_v36 = vpop.eup %7555  ;;  %v4455_v43 = vadd.f32 1.0, %v7554_v10  ;;  %7025 = vmatpush3.msra.mxu1 %v5612_v53  ;;  %v5218_v51 = vadd.f32 %v5202_v37, %v5154_v39  ;;  %vm10970_vm14 = vnez %v10969_v34  ;;  %v5286_v59 = vmul.f32 %v4950_v63, %v9906_v17  ;;  %v4326_v5 = vpop.f32.mrf.mxu0 }
 0x668   : > { %v4458_v23 = vadd.f32 1.0, %v7556_v36  ;;  %7565 = vrcp.f32 %v4456_v35  ;;  %7026 = vmatprep.subr.mxu1 %v10786_v58  ;;  %v5351_v10 = vadd.f32 %v5335_v48, %v5301_v9  ;;  %v5252_v36 = vmul.f32 %v10179_v15, %v9911_v27  ;;  %v5126_v48 = vld [vmem:[#allocation4 + $0xb0] sm:$0xff] }
 0x669   : > { %7567 = vrcp.f32 %v4455_v43  ;;  %7027 = vmatpush3.msra.mxu1 %v5611_v62  ;;  %v4988_v40 = vld [vmem:[#allocation4 + $0xa1] sm:$0xff]  ;;  %v5173_v53 = vld [vmem:[#allocation4 + $0xa9] sm:$0xff]  ;;  %v10248_v37 = vadd.f32 %v10185_v2, %v7003_v19  ;;  %v5420_v19 = vmul.f32 %v5126_v48, %v9927_v45 }
 0x66a   : > { %7569 = vrcp.f32 %v4458_v23  ;;  %7031 = vmatprep.subr.mxu1 %v10786_v58  ;;  %v5061_v26 = vld [vmem:[#allocation4 + $0xa7] sm:$0xff]  ;;  %v5268_v35 = vadd.f32 %v5252_v36, %v5218_v51  ;;  %v5469_v41 = vmul.f32 %v10217_v38, %v5173_v53  ;;  %v5062_v9 = vld [vmem:[#allocation4 + $0xaf] sm:$0xff]  ;;  %v4423_v51 = vmul.f32 1.442695, %v4363_v3 }
 0x66b   : > { %v5077_v54 = vsel %vm10970_vm14, %v5061_v26, 0.0  ;;  %v5369_v16 = vsel %vm10967_vm8, %v5061_v26, 0.0  ;;  %v5125_v25 = vld [vmem:[#allocation4 + $0xa8] sm:$0xff]  ;;  %7571 = vpow2.f32 %v4419_v52  ;;  %v10253_v26 = vadd.f32 %v10185_v2, %v4326_v5 }
 0x66c   : > { %v5526_v12 = vld [vmem:[#allocation5 + $0x60] ss:$2 sm:$0xff]  ;;  %v5385_v4 = vmul.f32 %v5369_v16, %v9932_v21  ;;  %v5093_v8 = vmul.f32 %v5077_v54, %v9867_v31  ;;  %v5419_v63 = vmul.f32 %v5125_v25, %v9927_v45  ;;  %v5141_v49 = vmul.f32 %v5125_v25, %v9863_v61 }
 0x66d   : > { %5527 = vst.msk [vmem:[#allocation6 + $0x18] sm:$0xff] %vm3998_vm0, %v5526_v12  ;;  %v5302_v55 = vadd.f32 %v5286_v59, %v5268_v35  ;;  %v4366_v54 = vsub.f32 0.0, %v10248_v37  ;;  %v5094_v2 = vmul.f32 %v5062_v9, %v9867_v31  ;;  %v5205_v16 = vmul.f32 %v5173_v53, %v9884_v29 }
 0x66e   : > { %v5401_v23 = vadd.f32 %v5385_v4, %v5351_v10  ;;  %v5157_v52 = vadd.f32 %v5141_v49, %v5093_v8  ;;  %v5386_v59 = vmul.f32 %v5062_v9, %v9932_v21 }
 0x66f   : > { %v7558_v22 = vpop.eup %7557 }
 0x670   : > { %v7560_v30 = vpop.eup %7559  ;;  %v4516_v43 = vmul.f32 %v7558_v22, %v10010_v47  ;;  %v5320_v47 = vsel %vm10968_vm11, %v4988_v40, 0.0  ;;  %v5435_v33 = vadd.f32 %v5419_v63, %v5401_v23  ;;  %v4365_v22 = vsub.f32 0.0, %v10253_v26 }
 0x671   : > { %v7562_v42 = vpop.eup %7561  ;;  %v4515_v62 = vmul.f32 %v7560_v30, %v10033_v0  ;;  %v5221_v30 = vadd.f32 %v5205_v16, %v5157_v52  ;;  %v10973_v16 = vld [vmem:[#allocation49_spill] sm:$0xff] }
 0x672   : > { %v4518_v15 = vmul.f32 %v7562_v42, %v10039_v14  ;;  %4548 = vst.msk [vmem:[#allocation4 + $0xc0] sm:$0xff] %vm3998_vm0, %v4516_v43  ;;  %v5485_v40 = vadd.f32 %v5469_v41, %v5435_v33  ;;  %v10971_v42 = vld [vmem:[#allocation47_spill] sm:$0xff]  ;;  %vm10974_vm10 = vnez %v10973_v16 }
 0x673   : > { %v7564_v60 = vpop.eup %7563  ;;  %4547 = vst.msk [vmem:[#allocation4 + $0xb8] sm:$0xff] %vm3998_vm0, %v4515_v62  ;;  %vm10972_vm12 = vnez %v10971_v42  ;;  %v4429_v62 = vmul.f32 1.442695, %v4366_v54 }
 0x674   : > { %v4517_v6 = vmul.f32 %v7564_v60, %v10054_v18  ;;  %4550 = vst.msk [vmem:[#allocation4 + $0xd0] sm:$0xff] %vm3998_vm0, %v4518_v15  ;;  %5501 = vst.msk [vmem:[#allocation5 + $0x80] sm:$0xff] %vm3998_vm0, %v5485_v40 }
 0x675   : > { %v7566_v12 = vpop.eup %7565 }
 0x676   : > { %v7568_v50 = vpop.eup %7567  ;;  %v4520_v0 = vmul.f32 %v7566_v12, %v10065_v13  ;;  %4549 = vst.msk [vmem:[#allocation4 + $0xc8] sm:$0xff] %vm3998_vm0, %v4517_v6  ;;  %v5336_v13 = vmul.f32 %v5320_v47, %v9918_v57 }
 0x677   : > { %v7570_v14 = vpop.eup %7569  ;;  %v4519_v18 = vmul.f32 %v7568_v50, %v10091_v32  ;;  %v4425_v32 = vmul.f32 1.442695, %v4364_v1 }
 0x678   : > { %4552 = vst.msk [vmem:[#allocation4 + $0xe0] sm:$0xff] %vm3998_vm0, %v4520_v0  ;;  %v4522_v39 = vmul.f32 %v7570_v14, %v10098_v11  ;;  %v5352_v10 = vadd.f32 %v5336_v13, %v5302_v55  ;;  %v5142_v11 = vmul.f32 %v5126_v48, %v9863_v61  ;;  %v7572_v53 = vpop.eup %7571 }
 0x679   : > { %4551 = vst.msk [vmem:[#allocation4 + $0xd8] sm:$0xff] %vm3998_vm0, %v4519_v18  ;;  %7573 = vpow2.f32 %v4425_v32  ;;  %v5128_v47 = vld [vmem:[#allocation4 + $0xc0] sm:$0xff]  ;;  %v4457_v0 = vadd.f32 1.0, %v7572_v53 }
 0x67a   : > { %4554 = vst.msk [vmem:[#allocation4 + $0xf0] sm:$0xff] %vm3998_vm0, %v4522_v39  ;;  %v5063_v36 = vld [vmem:[#allocation4 + $0xb7] sm:$0xff]  ;;  %v5402_v4 = vadd.f32 %v5386_v59, %v5352_v10  ;;  %v5158_v43 = vadd.f32 %v5142_v11, %v5094_v2  ;;  %v5064_v23 = vld [vmem:[#allocation4 + $0xbf] sm:$0xff]  ;;  %7575 = vpow2.f32 %v4423_v51  ;;  %v5290_v9 = vmul.f32 %v5128_v47, %v9906_v17 }
 0x67b   : > { %v5127_v25 = vld [vmem:[#allocation4 + $0xb8] sm:$0xff]  ;;  %v5239_v3 = vsel %vm10970_vm14, %v5063_v36, 0.0  ;;  %v5256_v6 = vmul.f32 %v5064_v23, %v9911_v27  ;;  %7577 = vpow2.f32 %v4429_v62  ;;  %v4427_v39 = vmul.f32 1.442695, %v4365_v22 }
 0x67c   : > { %v5174_v1 = vld [vmem:[#allocation4 + $0xb1] sm:$0xff]  ;;  %v5255_v8 = vmul.f32 %v5239_v3, %v9911_v27  ;;  %v5436_v15 = vadd.f32 %v5420_v19, %v5402_v4  ;;  %v5175_v12 = vld [vmem:[#allocation4 + $0xb9] sm:$0xff]  ;;  %v5289_v5 = vmul.f32 %v5127_v25, %v9906_v17  ;;  %7579 = vrcp.f32 %v4457_v0 }
 0x67d   : > { %v5190_v35 = vsel %vm10972_vm12, %v5174_v1, 0.0  ;;  %v5454_v50 = vsel %vm10968_vm11, %v5174_v1, 0.0  ;;  %v5065_v18 = vld [vmem:[#allocation4 + $0xc7] sm:$0xff]  ;;  %v5339_v48 = vmul.f32 %v5175_v12, %v9918_v57  ;;  %7581 = vpow2.f32 %v4427_v39  ;;  %v5066_v10 = vld [vmem:[#allocation4 + $0xcf] sm:$0xff] }
 0x67e   : > { %v5206_v60 = vmul.f32 %v5190_v35, %v9884_v29  ;;  %v5271_v63 = vadd.f32 %v5255_v8, %v5221_v30  ;;  %v5470_v33 = vmul.f32 %v10217_v38, %v5454_v50  ;;  %v5176_v40 = vld [vmem:[#allocation4 + $0xc1] sm:$0xff]  ;;  %v5373_v51 = vsel %vm10970_vm14, %v5065_v18, 0.0  ;;  %v5177_v59 = vld [vmem:[#allocation4 + $0xc9] sm:$0xff] }
 0x67f   : > { %v5129_v52 = vld [vmem:[#allocation4 + $0xc8] sm:$0xff]  ;;  %v5324_v32 = vsel %vm10972_vm12, %v5176_v40, 0.0  ;;  %v5389_v11 = vmul.f32 %v5373_v51, %v9932_v21  ;;  %v5081_v22 = vsel %vm10974_vm10, %v5065_v18, 0.0  ;;  %v5390_v1 = vmul.f32 %v5066_v10, %v9932_v21  ;;  %v5130_v35 = vld [vmem:[#allocation4 + $0xd0] sm:$0xff] }
 0x680   : > { %v5222_v49 = vadd.f32 %v5206_v60, %v5158_v43  ;;  %v5305_v41 = vadd.f32 %v5289_v5, %v5271_v63  ;;  %v5486_v55 = vadd.f32 %v5470_v33, %v5436_v15  ;;  %v5340_v54 = vmul.f32 %v5324_v32, %v9918_v57  ;;  %v5067_v23 = vld [vmem:[#allocation4 + $0xd7] sm:$0xff] }
 0x681   : > { %v5423_v30 = vmul.f32 %v5129_v52, %v9927_v45  ;;  %v5473_v4 = vmul.f32 %v10217_v38, %v5177_v59  ;;  %v5097_v8 = vmul.f32 %v5081_v22, %v9867_v31  ;;  %v5145_v53 = vmul.f32 %v5129_v52, %v9863_v61  ;;  %v5178_v15 = vld [vmem:[#allocation4 + $0xd1] sm:$0xff]  ;;  %v5179_v50 = vld [vmem:[#allocation4 + $0xd9] sm:$0xff] }
 0x682   : > { %v5272_v14 = vadd.f32 %v5256_v6, %v5222_v49  ;;  %5502 = vst.msk [vmem:[#allocation5 + $0x88] sm:$0xff] %vm3998_vm0, %v5486_v55  ;;  %v5355_v13 = vadd.f32 %v5339_v48, %v5305_v41  ;;  %v5424_v62 = vmul.f32 %v5130_v35, %v9927_v45  ;;  %v5131_v49 = vld [vmem:[#allocation4 + $0xd8] sm:$0xff]  ;;  %v5098_v47 = vmul.f32 %v5066_v10, %v9867_v31  ;;  %v5540_v10 = vld [vmem:[#allocation6] sm:$0xff] }
 0x683   : > { %v5161_v12 = vadd.f32 %v5145_v53, %v5097_v8  ;;  %v5209_v33 = vmul.f32 %v5177_v59, %v9884_v29  ;;  %v5458_v41 = vsel %vm10972_vm12, %v5178_v15, 0.0  ;;  %v5146_v32 = vmul.f32 %v5130_v35, %v9863_v61 }
 0x684   : > { %v5306_v7 = vadd.f32 %v5290_v9, %v5272_v14  ;;  %v5405_v19 = vadd.f32 %v5389_v11, %v5355_v13  ;;  %v5243_v14 = vsel %vm10974_vm10, %v5067_v23, 0.0  ;;  %v5474_v55 = vmul.f32 %v10217_v38, %v5458_v41 }
 0x685   : > { %v5225_v18 = vadd.f32 %v5209_v33, %v5161_v12  ;;  %v5194_v9 = vsel %vm9073_vm9, %v5178_v15, 0.0  ;;  %v5343_v53 = vmul.f32 %v5179_v50, %v9918_v57 }
 0x686   : > { %v7574_v2 = vpop.eup %7573  ;;  %v5356_v25 = vadd.f32 %v5340_v54, %v5306_v7  ;;  %v5439_v3 = vadd.f32 %v5423_v30, %v5405_v19  ;;  %v5259_v7 = vmul.f32 %v5243_v14, %v9911_v27  ;;  %v5210_v51 = vmul.f32 %v5194_v9, %v9884_v29  ;;  %v10312_v54 = vld [vmem:[%s10975_s2] ss:$0 sm:$0xff]  ;;  %s10979_s2 = sld [smem:[#allocation22_spill]] }
 0x687   : > { %v7576_v36 = vpop.eup %7575  ;;  %v4460_v48 = vadd.f32 1.0, %v7574_v2  ;;  %v5068_v2 = vld [vmem:[#allocation4 + $0xdf] sm:$0xff]  ;;  %v10315_v22 = vadd.f32 %v10312_v54, %v5540_v10  ;;  %v5134_v10 = vld [vmem:[#allocation4 + $0xf0] sm:$0xff] }
 0x688   : > { %v5406_v43 = vadd.f32 %v5390_v1, %v5356_v25  ;;  %v5489_v60 = vadd.f32 %v5473_v4, %v5439_v3  ;;  %v7578_v63 = vpop.eup %7577  ;;  %v4459_v13 = vadd.f32 1.0, %v7576_v36  ;;  %v5275_v11 = vadd.f32 %v5259_v7, %v5225_v18  ;;  %v5132_v25 = vld [vmem:[#allocation4 + $0xe0] sm:$0xff] }
 0x689   : > { %v5529_v34 = vld [vmem:[#allocation5 + $0x80] ss:$2 sm:$0xff]  ;;  %v7580_v6 = vpop.eup %7579  ;;  %v4462_v42 = vadd.f32 1.0, %v7578_v63  ;;  %7583 = vrcp.f32 %v4460_v48  ;;  %v5293_v36 = vmul.f32 %v5131_v49, %v9906_v17  ;;  %v5260_v19 = vmul.f32 %v5068_v2, %v9911_v27 }
 0x68a   : > { %5530 = vst.msk [vmem:[#allocation6 + $0x20] sm:$0xff] %vm3998_vm0, %v5529_v34  ;;  %5505 = vst.msk [vmem:[#allocation5 + $0xa0] sm:$0xff] %vm3998_vm0, %v5489_v60  ;;  %v5440_v5 = vadd.f32 %v5424_v62, %v5406_v43  ;;  %v7582_v0 = vpop.eup %7581  ;;  %v4521_v39 = vmul.f32 %v7580_v6, %v10188_v20  ;;  %7585 = vrcp.f32 %v4459_v13  ;;  %v5162_v20 = vadd.f32 %v5146_v32, %v5098_v47  ;;  %v5541_v34 = vld [vmem:[#allocation6 + $0x8] sm:$0xff]  ;;  %v5543_v32 = vld [vmem:[#allocation6 + $0x18] sm:$0xff] }
 0x68b   : > { %v4461_v52 = vadd.f32 1.0, %v7582_v0  ;;  %7587 = vrcp.f32 %v4462_v42  ;;  %v5309_v30 = vadd.f32 %v5293_v36, %v5275_v11  ;;  %v5563_v35 = vsub.f32 0.0, %v10315_v22 }
 0x68c   : > { %v5490_v40 = vadd.f32 %v5474_v55, %v5440_v5  ;;  %4553 = vst.msk [vmem:[#allocation4 + $0xe8] sm:$0xff] %vm3998_vm0, %v4521_v39  ;;  %v5226_v59 = vadd.f32 %v5210_v51, %v5162_v20  ;;  %v5294_v43 = vmul.f32 %v5132_v25, %v9906_v17  ;;  %v10324_v60 = vadd.f32 %v10312_v54, %v5541_v34 }
 0x68d   : > { %7589 = vrcp.f32 %v4461_v52  ;;  %v5359_v23 = vadd.f32 %v5343_v53, %v5309_v30  ;;  %v5542_v52 = vld [vmem:[#allocation6 + $0x10] sm:$0xff]  ;;  %v10346_v51 = vmul.f32 1.442695, %v5563_v35  ;;  %v5428_v34 = vmul.f32 %v5134_v10, %v9927_v45 }
 0x68e   : > { %5506 = vst.msk [vmem:[#allocation5 + $0xa8] sm:$0xff] %vm3998_vm0, %v5490_v40  ;;  %v5276_v8 = vadd.f32 %v5260_v19, %v5226_v59  ;;  %v10350_v20 = vadd.f32 %v10312_v54, %v5542_v52  ;;  %v5150_v19 = vmul.f32 %v5134_v10, %v9863_v61 }
 0x68f   : > { %7591 = vpow2.f32 %v10346_v51 }
 0x690   : > { %v5310_v49 = vadd.f32 %v5294_v43, %v5276_v8 }
 0x691   : > { %v5544_v36 = vld [vmem:[#allocation6 + $0x20] sm:$0xff] }
 0x693   : > { %v5069_v1 = vld [vmem:[#allocation4 + $0xe7] sm:$0xff]  ;;  %v5070_v48 = vld [vmem:[#allocation4 + $0xef] sm:$0xff] }
 0x694   : > { %v5180_v3 = vld [vmem:[#allocation4 + $0xe1] sm:$0xff]  ;;  %v5085_v63 = vsel %vm9141_vm4, %v5069_v1, 0.0  ;;  %v5377_v15 = vsel %vm10974_vm10, %v5069_v1, 0.0  ;;  %v5181_v41 = vld [vmem:[#allocation4 + $0xe9] sm:$0xff]  ;;  %v5102_v11 = vmul.f32 %v5070_v48, %v9867_v31  ;;  %v5394_v59 = vmul.f32 %v5070_v48, %v9932_v21 }
 0x695   : > { %v5532_v4 = vld [vmem:[#allocation5 + $0xa0] ss:$2 sm:$0xff]  ;;  %v5133_v62 = vld [vmem:[#allocation4 + $0xe8] sm:$0xff]  ;;  %v5328_v6 = vsel %vm9073_vm9, %v5180_v3, 0.0  ;;  %v5393_v5 = vmul.f32 %v5377_v15, %v9932_v21  ;;  %v5101_v47 = vmul.f32 %v5085_v63, %v9867_v31  ;;  %v5477_v13 = vmul.f32 %v10217_v38, %v5181_v41 }
 0x696   : > { %5533 = vst.msk [vmem:[#allocation6 + $0x28] sm:$0xff] %vm3998_vm0, %v5532_v4  ;;  %v7584_v12 = vpop.eup %7583  ;;  %v5149_v33 = vmul.f32 %v5133_v62, %v9863_v61  ;;  %v5427_v55 = vmul.f32 %v5133_v62, %v9927_v45  ;;  %v5344_v9 = vmul.f32 %v5328_v6, %v9918_v57  ;;  %v5213_v30 = vmul.f32 %v5181_v41, %v9884_v29 }
 0x697   : > { %v7586_v50 = vpop.eup %7585  ;;  %v5409_v14 = vadd.f32 %v5393_v5, %v5359_v23  ;;  %v4524_v16 = vmul.f32 %v7584_v12, %v10205_v46  ;;  %v5564_v46 = vsub.f32 0.0, %v10324_v60  ;;  %v5565_v4 = vsub.f32 0.0, %v10350_v20 }
 0x698   : > { %v7588_v0 = vpop.eup %7587  ;;  %v4523_v40 = vmul.f32 %v7586_v50, %v10214_v44  ;;  %v5360_v44 = vadd.f32 %v5344_v9, %v5310_v49  ;;  %v5165_v2 = vadd.f32 %v5149_v33, %v5101_v47  ;;  %v5166_v35 = vadd.f32 %v5150_v19, %v5102_v11 }
 0x699   : > { %v4526_v39 = vmul.f32 %v7588_v0, %v10248_v37  ;;  %v5443_v7 = vadd.f32 %v5427_v55, %v5409_v14  ;;  %4556 = vst.msk [vmem:[#allocation4 + $0x100] sm:$0xff] %vm3998_vm0, %v4524_v16  ;;  %v10358_v25 = vmul.f32 1.442695, %v5564_v46  ;;  %v10366_v63 = vadd.f32 %v10312_v54, %v5544_v36 }
 0x69a   : > { %v7590_v18 = vpop.eup %7589  ;;  %4555 = vst.msk [vmem:[#allocation4 + $0xf8] sm:$0xff] %vm3998_vm0, %v4523_v40  ;;  %v5410_v1 = vadd.f32 %v5394_v59, %v5360_v44  ;;  %v5229_v8 = vadd.f32 %v5213_v30, %v5165_v2 }
 0x69b   : > { %v4525_v42 = vmul.f32 %v7590_v18, %v10253_v26  ;;  %4558 = vst.msk [vmem:[#allocation4 + $0x110] sm:$0xff] %vm3998_vm0, %v4526_v39  ;;  %v5493_v37 = vadd.f32 %v5477_v13, %v5443_v7  ;;  %v10353_v26 = vadd.f32 %v10312_v54, %v5543_v32  ;;  %7593 = vpow2.f32 %v10358_v25 }
 0x69c   : > { %v5444_v15 = vadd.f32 %v5428_v34, %v5410_v1 }
 0x69d   : > { %4557 = vst.msk [vmem:[#allocation4 + $0x108] sm:$0xff] %vm3998_vm0, %v4525_v42  ;;  %5509 = vst.msk [vmem:[#allocation5 + $0xc0] sm:$0xff] %vm3998_vm0, %v5493_v37  ;;  %v5566_v31 = vsub.f32 0.0, %v10353_v26  ;;  %v5545_v19 = vld [vmem:[#allocation6 + $0x28] sm:$0xff] }
 0x6a0   : > { %v5136_v3 = vld [vmem:[#allocation4 + $0x100] sm:$0xff] }
 0x6a1   : > { %v5071_v53 = vld [vmem:[#allocation4 + $0xf7] sm:$0xff]  ;;  %v5072_v43 = vld [vmem:[#allocation4 + $0xff] sm:$0xff]  ;;  %v5298_v5 = vmul.f32 %v5136_v3, %v9906_v17 }
 0x6a2   : > { %v5135_v23 = vld [vmem:[#allocation4 + $0xf8] sm:$0xff]  ;;  %v5247_v61 = vsel %vm9141_vm4, %v5071_v53, 0.0  ;;  %v5264_v33 = vmul.f32 %v5072_v43, %v9911_v27  ;;  %v5284_v48 = vld [vmem:[#allocation4 + $0x110] sm:$0xff]  ;;  %v5575_v53 = vmul.f32 1.442695, %v5565_v4 }
 0x6a3   : > { %v5182_v62 = vld [vmem:[#allocation4 + $0xf1] sm:$0xff]  ;;  %v5263_v6 = vmul.f32 %v5247_v61, %v9911_v27  ;;  %v5183_v50 = vld [vmem:[#allocation4 + $0xf9] sm:$0xff]  ;;  %v5297_v0 = vmul.f32 %v5135_v23, %v9906_v17  ;;  %v5432_v30 = vmul.f32 %v5284_v48, %v9927_v45  ;;  %v5567_v23 = vsub.f32 0.0, %v10366_v63 }
 0x6a4   : > { %v5198_v49 = vsel %vm9201_vm2, %v5182_v62, 0.0  ;;  %v5318_v16 = vld [vmem:[#allocation4 + $0x111] sm:$0xff]  ;;  %v5462_v9 = vsel %vm9073_vm9, %v5182_v62, 0.0  ;;  %v5347_v40 = vmul.f32 %v5183_v50, %v9918_v57  ;;  %v5184_v7 = vld [vmem:[#allocation4 + $0x101] sm:$0xff]  ;;  %v5317_v32 = vld [vmem:[#allocation4 + $0x109] sm:$0xff]  ;;  %7595 = vpow2.f32 %v5575_v53 }
 0x6a5   : > { %v5214_v47 = vmul.f32 %v5198_v49, %v9884_v29  ;;  %v5279_v41 = vadd.f32 %v5263_v6, %v5229_v8  ;;  %v5478_v39 = vmul.f32 %v10217_v38, %v5462_v9  ;;  %v5233_v13 = vld [vmem:[#allocation4 + $0x107] sm:$0xff]  ;;  %v5234_v52 = vld [vmem:[#allocation4 + $0x10f] sm:$0xff]  ;;  %v5466_v46 = vsel %vm9201_vm2, %v5318_v16, 0.0  ;;  %v7592_v6 = vpop.eup %7591 }
 0x6a6   : > { %v5283_v17 = vld [vmem:[#allocation4 + $0x108] sm:$0xff]  ;;  %v5332_v28 = vsel %vm9201_vm2, %v5184_v7, 0.0  ;;  %v5381_v37 = vsel %vm9141_vm4, %v5233_v13, 0.0  ;;  %v5398_v2 = vmul.f32 %v5234_v52, %v9932_v21  ;;  %v5481_v3 = vmul.f32 %v10217_v38, %v5317_v32  ;;  %vm10988_vm2 = vmmov %vm10945_vm13 }
 0x6a7   : > { %v5230_v14 = vadd.f32 %v5214_v47, %v5166_v35  ;;  %v5313_v55 = vadd.f32 %v5297_v0, %v5279_v41  ;;  %v5494_v42 = vadd.f32 %v5478_v39, %v5444_v15  ;;  %v5348_v44 = vmul.f32 %v5332_v28, %v9918_v57 }
 0x6a8   : > { %v5397_v10 = vmul.f32 %v5381_v37, %v9932_v21  ;;  %v5431_v36 = vmul.f32 %v5283_v17, %v9927_v45  ;;  %v5482_v57 = vmul.f32 %v10217_v38, %v5466_v46  ;;  %v10397_v8 = vadd.f32 %v10312_v54, %v5545_v19 }
 0x6a9   : > { %v5280_v18 = vadd.f32 %v5264_v33, %v5230_v14  ;;  %v5363_v29 = vadd.f32 %v5347_v40, %v5313_v55  ;;  %5510 = vst.msk [vmem:[#allocation5 + $0xc8] sm:$0xff] %vm3998_vm0, %v5494_v42  ;;  %v5577_v38 = vmul.f32 1.442695, %v5566_v31  ;;  %v5579_v62 = vmul.f32 1.442695, %v5567_v23 }
 0x6aa   : > { %v5568_v45 = vsub.f32 0.0, %v10397_v8  ;;  %v5587_v31 = vadd.f32 1.0, %v7592_v6  ;;  %vm5980_vm9 = vcmask 261120   ;;  %vm6158_vm4 = vcmask 523264  }
 0x6ab   : > { %v5314_v27 = vadd.f32 %v5298_v5, %v5280_v18  ;;  %v5413_v59 = vadd.f32 %v5397_v10, %v5363_v29  ;;  %7597 = vpow2.f32 %v5577_v38  ;;  %v7594_v5 = vpop.eup %7593 }
 0x6ac   : > { %v5581_v4 = vmul.f32 1.442695, %v5568_v45  ;;  %7599 = vpow2.f32 %v5579_v62  ;;  %v5588_v33 = vadd.f32 1.0, %v7594_v5 }
 0x6ad   : > { %v5364_v11 = vadd.f32 %v5348_v44, %v5314_v27  ;;  %v5447_v34 = vadd.f32 %v5431_v36, %v5413_v59 }
 0x6ae   : > { %7601 = vpow2.f32 %v5581_v4  ;;  %v5624_v4 = vld [vmem:[%s10977_s16] sm:$0xf]  ;;  %s10980_s16 = sld [smem:[#allocation24_spill]] }
 0x6af   : > { %v5414_v1 = vadd.f32 %v5398_v2, %v5364_v11  ;;  %v5497_v21 = vadd.f32 %v5481_v3, %v5447_v34 }
 0x6b0   : > { %v5535_v35 = vld [vmem:[#allocation5 + $0xc0] ss:$2 sm:$0xff] }
 0x6b1   : > { %v5448_v56 = vadd.f32 %v5432_v30, %v5414_v1  ;;  %5536 = vst.msk [vmem:[#allocation6 + $0x30] sm:$0xff] %vm3998_vm0, %v5535_v35  ;;  %5513 = vst.msk [vmem:[#allocation5 + $0xe0] sm:$0xff] %vm3998_vm0, %v5497_v21  ;;  %v7596_v50 = vpop.eup %7595 }
 0x6b2   : > { %v5589_v0 = vadd.f32 1.0, %v7596_v50 }
 0x6b3   : > { %v5498_v43 = vadd.f32 %v5482_v57, %v5448_v56 }
 0x6b5   : > { %5514 = vst.msk [vmem:[#allocation5 + $0xe8] sm:$0xff] %vm3998_vm0, %v5498_v43 }
 0x6b8   : > { %v5546_v61 = vld [vmem:[#allocation6 + $0x30] sm:$0xff]  ;;  %v7598_v41 = vpop.eup %7597 }
 0x6b9   : > { %v5561_v15 = vadd.f32 %v10312_v54, %v5546_v61  ;;  %v7600_v55 = vpop.eup %7599  ;;  %v5590_v18 = vadd.f32 1.0, %v7598_v41  ;;  %v5832_v41 = vld [vmem:[%s10979_s2 + $0x58] sm:$0xff] }
 0x6ba   : > { %v5591_v40 = vadd.f32 1.0, %v7600_v55  ;;  %v5829_v55 = vld [vmem:[%s10979_s2 + $0x40] sm:$0xff] }
 0x6bb   : > { %v5569_v12 = vsub.f32 0.0, %v5561_v15  ;;  %v7602_v9 = vpop.eup %7601 }
 0x6bc   : > { %v5538_v49 = vld [vmem:[#allocation5 + $0xe0] ss:$2 sm:$0xff]  ;;  %v5592_v48 = vadd.f32 1.0, %v7602_v9 }
 0x6bd   : > { %5539 = vst.msk [vmem:[#allocation6 + $0x38] sm:$0xff] %vm3998_vm0, %v5538_v49  ;;  %v5583_v51 = vmul.f32 1.442695, %v5569_v12  ;;  %v5623_v12 = vld [vmem:[%s10978_s22] sm:$0x1]  ;;  %v5826_v9 = vld [vmem:[%s10979_s2 + $0x28] sm:$0xff] }
 0x6be   : > { %s10981_s22 = sld [smem:[#allocation21_spill]] }
 0x6bf   : > { %7603 = vpow2.f32 %v5583_v51 }
 0x6c0   : > { %7605 = vrcp.f32 %v5587_v31 }
 0x6c1   : > { %7607 = vrcp.f32 %v5588_v33 }
 0x6c2   : > { %7609 = vrcp.f32 %v5589_v0  ;;  %v5831_v0 = vld [vmem:[%s10979_s2 + $0x50] sm:$0xff] }
 0x6c4   : > { %v5547_v25 = vld [vmem:[#allocation6 + $0x38] sm:$0xff] }
 0x6c5   : > { %v5562_v47 = vadd.f32 %v10312_v54, %v5547_v25 }
 0x6c7   : > { %v5570_v14 = vsub.f32 0.0, %v5562_v47 }
 0x6c9   : > { %v5585_v16 = vmul.f32 1.442695, %v5570_v14  ;;  %v5830_v14 = vld [vmem:[%s10979_s2 + $0x48] sm:$0xff] }
 0x6cb   : > { %7611 = vpow2.f32 %v5585_v16  ;;  %v5828_v16 = vld [vmem:[%s10979_s2 + $0x38] sm:$0xff] }
 0x6cc   : > { %v7604_v39 = vpop.eup %7603  ;;  %7613 = vrcp.f32 %v5590_v18  ;;  %v5827_v18 = vld [vmem:[%s10979_s2 + $0x30] sm:$0xff] }
 0x6cd   : > { %v5593_v7 = vadd.f32 1.0, %v7604_v39  ;;  %7615 = vrcp.f32 %v5591_v40  ;;  %v7606_v54 = vpop.eup %7605  ;;  %v5825_v40 = vld [vmem:[%s10979_s2 + $0x20] sm:$0xff]  ;;  %v5824_v39 = vld [vmem:[%s10979_s2 + $0x18] sm:$0xff] }
 0x6ce   : > { %7617 = vrcp.f32 %v5592_v48  ;;  %v7608_v13 = vpop.eup %7607  ;;  %v10412_v32 = vmul.f32 %v7606_v54, %v10315_v22  ;;  %v5823_v48 = vld [vmem:[%s10979_s2 + $0x10] sm:$0xff]  ;;  %v5821_v54 = vld [vmem:[%s10979_s2] sm:$0xff] }
 0x6cf   : > { %7619 = vrcp.f32 %v5593_v7  ;;  %v7610_v29 = vpop.eup %7609  ;;  %v10409_v52 = vmul.f32 %v7608_v13, %v10324_v60  ;;  %v5822_v7 = vld [vmem:[%s10979_s2 + $0x8] sm:$0xff]  ;;  %v5972_v13 = vld [vmem:[%s10980_s16 + $0x18] sm:$0xff]  ;;  %s10983_s2 = sld [smem:[#allocation26_spill]] }
 0x6d0   : > { %v10415_v46 = vmul.f32 %v7610_v29, %v10350_v20  ;;  %v5626_v60 = vsel %vm3998_vm0, %v10412_v32, 0.0  ;;  %v5625_v29 = vld [vmem:[%s10981_s22] sm:$0x1]  ;;  %s10982_s22 = sld [smem:[#allocation23_spill]] }
 0x6d1   : > { %v5627_v37 = vsel %vm3998_vm0, %v10409_v52, 0.0 }
 0x6d2   : > { %v5629_v22 = vsel %vm3998_vm0, %v10415_v46, 0.0  ;;  %v5628_v20 = vadd.f32 %v5627_v37, %v5626_v60 }
 0x6d4   : > { %v5630_v36 = vadd.f32 %v5629_v22, %v5628_v20 }
 0x6d8   : > { %v7612_v42 = vpop.eup %7611 }
 0x6d9   : > { %v5594_v27 = vadd.f32 1.0, %v7612_v42  ;;  %v7614_v17 = vpop.eup %7613 }
 0x6da   : > { %v7616_v28 = vpop.eup %7615  ;;  %v10418_v44 = vmul.f32 %v7614_v17, %v10353_v26 }
 0x6db   : > { %7621 = vrcp.f32 %v5594_v27  ;;  %v7618_v10 = vpop.eup %7617  ;;  %v10423_v11 = vmul.f32 %v7616_v28, %v10366_v63 }
 0x6dc   : > { %v7620_v2 = vpop.eup %7619  ;;  %v10430_v59 = vmul.f32 %v7618_v10, %v10397_v8  ;;  %v5631_v26 = vsel %vm3998_vm0, %v10418_v44, 0.0 }
 0x6dd   : > { %v10434_v19 = vmul.f32 %v7620_v2, %v5561_v15  ;;  %v5633_v63 = vsel %vm3998_vm0, %v10423_v11, 0.0  ;;  %v5632_v30 = vadd.f32 %v5631_v26, %v5630_v36 }
 0x6de   : > { %v5635_v1 = vsel %vm3998_vm0, %v10430_v59, 0.0 }
 0x6df   : > { %v5634_v34 = vadd.f32 %v5633_v63, %v5632_v30  ;;  %v5637_v3 = vsel %vm3998_vm0, %v10434_v19, 0.0  ;;  %v5971_v63 = vld [vmem:[%s10980_s16 + $0x10] sm:$0xff]  ;;  %v5970_v30 = vld [vmem:[%s10980_s16 + $0x8] sm:$0xff] }
 0x6e1   : > { %v5636_v57 = vadd.f32 %v5635_v1, %v5634_v34  ;;  %v6634_v34 = vld [vmem:[%s10982_s22] ss:$0 sm:$0xff]  ;;  %s10984_s22 = sld [smem:[#allocation28_spill]] }
 0x6e3   : > { %v5638_v8 = vadd.f32 %v5637_v3, %v5636_v57 }
 0x6e8   : > { %v7622_v35 = vpop.eup %7621 }
 0x6e9   : > { %v10442_v56 = vmul.f32 %v7622_v35, %v5562_v47 }
 0x6eb   : > { %v5639_v21 = vsel %vm3998_vm0, %v10442_v56, 0.0 }
 0x6ec   : > { %v5640_v53 = vadd.f32 %v5639_v21, %v5638_v8 }
 0x6ee   : > { %v5641_v43 = vrot.slane %v5640_v53, 4 }
 0x6f0   : > { %v5642_v23 = vadd.f32 %v5641_v43, %v5640_v53 }
 0x6f2   : > { %v5643_v45 = vrot.slane %v5642_v23, 2 }
 0x6f4   : > { %v5644_v38 = vadd.f32 %v5643_v45, %v5642_v23 }
 0x6f6   : > { %v5645_v62 = vrot.slane %v5644_v38, 1 }
 0x6f8   : > { %v5646_v61 = vadd.f32 %v5645_v62, %v5644_v38 }
 0x6fa   : > { %v5648_v15 = vmul.f32 0.015625, %v5646_v61 }
 0x6fc   : > { %7029 = vmatmul.mubr.msk.f32.vlgmr.msra.gmra.mxu1 %vm3998_vm0, %v5648_v15  ;;  %v6188_v15 = vld [vmem:[%s10983_s2 + $0x38] sm:$0xff] }
 0x6fd   : > { %7033 = vmatprep.mubr.msk.f32.mxu1 %vm10893_vm15, %v10786_v58  ;;  %7032 = vmatpush3.msk.msra.mxu1 %vm3489_vm1, %v5624_v4  ;;  %v6187_v4 = vld [vmem:[%s10983_s2 + $0x30] sm:$0xff] }
 0x6fe   : > { %7036 = vmatprep.subr.mxu1 %v5832_v41  ;;  %7093 = vmatpush3.msra.mxu0 %v6188_v15 }
 0x6ff   : > { %7094 = vmatprep.subr.mxu0 %v10786_v58 }
 0x700   : > { %7095 = vmatpush3.msra.mxu0 %v6187_v4 }
 0x701   : > { %7096 = vmatprep.subr.mxu0 %v10786_v58 }
 0x7bc   : > { %v5718_v49 = vpop.f32.mrf.mxu1 }
 0x7bd   : > { %v5719_v51 = vadd.f32 %v5718_v49, %v5623_v12  ;;  %v6186_v12 = vld [vmem:[%s10983_s2 + $0x28] sm:$0xff]  ;;  %v6185_v49 = vld [vmem:[%s10983_s2 + $0x20] sm:$0xff] }
 0x7be   : > { %v7030_v6 = vpop.f32.mrf.mxu1  ;;  %7097 = vmatpush3.msra.mxu0 %v6186_v12 }
 0x7bf   : > { %v5722_v5 = vsub.f32 0.0, %v5719_v51  ;;  %7098 = vmatprep.subr.mxu0 %v10786_v58  ;;  %v6183_v6 = vld [vmem:[%s10983_s2 + $0x10] sm:$0xff] }
 0x7c0   : > { %7099 = vmatpush3.msra.mxu0 %v6185_v49 }
 0x7c1   : > { %v5723_v50 = vmul.f32 1.442695, %v5722_v5  ;;  %7100 = vmatprep.subr.mxu0 %v10786_v58  ;;  %v6182_v5 = vld [vmem:[%s10983_s2 + $0x8] sm:$0xff] }
 0x7c3   : > { %7623 = vpow2.f32 %v5723_v50  ;;  %v6267_v50 = vld [vmem:[%s10984_s22 + $0x18] sm:$0xff] }
 0x7d0   : > { %v7624_v25 = vpop.eup %7623 }
 0x7d1   : > { %v5725_v31 = vadd.f32 1.0, %v7624_v25  ;;  %v6266_v25 = vld [vmem:[%s10984_s22 + $0x10] sm:$0xff] }
 0x7d3   : > { %7625 = vrcp.f32 %v5725_v31  ;;  %v6181_v31 = vld [vmem:[%s10983_s2] sm:$0xff] }
 0x7e0   : > { %v7626_v47 = vpop.eup %7625 }
 0x7e1   : > { %v5727_v33 = vmul.f32 %v7626_v47, %v5719_v51  ;;  %v6184_v51 = vld [vmem:[%s10983_s2 + $0x18] sm:$0xff]  ;;  %v6265_v47 = vld [vmem:[%s10984_s22 + $0x8] sm:$0xff]  ;;  %s6655_s2 = sshll.u32 %s7938_s0, 4  ;;  %s7674_s0 = scalar_lea.vmem %s7673_s14, 32 }
 0x7e2   : > { %7101 = vmatpush3.msra.mxu0 %v6184_v51  ;;  %s10561_s8 = scalar_lea.hbm %s7915_s4, %s6655_s2 }
 0x7e3   : > { %7034 = vmatmul.mubr.msk.f32.vlgmr.msra.gmra.mxu1 %vm3485_vm6, %v5727_v33  ;;  %7102 = vmatprep.subr.mxu0 %v10786_v58  ;;  %v6643_v33 = vld [vmem:[%s10985_s3] ss:$0 sm:$0xff]  ;;  %s10986_s3 = sld [smem:[#allocation27_spill]] }
 0x7e4   : > { %7037 = vmatpush3.msra.mxu1 %v5832_v41  ;;  %7103 = vmatpush3.msra.mxu0 %v6183_v6 }
 0x7e5   : > { %7038 = vmatprep.subr.mxu1 %v5831_v0  ;;  %7104 = vmatprep.subr.mxu0 %v10786_v58 }
 0x7e6   : > { %7039 = vmatpush3.msra.mxu1 %v5831_v0  ;;  %7105 = vmatpush3.msra.mxu0 %v6182_v5 }
 0x7e7   : > { %7040 = vmatprep.subr.mxu1 %v5830_v14  ;;  %7106 = vmatprep.subr.mxu0 %v10786_v58 }
 0x7e8   : > { %7041 = vmatpush3.msra.mxu1 %v5830_v14  ;;  %7107 = vmatpush3.msra.mxu0 %v6181_v31 }
 0x7e9   : > { %7042 = vmatprep.subr.mxu1 %v5829_v55  ;;  %7122 = vmatprep.subr.mxu0 %v10786_v58 }
 0x7ea   : > { %7043 = vmatpush3.msra.mxu1 %v5829_v55 }
 0x7eb   : > { %7044 = vmatprep.subr.mxu1 %v5828_v16 }
 0x7ec   : > { %7045 = vmatpush3.msra.mxu1 %v5828_v16 }
 0x7ed   : > { %7046 = vmatprep.subr.mxu1 %v5827_v18 }
 0x7ee   : > { %7047 = vmatpush3.msra.mxu1 %v5827_v18 }
 0x7ef   : > { %7048 = vmatprep.subr.mxu1 %v5826_v9 }
 0x7f0   : > { %7049 = vmatpush3.msra.mxu1 %v5826_v9 }
 0x7f1   : > { %7050 = vmatprep.subr.mxu1 %v5825_v40 }
 0x7f2   : > { %7051 = vmatpush3.msra.mxu1 %v5825_v40 }
 0x7f3   : > { %7052 = vmatprep.subr.mxu1 %v5824_v39 }
 0x7f4   : > { %7053 = vmatpush3.msra.mxu1 %v5824_v39 }
 0x7f5   : > { %7054 = vmatprep.subr.mxu1 %v5823_v48 }
 0x7f6   : > { %7055 = vmatpush3.msra.mxu1 %v5823_v48 }
 0x7f7   : > { %7056 = vmatprep.subr.mxu1 %v5822_v7 }
 0x7f8   : > { %7057 = vmatpush3.msra.mxu1 %v5822_v7 }
 0x7f9   : > { %7058 = vmatprep.subr.mxu1 %v5821_v54 }
 0x7fa   : > { %7059 = vmatpush3.msra.mxu1 %v5821_v54 }
 0x7fb   : > { %7072 = vmatprep.subr.mxu1 %v5972_v13 }
 0x8a3   : > { %v5800_v42 = vpop.f32.mrf.mxu1 }
 0x8a4   : > { %v5801_v27 = vadd.f32 %v5800_v42, %v5625_v29 }
 0x8a5   : > { %v7035_v17 = vpop.f32.mrf.mxu1 }
 0x8a6   : > { %v5804_v28 = vsub.f32 0.0, %v5801_v27 }
 0x8a8   : > { %v5805_v37 = vmul.f32 1.442695, %v5804_v28 }
 0x8aa   : > { %7627 = vpow2.f32 %v5805_v37 }
 0x8b7   : > { %v7628_v10 = vpop.eup %7627 }
 0x8b8   : > { %v5807_v60 = vadd.f32 1.0, %v7628_v10 }
 0x8ba   : > { %7629 = vrcp.f32 %v5807_v60 }
 0x8c7   : > { %v7630_v22 = vpop.eup %7629 }
 0x8c8   : > { %v5812_v2 = vrot.slane %v7630_v22, %v10895_v24 }
 0x8ca   : > { %v5813_v20 = vmul.f32 %v5812_v2, %v10412_v32  ;;  %v5814_v26 = vmul.f32 %v5812_v2, %v10409_v52  ;;  %v5815_v36 = vmul.f32 %v5812_v2, %v10415_v46  ;;  %v5816_v1 = vmul.f32 %v5812_v2, %v10418_v44  ;;  %v5969_v44 = vld [vmem:[%s10980_s16] sm:$0xff] }
 0x8cb   : > { %v5817_v24 = vmul.f32 %v5812_v2, %v10423_v11  ;;  %v5818_v52 = vmul.f32 %v5812_v2, %v10430_v59  ;;  %v5819_v32 = vmul.f32 %v5812_v2, %v10434_v19  ;;  %v5820_v46 = vmul.f32 %v5812_v2, %v10442_v56 }
 0x8cc   : > { %7060 = vmatprep.mubr.msk.f32.mxu1 %vm3998_vm0, %v5813_v20 }
 0x8cd   : > { %7061 = vmatmul.mubr.msk.f32.vlgmr.msra.gmra.mxu1 %vm3998_vm0, %v5814_v26 }
 0x8ce   : > { %7063 = vmatprep.mubr.msk.f32.mxu1 %vm3998_vm0, %v5815_v36  ;;  %7073 = vmatpush3.msra.mxu1 %v5972_v13 }
 0x8cf   : > { %7074 = vmatprep.subr.mxu1 %v5971_v63 }
 0x8d0   : > { %7075 = vmatpush3.msra.mxu1 %v5971_v63 }
 0x8d1   : > { %7064 = vmatmul.mubr.msk.f32.gmra.mxu1 %vm3998_vm0, %v5816_v1  ;;  %7076 = vmatprep.subr.mxu1 %v5970_v30 }
 0x8d2   : > { %7066 = vmatprep.mubr.msk.f32.mxu1 %vm3998_vm0, %v5817_v24  ;;  %7077 = vmatpush3.msra.mxu1 %v5970_v30 }
 0x8d3   : > { %7078 = vmatprep.subr.mxu1 %v5969_v44 }
 0x8d4   : > { %7079 = vmatpush3.msra.mxu1 %v5969_v44 }
 0x8d5   : > { %7067 = vmatmul.mubr.msk.f32.gmra.mxu1 %vm3998_vm0, %v5818_v52  ;;  %7111 = vmatprep.subr.mxu1 %v10786_v58 }
 0x8d6   : > { %7069 = vmatprep.mubr.msk.f32.mxu1 %vm3998_vm0, %v5819_v32 }
 0x8d9   : > { %7070 = vmatmul.mubr.msk.f32.gmra.mxu1 %vm3998_vm0, %v5820_v46 }
 0x98d   : > { %v7062_v11 = vpop.f32.mrf.mxu1 }
 0x98e   : > { %v5936_v35 = vadd.f32 %v7062_v11, %v6634_v34 }
 0x98f   : > { %v5930_v3 = vpop.f32.mrf.mxu1 }
 0x990   : > { %v5931_v59 = vadd.f32 %v6634_v34, %v5930_v3 }
 0x991   : > { %v7065_v19 = vpop.f32.mrf.mxu1 }
 0x992   : > { %7080 = vmatprep.mubr.msk.f32.mxu1 %vm5980_vm9, %v5931_v59  ;;  %v5946_v8 = vadd.f32 %v7065_v19, %v6634_v34 }
 0x993   : > { %v5940_v57 = vpop.f32.mrf.mxu1  ;;  %7081 = vmatmul.mubr.msk.f32.vlgmr.msra.gmra.mxu1 %vm5980_vm9, %v5936_v35 }
 0x994   : > { %v5941_v56 = vadd.f32 %v6634_v34, %v5940_v57  ;;  %7112 = vmatpush3.msra.mxu1 %v6267_v50 }
 0x995   : > { %v7068_v21 = vpop.f32.mrf.mxu1  ;;  %7113 = vmatprep.subr.mxu1 %v10786_v58 }
 0x996   : > { %7083 = vmatprep.mubr.msk.f32.mxu1 %vm5980_vm9, %v5941_v56  ;;  %v5956_v23 = vadd.f32 %v7068_v21, %v6634_v34  ;;  %7114 = vmatpush3.msra.mxu1 %v6266_v25 }
 0x997   : > { %v5950_v53 = vpop.f32.mrf.mxu1  ;;  %7084 = vmatmul.mubr.msk.f32.gmra.mxu1 %vm5980_vm9, %v5946_v8  ;;  %7115 = vmatprep.subr.mxu1 %v10786_v58 }
 0x998   : > { %v5951_v43 = vadd.f32 %v6634_v34, %v5950_v53  ;;  %7116 = vmatpush3.msra.mxu1 %v6265_v47 }
 0x999   : > { %v7071_v45 = vpop.f32.mrf.mxu1  ;;  %7117 = vmatprep.subr.mxu1 %v10786_v58 }
 0x99a   : > { %7086 = vmatprep.mubr.msk.f32.mxu1 %vm5980_vm9, %v5951_v43  ;;  %v5966_v61 = vadd.f32 %v7071_v45, %v6634_v34 }
 0x99b   : > { %v5960_v38 = vpop.f32.mrf.mxu1  ;;  %7087 = vmatmul.mubr.msk.f32.gmra.mxu1 %vm5980_vm9, %v5956_v23 }
 0x99c   : > { %v5961_v62 = vadd.f32 %v6634_v34, %v5960_v38 }
 0x99e   : > { %7089 = vmatprep.mubr.msk.f32.mxu1 %vm5980_vm9, %v5961_v62 }
 0x99f   : > { %7090 = vmatmul.mubr.msk.f32.gmra.mxu1 %vm5980_vm9, %v5966_v61 }
 0x9a0   : > { %7119 = vmatprep.mubr.msk.f32.mxu1 %vm10893_vm15, %v10786_v58 }
 0xa53   : > { %v7082_v41 = vpop.f32.mrf.mxu1 }
 0xa54   : > { %v10522_v0 = vadd.f32 %v7082_v41, %v6643_v33 }
 0xa55   : > { %v6071_v14 = vpop.f32.mrf.mxu1 }
 0xa56   : > { %v6111_v55 = vsub.f32 0.0, %v10522_v0  ;;  %v10525_v16 = vadd.f32 %v6643_v33, %v6071_v14 }
 0xa57   : > { %v7085_v18 = vpop.f32.mrf.mxu1 }
 0xa58   : > { %v6120_v9 = vmul.f32 1.442695, %v6111_v55  ;;  %v6110_v40 = vsub.f32 0.0, %v10525_v16  ;;  %v10528_v39 = vadd.f32 %v7085_v18, %v6643_v33 }
 0xa59   : > { %v6081_v48 = vpop.f32.mrf.mxu1 }
 0xa5a   : > { %7631 = vpow2.f32 %v6120_v9  ;;  %v6118_v7 = vmul.f32 1.442695, %v6110_v40  ;;  %v6113_v54 = vsub.f32 0.0, %v10528_v39  ;;  %v6082_v13 = vadd.f32 %v6643_v33, %v6081_v48 }
 0xa5b   : > { %v7088_v29 = vpop.f32.mrf.mxu1 }
 0xa5c   : > { %7633 = vpow2.f32 %v6118_v7  ;;  %v6124_v42 = vmul.f32 1.442695, %v6113_v54  ;;  %v6112_v27 = vsub.f32 0.0, %v6082_v13  ;;  %v10531_v17 = vadd.f32 %v7088_v29, %v6643_v33 }
 0xa5d   : > { %v6091_v28 = vpop.f32.mrf.mxu1 }
 0xa5e   : > { %7635 = vpow2.f32 %v6124_v42  ;;  %v6122_v37 = vmul.f32 1.442695, %v6112_v27  ;;  %v6115_v10 = vsub.f32 0.0, %v10531_v17  ;;  %v6092_v60 = vadd.f32 %v6643_v33, %v6091_v28 }
 0xa5f   : > { %v7091_v22 = vpop.f32.mrf.mxu1 }
 0xa60   : > { %7637 = vpow2.f32 %v6122_v37  ;;  %v6128_v2 = vmul.f32 1.442695, %v6115_v10  ;;  %v6114_v20 = vsub.f32 0.0, %v6092_v60  ;;  %v6107_v26 = vadd.f32 %v7091_v22, %v6643_v33 }
 0xa61   : > { %v6101_v36 = vpop.f32.mrf.mxu1 }
 0xa62   : > { %7639 = vpow2.f32 %v6128_v2  ;;  %v6126_v63 = vmul.f32 1.442695, %v6114_v20  ;;  %v6117_v30 = vsub.f32 0.0, %v6107_v26  ;;  %v6102_v1 = vadd.f32 %v6643_v33, %v6101_v36  ;;  %v6264_v20 = vld [vmem:[%s10984_s22] sm:$0xff] }
 0xa63   : > { %7118 = vmatpush3.msra.mxu1 %v6264_v20 }
 0xa64   : > { %7641 = vpow2.f32 %v6126_v63  ;;  %v6132_v24 = vmul.f32 1.442695, %v6117_v30  ;;  %v6116_v52 = vsub.f32 0.0, %v6102_v1 }
 0xa66   : > { %7643 = vpow2.f32 %v6132_v24  ;;  %v6130_v32 = vmul.f32 1.442695, %v6116_v52  ;;  %v6344_v24 = vld [vmem:[%s7905_s20 + $0x8] sm:$0xff]  ;;  %v6343_v52 = vld [vmem:[%s7905_s20] sm:$0xff] }
 0xa67   : > { %v7632_v46 = vpop.eup %7631 }
 0xa68   : > { %v6135_v44 = vadd.f32 1.0, %v7632_v46  ;;  %7645 = vpow2.f32 %v6130_v32  ;;  %v6268_v32 = vld [vmem:[%s10987_s12] sm:$0x1] }
 0xa69   : > { %v7634_v11 = vpop.eup %7633 }
 0xa6a   : > { %7647 = vrcp.f32 %v6135_v44  ;;  %v6134_v34 = vadd.f32 1.0, %v7634_v11 }
 0xa6b   : > { %v7636_v3 = vpop.eup %7635 }
 0xa6c   : > { %7649 = vrcp.f32 %v6134_v34  ;;  %v6137_v59 = vadd.f32 1.0, %v7636_v3  ;;  %v6345_v3 = vld [vmem:[%s7910_s27] sm:$0x1] }
 0xa6d   : > { %v7638_v35 = vpop.eup %7637 }
 0xa6e   : > { %7651 = vrcp.f32 %v6137_v59  ;;  %v6136_v19 = vadd.f32 1.0, %v7638_v35 }
 0xa6f   : > { %v7640_v57 = vpop.eup %7639 }
 0xa70   : > { %7653 = vrcp.f32 %v6136_v19  ;;  %v6139_v56 = vadd.f32 1.0, %v7640_v57 }
 0xa71   : > { %v7642_v8 = vpop.eup %7641 }
 0xa72   : > { %7655 = vrcp.f32 %v6139_v56  ;;  %v6138_v21 = vadd.f32 1.0, %v7642_v8 }
 0xa73   : > { %v7644_v53 = vpop.eup %7643 }
 0xa74   : > { %7657 = vrcp.f32 %v6138_v21  ;;  %v6141_v43 = vadd.f32 1.0, %v7644_v53 }
 0xa75   : > { %v7646_v23 = vpop.eup %7645 }
 0xa76   : > { %7659 = vrcp.f32 %v6141_v43  ;;  %v6140_v45 = vadd.f32 1.0, %v7646_v23 }
 0xa77   : > { %v7648_v38 = vpop.eup %7647 }
 0xa78   : > { %7661 = vrcp.f32 %v6140_v45  ;;  %v6151_v61 = vmul.f32 %v7648_v38, %v10522_v0 }
 0xa79   : > { %v7650_v62 = vpop.eup %7649 }
 0xa7a   : > { %v6150_v15 = vmul.f32 %v7650_v62, %v10525_v16  ;;  %v6160_v51 = vsel %vm6158_vm4, %v6151_v61, 0.0 }
 0xa7b   : > { %v7652_v4 = vpop.eup %7651 }
 0xa7c   : > { %v6159_v12 = vsel %vm6158_vm4, %v6150_v15, 0.0  ;;  %v6153_v6 = vmul.f32 %v7652_v4, %v10528_v39 }
 0xa7d   : > { %v7654_v49 = vpop.eup %7653  ;;  %v6161_v25 = vadd.f32 %v6160_v51, %v6159_v12 }
 0xa7e   : > { %v6152_v5 = vmul.f32 %v7654_v49, %v6082_v13  ;;  %v6164_v41 = vsel %vm6158_vm4, %v6153_v6, 0.0 }
 0xa7f   : > { %v7656_v50 = vpop.eup %7655 }
 0xa80   : > { %v6162_v31 = vsel %vm6158_vm4, %v6152_v5, 0.0  ;;  %v6155_v0 = vmul.f32 %v7656_v50, %v10531_v17 }
 0xa81   : > { %v7658_v47 = vpop.eup %7657  ;;  %v6163_v33 = vadd.f32 %v6162_v31, %v6161_v25 }
 0xa82   : > { %v6154_v14 = vmul.f32 %v7658_v47, %v6092_v60  ;;  %v6168_v39 = vsel %vm6158_vm4, %v6155_v0, 0.0 }
 0xa83   : > { %v7660_v55 = vpop.eup %7659  ;;  %v6165_v16 = vadd.f32 %v6164_v41, %v6163_v33 }
 0xa84   : > { %v6166_v18 = vsel %vm6158_vm4, %v6154_v14, 0.0  ;;  %v6157_v48 = vmul.f32 %v7660_v55, %v6107_v26  ;;  %v6189_v26 = vld [vmem:[%s10986_s3] sm:$0x1]  ;;  %s893_s3 = sand.u32 1, %s7720_s10  }
 0xa85   : > { %v7662_v9 = vpop.eup %7661  ;;  %v6167_v40 = vadd.f32 %v6166_v18, %v6165_v16  ;;  %s894_s5 = scalar_lea.vmem [#allocation7], %s893_s3  ;;  %s6422_s9 = scalar_lea.sflag [#allocation8], %s893_s3 }
 0xa86   : > { %v6156_v7 = vmul.f32 %v7662_v9, %v6102_v1  ;;  %v6172_v42 = vsel %vm6158_vm4, %v6157_v48, 0.0  ;;  %s6434_s6 = sshll.u32 %s894_s5, 4  ;;  %s6435_s6 = int_to_ptr.vmem [resolvable:$true] %s6434_s6 }
 0xa87   : > { %v6169_v54 = vadd.f32 %v6168_v39, %v6167_v40  ;;  %s7668_s12 = scalar_lea.vmem %s6435_s6, 16  ;;  %p7675_p0 = scmp.lt.s32.totalorder %s6435_s6, %s7673_s14 }
 0xa88   : > { %v6170_v13 = vsel %vm6158_vm4, %v6156_v7, 0.0  ;;  %p7669_p11 = scmp.ne.s32.totalorder %s6435_s6, %s7668_s12  ;;  %p7676_p1 = scmp.lt.s32.totalorder %s7674_s0, %s7668_s12 }
 0xa89   : > { %v6171_v29 = vadd.f32 %v6170_v13, %v6169_v54 }
 0xa8a   : > { %p7670_p12 = pnand %p7669_p11, %p7955_p5  ;;  %p7677_p2 = por %p7676_p1, %p7675_p0 }
 0xa8b   : > { %v6173_v27 = vadd.f32 %v6172_v42, %v6171_v29 }
 0xa8c   : > { %p7671_p13 = pneg %p7670_p12 }
 0xa8d   : > { %v6174_v17 = vrot.slane %v6173_v27, 4 }
 0xa8e   : > { %p7678_p3 = pnand %p7677_p2, %p7671_p13 }
 0xa8f   : > { %v6175_v28 = vadd.f32 %v6174_v17, %v6173_v27 }
 0xa91   : > { %v6176_v37 = vrot.slane %v6175_v28, 2 }
 0xa93   : > { %v6177_v10 = vadd.f32 %v6176_v37, %v6175_v28 }
 0xa95   : > { %v6178_v60 = vrot.slane %v6177_v10, 1 }
 0xa97   : > { %v6179_v22 = vadd.f32 %v6178_v60, %v6177_v10 }
 0xa99   : > { %v6180_v2 = vmul.f32 0.015625, %v6179_v22 }
 0xa9b   : > { %7109 = vmatmul.mubr.msk.f32.vlgmr.msra.gmra.mxu0 %vm6158_vm4, %v6180_v2 }
 0xa9c   : > { %7126 = vmatprep.mubr.msk.f32.mxu0 %vm10893_vm15, %v10786_v58  ;;  %7123 = vmatpush3.msra.mxu0 %v6344_v24  ;;  %vm6419_vm15 = vcmask 49152  }
 0xa9d   : > { %7124 = vmatprep.subr.mxu0 %v10786_v58 }
 0xa9e   : > { %7125 = vmatpush3.msra.mxu0 %v6343_v52 }
 0xb5b   : > { %v6259_v36 = vpop.f32.mrf.mxu0 }
 0xb5c   : > { %v6260_v63 = vadd.f32 %v6259_v36, %v6189_v26 }
 0xb5d   : > { %v7110_v30 = vpop.f32.mrf.mxu0 }
 0xb5e   : > { %v6263_v1 = vmax.f32 %v6260_v63, 0.0 }
 0xb60   : > { %7120 = vmatmul.mubr.msk.f32.vlgmr.msra.gmra.mxu1 %vm5980_vm9, %v6263_v1 }
 0xc20   : > { %v6338_v46 = vpop.f32.mrf.mxu1 }
 0xc21   : > { %v6339_v44 = vadd.f32 %v6338_v46, %v6268_v32 }
 0xc22   : > { %v7121_v11 = vpop.f32.mrf.mxu1 }
 0xc23   : > { %v6342_v34 = vmax.f32 %v6339_v44, 0.0 }
 0xc25   : > { %7127 = vmatmul.mubr.msk.f32.vlgmr.msra.gmra.mxu0 %vm10988_vm2, %v6342_v34 }
 0xce5   : > { %v6415_v59 = vpop.f32.mrf.mxu0 }
 0xce6   : > { %v6416_v35 = vadd.f32 %v6415_v59, %v6345_v3 }
 0xce7   : > { %v7128_v58 = vpop.f32.mrf.mxu0 }
 0xce8   : > { %6420 = vst.msk [vmem:[%s894_s5] sm:$0x1] %vm6419_vm15, %v6416_v35 }
 0xce9   : > { %7681 = shalt.err (!%p7678_p3)
}
 0xcea   : > { %s7682_s5 = scalar_lea.hbm %s10561_s8, 16  ;;  %s7686_s2 = scalar_lea.hbm %s7915_s4, 32 }
 0xceb   : > { %p7683_p4 = scmp.ne.s32.totalorder %s10561_s8, %s7682_s5  ;;  %p7687_p9 = scmp.lt.s32.totalorder %s10561_s8, %s7915_s4 }
 0xcec   : > { %p7688_p10 = scmp.lt.s32.totalorder %s7686_s2, %s7682_s5 }
 0xced   : > { %p7684_p7 = pnand %p7683_p4, %p7955_p5 }
 0xcee   : > { %p7689_p11 = por %p7688_p10, %p7687_p9 }
 0xcef   : > { %p7685_p8 = pneg %p7684_p7 }
 0xcf1   : > { %p7690_p12 = pnand %p7689_p11, %p7685_p8 }
 0xcf3   : > { %7693 = shalt.err (!%p7690_p12)
}
 0xcf4   : > { %7129 = dma.vmem_to_hbm [thread:$0]  (%p7955_p5), %s6435_s6, 16, %s10561_s8, %s6422_s9  }
 0xcf5 PF: > { %p7135_p13 = scmp.ge.s32.totalorder %s7728_s15, 2  ;;  %s6446_s13 = sand.u32 1, %s7716_s7  }
 0xcf6   : > { %s6447_s14 = scalar_lea.sflag [#allocation8], %s6446_s13 }
 0xcf7   : > { %p7132_p0 = pnand %p7135_p13, %p7959_p6 }
 0xcf9   : > { %p7133_p1 = pneg %p7132_p0 }
 0xcfb   : > { %7711 = dma.done.wait (%p7133_p1), %s6447_s14, 16  }
 0xcfc   : > { %7713 = vsyncadd (%p7133_p1), %s6447_s14, 4294967280  ;;  %p69_p2 = scmp.ge.s32.totalorder %s7942_s18, 4   ;;  %s10989_s7 = smov %s7720_s10 }
 0xcfd   : > { %s10990_s10 = smov %s7724_s11  ;;  %s10991_s11 = smov %s7953_s26 }
 0xcfe   : > { %s10992_s15 = smov %s7942_s18  ;;  %71 = sbr.rel (!%p69_p2) target bundleno = 61 (0x3d), region = 207 }
 0xd03   :  { %6451 = vsyncpa [#allocation8], 1 }
 0xd04   :  { %6453 = vsyncpa [#allocation8 + $0x1], 1 }

</bundles_post_ra>
